<compile_context>
chip_gen: v5e
topology: v5e:2x2
jax: 0.10.0
libtpu: 0.0.40
codegen_flags: <defaults>
</compile_context>

<pallas_src>
import jax
import jax.numpy as jnp
from jax.experimental import pallas as pl
from jax.experimental.pallas import tpu as pltpu

# ----------------------------- model dimensions -----------------------------
BASE_FEATURES = 2048          # resnet50 fc.in_features
NUM_INITIAL_FEATURES = 8      # configurable in the module; small test value
NUM_FEATURES = 20             # num_features=20 in comfort()
N_BATCH = 2
HF = WF = 4                   # spatial extent of the stage-4 feature map
TILE_M = 8                    # batch tile (sublane aligned); raise for larger batches
TILE_K = 512                  # K-chunk of the streamed first-layer weights
OUT_LANES = 128               # lane-dense packed output width


def _vpu_small_k_matmul(x, w):
    """x: (M, K) f32, w: (K, N) f32 with tiny K (8 / 20): unrolled VPU broadcast-MAC."""
    acc = x[:, 0:1] * w[0:1, :]
    for k in range(1, w.shape[0]):
        acc = acc + x[:, k:k + 1] * w[k:k + 1, :]
    return acc


# ------------------------------- Pallas kernel ------------------------------
def two_stage_kernel(
    base_ref, init_ref, w1b_ref, f1b_ref,              # streamed: base K-chunk + big weights
    w1i_ref, b1_ref, w2_ref, b2_ref, w3_ref, b3_ref, w4_ref, b4_ref,   # task_layers residents
    f1i_ref, f1f_ref, c1_ref, f2_ref, c2_ref, f3_ref, c3_ref,          # final_layer residents
    out_ref,                                            # packed (TILE_M, 128) output
    h1_acc, g1_acc,                                     # VMEM f32 accumulators
):
    f32 = jnp.float32
    bf16 = jnp.bfloat16
    k = pl.program_id(1)

    @pl.when(k == 0)
    def _():
        h1_acc[...] = jnp.zeros_like(h1_acc)
        g1_acc[...] = jnp.zeros_like(g1_acc)

    # Streamed K-chunk of the pooled backbone features; bf16 operands hit the MXU's
    # native path, accumulation stays f32.
    base_k = base_ref[...].astype(bf16)                               # (TILE_M, TILE_K)
    h1_acc[...] += jnp.dot(base_k, w1b_ref[...], preferred_element_type=f32)
    g1_acc[...] += jnp.dot(base_k, f1b_ref[...], preferred_element_type=f32)

    @pl.when(k == pl.num_programs(1) - 1)
    def _():
        init = init_ref[...]                                          # (TILE_M, 8) f32

        # torch.cat((base, init), 1) @ W1  ==  base @ W1_base + init @ W1_init
        h = h1_acc[...] + _vpu_small_k_matmul(init, w1i_ref[...].astype(f32)) + b1_ref[...]
        h = jnp.maximum(h, 0.0)                                       # ReLU (Dropout = identity)
        h = jnp.maximum(jnp.dot(h.astype(bf16), w2_ref[...], preferred_element_type=f32)
                        + b2_ref[...], 0.0)
        h = jnp.maximum(jnp.dot(h.astype(bf16), w3_ref[...], preferred_element_type=f32)
                        + b3_ref[...], 0.0)
        # w4/b4 are zero-padded to 128 output lanes: real features in cols [0, 20).
        features = jnp.dot(h.astype(bf16), w4_ref[...], preferred_element_type=f32) + b4_ref[...]

        # torch.cat((base, init, features), 1) @ F1  ==  split matmuls
        g = (g1_acc[...]
             + _vpu_small_k_matmul(init, f1i_ref[...].astype(f32))
             + _vpu_small_k_matmul(features[:, :NUM_FEATURES], f1f_ref[...].astype(f32))
             + c1_ref[...])
        g = jnp.maximum(g, 0.0)
        g = jnp.maximum(jnp.dot(g.astype(bf16), f2_ref[...], preferred_element_type=f32)
                        + c2_ref[...], 0.0)
        # f3/c3 are zero-padded to 128 lanes with the comfort column at index NUM_FEATURES.
        comfort = jnp.dot(g.astype(bf16), f3_ref[...], preferred_element_type=f32) + c3_ref[...]

        # Single lane-dense store: cols [0,20) = features, col 20 = comfort, rest zero.
        out_ref[...] = features + comfort


# --------------------------------- wrapper ----------------------------------
def two_stage_forward(fmap_nchw, initial_features, params):
    """fmap_nchw: (N, 2048, Hf, Wf) backbone pre-pool feature map (NCHW, torch convention)."""
    f32 = jnp.float32
    n = fmap_nchw.shape[0]

    # ResNet50 global average pool hoisted out of the kernel (no transpose round-trip,
    # 16x smaller per-tile feature DMA, no in-kernel XLU reduction).
    base = jnp.mean(fmap_nchw.astype(f32), axis=(2, 3))               # (N, 2048)
    init = initial_features.astype(f32)

    n_pad = ((n + TILE_M - 1) // TILE_M) * TILE_M
    pad = n_pad - n
    if pad:
        base = jnp.pad(base, ((0, pad), (0, 0)))
        init = jnp.pad(init, ((0, pad), (0, 0)))
    num_tiles = n_pad // TILE_M
    assert BASE_FEATURES % TILE_K == 0
    num_k = BASE_FEATURES // TILE_K

    def resident(arr):
        # Constant block index + single buffer: weight DMA'd once, VMEM-resident.
        return pl.BlockSpec(arr.shape, lambda i, k: (0, 0),
                            pipeline_mode=pl.Buffered(1))

    p = params
    in_specs = [
        pl.BlockSpec((TILE_M, TILE_K), lambda i, k: (i, k)),                   # base K-chunk
        pl.BlockSpec((TILE_M, NUM_INITIAL_FEATURES), lambda i, k: (i, 0)),     # init
        pl.BlockSpec((TILE_K, 1024), lambda i, k: (k, 0)),                     # w1b (streamed)
        pl.BlockSpec((TILE_K, 512), lambda i, k: (k, 0)),                      # f1b (streamed)
        resident(p['w1i']), resident(p['b1']),
        resident(p['w2']), resident(p['b2']),
        resident(p['w3']), resident(p['b3']),
        resident(p['w4']), resident(p['b4']),
        resident(p['f1i']), resident(p['f1f']), resident(p['c1']),
        resident(p['f2']), resident(p['c2']),
        resident(p['f3']), resident(p['c3']),
    ]
    out_spec = pl.BlockSpec((TILE_M, OUT_LANES), lambda i, k: (i, 0))

    out = pl.pallas_call(
        two_stage_kernel,
        out_shape=jax.ShapeDtypeStruct((n_pad, OUT_LANES), f32),
        grid=(num_tiles, num_k),
        in_specs=in_specs,
        out_specs=out_spec,
        scratch_shapes=[pltpu.VMEM((TILE_M, 1024), f32),
                        pltpu.VMEM((TILE_M, 512), f32)],
        compiler_params=pltpu.CompilerParams(
            dimension_semantics=("parallel", "arbitrary"),   # batch tiles parallel, K-chunks reduce
            vmem_limit_bytes=24 * 1024 * 1024,
        ),
    )(base, init, p['w1b'], p['f1b'],
      p['w1i'], p['b1'], p['w2'], p['b2'], p['w3'], p['b3'], p['w4'], p['b4'],
      p['f1i'], p['f1f'], p['c1'], p['f2'], p['c2'], p['f3'], p['c3'])

    feats = out[:n, :NUM_FEATURES]
    comfort = out[:n, NUM_FEATURES:NUM_FEATURES + 1]
    return feats, comfort


# --------------------------- deterministic params ----------------------------
def make_params(key):
    def lin(k, fan_in, fan_out):
        kw, kb = jax.random.split(k)
        bound = 1.0 / jnp.sqrt(jnp.float32(fan_in))
        w = jax.random.uniform(kw, (fan_in, fan_out), jnp.float32, -bound, bound)
        b = jax.random.uniform(kb, (1, fan_out), jnp.float32, -bound, bound)
        return w, b

    ks = jax.random.split(key, 7)
    # task_layers (concat weight split into base / initial parts)
    w1, b1 = lin(ks[0], BASE_FEATURES + NUM_INITIAL_FEATURES, 1024)
    w1b, w1i = w1[:BASE_FEATURES], w1[BASE_FEATURES:]
    w2, b2 = lin(ks[1], 1024, 512)
    w3, b3 = lin(ks[2], 512, 256)
    w4, b4 = lin(ks[3], 256, NUM_FEATURES)
    # final_layer (concat weight split into base / initial / features parts)
    f1, c1 = lin(ks[4], BASE_FEATURES + NUM_INITIAL_FEATURES + NUM_FEATURES, 512)
    f1b = f1[:BASE_FEATURES]
    f1i = f1[BASE_FEATURES:BASE_FEATURES + NUM_INITIAL_FEATURES]
    f1f = f1[BASE_FEATURES + NUM_INITIAL_FEATURES:]
    f2, c2 = lin(ks[5], 512, 256)
    f3, c3 = lin(ks[6], 256, 1)
    # NOTE: self.w = nn.Parameter(0.5) is unused in forward(); omitted.

    # Lane-dense output packing: features -> cols [0,20), comfort -> col 20 of one
    # 128-wide output block (full-lane vst instead of masked partial stores).
    w4_pad = jnp.zeros((256, OUT_LANES), jnp.float32).at[:, :NUM_FEATURES].set(w4)
    b4_pad = jnp.zeros((1, OUT_LANES), jnp.float32).at[:, :NUM_FEATURES].set(b4)
    f3_pad = jnp.zeros((256, OUT_LANES), jnp.float32).at[:, NUM_FEATURES:NUM_FEATURES + 1].set(f3)
    c3_pad = jnp.zeros((1, OUT_LANES), jnp.float32).at[:, NUM_FEATURES:NUM_FEATURES + 1].set(c3)

    bf16 = jnp.bfloat16
    # Weight matrices stored and fed to the MXU in bf16 (kernel is HBM-bandwidth bound);
    # biases stay f32 (tiny, added after the f32 accumulation).
    return dict(
        w1b=w1b.astype(bf16), f1b=f1b.astype(bf16),
        w1i=w1i.astype(bf16), b1=b1,
        w2=w2.astype(bf16), b2=b2,
        w3=w3.astype(bf16), b3=b3,
        w4=w4_pad.astype(bf16), b4=b4_pad,
        f1i=f1i.astype(bf16), f1f=f1f.astype(bf16), c1=c1,
        f2=f2.astype(bf16), c2=c2,
        f3=f3_pad.astype(bf16), c3=c3_pad,
    )


def reference_forward(fmap_nchw, init, params):
    f32 = jnp.float32
    p = {k: v.astype(f32) for k, v in params.items()}
    w4 = p['w4'][:, :NUM_FEATURES]
    b4 = p['b4'][:, :NUM_FEATURES]
    f3 = p['f3'][:, NUM_FEATURES:NUM_FEATURES + 1]
    c3 = p['c3'][:, NUM_FEATURES:NUM_FEATURES + 1]

    base = jnp.mean(fmap_nchw.astype(f32), axis=(2, 3))           # global avg pool (NCHW)
    combined = jnp.concatenate([base, init.astype(f32)], axis=1)
    h = jnp.maximum(combined @ jnp.concatenate([p['w1b'], p['w1i']], 0) + p['b1'], 0.0)
    h = jnp.maximum(h @ p['w2'] + p['b2'], 0.0)
    h = jnp.maximum(h @ p['w3'] + p['b3'], 0.0)
    features = h @ w4 + b4
    combined2 = jnp.concatenate([base, init.astype(f32), features], axis=1)
    g = jnp.maximum(combined2 @ jnp.concatenate([p['f1b'], p['f1i'], p['f1f']], 0) + p['c1'], 0.0)
    g = jnp.maximum(g @ p['f2'] + p['c2'], 0.0)
    comfort = g @ f3 + c3
    return features, comfort


# ------------------------------------ main -----------------------------------
if __name__ == "__main__":
    key = jax.random.PRNGKey(0)
    k_fmap, k_init, k_params = jax.random.split(key, 3)

    # "x": backbone pre-avgpool feature map, NCHW per torch convention.
    x_fmap = jax.random.normal(k_fmap, (N_BATCH, BASE_FEATURES, HF, WF), jnp.float32)
    initial_features = jax.random.normal(k_init, (N_BATCH, NUM_INITIAL_FEATURES), jnp.float32)
    params = make_params(k_params)

    feats, comfort = two_stage_forward(x_fmap, initial_features, params)
    jax.block_until_ready((feats, comfort))

    ref_feats, ref_comfort = reference_forward(x_fmap, initial_features, params)
    assert feats.shape == (N_BATCH, NUM_FEATURES) and comfort.shape == (N_BATCH, 1)
    # bf16 MXU operands (weights + activation casts) vs. the f32-activation reference
    # add ~1e-3 relative error per layer; 5e-3 covers the 4-layer stack.
    assert jnp.allclose(feats, ref_feats, atol=5e-3, rtol=5e-3)
    assert jnp.allclose(comfort, ref_comfort, atol=5e-3, rtol=5e-3)

    print("KERNEL_OK")
</pallas_src>

<mosaic_0001>
module attributes {stable_mosaic.version = 11 : i64} {
  func.func @two_stage_kernel(%arg0: i32, %arg1: i32, %arg2: memref<8x512xf32, #tpu.memory_space<vmem>>, %arg3: memref<8x8xf32, #tpu.memory_space<vmem>>, %arg4: memref<512x1024xbf16, #tpu.memory_space<vmem>>, %arg5: memref<512x512xbf16, #tpu.memory_space<vmem>>, %arg6: memref<8x1024xbf16, #tpu.memory_space<vmem>>, %arg7: memref<1x1024xf32, #tpu.memory_space<vmem>>, %arg8: memref<1024x512xbf16, #tpu.memory_space<vmem>>, %arg9: memref<1x512xf32, #tpu.memory_space<vmem>>, %arg10: memref<512x256xbf16, #tpu.memory_space<vmem>>, %arg11: memref<1x256xf32, #tpu.memory_space<vmem>>, %arg12: memref<256x128xbf16, #tpu.memory_space<vmem>>, %arg13: memref<1x128xf32, #tpu.memory_space<vmem>>, %arg14: memref<8x512xbf16, #tpu.memory_space<vmem>>, %arg15: memref<20x512xbf16, #tpu.memory_space<vmem>>, %arg16: memref<1x512xf32, #tpu.memory_space<vmem>>, %arg17: memref<512x256xbf16, #tpu.memory_space<vmem>>, %arg18: memref<1x256xf32, #tpu.memory_space<vmem>>, %arg19: memref<256x128xbf16, #tpu.memory_space<vmem>>, %arg20: memref<1x128xf32, #tpu.memory_space<vmem>>, %arg21: memref<8x128xf32, #tpu.memory_space<vmem>>, %arg22: memref<8x1024xf32, #tpu.memory_space<vmem>>, %arg23: memref<8x512xf32, #tpu.memory_space<vmem>>) attributes {dimension_semantics = [#tpu.dimension_semantics<parallel>, #tpu.dimension_semantics<arbitrary>], iteration_bounds = array<i64: 1, 4>, scalar_prefetch = 0 : i64, scratch_operands = 2 : i64, tpu.core_type = #tpu.core_type<tc>, window_params = [{transform_indices = @transform_0, window_bounds = array<i64: 8, 512>}, {transform_indices = @transform_1, window_bounds = array<i64: 8, 8>}, {transform_indices = @transform_2, window_bounds = array<i64: 512, 1024>}, {transform_indices = @transform_3, window_bounds = array<i64: 512, 512>}, {pipeline_mode = #tpu.pipeline_mode<synchronous>, transform_indices = @transform_4, window_bounds = array<i64: 8, 1024>}, {pipeline_mode = #tpu.pipeline_mode<synchronous>, transform_indices = @transform_5, window_bounds = array<i64: 1, 1024>}, {pipeline_mode = #tpu.pipeline_mode<synchronous>, transform_indices = @transform_6, window_bounds = array<i64: 1024, 512>}, {pipeline_mode = #tpu.pipeline_mode<synchronous>, transform_indices = @transform_7, window_bounds = array<i64: 1, 512>}, {pipeline_mode = #tpu.pipeline_mode<synchronous>, transform_indices = @transform_8, window_bounds = array<i64: 512, 256>}, {pipeline_mode = #tpu.pipeline_mode<synchronous>, transform_indices = @transform_9, window_bounds = array<i64: 1, 256>}, {pipeline_mode = #tpu.pipeline_mode<synchronous>, transform_indices = @transform_10, window_bounds = array<i64: 256, 128>}, {pipeline_mode = #tpu.pipeline_mode<synchronous>, transform_indices = @transform_11, window_bounds = array<i64: 1, 128>}, {pipeline_mode = #tpu.pipeline_mode<synchronous>, transform_indices = @transform_12, window_bounds = array<i64: 8, 512>}, {pipeline_mode = #tpu.pipeline_mode<synchronous>, transform_indices = @transform_13, window_bounds = array<i64: 20, 512>}, {pipeline_mode = #tpu.pipeline_mode<synchronous>, transform_indices = @transform_14, window_bounds = array<i64: 1, 512>}, {pipeline_mode = #tpu.pipeline_mode<synchronous>, transform_indices = @transform_15, window_bounds = array<i64: 512, 256>}, {pipeline_mode = #tpu.pipeline_mode<synchronous>, transform_indices = @transform_16, window_bounds = array<i64: 1, 256>}, {pipeline_mode = #tpu.pipeline_mode<synchronous>, transform_indices = @transform_17, window_bounds = array<i64: 256, 128>}, {pipeline_mode = #tpu.pipeline_mode<synchronous>, transform_indices = @transform_18, window_bounds = array<i64: 1, 128>}, {transform_indices = @transform_19, window_bounds = array<i64: 8, 128>}]} {
    %c0_i32 = arith.constant 0 : i32
    %0 = arith.cmpi eq, %arg1, %c0_i32 : i32
    %1 = arith.extui %0 : i1 to i32
    %c0_i32_0 = arith.constant 0 : i32
    %2 = arith.cmpi ne, %1, %c0_i32_0 : i32
    scf.if %2 {
      %cst_16 = arith.constant 0.000000e+00 : f32
      %18 = vector.broadcast %cst_16 : f32 to vector<8x1024xf32>
      %c0_17 = arith.constant 0 : index
      %c0_18 = arith.constant 0 : index
      %19 = vector.load %arg22[%c0_17, %c0_18] : memref<8x1024xf32, #tpu.memory_space<vmem>>, vector<8x1024xf32>
      tpu.vector_store %arg22[%c0_17, %c0_18], %18 {strides = array<i32>} : memref<8x1024xf32, #tpu.memory_space<vmem>>, vector<8x1024xf32>,
      %cst_19 = arith.constant 0.000000e+00 : f32
      %20 = vector.broadcast %cst_19 : f32 to vector<8x512xf32>
      %c0_20 = arith.constant 0 : index
      %c0_21 = arith.constant 0 : index
      %21 = vector.load %arg23[%c0_20, %c0_21] : memref<8x512xf32, #tpu.memory_space<vmem>>, vector<8x512xf32>
      tpu.vector_store %arg23[%c0_20, %c0_21], %20 {strides = array<i32>} : memref<8x512xf32, #tpu.memory_space<vmem>>, vector<8x512xf32>,
    } else {
    }
    %c0 = arith.constant 0 : index
    %c0_1 = arith.constant 0 : index
    %3 = vector.load %arg2[%c0, %c0_1] : memref<8x512xf32, #tpu.memory_space<vmem>>, vector<8x512xf32>
    %4 = arith.truncf %3 : vector<8x512xf32> to vector<8x512xbf16>
    %c0_2 = arith.constant 0 : index
    %c0_3 = arith.constant 0 : index
    %5 = vector.load %arg22[%c0_2, %c0_3] : memref<8x1024xf32, #tpu.memory_space<vmem>>, vector<8x1024xf32>
    %c0_4 = arith.constant 0 : index
    %c0_5 = arith.constant 0 : index
    %6 = vector.load %arg4[%c0_4, %c0_5] : memref<512x1024xbf16, #tpu.memory_space<vmem>>, vector<512x1024xbf16>
    %cst = arith.constant dense<0.000000e+00> : vector<8x1024xf32>
    %7 = tpu.matmul %4, %6, %cst {dimension_numbers = #tpu.dot_dimension_numbers<[1], [0], [0], [1], [0, 0, 1, 1], [], []>} : vector<8x512xbf16>, vector<512x1024xbf16>, vector<8x1024xf32> -> vector<8x1024xf32>
    %8 = arith.addf %5, %7 : vector<8x1024xf32>
    %c0_6 = arith.constant 0 : index
    %c0_7 = arith.constant 0 : index
    %9 = vector.load %arg22[%c0_6, %c0_7] : memref<8x1024xf32, #tpu.memory_space<vmem>>, vector<8x1024xf32>
    tpu.vector_store %arg22[%c0_6, %c0_7], %8 {strides = array<i32>} : memref<8x1024xf32, #tpu.memory_space<vmem>>, vector<8x1024xf32>,
    %c0_8 = arith.constant 0 : index
    %c0_9 = arith.constant 0 : index
    %10 = vector.load %arg23[%c0_8, %c0_9] : memref<8x512xf32, #tpu.memory_space<vmem>>, vector<8x512xf32>
    %c0_10 = arith.constant 0 : index
    %c0_11 = arith.constant 0 : index
    %11 = vector.load %arg5[%c0_10, %c0_11] : memref<512x512xbf16, #tpu.memory_space<vmem>>, vector<512x512xbf16>
    %cst_12 = arith.constant dense<0.000000e+00> : vector<8x512xf32>
    %12 = tpu.matmul %4, %11, %cst_12 {dimension_numbers = #tpu.dot_dimension_numbers<[1], [0], [0], [1], [0, 0, 1, 1], [], []>} : vector<8x512xbf16>, vector<512x512xbf16>, vector<8x512xf32> -> vector<8x512xf32>
    %13 = arith.addf %10, %12 : vector<8x512xf32>
    %c0_13 = arith.constant 0 : index
    %c0_14 = arith.constant 0 : index
    %14 = vector.load %arg23[%c0_13, %c0_14] : memref<8x512xf32, #tpu.memory_space<vmem>>, vector<8x512xf32>
    tpu.vector_store %arg23[%c0_13, %c0_14], %13 {strides = array<i32>} : memref<8x512xf32, #tpu.memory_space<vmem>>, vector<8x512xf32>,
    %c3_i32 = arith.constant 3 : i32
    %15 = arith.cmpi eq, %arg1, %c3_i32 : i32
    %16 = arith.extui %15 : i1 to i32
    %c0_i32_15 = arith.constant 0 : i32
    %17 = arith.cmpi ne, %16, %c0_i32_15 : i32
    scf.if %17 {
      %c0_16 = arith.constant 0 : index
      %c0_17 = arith.constant 0 : index
      %18 = vector.load %arg3[%c0_16, %c0_17] : memref<8x8xf32, #tpu.memory_space<vmem>>, vector<8x8xf32>
      %c0_18 = arith.constant 0 : index
      %c0_19 = arith.constant 0 : index
      %19 = vector.load %arg22[%c0_18, %c0_19] : memref<8x1024xf32, #tpu.memory_space<vmem>>, vector<8x1024xf32>
      %c0_20 = arith.constant 0 : index
      %c0_21 = arith.constant 0 : index
      %20 = vector.load %arg6[%c0_20, %c0_21] : memref<8x1024xbf16, #tpu.memory_space<vmem>>, vector<8x1024xbf16>
      %21 = arith.extf %20 : vector<8x1024xbf16> to vector<8x1024xf32>
      %22 = vector.extract_strided_slice %18 {offsets = [0, 0], sizes = [8, 1], strides = [1, 1]} : vector<8x8xf32> to vector<8x1xf32>
      %23 = vector.extract_strided_slice %21 {offsets = [0, 0], sizes = [1, 1024], strides = [1, 1]} : vector<8x1024xf32> to vector<1x1024xf32>
      %24 = vector.broadcast %22 : vector<8x1xf32> to vector<8x1024xf32>
      %25 = vector.broadcast %23 : vector<1x1024xf32> to vector<8x1024xf32>
      %26 = arith.mulf %24, %25 : vector<8x1024xf32>
      %27 = vector.extract_strided_slice %18 {offsets = [0, 1], sizes = [8, 1], strides = [1, 1]} : vector<8x8xf32> to vector<8x1xf32>
      %28 = vector.extract_strided_slice %21 {offsets = [1, 0], sizes = [1, 1024], strides = [1, 1]} : vector<8x1024xf32> to vector<1x1024xf32>
      %29 = vector.broadcast %27 : vector<8x1xf32> to vector<8x1024xf32>
      %30 = vector.broadcast %28 : vector<1x1024xf32> to vector<8x1024xf32>
      %31 = arith.mulf %29, %30 : vector<8x1024xf32>
      %32 = arith.addf %26, %31 : vector<8x1024xf32>
      %33 = vector.extract_strided_slice %18 {offsets = [0, 2], sizes = [8, 1], strides = [1, 1]} : vector<8x8xf32> to vector<8x1xf32>
      %34 = vector.extract_strided_slice %21 {offsets = [2, 0], sizes = [1, 1024], strides = [1, 1]} : vector<8x1024xf32> to vector<1x1024xf32>
      %35 = vector.broadcast %33 : vector<8x1xf32> to vector<8x1024xf32>
      %36 = vector.broadcast %34 : vector<1x1024xf32> to vector<8x1024xf32>
      %37 = arith.mulf %35, %36 : vector<8x1024xf32>
      %38 = arith.addf %32, %37 : vector<8x1024xf32>
      %39 = vector.extract_strided_slice %18 {offsets = [0, 3], sizes = [8, 1], strides = [1, 1]} : vector<8x8xf32> to vector<8x1xf32>
      %40 = vector.extract_strided_slice %21 {offsets = [3, 0], sizes = [1, 1024], strides = [1, 1]} : vector<8x1024xf32> to vector<1x1024xf32>
      %41 = vector.broadcast %39 : vector<8x1xf32> to vector<8x1024xf32>
      %42 = vector.broadcast %40 : vector<1x1024xf32> to vector<8x1024xf32>
      %43 = arith.mulf %41, %42 : vector<8x1024xf32>
      %44 = arith.addf %38, %43 : vector<8x1024xf32>
      %45 = vector.extract_strided_slice %18 {offsets = [0, 4], sizes = [8, 1], strides = [1, 1]} : vector<8x8xf32> to vector<8x1xf32>
      %46 = vector.extract_strided_slice %21 {offsets = [4, 0], sizes = [1, 1024], strides = [1, 1]} : vector<8x1024xf32> to vector<1x1024xf32>
      %47 = vector.broadcast %45 : vector<8x1xf32> to vector<8x1024xf32>
      %48 = vector.broadcast %46 : vector<1x1024xf32> to vector<8x1024xf32>
      %49 = arith.mulf %47, %48 : vector<8x1024xf32>
      %50 = arith.addf %44, %49 : vector<8x1024xf32>
      %51 = vector.extract_strided_slice %18 {offsets = [0, 5], sizes = [8, 1], strides = [1, 1]} : vector<8x8xf32> to vector<8x1xf32>
      %52 = vector.extract_strided_slice %21 {offsets = [5, 0], sizes = [1, 1024], strides = [1, 1]} : vector<8x1024xf32> to vector<1x1024xf32>
      %53 = vector.broadcast %51 : vector<8x1xf32> to vector<8x1024xf32>
      %54 = vector.broadcast %52 : vector<1x1024xf32> to vector<8x1024xf32>
      %55 = arith.mulf %53, %54 : vector<8x1024xf32>
      %56 = arith.addf %50, %55 : vector<8x1024xf32>
      %57 = vector.extract_strided_slice %18 {offsets = [0, 6], sizes = [8, 1], strides = [1, 1]} : vector<8x8xf32> to vector<8x1xf32>
      %58 = vector.extract_strided_slice %21 {offsets = [6, 0], sizes = [1, 1024], strides = [1, 1]} : vector<8x1024xf32> to vector<1x1024xf32>
      %59 = vector.broadcast %57 : vector<8x1xf32> to vector<8x1024xf32>
      %60 = vector.broadcast %58 : vector<1x1024xf32> to vector<8x1024xf32>
      %61 = arith.mulf %59, %60 : vector<8x1024xf32>
      %62 = arith.addf %56, %61 : vector<8x1024xf32>
      %63 = vector.extract_strided_slice %18 {offsets = [0, 7], sizes = [8, 1], strides = [1, 1]} : vector<8x8xf32> to vector<8x1xf32>
      %64 = vector.extract_strided_slice %21 {offsets = [7, 0], sizes = [1, 1024], strides = [1, 1]} : vector<8x1024xf32> to vector<1x1024xf32>
      %65 = vector.broadcast %63 : vector<8x1xf32> to vector<8x1024xf32>
      %66 = vector.broadcast %64 : vector<1x1024xf32> to vector<8x1024xf32>
      %67 = arith.mulf %65, %66 : vector<8x1024xf32>
      %68 = arith.addf %62, %67 : vector<8x1024xf32>
      %69 = arith.addf %19, %68 : vector<8x1024xf32>
      %c0_22 = arith.constant 0 : index
      %c0_23 = arith.constant 0 : index
      %70 = vector.load %arg7[%c0_22, %c0_23] : memref<1x1024xf32, #tpu.memory_space<vmem>>, vector<1x1024xf32>
      %71 = vector.broadcast %70 : vector<1x1024xf32> to vector<8x1024xf32>
      %72 = arith.addf %69, %71 : vector<8x1024xf32>
      %cst_24 = arith.constant 0.000000e+00 : f32
      %73 = vector.broadcast %cst_24 : f32 to vector<8x1024xf32>
      %74 = arith.maximumf %72, %73 : vector<8x1024xf32>
      %75 = arith.truncf %74 : vector<8x1024xf32> to vector<8x1024xbf16>
      %c0_25 = arith.constant 0 : index
      %c0_26 = arith.constant 0 : index
      %76 = vector.load %arg8[%c0_25, %c0_26] : memref<1024x512xbf16, #tpu.memory_space<vmem>>, vector<1024x512xbf16>
      %cst_27 = arith.constant dense<0.000000e+00> : vector<8x512xf32>
      %77 = tpu.matmul %75, %76, %cst_27 {dimension_numbers = #tpu.dot_dimension_numbers<[1], [0], [0], [1], [0, 0, 1, 1], [], []>} : vector<8x1024xbf16>, vector<1024x512xbf16>, vector<8x512xf32> -> vector<8x512xf32>
      %c0_28 = arith.constant 0 : index
      %c0_29 = arith.constant 0 : index
      %78 = vector.load %arg9[%c0_28, %c0_29] : memref<1x512xf32, #tpu.memory_space<vmem>>, vector<1x512xf32>
      %79 = vector.broadcast %78 : vector<1x512xf32> to vector<8x512xf32>
      %80 = arith.addf %77, %79 : vector<8x512xf32>
      %cst_30 = arith.constant 0.000000e+00 : f32
      %81 = vector.broadcast %cst_30 : f32 to vector<8x512xf32>
      %82 = arith.maximumf %80, %81 : vector<8x512xf32>
      %83 = arith.truncf %82 : vector<8x512xf32> to vector<8x512xbf16>
      %c0_31 = arith.constant 0 : index
      %c0_32 = arith.constant 0 : index
      %84 = vector.load %arg10[%c0_31, %c0_32] : memref<512x256xbf16, #tpu.memory_space<vmem>>, vector<512x256xbf16>
      %cst_33 = arith.constant dense<0.000000e+00> : vector<8x256xf32>
      %85 = tpu.matmul %83, %84, %cst_33 {dimension_numbers = #tpu.dot_dimension_numbers<[1], [0], [0], [1], [0, 0, 1, 1], [], []>} : vector<8x512xbf16>, vector<512x256xbf16>, vector<8x256xf32> -> vector<8x256xf32>
      %c0_34 = arith.constant 0 : index
      %c0_35 = arith.constant 0 : index
      %86 = vector.load %arg11[%c0_34, %c0_35] : memref<1x256xf32, #tpu.memory_space<vmem>>, vector<1x256xf32>
      %87 = vector.broadcast %86 : vector<1x256xf32> to vector<8x256xf32>
      %88 = arith.addf %85, %87 : vector<8x256xf32>
      %cst_36 = arith.constant 0.000000e+00 : f32
      %89 = vector.broadcast %cst_36 : f32 to vector<8x256xf32>
      %90 = arith.maximumf %88, %89 : vector<8x256xf32>
      %91 = arith.truncf %90 : vector<8x256xf32> to vector<8x256xbf16>
      %c0_37 = arith.constant 0 : index
      %c0_38 = arith.constant 0 : index
      %92 = vector.load %arg12[%c0_37, %c0_38] : memref<256x128xbf16, #tpu.memory_space<vmem>>, vector<256x128xbf16>
      %cst_39 = arith.constant dense<0.000000e+00> : vector<8x128xf32>
      %93 = tpu.matmul %91, %92, %cst_39 {dimension_numbers = #tpu.dot_dimension_numbers<[1], [0], [0], [1], [0, 0, 1, 1], [], []>} : vector<8x256xbf16>, vector<256x128xbf16>, vector<8x128xf32> -> vector<8x128xf32>
      %c0_40 = arith.constant 0 : index
      %c0_41 = arith.constant 0 : index
      %94 = vector.load %arg13[%c0_40, %c0_41] : memref<1x128xf32, #tpu.memory_space<vmem>>, vector<1x128xf32>
      %95 = vector.broadcast %94 : vector<1x128xf32> to vector<8x128xf32>
      %96 = arith.addf %93, %95 : vector<8x128xf32>
      %c0_42 = arith.constant 0 : index
      %c0_43 = arith.constant 0 : index
      %97 = vector.load %arg23[%c0_42, %c0_43] : memref<8x512xf32, #tpu.memory_space<vmem>>, vector<8x512xf32>
      %c0_44 = arith.constant 0 : index
      %c0_45 = arith.constant 0 : index
      %98 = vector.load %arg14[%c0_44, %c0_45] : memref<8x512xbf16, #tpu.memory_space<vmem>>, vector<8x512xbf16>
      %99 = arith.extf %98 : vector<8x512xbf16> to vector<8x512xf32>
      %100 = vector.extract_strided_slice %18 {offsets = [0, 0], sizes = [8, 1], strides = [1, 1]} : vector<8x8xf32> to vector<8x1xf32>
      %101 = vector.extract_strided_slice %99 {offsets = [0, 0], sizes = [1, 512], strides = [1, 1]} : vector<8x512xf32> to vector<1x512xf32>
      %102 = vector.broadcast %100 : vector<8x1xf32> to vector<8x512xf32>
      %103 = vector.broadcast %101 : vector<1x512xf32> to vector<8x512xf32>
      %104 = arith.mulf %102, %103 : vector<8x512xf32>
      %105 = vector.extract_strided_slice %18 {offsets = [0, 1], sizes = [8, 1], strides = [1, 1]} : vector<8x8xf32> to vector<8x1xf32>
      %106 = vector.extract_strided_slice %99 {offsets = [1, 0], sizes = [1, 512], strides = [1, 1]} : vector<8x512xf32> to vector<1x512xf32>
      %107 = vector.broadcast %105 : vector<8x1xf32> to vector<8x512xf32>
      %108 = vector.broadcast %106 : vector<1x512xf32> to vector<8x512xf32>
      %109 = arith.mulf %107, %108 : vector<8x512xf32>
      %110 = arith.addf %104, %109 : vector<8x512xf32>
      %111 = vector.extract_strided_slice %18 {offsets = [0, 2], sizes = [8, 1], strides = [1, 1]} : vector<8x8xf32> to vector<8x1xf32>
      %112 = vector.extract_strided_slice %99 {offsets = [2, 0], sizes = [1, 512], strides = [1, 1]} : vector<8x512xf32> to vector<1x512xf32>
      %113 = vector.broadcast %111 : vector<8x1xf32> to vector<8x512xf32>
      %114 = vector.broadcast %112 : vector<1x512xf32> to vector<8x512xf32>
      %115 = arith.mulf %113, %114 : vector<8x512xf32>
      %116 = arith.addf %110, %115 : vector<8x512xf32>
      %117 = vector.extract_strided_slice %18 {offsets = [0, 3], sizes = [8, 1], strides = [1, 1]} : vector<8x8xf32> to vector<8x1xf32>
      %118 = vector.extract_strided_slice %99 {offsets = [3, 0], sizes = [1, 512], strides = [1, 1]} : vector<8x512xf32> to vector<1x512xf32>
      %119 = vector.broadcast %117 : vector<8x1xf32> to vector<8x512xf32>
      %120 = vector.broadcast %118 : vector<1x512xf32> to vector<8x512xf32>
      %121 = arith.mulf %119, %120 : vector<8x512xf32>
      %122 = arith.addf %116, %121 : vector<8x512xf32>
      %123 = vector.extract_strided_slice %18 {offsets = [0, 4], sizes = [8, 1], strides = [1, 1]} : vector<8x8xf32> to vector<8x1xf32>
      %124 = vector.extract_strided_slice %99 {offsets = [4, 0], sizes = [1, 512], strides = [1, 1]} : vector<8x512xf32> to vector<1x512xf32>
      %125 = vector.broadcast %123 : vector<8x1xf32> to vector<8x512xf32>
      %126 = vector.broadcast %124 : vector<1x512xf32> to vector<8x512xf32>
      %127 = arith.mulf %125, %126 : vector<8x512xf32>
      %128 = arith.addf %122, %127 : vector<8x512xf32>
      %129 = vector.extract_strided_slice %18 {offsets = [0, 5], sizes = [8, 1], strides = [1, 1]} : vector<8x8xf32> to vector<8x1xf32>
      %130 = vector.extract_strided_slice %99 {offsets = [5, 0], sizes = [1, 512], strides = [1, 1]} : vector<8x512xf32> to vector<1x512xf32>
      %131 = vector.broadcast %129 : vector<8x1xf32> to vector<8x512xf32>
      %132 = vector.broadcast %130 : vector<1x512xf32> to vector<8x512xf32>
      %133 = arith.mulf %131, %132 : vector<8x512xf32>
      %134 = arith.addf %128, %133 : vector<8x512xf32>
      %135 = vector.extract_strided_slice %18 {offsets = [0, 6], sizes = [8, 1], strides = [1, 1]} : vector<8x8xf32> to vector<8x1xf32>
      %136 = vector.extract_strided_slice %99 {offsets = [6, 0], sizes = [1, 512], strides = [1, 1]} : vector<8x512xf32> to vector<1x512xf32>
      %137 = vector.broadcast %135 : vector<8x1xf32> to vector<8x512xf32>
      %138 = vector.broadcast %136 : vector<1x512xf32> to vector<8x512xf32>
      %139 = arith.mulf %137, %138 : vector<8x512xf32>
      %140 = arith.addf %134, %139 : vector<8x512xf32>
      %141 = vector.extract_strided_slice %18 {offsets = [0, 7], sizes = [8, 1], strides = [1, 1]} : vector<8x8xf32> to vector<8x1xf32>
      %142 = vector.extract_strided_slice %99 {offsets = [7, 0], sizes = [1, 512], strides = [1, 1]} : vector<8x512xf32> to vector<1x512xf32>
      %143 = vector.broadcast %141 : vector<8x1xf32> to vector<8x512xf32>
      %144 = vector.broadcast %142 : vector<1x512xf32> to vector<8x512xf32>
      %145 = arith.mulf %143, %144 : vector<8x512xf32>
      %146 = arith.addf %140, %145 : vector<8x512xf32>
      %147 = arith.addf %97, %146 : vector<8x512xf32>
      %148 = vector.extract_strided_slice %96 {offsets = [0, 0], sizes = [8, 20], strides = [1, 1]} : vector<8x128xf32> to vector<8x20xf32>
      %c0_46 = arith.constant 0 : index
      %c0_47 = arith.constant 0 : index
      %149 = vector.load %arg15[%c0_46, %c0_47] : memref<20x512xbf16, #tpu.memory_space<vmem>>, vector<20x512xbf16>
      %150 = arith.extf %149 : vector<20x512xbf16> to vector<20x512xf32>
      %151 = vector.extract_strided_slice %148 {offsets = [0, 0], sizes = [8, 1], strides = [1, 1]} : vector<8x20xf32> to vector<8x1xf32>
      %152 = vector.extract_strided_slice %150 {offsets = [0, 0], sizes = [1, 512], strides = [1, 1]} : vector<20x512xf32> to vector<1x512xf32>
      %153 = vector.broadcast %151 : vector<8x1xf32> to vector<8x512xf32>
      %154 = vector.broadcast %152 : vector<1x512xf32> to vector<8x512xf32>
      %155 = arith.mulf %153, %154 : vector<8x512xf32>
      %156 = vector.extract_strided_slice %148 {offsets = [0, 1], sizes = [8, 1], strides = [1, 1]} : vector<8x20xf32> to vector<8x1xf32>
      %157 = vector.extract_strided_slice %150 {offsets = [1, 0], sizes = [1, 512], strides = [1, 1]} : vector<20x512xf32> to vector<1x512xf32>
      %158 = vector.broadcast %156 : vector<8x1xf32> to vector<8x512xf32>
      %159 = vector.broadcast %157 : vector<1x512xf32> to vector<8x512xf32>
      %160 = arith.mulf %158, %159 : vector<8x512xf32>
      %161 = arith.addf %155, %160 : vector<8x512xf32>
      %162 = vector.extract_strided_slice %148 {offsets = [0, 2], sizes = [8, 1], strides = [1, 1]} : vector<8x20xf32> to vector<8x1xf32>
      %163 = vector.extract_strided_slice %150 {offsets = [2, 0], sizes = [1, 512], strides = [1, 1]} : vector<20x512xf32> to vector<1x512xf32>
      %164 = vector.broadcast %162 : vector<8x1xf32> to vector<8x512xf32>
      %165 = vector.broadcast %163 : vector<1x512xf32> to vector<8x512xf32>
      %166 = arith.mulf %164, %165 : vector<8x512xf32>
      %167 = arith.addf %161, %166 : vector<8x512xf32>
      %168 = vector.extract_strided_slice %148 {offsets = [0, 3], sizes = [8, 1], strides = [1, 1]} : vector<8x20xf32> to vector<8x1xf32>
      %169 = vector.extract_strided_slice %150 {offsets = [3, 0], sizes = [1, 512], strides = [1, 1]} : vector<20x512xf32> to vector<1x512xf32>
      %170 = vector.broadcast %168 : vector<8x1xf32> to vector<8x512xf32>
      %171 = vector.broadcast %169 : vector<1x512xf32> to vector<8x512xf32>
      %172 = arith.mulf %170, %171 : vector<8x512xf32>
      %173 = arith.addf %167, %172 : vector<8x512xf32>
      %174 = vector.extract_strided_slice %148 {offsets = [0, 4], sizes = [8, 1], strides = [1, 1]} : vector<8x20xf32> to vector<8x1xf32>
      %175 = vector.extract_strided_slice %150 {offsets = [4, 0], sizes = [1, 512], strides = [1, 1]} : vector<20x512xf32> to vector<1x512xf32>
      %176 = vector.broadcast %174 : vector<8x1xf32> to vector<8x512xf32>
      %177 = vector.broadcast %175 : vector<1x512xf32> to vector<8x512xf32>
      %178 = arith.mulf %176, %177 : vector<8x512xf32>
      %179 = arith.addf %173, %178 : vector<8x512xf32>
      %180 = vector.extract_strided_slice %148 {offsets = [0, 5], sizes = [8, 1], strides = [1, 1]} : vector<8x20xf32> to vector<8x1xf32>
      %181 = vector.extract_strided_slice %150 {offsets = [5, 0], sizes = [1, 512], strides = [1, 1]} : vector<20x512xf32> to vector<1x512xf32>
      %182 = vector.broadcast %180 : vector<8x1xf32> to vector<8x512xf32>
      %183 = vector.broadcast %181 : vector<1x512xf32> to vector<8x512xf32>
      %184 = arith.mulf %182, %183 : vector<8x512xf32>
      %185 = arith.addf %179, %184 : vector<8x512xf32>
      %186 = vector.extract_strided_slice %148 {offsets = [0, 6], sizes = [8, 1], strides = [1, 1]} : vector<8x20xf32> to vector<8x1xf32>
      %187 = vector.extract_strided_slice %150 {offsets = [6, 0], sizes = [1, 512], strides = [1, 1]} : vector<20x512xf32> to vector<1x512xf32>
      %188 = vector.broadcast %186 : vector<8x1xf32> to vector<8x512xf32>
      %189 = vector.broadcast %187 : vector<1x512xf32> to vector<8x512xf32>
      %190 = arith.mulf %188, %189 : vector<8x512xf32>
      %191 = arith.addf %185, %190 : vector<8x512xf32>
      %192 = vector.extract_strided_slice %148 {offsets = [0, 7], sizes = [8, 1], strides = [1, 1]} : vector<8x20xf32> to vector<8x1xf32>
      %193 = vector.extract_strided_slice %150 {offsets = [7, 0], sizes = [1, 512], strides = [1, 1]} : vector<20x512xf32> to vector<1x512xf32>
      %194 = vector.broadcast %192 : vector<8x1xf32> to vector<8x512xf32>
      %195 = vector.broadcast %193 : vector<1x512xf32> to vector<8x512xf32>
      %196 = arith.mulf %194, %195 : vector<8x512xf32>
      %197 = arith.addf %191, %196 : vector<8x512xf32>
      %198 = vector.extract_strided_slice %148 {offsets = [0, 8], sizes = [8, 1], strides = [1, 1]} : vector<8x20xf32> to vector<8x1xf32>
      %199 = vector.extract_strided_slice %150 {offsets = [8, 0], sizes = [1, 512], strides = [1, 1]} : vector<20x512xf32> to vector<1x512xf32>
      %200 = vector.broadcast %198 : vector<8x1xf32> to vector<8x512xf32>
      %201 = vector.broadcast %199 : vector<1x512xf32> to vector<8x512xf32>
      %202 = arith.mulf %200, %201 : vector<8x512xf32>
      %203 = arith.addf %197, %202 : vector<8x512xf32>
      %204 = vector.extract_strided_slice %148 {offsets = [0, 9], sizes = [8, 1], strides = [1, 1]} : vector<8x20xf32> to vector<8x1xf32>
      %205 = vector.extract_strided_slice %150 {offsets = [9, 0], sizes = [1, 512], strides = [1, 1]} : vector<20x512xf32> to vector<1x512xf32>
      %206 = vector.broadcast %204 : vector<8x1xf32> to vector<8x512xf32>
      %207 = vector.broadcast %205 : vector<1x512xf32> to vector<8x512xf32>
      %208 = arith.mulf %206, %207 : vector<8x512xf32>
      %209 = arith.addf %203, %208 : vector<8x512xf32>
      %210 = vector.extract_strided_slice %148 {offsets = [0, 10], sizes = [8, 1], strides = [1, 1]} : vector<8x20xf32> to vector<8x1xf32>
      %211 = vector.extract_strided_slice %150 {offsets = [10, 0], sizes = [1, 512], strides = [1, 1]} : vector<20x512xf32> to vector<1x512xf32>
      %212 = vector.broadcast %210 : vector<8x1xf32> to vector<8x512xf32>
      %213 = vector.broadcast %211 : vector<1x512xf32> to vector<8x512xf32>
      %214 = arith.mulf %212, %213 : vector<8x512xf32>
      %215 = arith.addf %209, %214 : vector<8x512xf32>
      %216 = vector.extract_strided_slice %148 {offsets = [0, 11], sizes = [8, 1], strides = [1, 1]} : vector<8x20xf32> to vector<8x1xf32>
      %217 = vector.extract_strided_slice %150 {offsets = [11, 0], sizes = [1, 512], strides = [1, 1]} : vector<20x512xf32> to vector<1x512xf32>
      %218 = vector.broadcast %216 : vector<8x1xf32> to vector<8x512xf32>
      %219 = vector.broadcast %217 : vector<1x512xf32> to vector<8x512xf32>
      %220 = arith.mulf %218, %219 : vector<8x512xf32>
      %221 = arith.addf %215, %220 : vector<8x512xf32>
      %222 = vector.extract_strided_slice %148 {offsets = [0, 12], sizes = [8, 1], strides = [1, 1]} : vector<8x20xf32> to vector<8x1xf32>
      %223 = vector.extract_strided_slice %150 {offsets = [12, 0], sizes = [1, 512], strides = [1, 1]} : vector<20x512xf32> to vector<1x512xf32>
      %224 = vector.broadcast %222 : vector<8x1xf32> to vector<8x512xf32>
      %225 = vector.broadcast %223 : vector<1x512xf32> to vector<8x512xf32>
      %226 = arith.mulf %224, %225 : vector<8x512xf32>
      %227 = arith.addf %221, %226 : vector<8x512xf32>
      %228 = vector.extract_strided_slice %148 {offsets = [0, 13], sizes = [8, 1], strides = [1, 1]} : vector<8x20xf32> to vector<8x1xf32>
      %229 = vector.extract_strided_slice %150 {offsets = [13, 0], sizes = [1, 512], strides = [1, 1]} : vector<20x512xf32> to vector<1x512xf32>
      %230 = vector.broadcast %228 : vector<8x1xf32> to vector<8x512xf32>
      %231 = vector.broadcast %229 : vector<1x512xf32> to vector<8x512xf32>
      %232 = arith.mulf %230, %231 : vector<8x512xf32>
      %233 = arith.addf %227, %232 : vector<8x512xf32>
      %234 = vector.extract_strided_slice %148 {offsets = [0, 14], sizes = [8, 1], strides = [1, 1]} : vector<8x20xf32> to vector<8x1xf32>
      %235 = vector.extract_strided_slice %150 {offsets = [14, 0], sizes = [1, 512], strides = [1, 1]} : vector<20x512xf32> to vector<1x512xf32>
      %236 = vector.broadcast %234 : vector<8x1xf32> to vector<8x512xf32>
      %237 = vector.broadcast %235 : vector<1x512xf32> to vector<8x512xf32>
      %238 = arith.mulf %236, %237 : vector<8x512xf32>
      %239 = arith.addf %233, %238 : vector<8x512xf32>
      %240 = vector.extract_strided_slice %148 {offsets = [0, 15], sizes = [8, 1], strides = [1, 1]} : vector<8x20xf32> to vector<8x1xf32>
      %241 = vector.extract_strided_slice %150 {offsets = [15, 0], sizes = [1, 512], strides = [1, 1]} : vector<20x512xf32> to vector<1x512xf32>
      %242 = vector.broadcast %240 : vector<8x1xf32> to vector<8x512xf32>
      %243 = vector.broadcast %241 : vector<1x512xf32> to vector<8x512xf32>
      %244 = arith.mulf %242, %243 : vector<8x512xf32>
      %245 = arith.addf %239, %244 : vector<8x512xf32>
      %246 = vector.extract_strided_slice %148 {offsets = [0, 16], sizes = [8, 1], strides = [1, 1]} : vector<8x20xf32> to vector<8x1xf32>
      %247 = vector.extract_strided_slice %150 {offsets = [16, 0], sizes = [1, 512], strides = [1, 1]} : vector<20x512xf32> to vector<1x512xf32>
      %248 = vector.broadcast %246 : vector<8x1xf32> to vector<8x512xf32>
      %249 = vector.broadcast %247 : vector<1x512xf32> to vector<8x512xf32>
      %250 = arith.mulf %248, %249 : vector<8x512xf32>
      %251 = arith.addf %245, %250 : vector<8x512xf32>
      %252 = vector.extract_strided_slice %148 {offsets = [0, 17], sizes = [8, 1], strides = [1, 1]} : vector<8x20xf32> to vector<8x1xf32>
      %253 = vector.extract_strided_slice %150 {offsets = [17, 0], sizes = [1, 512], strides = [1, 1]} : vector<20x512xf32> to vector<1x512xf32>
      %254 = vector.broadcast %252 : vector<8x1xf32> to vector<8x512xf32>
      %255 = vector.broadcast %253 : vector<1x512xf32> to vector<8x512xf32>
      %256 = arith.mulf %254, %255 : vector<8x512xf32>
      %257 = arith.addf %251, %256 : vector<8x512xf32>
      %258 = vector.extract_strided_slice %148 {offsets = [0, 18], sizes = [8, 1], strides = [1, 1]} : vector<8x20xf32> to vector<8x1xf32>
      %259 = vector.extract_strided_slice %150 {offsets = [18, 0], sizes = [1, 512], strides = [1, 1]} : vector<20x512xf32> to vector<1x512xf32>
      %260 = vector.broadcast %258 : vector<8x1xf32> to vector<8x512xf32>
      %261 = vector.broadcast %259 : vector<1x512xf32> to vector<8x512xf32>
      %262 = arith.mulf %260, %261 : vector<8x512xf32>
      %263 = arith.addf %257, %262 : vector<8x512xf32>
      %264 = vector.extract_strided_slice %148 {offsets = [0, 19], sizes = [8, 1], strides = [1, 1]} : vector<8x20xf32> to vector<8x1xf32>
      %265 = vector.extract_strided_slice %150 {offsets = [19, 0], sizes = [1, 512], strides = [1, 1]} : vector<20x512xf32> to vector<1x512xf32>
      %266 = vector.broadcast %264 : vector<8x1xf32> to vector<8x512xf32>
      %267 = vector.broadcast %265 : vector<1x512xf32> to vector<8x512xf32>
      %268 = arith.mulf %266, %267 : vector<8x512xf32>
      %269 = arith.addf %263, %268 : vector<8x512xf32>
      %270 = arith.addf %147, %269 : vector<8x512xf32>
      %c0_48 = arith.constant 0 : index
      %c0_49 = arith.constant 0 : index
      %271 = vector.load %arg16[%c0_48, %c0_49] : memref<1x512xf32, #tpu.memory_space<vmem>>, vector<1x512xf32>
      %272 = vector.broadcast %271 : vector<1x512xf32> to vector<8x512xf32>
      %273 = arith.addf %270, %272 : vector<8x512xf32>
      %cst_50 = arith.constant 0.000000e+00 : f32
      %274 = vector.broadcast %cst_50 : f32 to vector<8x512xf32>
      %275 = arith.maximumf %273, %274 : vector<8x512xf32>
      %276 = arith.truncf %275 : vector<8x512xf32> to vector<8x512xbf16>
      %c0_51 = arith.constant 0 : index
      %c0_52 = arith.constant 0 : index
      %277 = vector.load %arg17[%c0_51, %c0_52] : memref<512x256xbf16, #tpu.memory_space<vmem>>, vector<512x256xbf16>
      %cst_53 = arith.constant dense<0.000000e+00> : vector<8x256xf32>
      %278 = tpu.matmul %276, %277, %cst_53 {dimension_numbers = #tpu.dot_dimension_numbers<[1], [0], [0], [1], [0, 0, 1, 1], [], []>} : vector<8x512xbf16>, vector<512x256xbf16>, vector<8x256xf32> -> vector<8x256xf32>
      %c0_54 = arith.constant 0 : index
      %c0_55 = arith.constant 0 : index
      %279 = vector.load %arg18[%c0_54, %c0_55] : memref<1x256xf32, #tpu.memory_space<vmem>>, vector<1x256xf32>
      %280 = vector.broadcast %279 : vector<1x256xf32> to vector<8x256xf32>
      %281 = arith.addf %278, %280 : vector<8x256xf32>
      %cst_56 = arith.constant 0.000000e+00 : f32
      %282 = vector.broadcast %cst_56 : f32 to vector<8x256xf32>
      %283 = arith.maximumf %281, %282 : vector<8x256xf32>
      %284 = arith.truncf %283 : vector<8x256xf32> to vector<8x256xbf16>
      %c0_57 = arith.constant 0 : index
      %c0_58 = arith.constant 0 : index
      %285 = vector.load %arg19[%c0_57, %c0_58] : memref<256x128xbf16, #tpu.memory_space<vmem>>, vector<256x128xbf16>
      %cst_59 = arith.constant dense<0.000000e+00> : vector<8x128xf32>
      %286 = tpu.matmul %284, %285, %cst_59 {dimension_numbers = #tpu.dot_dimension_numbers<[1], [0], [0], [1], [0, 0, 1, 1], [], []>} : vector<8x256xbf16>, vector<256x128xbf16>, vector<8x128xf32> -> vector<8x128xf32>
      %c0_60 = arith.constant 0 : index
      %c0_61 = arith.constant 0 : index
      %287 = vector.load %arg20[%c0_60, %c0_61] : memref<1x128xf32, #tpu.memory_space<vmem>>, vector<1x128xf32>
      %288 = vector.broadcast %287 : vector<1x128xf32> to vector<8x128xf32>
      %289 = arith.addf %286, %288 : vector<8x128xf32>
      %290 = arith.addf %96, %289 : vector<8x128xf32>
      %c0_62 = arith.constant 0 : index
      %c0_63 = arith.constant 0 : index
      %291 = vector.load %arg21[%c0_62, %c0_63] : memref<8x128xf32, #tpu.memory_space<vmem>>, vector<8x128xf32>
      tpu.vector_store %arg21[%c0_62, %c0_63], %290 {strides = array<i32>} : memref<8x128xf32, #tpu.memory_space<vmem>>, vector<8x128xf32>,
    } else {
    }
    return
  }
  func.func @transform_0(%arg0: i32, %arg1: i32) -> (i32, i32) {
    %c0_i32 = arith.constant 0 : i32
    return %arg0, %arg1 : i32, i32
  }
  func.func @transform_1(%arg0: i32, %arg1: i32) -> (i32, i32) {
    %c0_i32 = arith.constant 0 : i32
    %c0_i32_0 = arith.constant 0 : i32
    return %arg0, %c0_i32 : i32, i32
  }
  func.func @transform_2(%arg0: i32, %arg1: i32) -> (i32, i32) {
    %c0_i32 = arith.constant 0 : i32
    %c0_i32_0 = arith.constant 0 : i32
    return %arg1, %c0_i32 : i32, i32
  }
  func.func @transform_3(%arg0: i32, %arg1: i32) -> (i32, i32) {
    %c0_i32 = arith.constant 0 : i32
    %c0_i32_0 = arith.constant 0 : i32
    return %arg1, %c0_i32 : i32, i32
  }
  func.func @transform_4(%arg0: i32, %arg1: i32) -> (i32, i32) {
    %c0_i32 = arith.constant 0 : i32
    %c0_i32_0 = arith.constant 0 : i32
    %c0_i32_1 = arith.constant 0 : i32
    return %c0_i32, %c0_i32_0 : i32, i32
  }
  func.func @transform_5(%arg0: i32, %arg1: i32) -> (i32, i32) {
    %c0_i32 = arith.constant 0 : i32
    %c0_i32_0 = arith.constant 0 : i32
    %c0_i32_1 = arith.constant 0 : i32
    return %c0_i32, %c0_i32_0 : i32, i32
  }
  func.func @transform_6(%arg0: i32, %arg1: i32) -> (i32, i32) {
    %c0_i32 = arith.constant 0 : i32
    %c0_i32_0 = arith.constant 0 : i32
    %c0_i32_1 = arith.constant 0 : i32
    return %c0_i32, %c0_i32_0 : i32, i32
  }
  func.func @transform_7(%arg0: i32, %arg1: i32) -> (i32, i32) {
    %c0_i32 = arith.constant 0 : i32
    %c0_i32_0 = arith.constant 0 : i32
    %c0_i32_1 = arith.constant 0 : i32
    return %c0_i32, %c0_i32_0 : i32, i32
  }
  func.func @transform_8(%arg0: i32, %arg1: i32) -> (i32, i32) {
    %c0_i32 = arith.constant 0 : i32
    %c0_i32_0 = arith.constant 0 : i32
    %c0_i32_1 = arith.constant 0 : i32
    return %c0_i32, %c0_i32_0 : i32, i32
  }
  func.func @transform_9(%arg0: i32, %arg1: i32) -> (i32, i32) {
    %c0_i32 = arith.constant 0 : i32
    %c0_i32_0 = arith.constant 0 : i32
    %c0_i32_1 = arith.constant 0 : i32
    return %c0_i32, %c0_i32_0 : i32, i32
  }
  func.func @transform_10(%arg0: i32, %arg1: i32) -> (i32, i32) {
    %c0_i32 = arith.constant 0 : i32
    %c0_i32_0 = arith.constant 0 : i32
    %c0_i32_1 = arith.constant 0 : i32
    return %c0_i32, %c0_i32_0 : i32, i32
  }
  func.func @transform_11(%arg0: i32, %arg1: i32) -> (i32, i32) {
    %c0_i32 = arith.constant 0 : i32
    %c0_i32_0 = arith.constant 0 : i32
    %c0_i32_1 = arith.constant 0 : i32
    return %c0_i32, %c0_i32_0 : i32, i32
  }
  func.func @transform_12(%arg0: i32, %arg1: i32) -> (i32, i32) {
    %c0_i32 = arith.constant 0 : i32
    %c0_i32_0 = arith.constant 0 : i32
    %c0_i32_1 = arith.constant 0 : i32
    return %c0_i32, %c0_i32_0 : i32, i32
  }
  func.func @transform_13(%arg0: i32, %arg1: i32) -> (i32, i32) {
    %c0_i32 = arith.constant 0 : i32
    %c0_i32_0 = arith.constant 0 : i32
    %c0_i32_1 = arith.constant 0 : i32
    return %c0_i32, %c0_i32_0 : i32, i32
  }
  func.func @transform_14(%arg0: i32, %arg1: i32) -> (i32, i32) {
    %c0_i32 = arith.constant 0 : i32
    %c0_i32_0 = arith.constant 0 : i32
    %c0_i32_1 = arith.constant 0 : i32
    return %c0_i32, %c0_i32_0 : i32, i32
  }
  func.func @transform_15(%arg0: i32, %arg1: i32) -> (i32, i32) {
    %c0_i32 = arith.constant 0 : i32
    %c0_i32_0 = arith.constant 0 : i32
    %c0_i32_1 = arith.constant 0 : i32
    return %c0_i32, %c0_i32_0 : i32, i32
  }
  func.func @transform_16(%arg0: i32, %arg1: i32) -> (i32, i32) {
    %c0_i32 = arith.constant 0 : i32
    %c0_i32_0 = arith.constant 0 : i32
    %c0_i32_1 = arith.constant 0 : i32
    return %c0_i32, %c0_i32_0 : i32, i32
  }
  func.func @transform_17(%arg0: i32, %arg1: i32) -> (i32, i32) {
    %c0_i32 = arith.constant 0 : i32
    %c0_i32_0 = arith.constant 0 : i32
    %c0_i32_1 = arith.constant 0 : i32
    return %c0_i32, %c0_i32_0 : i32, i32
  }
  func.func @transform_18(%arg0: i32, %arg1: i32) -> (i32, i32) {
    %c0_i32 = arith.constant 0 : i32
    %c0_i32_0 = arith.constant 0 : i32
    %c0_i32_1 = arith.constant 0 : i32
    return %c0_i32, %c0_i32_0 : i32, i32
  }
  func.func @transform_19(%arg0: i32, %arg1: i32) -> (i32, i32) {
    %c0_i32 = arith.constant 0 : i32
    %c0_i32_0 = arith.constant 0 : i32
    return %arg0, %c0_i32 : i32, i32
  }
}

</mosaic_0001>

<bundles_post_ra>
// kernel: tpu_custom_call.1
= control target key start
LH: loop header
LB: loop body
LE: loop exit
PB: predicated region body
PF: predicated region fallthrough
CT: control target
= control target key end

     0   :  { %s15509_s0 = inlined_call_operand.hbm [shape: f32[8,2048], index: 0, kind: input, shape index: {}]   ;;  %s15510_s1 = inlined_call_operand.hbm [shape: f32[8,8], index: 1, kind: input, shape index: {}]   ;;  %s15511_s2 = inlined_call_operand.hbm [shape: bf16[2048,1024], index: 2, kind: input, shape index: {}]   ;;  %s15512_s3 = inlined_call_operand.hbm [shape: bf16[2048,512], index: 3, kind: input, shape index: {}]   ;;  %s15513_s4 = inlined_call_operand.hbm [shape: bf16[8,1024], index: 4, kind: input, shape index: {}]   ;;  %s15514_s5 = inlined_call_operand.hbm [shape: f32[1,1024], index: 5, kind: input, shape index: {}]   ;;  %s15515_s6 = inlined_call_operand.hbm [shape: bf16[1024,512], index: 6, kind: input, shape index: {}]   ;;  %s15516_s7 = inlined_call_operand.hbm [shape: f32[1,512], index: 7, kind: input, shape index: {}]   ;;  %s15517_s8 = inlined_call_operand.hbm [shape: bf16[512,256], index: 8, kind: input, shape index: {}]   ;;  %s15518_s9 = inlined_call_operand.hbm [shape: f32[1,256], index: 9, kind: input, shape index: {}]   ;;  %s15519_s10 = inlined_call_operand.hbm [shape: bf16[256,128], index: 10, kind: input, shape index: {}]   ;;  %s15520_s11 = inlined_call_operand.hbm [shape: f32[1,128], index: 11, kind: input, shape index: {}]   ;;  %s15521_s12 = inlined_call_operand.hbm [shape: bf16[8,512], index: 12, kind: input, shape index: {}]   ;;  %s15522_s13 = inlined_call_operand.hbm [shape: bf16[20,512], index: 13, kind: input, shape index: {}]   ;;  %s15523_s14 = inlined_call_operand.hbm [shape: f32[1,512], index: 14, kind: input, shape index: {}]   ;;  %s15524_s15 = inlined_call_operand.hbm [shape: bf16[512,256], index: 15, kind: input, shape index: {}]   ;;  %s15525_s16 = inlined_call_operand.hbm [shape: f32[1,256], index: 16, kind: input, shape index: {}]   ;;  %s15526_s17 = inlined_call_operand.hbm [shape: bf16[256,128], index: 17, kind: input, shape index: {}]   ;;  %s15527_s18 = inlined_call_operand.hbm [shape: f32[1,128], index: 18, kind: input, shape index: {}]   ;;  %s15528_s19 = inlined_call_operand.hbm [shape: f32[8,128], index: 19, kind: output, shape index: {}]  }
   0x1   :  { %15559 = sst [smem:[#allocation64_spill]] %s15509_s0 }
   0x2   :  { %15560 = sst [smem:[#allocation65_spill]] %s15510_s1 }
   0x3   :  { %15561 = sst [smem:[#allocation66_spill]] %s15511_s2 }
   0x4   :  { %15562 = sst [smem:[#allocation67_spill]] %s15512_s3 }
   0x5   :  { %15563 = sst [smem:[#allocation68_spill]] %s15513_s4 }
   0x6   :  { %15564 = sst [smem:[#allocation69_spill]] %s15514_s5 }
   0x7   :  { %15565 = sst [smem:[#allocation70_spill]] %s15515_s6 }
   0x8   :  { %15566 = sst [smem:[#allocation71_spill]] %s15516_s7 }
   0x9   :  { %15567 = sst [smem:[#allocation72_spill]] %s15517_s8 }
   0xa   :  { %15568 = sst [smem:[#allocation73_spill]] %s15519_s10 }
   0xb   :  { %15569 = sst [smem:[#allocation74_spill]] %s15521_s12 }
   0xc   :  { %15570 = sst [smem:[#allocation75_spill]] %s15523_s14 }
   0xd   :  { %15571 = sst [smem:[#allocation76_spill]] %s15525_s16 }
   0xe   :  { %15572 = sst [smem:[#allocation77_spill]] %s15527_s18 }
   0xf   :  { %15573 = sst [smem:[#allocation78_spill]] %s15528_s19 }
  0x10   :  { %24 = vsyncpa [#allocation5], 0 }
  0x11   :  { %26 = vsyncpa [#allocation5 + $0x1], 0 }
  0x12   :  { %27 = vsyncpa [#allocation8], 0 }
  0x13   :  { %28 = vsyncpa [#allocation13], 0 }
  0x14   :  { %29 = vsyncpa [#allocation16], 0 }
  0x15   :  { %30 = vsyncpa [#allocation19], 0 }
  0x16   :  { %31 = vsyncpa [#allocation22], 0 }
  0x17   :  { %32 = vsyncpa [#allocation25], 0 }
  0x18   :  { %33 = vsyncpa [#allocation28], 0 }
  0x19   :  { %34 = vsyncpa [#allocation31], 0 }
  0x1a   :  { %35 = vsyncpa [#allocation6], 0  ;;  %s13459_s0 = smov 0   ;;  %s13461_s30 = smov 0  }
  0x1b   :  { %s13463_s20 = smov 0   ;;  %s13465_s21 = smov 0  }
  0x1c   :  { %s13467_s1 = smov 0   ;;  %s13469_s22 = smov 0  }
  0x1d LB: > { %15574 = sst [smem:[#allocation46_spill]] %s13295_s30  ;;  %s13488_s2 = sadd.s32 4294967295, %s13311_s22   ;;  %s13311_s22 = sphi %s13469_s22, %s41_s22   ;;  %s13307_s1 = sphi %s13467_s1, %s15699_s1   ;;  %s13303_s21 = sphi %s13465_s21, %s15698_s21   ;;  %s13299_s20 = sphi %s13463_s20, %s15696_s20   ;;  %s13295_s30 = sphi %s13461_s30, %s15695_s30   ;;  %s13291_s0 = sphi %s13459_s0, %s15694_s0  }
  0x1e   : > { %15575 = sst [smem:[#allocation47_spill]] %s13299_s20  ;;  %s50_s23 = sadd.s32 1, %s13307_s1 }
  0x1f   : > { %15576 = sst [smem:[#allocation48_spill]] %s13303_s21  ;;  %p51_p0 = scmp.ge.s32.totalorder %s50_s23, 4 }
  0x20   : > { %15577 = sst [smem:[#allocation49_spill]] %s13488_s2  ;;  %s62_s24 = sadd.s32 1, %s13299_s20 }
  0x21   : > { %p69_p1 = scmp.ne.s32.totalorder %s13299_s20, %s13295_s30  ;;  %p70_p2 = scmp.eq.s32.totalorder %s13311_s22, 0 }
  0x22   : > { %s15701_s23 = smov (%p51_p0, %s50_s23), 0  ;;  %p75_p4 = scmp.ne.s32.totalorder %s13295_s30, %s13291_s0 }
  0x23   : > { %15578 = sst [smem:[#allocation50_spill]] %s15701_s23  ;;  %p13497_p3 = por %p70_p2, %p69_p1 }
  0x24   : > { %s58_s3 = ssub.s32 %s13307_s1, %s15701_s23  ;;  %p76_p5 = scmp.eq.s32.totalorder %s13488_s2, 0 }
  0x25   : > { %p60_p6 = scmp.eq.s32.totalorder %s58_s3, 0  ;;  %p8265_p7 = scmp.ge.s32.totalorder %s13311_s22, 1 }
  0x26   : > { %p13508_p8 = por %p76_p5, %p75_p4  ;;  %p505_p9 = scmp.lt.s32.totalorder %s13311_s22, 5 }
  0x27   : > { %s13514_s27 = scalar_select %p60_p6, %s13299_s20, %s62_s24  }
  0x28   : > { %s15580_s26 = scalar_select %p13508_p8, 1, 0 }
  0x29   : > { %15582 = sst [smem:[#allocation52_spill]] %s13514_s27  ;;  %p13516_p10 = pnand %p8265_p7, %p505_p9 }
  0x2a   : > { %15581 = sst [smem:[#allocation51_spill]] %s15580_s26  ;;  %p12474_p11 = scmp.lt.s32.totalorder %s13311_s22, 4 }
  0x2b   : > { %s15583_s28 = scalar_select %p13516_p10, 1, 0 }
  0x2c   : > { %p12399_p12 = pneg %p13516_p10  ;;  %s724_s29 = sand.u32 1, %s13311_s22  }
  0x2d   : > { %15584 = sst [smem:[#allocation53_spill]] %s15583_s28  ;;  %s726_s0 = sand.u32 1, %s13299_s20  }
  0x2e   : > { %p13527_p13 = pnand %p12399_p12, %p76_p5  ;;  %s8283_s23 = sshll.u32 %s726_s0, 5 }
  0x2f   : > { %s11520_s19 = sshll.u32 %s13307_s1, 5  ;;  %s15586_s27 = sld [smem:[#allocation64_spill]] }
  0x30   : > { %s728_s18 = scalar_lea.vmem [#allocation4], %s8283_s23  ;;  %p13539_p0 = pnand %p12474_p11, %p13497_p3 }
  0x31   : > { %s739_s16 = sshll.u32 %s728_s18, 4  ;;  %s8286_s2 = sshll.u32 %s726_s0, 11  ;;  %s740_s16 = int_to_ptr.vmem [resolvable:$true] %s739_s16 }
  0x32   : > { %s8290_s28 = sshll.u32 %s726_s0, 10  ;;  %s750_s14 = scalar_lea.vmem [#allocation9], %s8286_s2 }
  0x33   : > { %s759_s12 = sshll.u32 %s750_s14, 4  ;;  %s13543_s10 = scalar_lea.sflag [#allocation5], %s724_s29  ;;  %s13548_s12 = int_to_ptr.vmem [resolvable:$true] %s759_s12 }
  0x34   : > { %s773_s18 = scalar_lea.vmem [#allocation10], %s8290_s28  ;;  %s15588_s25 = sld [smem:[#allocation65_spill]] }
  0x35   : > { %s735_s26 = scalar_lea.hbm %s15586_s27, %s11520_s19  ;;  %s782_s19 = sshll.u32 %s773_s18, 4  ;;  %s13550_s19 = int_to_ptr.vmem [resolvable:$true] %s782_s19 }
  0x36   : > { %s737_s30 = sshll.u32 %s735_s26, 4  ;;  %s13313_s27 = smov [#allocation7]   ;;  %s738_s30 = int_to_ptr.hbm [resolvable:$true] %s737_s30 }
  0x37   : > { %12451 = dma.hbm_to_vmem [thread:$0]  (!%p13539_p0), %s738_s30, 512, %s740_s16, %s13543_s10  }
  0x38   : > { %s521_s2 = sshll.u32 %s13313_s27, 4  ;;  %s15589_s5 = sld [smem:[#allocation69_spill]]  ;;  %s522_s2 = int_to_ptr.vmem [resolvable:$true] %s521_s2 }
  0x39   : > { %s13314_s30 = smov [#allocation12]   ;;  %s15590_s7 = sld [smem:[#allocation71_spill]] }
  0x3a   : > { %s519_s26 = sshll.u32 %s15588_s25, 4  ;;  %s545_s28 = sshll.u32 %s13314_s30, 4  ;;  %s520_s26 = int_to_ptr.hbm [resolvable:$true] %s519_s26  ;;  %s546_s28 = int_to_ptr.vmem [resolvable:$true] %s545_s28 }
  0x3b   : > { %12402 = dma.hbm_to_vmem [thread:$0]  (!%p13527_p13), %s520_s26, 128, %s522_s2, [#allocation8]  }
  0x3c   : > { %s595_s25 = sshll.u32 %s15518_s9, 4  ;;  %s13315_s27 = smov [#allocation15]   ;;  %s596_s25 = int_to_ptr.hbm [resolvable:$true] %s595_s25 }
  0x3d   : > { %s571_s14 = sshll.u32 %s13315_s27, 4  ;;  %s13316_s26 = smov [#allocation18]   ;;  %s572_s14 = int_to_ptr.vmem [resolvable:$true] %s571_s14 }
  0x3e   : > { %s543_s16 = sshll.u32 %s15589_s5, 4  ;;  %s597_s2 = sshll.u32 %s13316_s26, 4  ;;  %s544_s16 = int_to_ptr.hbm [resolvable:$true] %s543_s16  ;;  %s598_s2 = int_to_ptr.vmem [resolvable:$true] %s597_s2 }
  0x3f   : > { %s569_s18 = sshll.u32 %s15590_s7, 4  ;;  %s621_s0 = sshll.u32 %s15520_s11, 4  ;;  %s570_s18 = int_to_ptr.hbm [resolvable:$true] %s569_s18  ;;  %s622_s0 = int_to_ptr.hbm [resolvable:$true] %s621_s0 }
  0x40   : > { %12408 = dma.hbm_to_vmem [thread:$0]  (!%p13527_p13), %s544_s16, 128, %s546_s28, [#allocation13]  }
  0x41   : > { %12414 = dma.hbm_to_vmem [thread:$0]  (!%p13527_p13), %s570_s18, 64, %s572_s14, [#allocation16]  }
  0x42   : > { %12420 = dma.hbm_to_vmem [thread:$0]  (!%p13527_p13), %s596_s25, 32, %s598_s2, [#allocation19]  }
  0x43   : > { %s13317_s16 = smov [#allocation21]   ;;  %s644_s23 = sshll.u32 %s15522_s13, 4  ;;  %s645_s23 = int_to_ptr.hbm [resolvable:$true] %s644_s23 }
  0x44   : > { %s623_s28 = sshll.u32 %s13317_s16, 4  ;;  %s13318_s18 = smov [#allocation24]   ;;  %s624_s28 = int_to_ptr.vmem [resolvable:$true] %s623_s28 }
  0x45   : > { %12426 = dma.hbm_to_vmem [thread:$0]  (!%p13527_p13), %s622_s0, 16, %s624_s28, [#allocation22]  }
  0x46   : > { %s646_s27 = sshll.u32 %s13318_s18, 4  ;;  %s15537_s14 = smov 256   ;;  %s647_s27 = int_to_ptr.vmem [resolvable:$true] %s646_s27 }
  0x47   : > { %s15539_s26 = smov 16   ;;  %s670_s29 = sshll.u32 %s15524_s15, 4  ;;  %s671_s29 = int_to_ptr.hbm [resolvable:$true] %s670_s29 }
  0x48   : > { %12432 = dma.hbm_to_vmem [thread:$0]  (!%p13527_p13), %s645_s23, 768, %s647_s27, [#allocation25], %s15537_s14, %s15537_s14, %s15539_s26  }
  0x49   : > { %s13321_s30 = smov [#allocation27]   ;;  %s15541_s16 = smov 128  }
  0x4a   : > { %s672_s0 = sshll.u32 %s13321_s30, 4  ;;  %s13323_s28 = smov 8   ;;  %s673_s0 = int_to_ptr.vmem [resolvable:$true] %s672_s0 }
  0x4b   : > { %12438 = dma.hbm_to_vmem [thread:$0]  (!%p13527_p13), %s671_s29, 8192, %s673_s0, [#allocation28], %s15541_s16, %s15541_s16, %s13323_s28  }
  0x4c   : > { %s696_s23 = sshll.u32 %s15526_s17, 4  ;;  %s13324_s18 = smov [#allocation30]   ;;  %s697_s23 = int_to_ptr.hbm [resolvable:$true] %s696_s23 }
  0x4d   : > { %s698_s27 = sshll.u32 %s13324_s18, 4  ;;  %s11522_s25 = sshll.u32 %s13307_s1, 11  ;;  %s699_s27 = int_to_ptr.vmem [resolvable:$true] %s698_s27 }
  0x4e   : > { %s15591_s14 = sld [smem:[#allocation66_spill]]  ;;  %s15542_s5 = smov 64  }
  0x4f   : > { %s15543_s7 = smov 4   ;;  %s13327_s0 = smov 512  }
  0x50   : > { %12444 = dma.hbm_to_vmem [thread:$0]  (!%p13527_p13), %s697_s23, 2048, %s699_s27, [#allocation31], %s15542_s5, %s15542_s5, %s15543_s7  }
  0x51   : > { %s13328_s24 = smov 32   ;;  %s15592_s4 = sld [smem:[#allocation68_spill]] }
  0x52   : > { %s15593_s6 = sld [smem:[#allocation70_spill]]  ;;  %s15598_s5 = smov 128  }
  0x53   : > { %s15594_s8 = sld [smem:[#allocation72_spill]]  ;;  %s13332_s30 = smov [#allocation20]  }
  0x54   : > { %s756_s26 = scalar_lea.hbm %s15591_s14, %s11522_s25  ;;  %s13329_s14 = smov [#allocation11]  }
  0x55   : > { %s757_s29 = sshll.u32 %s756_s26, 4  ;;  %s533_s25 = sshll.u32 %s13329_s14, 4  ;;  %s758_s29 = int_to_ptr.hbm [resolvable:$true] %s757_s29  ;;  %s534_s25 = int_to_ptr.vmem [resolvable:$true] %s533_s25 }
  0x56   : > { %12454 = dma.hbm_to_vmem [thread:$0]  (!%p13539_p0), %s758_s29, 32768, %s13548_s12, %s13543_s10, %s13327_s0, %s13327_s0, %s13328_s24  }
  0x57   : > { %s531_s2 = sshll.u32 %s15592_s4, 4  ;;  %s13330_s26 = smov [#allocation14]   ;;  %s532_s2 = int_to_ptr.hbm [resolvable:$true] %s531_s2 }
  0x58   : > { %s554_s23 = sshll.u32 %s15593_s6, 4  ;;  %s556_s27 = sshll.u32 %s13330_s26, 4  ;;  %s555_s23 = int_to_ptr.hbm [resolvable:$true] %s554_s23  ;;  %s557_s27 = int_to_ptr.vmem [resolvable:$true] %s556_s27 }
  0x59   : > { %12405 = dma.hbm_to_vmem [thread:$0]  (!%p13527_p13), %s532_s2, 512, %s534_s25, [#allocation8]  }
  0x5a   : > { %s580_s29 = sshll.u32 %s15594_s8, 4  ;;  %s15595_s0 = smov 16   ;;  %s581_s29 = int_to_ptr.hbm [resolvable:$true] %s580_s29 }
  0x5b   : > { %s15596_s24 = smov 256   ;;  %s15597_s18 = sld [smem:[#allocation73_spill]] }
  0x5c   : > { %12411 = dma.hbm_to_vmem [thread:$0]  (!%p13527_p13), %s555_s23, 32768, %s557_s27, [#allocation13], %s15596_s24, %s15596_s24, %s15595_s0  }
  0x5d   : > { %s13331_s2 = smov [#allocation17]   ;;  %s608_s26 = sshll.u32 %s13332_s30, 4  ;;  %s609_s26 = int_to_ptr.vmem [resolvable:$true] %s608_s26 }
  0x5e   : > { %s582_s25 = sshll.u32 %s13331_s2, 4  ;;  %s15599_s4 = sld [smem:[#allocation74_spill]]  ;;  %s583_s25 = int_to_ptr.vmem [resolvable:$true] %s582_s25 }
  0x5f   : > { %12417 = dma.hbm_to_vmem [thread:$0]  (!%p13527_p13), %s581_s29, 8192, %s583_s25, [#allocation16], %s15598_s5, %s15598_s5, %s13323_s28  }
  0x60   : > { %s15600_s27 = smov 4   ;;  %s15601_s21 = smov 64  }
  0x61   : > { %s606_s14 = sshll.u32 %s15597_s18, 4  ;;  %s15602_s2 = sld [smem:[#allocation75_spill]]  ;;  %s607_s14 = int_to_ptr.hbm [resolvable:$true] %s606_s14 }
  0x62   : > { %12423 = dma.hbm_to_vmem [thread:$0]  (!%p13527_p13), %s607_s14, 2048, %s609_s26, [#allocation19], %s15601_s21, %s15601_s21, %s15600_s27  }
  0x63   : > { %s13333_s8 = smov [#allocation23]   ;;  %s15603_s5 = sld [smem:[#allocation76_spill]] }
  0x64   : > { %s633_s23 = sshll.u32 %s15599_s4, 4  ;;  %s635_s28 = sshll.u32 %s13333_s8, 4  ;;  %s634_s23 = int_to_ptr.hbm [resolvable:$true] %s633_s23  ;;  %s636_s28 = int_to_ptr.vmem [resolvable:$true] %s635_s28 }
  0x65   : > { %12429 = dma.hbm_to_vmem [thread:$0]  (!%p13527_p13), %s634_s23, 256, %s636_s28, [#allocation22]  }
  0x66   : > { %s13334_s4 = smov [#allocation26]   ;;  %s15604_s26 = sld [smem:[#allocation77_spill]] }
  0x67   : > { %s659_s6 = sshll.u32 %s15602_s2, 4  ;;  %s661_s7 = sshll.u32 %s13334_s4, 4  ;;  %s660_s6 = int_to_ptr.hbm [resolvable:$true] %s659_s6  ;;  %s662_s7 = int_to_ptr.vmem [resolvable:$true] %s661_s7 }
  0x68   : > { %12435 = dma.hbm_to_vmem [thread:$0]  (!%p13527_p13), %s660_s6, 64, %s662_s7, [#allocation25]  }
  0x69   : > { %s685_s30 = sshll.u32 %s15603_s5, 4  ;;  %s13335_s27 = smov [#allocation29]   ;;  %s686_s30 = int_to_ptr.hbm [resolvable:$true] %s685_s30 }
  0x6a   : > { %s687_s23 = sshll.u32 %s13335_s27, 4  ;;  %s13336_s21 = smov [#allocation32]   ;;  %s688_s23 = int_to_ptr.vmem [resolvable:$true] %s687_s23 }
  0x6b   : > { %12441 = dma.hbm_to_vmem [thread:$0]  (!%p13527_p13), %s686_s30, 32, %s688_s23, [#allocation28]  }
  0x6c   : > { %s711_s12 = sshll.u32 %s15604_s26, 4  ;;  %s713_s16 = sshll.u32 %s13336_s21, 4  ;;  %s712_s12 = int_to_ptr.hbm [resolvable:$true] %s711_s12  ;;  %s714_s16 = int_to_ptr.vmem [resolvable:$true] %s713_s16 }
  0x6d   : > { %s11524_s18 = sshll.u32 %s13307_s1, 10  ;;  %s15605_s4 = sld [smem:[#allocation67_spill]] }
  0x6e   : > { %12447 = dma.hbm_to_vmem [thread:$0]  (!%p13527_p13), %s712_s12, 16, %s714_s16, [#allocation31]  }
  0x6f   : > { %s15607_s25 = sld [smem:[#allocation49_spill]] (!%p13516_p10) }
  0x70   : > { %s15608_s5 = sld [smem:[#allocation46_spill]] (!%p13516_p10) }
  0x71   : > { %794 = sbr.rel (%p13516_p10) target bundleno = 2009 (0x7d9), region = 96 }
  0x73   : > { %s779_s29 = scalar_lea.hbm %s15605_s4, %s11524_s18 }
  0x74   : > { %s780_s6 = sshll.u32 %s779_s29, 4  ;;  %s781_s6 = int_to_ptr.hbm [resolvable:$true] %s780_s6 }
  0x75   : > { %12457 = dma.hbm_to_vmem [thread:$0]  (!%p13539_p0), %s781_s6, 16384, %s13550_s19, %s13543_s10, %s15596_s24, %s15596_s24, %s15595_s0  }
  0x76   : > { %s796_s8 = sand.u32 1, %s15607_s25   ;;  %s798_s14 = sand.u32 1, %s15608_s5  }
  0x77   : > { %s8295_s26 = sshll.u32 %s798_s14, 5  ;;  %s797_s27 = scalar_lea.sflag [#allocation5], %s796_s8 }
  0x78   : > { %s13673_s23 = scalar_lea.vmem [#allocation4], %s8295_s26 }
  0x79   : > { %13242 = dma.done.wait (%p13508_p8), %s797_s27, 512  }
  0x7a   : > { %13244 = vsyncadd (%p13508_p8), %s797_s27, 4294966784 }
  0x7b   : > { %13246 = dma.done.wait (%p76_p5), [#allocation8], 128  }
  0x7c   : > { %13248 = vsyncadd (%p76_p5), [#allocation8], 4294967168  ;;  %s8297_s10 = sshll.u32 %s798_s14, 11 }
  0x7d   : > { %s13683_s20 = scalar_lea.vmem [#allocation9], %s8297_s10 }
  0x7e   : > { %13250 = dma.done.wait (%p13508_p8), %s797_s27, 49152  }
  0x7f   : > { %13252 = vsyncadd (%p13508_p8), %s797_s27, 4294918144  ;;  %s8298_s3 = sshll.u32 %s798_s14, 10 }
  0x80   : > { %s13689_s19 = scalar_lea.vmem [#allocation10], %s8298_s3 }
  0x81   : > { %13254 = dma.done.wait (%p76_p5), [#allocation8], 512  }
  0x82   : > { %13256 = vsyncadd (%p76_p5), [#allocation8], 4294966784 }
  0x83   : > { %13258 = dma.done.wait (%p76_p5), [#allocation13], 32896  }
  0x84   : > { %13260 = vsyncadd (%p76_p5), [#allocation13], 4294934400 }
  0x85   : > { %13262 = dma.done.wait (%p76_p5), [#allocation16], 8256  }
  0x86   : > { %13264 = vsyncadd (%p76_p5), [#allocation16], 4294959040 }
  0x87   : > { %13266 = dma.done.wait (%p76_p5), [#allocation19], 2080  }
  0x88   : > { %13268 = vsyncadd (%p76_p5), [#allocation19], 4294965216 }
  0x89   : > { %13270 = dma.done.wait (%p76_p5), [#allocation22], 272  }
  0x8a   : > { %13272 = vsyncadd (%p76_p5), [#allocation22], 4294967024 }
  0x8b   : > { %13274 = dma.done.wait (%p76_p5), [#allocation25], 832  }
  0x8c   : > { %13276 = vsyncadd (%p76_p5), [#allocation25], 4294966464 }
  0x8d   : > { %13278 = dma.done.wait (%p76_p5), [#allocation28], 8224  }
  0x8e   : > { %13280 = vsyncadd (%p76_p5), [#allocation28], 4294959072 }
  0x8f   : > { %13282 = dma.done.wait (%p76_p5), [#allocation31], 2064  }
  0x90   : > { %13284 = vsyncadd (%p76_p5), [#allocation31], 4294965232  ;;  %s15610_s0 = sld [smem:[#allocation48_spill]] }
  0x96   : > { %p8314_p1 = scmp.ne.s32.totalorder %s15610_s0, 0 }
  0x98   : > { %967 = sbr.rel (%p8314_p1) target bundleno = 170 (0xaa), region = 176 }
  0x9d   : > { %v13337_v0 = vmov 0.0  }
  0x9e   : > { %968 = vst [vmem:[#allocation2 + $0x30] sm:$0xff] %v13337_v0 }
  0x9f   : > { %969 = vst [vmem:[#allocation2] sm:$0xff] %v13337_v0 }
  0xa0   : > { %970 = vst [vmem:[#allocation2 + $0x18] sm:$0xff] %v13337_v0 }
  0xa1   : > { %971 = vst [vmem:[#allocation2 + $0x10] sm:$0xff] %v13337_v0 }
  0xa2   : > { %972 = vst [vmem:[#allocation2 + $0x8] sm:$0xff] %v13337_v0 }
  0xa3   : > { %973 = vst [vmem:[#allocation2 + $0x20] sm:$0xff] %v13337_v0 }
  0xa4   : > { %974 = vst [vmem:[#allocation2 + $0x28] sm:$0xff] %v13337_v0 }
  0xa5   : > { %975 = vst [vmem:[#allocation2 + $0x38] sm:$0xff] %v13337_v0 }
  0xa6   : > { %976 = vst [vmem:[#allocation3] sm:$0xff] %v13337_v0 }
  0xa7   : > { %977 = vst [vmem:[#allocation3 + $0x18] sm:$0xff] %v13337_v0 }
  0xa8   : > { %978 = vst [vmem:[#allocation3 + $0x10] sm:$0xff] %v13337_v0 }
  0xa9   : > { %979 = vst [vmem:[#allocation3 + $0x8] sm:$0xff] %v13337_v0 }
  0xaa PF: > { %v8541_v1 = vld [vmem:[%s13683_s20 + $0x1c0] sm:$0xf]  ;;  %s15611_s24 = sld [smem:[#allocation48_spill]] }
  0xab   : > { %v11585_v2 = vld [vmem:[%s13683_s20 + $0x1dc] sm:$0xf0] }
  0xac   : > { %v8797_v3 = vld [vmem:[%s13683_s20 + $0x3c0] sm:$0xf]  ;;  %v8542_v4 = vor.u32 %v11585_v2, %v8541_v1 }
  0xad   : > { %v11649_v5 = vld [vmem:[%s13683_s20 + $0x3dc] sm:$0xf0] }
  0xae   : > { %v9053_v6 = vld [vmem:[%s13683_s20 + $0x5c0] sm:$0xf]  ;;  %v8798_v8 = vor.u32 %v11649_v5, %v8797_v3  ;;  %2532 = vmatpush.bf16.msra.mxu0 %v8542_v4 }
  0xaf   : > { %v11713_v7 = vld [vmem:[%s13683_s20 + $0x5dc] sm:$0xf0] }
  0xb0   : > { %v9054_v9 = vor.u32 %v11713_v7, %v9053_v6  ;;  %v9309_v10 = vld [vmem:[%s13683_s20 + $0x7c0] sm:$0xf]  ;;  %2545 = vmatpush.bf16.msra.mxu1 %v8798_v8  ;;  %p9851_p2 = scmp.ne.s32.totalorder %s15611_s24, 3 }
  0xb1   : > { %v11777_v11 = vld [vmem:[%s13683_s20 + $0x7dc] sm:$0xf0] }
  0xb2   : > { %v8509_v12 = vld [vmem:[%s13683_s20 + $0x180] sm:$0xf]  ;;  %v9310_v13 = vor.u32 %v11777_v11, %v9309_v10  ;;  %2558 = vmatpush.bf16.msra.mxu2 %v9054_v9 }
  0xb3   : > { %v11577_v14 = vld [vmem:[%s13683_s20 + $0x19c] sm:$0xf0] }
  0xb4   : > { %v8765_v15 = vld [vmem:[%s13683_s20 + $0x380] sm:$0xf]  ;;  %v8510_v17 = vor.u32 %v11577_v14, %v8509_v12  ;;  %2571 = vmatpush.bf16.msra.mxu3 %v9310_v13 }
  0xb5   : > { %v11641_v16 = vld [vmem:[%s13683_s20 + $0x39c] sm:$0xf0] }
  0xb6   : > { %v8766_v18 = vor.u32 %v11641_v16, %v8765_v15  ;;  %v9021_v19 = vld [vmem:[%s13683_s20 + $0x580] sm:$0xf]  ;;  %2533 = vmatpush.bf16.msra.mxu0 %v8510_v17 }
  0xb7   : > { %v11705_v20 = vld [vmem:[%s13683_s20 + $0x59c] sm:$0xf0] }
  0xb8   : > { %v9277_v21 = vld [vmem:[%s13683_s20 + $0x780] sm:$0xf]  ;;  %v9022_v22 = vor.u32 %v11705_v20, %v9021_v19  ;;  %2546 = vmatpush.bf16.msra.mxu1 %v8766_v18 }
  0xb9   : > { %v11769_v23 = vld [vmem:[%s13683_s20 + $0x79c] sm:$0xf0] }
  0xba   : > { %v8477_v24 = vld [vmem:[%s13683_s20 + $0x140] sm:$0xf]  ;;  %v9278_v26 = vor.u32 %v11769_v23, %v9277_v21  ;;  %2559 = vmatpush.bf16.msra.mxu2 %v9022_v22 }
  0xbb   : > { %v11569_v25 = vld [vmem:[%s13683_s20 + $0x15c] sm:$0xf0] }
  0xbc   : > { %v8733_v27 = vld [vmem:[%s13683_s20 + $0x340] sm:$0xf]  ;;  %v8478_v30 = vor.u32 %v11569_v25, %v8477_v24  ;;  %2572 = vmatpush.bf16.msra.mxu3 %v9278_v26 }
  0xbd   : > { %v11633_v28 = vld [vmem:[%s13683_s20 + $0x35c] sm:$0xf0] }
  0xbe   : > { %v8989_v29 = vld [vmem:[%s13683_s20 + $0x540] sm:$0xf]  ;;  %v8734_v34 = vor.u32 %v11633_v28, %v8733_v27  ;;  %2534 = vmatpush.bf16.msra.mxu0 %v8478_v30  ;;  %v8543_v30 = vld [vmem:[%s13683_s20 + $0x1e0] sm:$0xf0] }
  0xbf   : > { %v11697_v31 = vld [vmem:[%s13683_s20 + $0x55c] sm:$0xf0] }
  0xc0   : > { %v9245_v32 = vld [vmem:[%s13683_s20 + $0x740] sm:$0xf]  ;;  %v8990_v35 = vor.u32 %v11697_v31, %v8989_v29  ;;  %2547 = vmatpush.bf16.msra.mxu1 %v8734_v34  ;;  %v11581_v29 = vld [vmem:[%s13683_s20 + $0x1c4] sm:$0xf] }
  0xc1   : > { %v11761_v33 = vld [vmem:[%s13683_s20 + $0x75c] sm:$0xf0]  ;;  %v11645_v31 = vld [vmem:[%s13683_s20 + $0x3c4] sm:$0xf] }
  0xc2   : > { %v8445_v36 = vld [vmem:[%s13683_s20 + $0x100] sm:$0xf]  ;;  %v9246_v39 = vor.u32 %v11761_v33, %v9245_v32  ;;  %2560 = vmatpush.bf16.msra.mxu2 %v8990_v35  ;;  %v8799_v33 = vld [vmem:[%s13683_s20 + $0x3e0] sm:$0xf0] }
  0xc3   : > { %v11561_v37 = vld [vmem:[%s13683_s20 + $0x11c] sm:$0xf0]  ;;  %v11709_v34 = vld [vmem:[%s13683_s20 + $0x5c4] sm:$0xf] }
  0xc4   : > { %v8701_v38 = vld [vmem:[%s13683_s20 + $0x300] sm:$0xf]  ;;  %v8446_v45 = vor.u32 %v11561_v37, %v8445_v36  ;;  %2573 = vmatpush.bf16.msra.mxu3 %v9246_v39  ;;  %v9055_v35 = vld [vmem:[%s13683_s20 + $0x5e0] sm:$0xf0] }
  0xc5   : > { %v11625_v40 = vld [vmem:[%s13683_s20 + $0x31c] sm:$0xf0]  ;;  %v9311_v39 = vld [vmem:[%s13683_s20 + $0x7e0] sm:$0xf0] }
  0xc6   : > { %v8957_v41 = vld [vmem:[%s13683_s20 + $0x500] sm:$0xf]  ;;  %v8702_v46 = vor.u32 %v11625_v40, %v8701_v38  ;;  %2535 = vmatpush.bf16.msra.mxu0 %v8446_v45  ;;  %v11773_v38 = vld [vmem:[%s13683_s20 + $0x7c4] sm:$0xf] }
  0xc7   : > { %v11689_v42 = vld [vmem:[%s13683_s20 + $0x51c] sm:$0xf0]  ;;  %v8511_v45 = vld [vmem:[%s13683_s20 + $0x1a0] sm:$0xf0] }
  0xc8   : > { %v9213_v43 = vld [vmem:[%s13683_s20 + $0x700] sm:$0xf]  ;;  %v8958_v47 = vor.u32 %v11689_v42, %v8957_v41  ;;  %2548 = vmatpush.bf16.msra.mxu1 %v8702_v46  ;;  %v8546_v41 = vor.u32 %v11581_v29, %v8543_v30  ;;  %v8802_v42 = vor.u32 %v11645_v31, %v8799_v33  ;;  %v11637_v46 = vld [vmem:[%s13683_s20 + $0x384] sm:$0xf] }
  0xc9   : > { %v11753_v44 = vld [vmem:[%s13683_s20 + $0x71c] sm:$0xf0]  ;;  %v11677_v29 = vld [vmem:[%s13683_s20 + $0x4c4] sm:$0xf] }
  0xca   : > { %v8413_v48 = vld [vmem:[%s13683_s20 + $0xc0] sm:$0xf]  ;;  %v9214_v51 = vor.u32 %v11753_v44, %v9213_v43  ;;  %2561 = vmatpush.bf16.msra.mxu2 %v8958_v47  ;;  %v9058_v43 = vor.u32 %v11709_v34, %v9055_v35  ;;  %v11573_v44 = vld [vmem:[%s13683_s20 + $0x184] sm:$0xf]  ;;  %v9314_v47 = vor.u32 %v11773_v38, %v9311_v39 }
  0xcb   : > { %v11553_v49 = vld [vmem:[%s13683_s20 + $0xdc] sm:$0xf0]  ;;  %v8927_v30 = vld [vmem:[%s13683_s20 + $0x4e0] sm:$0xf0] }
  0xcc   : > { %v8669_v50 = vld [vmem:[%s13683_s20 + $0x2c0] sm:$0xf]  ;;  %v8414_v57 = vor.u32 %v11553_v49, %v8413_v48  ;;  %2574 = vmatpush.bf16.msra.mxu3 %v9214_v51  ;;  %v8767_v48 = vld [vmem:[%s13683_s20 + $0x3a0] sm:$0xf0]  ;;  %v8930_v35 = vor.u32 %v11677_v29, %v8927_v30  ;;  %v9029_v29 = vld [vmem:[%s13683_s20 + $0x588] sm:$0xf] }
  0xcd   : > { %v11617_v52 = vld [vmem:[%s13683_s20 + $0x2dc] sm:$0xf0]  ;;  %v11701_v49 = vld [vmem:[%s13683_s20 + $0x584] sm:$0xf]  ;;  %v11706_v30 = vld [vmem:[%s13683_s20 + $0x5a4] sm:$0xf0] }
  0xce   : > { %v8925_v53 = vld [vmem:[%s13683_s20 + $0x4c0] sm:$0xf]  ;;  %v8670_v58 = vor.u32 %v11617_v52, %v8669_v50  ;;  %2536 = vmatpush.bf16.msra.mxu0 %v8414_v57  ;;  %v9023_v50 = vld [vmem:[%s13683_s20 + $0x5a0] sm:$0xf0] }
  0xcf   : > { %v11681_v54 = vld [vmem:[%s13683_s20 + $0x4dc] sm:$0xf0]  ;;  %v11765_v51 = vld [vmem:[%s13683_s20 + $0x784] sm:$0xf] }
  0xd0   : > { %v9181_v55 = vld [vmem:[%s13683_s20 + $0x6c0] sm:$0xf]  ;;  %v8926_v59 = vor.u32 %v11681_v54, %v8925_v53  ;;  %2549 = vmatpush.bf16.msra.mxu1 %v8670_v58  ;;  %v9279_v52 = vld [vmem:[%s13683_s20 + $0x7a0] sm:$0xf0]  ;;  %v8514_v53 = vor.u32 %v11573_v44, %v8511_v45 }
  0xd1   : > { %v11745_v56 = vld [vmem:[%s13683_s20 + $0x6dc] sm:$0xf0]  ;;  %v11565_v54 = vld [vmem:[%s13683_s20 + $0x144] sm:$0xf] }
  0xd2   : > { %v8381_v60 = vld [vmem:[%s13683_s20 + $0x80] sm:$0xf]  ;;  %v9182_v63 = vor.u32 %v11745_v56, %v9181_v55  ;;  %2562 = vmatpush.bf16.msra.mxu2 %v8926_v59  ;;  %v8770_v55 = vor.u32 %v11637_v46, %v8767_v48  ;;  %v9026_v56 = vor.u32 %v11701_v49, %v9023_v50  ;;  %v8479_v57 = vld [vmem:[%s13683_s20 + $0x160] sm:$0xf0] }
  0xd3   : > { %v11545_v61 = vld [vmem:[%s13683_s20 + $0x9c] sm:$0xf0]  ;;  %v11629_v58 = vld [vmem:[%s13683_s20 + $0x344] sm:$0xf] }
  0xd4   : > { %v8637_v62 = vld [vmem:[%s13683_s20 + $0x280] sm:$0xf]  ;;  %v8382_v5 = vor.u32 %v11545_v61, %v8381_v60  ;;  %2575 = vmatpush.bf16.msra.mxu3 %v9182_v63  ;;  %v8735_v59 = vld [vmem:[%s13683_s20 + $0x360] sm:$0xf0]  ;;  %v9282_v60 = vor.u32 %v11765_v51, %v9279_v52 }
  0xd5   : > { %v11609_v0 = vld [vmem:[%s13683_s20 + $0x29c] sm:$0xf0]  ;;  %v11693_v61 = vld [vmem:[%s13683_s20 + $0x544] sm:$0xf] }
  0xd6   : > { %v8893_v1 = vld [vmem:[%s13683_s20 + $0x480] sm:$0xf]  ;;  %v8638_v6 = vor.u32 %v11609_v0, %v8637_v62  ;;  %2537 = vmatpush.bf16.msra.mxu0 %v8382_v5  ;;  %v8991_v62 = vld [vmem:[%s13683_s20 + $0x560] sm:$0xf0] }
  0xd7   : > { %v11673_v2 = vld [vmem:[%s13683_s20 + $0x49c] sm:$0xf0]  ;;  %v11757_v63 = vld [vmem:[%s13683_s20 + $0x744] sm:$0xf]  ;;  %v8994_v5 = vor.u32 %v11693_v61, %v8991_v62 }
  0xd8   : > { %v9149_v3 = vld [vmem:[%s13683_s20 + $0x680] sm:$0xf]  ;;  %v8894_v7 = vor.u32 %v11673_v2, %v8893_v1  ;;  %2550 = vmatpush.bf16.msra.mxu1 %v8638_v6  ;;  %v9247_v0 = vld [vmem:[%s13683_s20 + $0x760] sm:$0xf0]  ;;  %v8482_v1 = vor.u32 %v11565_v54, %v8479_v57  ;;  %v8738_v2 = vor.u32 %v11629_v58, %v8735_v59 }
  0xd9   : > { %v11737_v4 = vld [vmem:[%s13683_s20 + $0x69c] sm:$0xf0]  ;;  %v11557_v6 = vld [vmem:[%s13683_s20 + $0x104] sm:$0xf] }
  0xda   : > { %v8349_v8 = vld [vmem:[%s13683_s20 + $0x40] sm:$0xf]  ;;  %v9150_v11 = vor.u32 %v11737_v4, %v9149_v3  ;;  %2563 = vmatpush.bf16.msra.mxu2 %v8894_v7  ;;  %v982_v3 = vld [vmem:[%s13673_s23 + $0x10] sm:$0xff]  ;;  %v983_v4 = vld [vmem:[%s13673_s23 + $0x18] sm:$0xff] }
  0xdb   : > { %v11537_v9 = vld [vmem:[%s13683_s20 + $0x5c] sm:$0xf0]  ;;  %v8447_v7 = vld [vmem:[%s13683_s20 + $0x120] sm:$0xf0] }
  0xdc   : > { %v8605_v10 = vld [vmem:[%s13683_s20 + $0x240] sm:$0xf]  ;;  %v8350_v17 = vor.u32 %v11537_v9, %v8349_v8  ;;  %2576 = vmatpush.bf16.msra.mxu3 %v9150_v11  ;;  %v11621_v8 = vld [vmem:[%s13683_s20 + $0x304] sm:$0xf]  ;;  %v13817_v9 = vpack.c.bf16 %v982_v3, %v982_v3  ;;  %v9250_v11 = vor.u32 %v11757_v63, %v9247_v0 }
  0xdd   : > { %v11601_v12 = vld [vmem:[%s13683_s20 + $0x25c] sm:$0xf0]  ;;  %v11741_v31 = vld [vmem:[%s13683_s20 + $0x6c4] sm:$0xf] }
  0xde   : > { %v8861_v13 = vld [vmem:[%s13683_s20 + $0x440] sm:$0xf]  ;;  %v8606_v20 = vor.u32 %v11601_v12, %v8605_v10  ;;  %2538 = vmatpush.bf16.msra.mxu0 %v8350_v17  ;;  %v13819_v10 = vpack.c.bf16 %v983_v4, %v983_v4  ;;  %v8703_v12 = vld [vmem:[%s13683_s20 + $0x320] sm:$0xf0]  ;;  %v980_v17 = vld [vmem:[%s13673_s23] sm:$0xff] }
  0xdf   : > { %v11665_v14 = vld [vmem:[%s13683_s20 + $0x45c] sm:$0xf0]  ;;  %v11605_v38 = vld [vmem:[%s13683_s20 + $0x284] sm:$0xf] }
  0xe0   : > { %v9117_v15 = vld [vmem:[%s13683_s20 + $0x640] sm:$0xf]  ;;  %v8862_v21 = vor.u32 %v11665_v14, %v8861_v13  ;;  %2551 = vmatpush.bf16.msra.mxu1 %v8606_v20  ;;  %v11685_v13 = vld [vmem:[%s13683_s20 + $0x504] sm:$0xf] }
  0xe1   : > { %v11729_v16 = vld [vmem:[%s13683_s20 + $0x65c] sm:$0xf0]  ;;  %v8959_v14 = vld [vmem:[%s13683_s20 + $0x520] sm:$0xf0] }
  0xe2   : > { %v8317_v18 = vld [vmem:[%s13683_s20] sm:$0xf]  ;;  %v9118_v25 = vor.u32 %v11729_v16, %v9117_v15  ;;  %2564 = vmatpush.bf16.msra.mxu2 %v8862_v21  ;;  %v11749_v15 = vld [vmem:[%s13683_s20 + $0x704] sm:$0xf]  ;;  %v8706_v21 = vor.u32 %v11621_v8, %v8703_v12  ;;  %v9061_v12 = vld [vmem:[%s13683_s20 + $0x5c8] sm:$0xf] }
  0xe3   : > { %v11529_v19 = vld [vmem:[%s13683_s20 + $0x1c] sm:$0xf0]  ;;  %v9215_v16 = vld [vmem:[%s13683_s20 + $0x720] sm:$0xf0] }
  0xe4   : > { %v8573_v22 = vld [vmem:[%s13683_s20 + $0x200] sm:$0xf]  ;;  %v8318_v32 = vor.u32 %v11529_v19, %v8317_v18  ;;  %2577 = vmatpush.bf16.msra.mxu3 %v9118_v25  ;;  %v8450_v18 = vor.u32 %v11557_v6, %v8447_v7  ;;  %v13829_v19 = vpack.c.bf16 %v980_v17, %v980_v17  ;;  %v11613_v25 = vld [vmem:[%s13683_s20 + $0x2c4] sm:$0xf]  ;;  %v11586_v6 = vld [vmem:[%s13683_s20 + $0x1e4] sm:$0xf0] }
  0xe5   : > { %v11593_v23 = vld [vmem:[%s13683_s20 + $0x21c] sm:$0xf0]  ;;  %v9151_v44 = vld [vmem:[%s13683_s20 + $0x6a0] sm:$0xf0]  ;;  %v8805_v7 = vld [vmem:[%s13683_s20 + $0x3c8] sm:$0xf] }
  0xe6   : > { %v8829_v24 = vld [vmem:[%s13683_s20 + $0x400] sm:$0xf]  ;;  %v8574_v36 = vor.u32 %v11593_v23, %v8573_v22  ;;  %2539 = vmatpush.bf16.msra.mxu0 %v8318_v32  ;;  %v8962_v22 = vor.u32 %v11685_v13, %v8959_v14  ;;  %v11549_v23 = vld [vmem:[%s13683_s20 + $0xc4] sm:$0xf]  ;;  %v11714_v13 = vld [vmem:[%s13683_s20 + $0x5e4] sm:$0xf0] }
  0xe7   : > { %v11657_v26 = vld [vmem:[%s13683_s20 + $0x41c] sm:$0xf0]  ;;  %v9183_v32 = vld [vmem:[%s13683_s20 + $0x6e0] sm:$0xf0]  ;;  %v11778_v17 = vld [vmem:[%s13683_s20 + $0x7e4] sm:$0xf0] }
  0xe8   : > { %v9085_v27 = vld [vmem:[%s13683_s20 + $0x600] sm:$0xf]  ;;  %v8830_v37 = vor.u32 %v11657_v26, %v8829_v24  ;;  %2552 = vmatpush.bf16.msra.mxu1 %v8574_v36  ;;  %v8415_v24 = vld [vmem:[%s13683_s20 + $0xe0] sm:$0xf0]  ;;  %v9186_v39 = vor.u32 %v11741_v31, %v9183_v32  ;;  %v9285_v31 = vld [vmem:[%s13683_s20 + $0x788] sm:$0xf] }
  0xe9   : > { %v11721_v28 = vld [vmem:[%s13683_s20 + $0x61c] sm:$0xf0]  ;;  %2540 = vmatmul.bf16.vlgmr.msra.gmra.mxu0 %v13829_v19  ;;  %v8418_v33 = vor.u32 %v11549_v23, %v8415_v24  ;;  %v11541_v36 = vld [vmem:[%s13683_s20 + $0x84] sm:$0xf]  ;;  %v8517_v23 = vld [vmem:[%s13683_s20 + $0x188] sm:$0xf] }
  0xea   : > { %v9086_v40 = vor.u32 %v11721_v28, %v9085_v27  ;;  %2565 = vmatpush.bf16.msra.mxu2 %v8830_v37  ;;  %2584 = vmatpush.bf16.msrb.mxu0 %v8546_v41  ;;  %v981_v20 = vld [vmem:[%s13673_s23 + $0x8] sm:$0xff]  ;;  %v9218_v27 = vor.u32 %v11749_v15, %v9215_v16  ;;  %v9317_v16 = vld [vmem:[%s13683_s20 + $0x7c8] sm:$0xf] }
  0xeb   : > { %v13835_v26 = vpack.c.bf16 %v981_v20, %v981_v20  ;;  %v8671_v28 = vld [vmem:[%s13683_s20 + $0x2e0] sm:$0xf0]  ;;  %v11578_v24 = vld [vmem:[%s13683_s20 + $0x1a4] sm:$0xf0] }
  0xec   : > { %2578 = vmatpush.bf16.msra.mxu3 %v9086_v40  ;;  %2597 = vmatpush.bf16.msrb.mxu1 %v8802_v42  ;;  %v8674_v34 = vor.u32 %v11613_v25, %v8671_v28  ;;  %v8383_v37 = vld [vmem:[%s13683_s20 + $0xa0] sm:$0xf0]  ;;  %v8773_v25 = vld [vmem:[%s13683_s20 + $0x388] sm:$0xf] }
  0xed   : > { %2566 = vmatmul.bf16.vlgmr.msra.gmra.mxu2 %v13817_v9  ;;  %2553 = vmatmul.bf16.vlgmr.msra.gmra.mxu1 %v13835_v26  ;;  %v8639_v40 = vld [vmem:[%s13683_s20 + $0x2a0] sm:$0xf0]  ;;  %v8386_v45 = vor.u32 %v11541_v36, %v8383_v37  ;;  %v11642_v28 = vld [vmem:[%s13683_s20 + $0x3a4] sm:$0xf0] }
  0xee   : > { %2610 = vmatpush.bf16.msrb.mxu2 %v9058_v43  ;;  %2585 = vmatpush.bf16.msrb.mxu0 %v8514_v53  ;;  %v11669_v41 = vld [vmem:[%s13683_s20 + $0x484] sm:$0xf]  ;;  %v8642_v46 = vor.u32 %v11605_v38, %v8639_v40  ;;  %v11770_v32 = vld [vmem:[%s13683_s20 + $0x7a4] sm:$0xf0] }
  0xef   : > { %2579 = vmatmul.bf16.vlgmr.msra.gmra.mxu3 %v13819_v10  ;;  %v8895_v42 = vld [vmem:[%s13683_s20 + $0x4a0] sm:$0xf0]  ;;  %v8485_v36 = vld [vmem:[%s13683_s20 + $0x148] sm:$0xf] }
  0xf0   : > { %2623 = vmatpush.bf16.msrb.mxu3 %v9314_v47  ;;  %2598 = vmatpush.bf16.msrb.mxu1 %v8770_v55  ;;  %v11733_v43 = vld [vmem:[%s13683_s20 + $0x684] sm:$0xf]  ;;  %v8898_v47 = vor.u32 %v11669_v41, %v8895_v42  ;;  %v11570_v37 = vld [vmem:[%s13683_s20 + $0x164] sm:$0xf0] }
  0xf1   : > { %v11533_v48 = vld [vmem:[%s13683_s20 + $0x44] sm:$0xf]  ;;  %v9154_v51 = vor.u32 %v11733_v43, %v9151_v44  ;;  %v8741_v38 = vld [vmem:[%s13683_s20 + $0x348] sm:$0xf] }
  0xf2   : > { %2611 = vmatpush.bf16.msrb.mxu2 %v9026_v56  ;;  %2586 = vmatpush.bf16.msrb.mxu0 %v8482_v1  ;;  %v8351_v49 = vld [vmem:[%s13683_s20 + $0x60] sm:$0xf0]  ;;  %v11634_v40 = vld [vmem:[%s13683_s20 + $0x364] sm:$0xf0] }
  0xf3   : > { %v11597_v50 = vld [vmem:[%s13683_s20 + $0x244] sm:$0xf]  ;;  %v8354_v57 = vor.u32 %v11533_v48, %v8351_v49  ;;  %v8997_v41 = vld [vmem:[%s13683_s20 + $0x548] sm:$0xf] }
  0xf4   : > { %2624 = vmatpush.bf16.msrb.mxu3 %v9282_v60  ;;  %2599 = vmatpush.bf16.msrb.mxu1 %v8738_v2  ;;  %v8607_v52 = vld [vmem:[%s13683_s20 + $0x260] sm:$0xf0]  ;;  %v11698_v42 = vld [vmem:[%s13683_s20 + $0x564] sm:$0xf0] }
  0xf5   : > { %v11661_v53 = vld [vmem:[%s13683_s20 + $0x444] sm:$0xf]  ;;  %v8610_v60 = vor.u32 %v11597_v50, %v8607_v52  ;;  %v9253_v43 = vld [vmem:[%s13683_s20 + $0x748] sm:$0xf] }
  0xf6   : > { %2612 = vmatpush.bf16.msrb.mxu2 %v8994_v5  ;;  %2587 = vmatpush.bf16.msrb.mxu0 %v8450_v18  ;;  %v8863_v54 = vld [vmem:[%s13683_s20 + $0x460] sm:$0xf0]  ;;  %v8549_v5 = vld [vmem:[%s13683_s20 + $0x1c8] sm:$0xf] }
  0xf7   : > { %v11725_v55 = vld [vmem:[%s13683_s20 + $0x644] sm:$0xf]  ;;  %v8866_v61 = vor.u32 %v11661_v53, %v8863_v54  ;;  %v8550_v20 = vor.u32 %v11586_v6, %v8549_v5  ;;  %v11762_v44 = vld [vmem:[%s13683_s20 + $0x764] sm:$0xf0] }
  0xf8   : > { %2625 = vmatpush.bf16.msrb.mxu3 %v9250_v11  ;;  %2600 = vmatpush.bf16.msrb.mxu1 %v8706_v21  ;;  %v9119_v56 = vld [vmem:[%s13683_s20 + $0x660] sm:$0xf0]  ;;  %v11650_v11 = vld [vmem:[%s13683_s20 + $0x3e4] sm:$0xf0] }
  0xf9   : > { %v11525_v58 = vld [vmem:[%s13683_s20 + $0x4] sm:$0xf]  ;;  %v9122_v1 = vor.u32 %v11725_v55, %v9119_v56  ;;  %v8806_v21 = vor.u32 %v11650_v11, %v8805_v7  ;;  %v8453_v48 = vld [vmem:[%s13683_s20 + $0x108] sm:$0xf] }
  0xfa   : > { %2613 = vmatpush.bf16.msrb.mxu2 %v8962_v22  ;;  %2588 = vmatpush.bf16.msrb.mxu0 %v8418_v33  ;;  %v8319_v59 = vld [vmem:[%s13683_s20 + $0x20] sm:$0xf0]  ;;  %v9062_v22 = vor.u32 %v11714_v13, %v9061_v12  ;;  %v8518_v33 = vor.u32 %v11578_v24, %v8517_v23  ;;  %v11562_v49 = vld [vmem:[%s13683_s20 + $0x124] sm:$0xf0] }
  0xfb   : > { %v11589_v62 = vld [vmem:[%s13683_s20 + $0x204] sm:$0xf]  ;;  %v8322_v8 = vor.u32 %v11525_v58, %v8319_v59  ;;  %v8709_v50 = vld [vmem:[%s13683_s20 + $0x308] sm:$0xf] }
  0xfc   : > { %2626 = vmatpush.bf16.msrb.mxu3 %v9218_v27  ;;  %2601 = vmatpush.bf16.msrb.mxu1 %v8674_v34  ;;  %v8575_v63 = vld [vmem:[%s13683_s20 + $0x220] sm:$0xf0]  ;;  %v9318_v27 = vor.u32 %v11778_v17, %v9317_v16  ;;  %v8774_v34 = vor.u32 %v11642_v28, %v8773_v25  ;;  %v11626_v52 = vld [vmem:[%s13683_s20 + $0x324] sm:$0xf0] }
  0xfd   : > { %v11653_v0 = vld [vmem:[%s13683_s20 + $0x404] sm:$0xf]  ;;  %v8578_v14 = vor.u32 %v11589_v62, %v8575_v63  ;;  %v8965_v53 = vld [vmem:[%s13683_s20 + $0x508] sm:$0xf]  ;;  %v8710_v58 = vor.u32 %v11626_v52, %v8709_v50  ;;  %v11710_v50 = vld [vmem:[%s13683_s20 + $0x5cc] sm:$0xf] }
  0xfe   : > { %2614 = vmatpush.bf16.msrb.mxu2 %v8930_v35  ;;  %2589 = vmatpush.bf16.msrb.mxu0 %v8386_v45  ;;  %v8831_v2 = vld [vmem:[%s13683_s20 + $0x420] sm:$0xf0]  ;;  %v9030_v35 = vor.u32 %v11706_v30, %v9029_v29  ;;  %v8486_v45 = vor.u32 %v11570_v37, %v8485_v36  ;;  %v11690_v54 = vld [vmem:[%s13683_s20 + $0x524] sm:$0xf0] }
  0xff   : > { %v11717_v3 = vld [vmem:[%s13683_s20 + $0x604] sm:$0xf]  ;;  %v8834_v15 = vor.u32 %v11653_v0, %v8831_v2  ;;  %v9221_v55 = vld [vmem:[%s13683_s20 + $0x708] sm:$0xf]  ;;  %v8966_v59 = vor.u32 %v11690_v54, %v8965_v53  ;;  %v11774_v54 = vld [vmem:[%s13683_s20 + $0x7cc] sm:$0xf] }
 0x100   : > { %2627 = vmatpush.bf16.msrb.mxu3 %v9186_v39  ;;  %2602 = vmatpush.bf16.msrb.mxu1 %v8642_v46  ;;  %v9087_v4 = vld [vmem:[%s13683_s20 + $0x620] sm:$0xf0]  ;;  %v9286_v39 = vor.u32 %v11770_v32, %v9285_v31  ;;  %v8742_v46 = vor.u32 %v11634_v40, %v8741_v38  ;;  %v11754_v56 = vld [vmem:[%s13683_s20 + $0x724] sm:$0xf0] }
 0x101   : > { %v9090_v18 = vor.u32 %v11717_v3, %v9087_v4  ;;  %v8677_v62 = vld [vmem:[%s13683_s20 + $0x2c8] sm:$0xf]  ;;  %v9222_v63 = vor.u32 %v11754_v56, %v9221_v55  ;;  %v9319_v55 = vld [vmem:[%s13683_s20 + $0x7e8] sm:$0xf0] }
 0x102   : > { %2615 = vmatpush.bf16.msrb.mxu2 %v8898_v47  ;;  %2590 = vmatpush.bf16.msrb.mxu0 %v8354_v57  ;;  %v8998_v47 = vor.u32 %v11698_v42, %v8997_v41  ;;  %v8454_v57 = vor.u32 %v11562_v49, %v8453_v48  ;;  %v11618_v0 = vld [vmem:[%s13683_s20 + $0x2e4] sm:$0xf0]  ;;  %v8807_v49 = vld [vmem:[%s13683_s20 + $0x3e8] sm:$0xf0] }
 0x103   : > { %v11682_v2 = vld [vmem:[%s13683_s20 + $0x4e4] sm:$0xf0]  ;;  %v8678_v6 = vor.u32 %v11618_v0, %v8677_v62  ;;  %v11638_v62 = vld [vmem:[%s13683_s20 + $0x38c] sm:$0xf] }
 0x104   : > { %2628 = vmatpush.bf16.msrb.mxu3 %v9154_v51  ;;  %2603 = vmatpush.bf16.msrb.mxu1 %v8610_v60  ;;  %v9254_v51 = vor.u32 %v11762_v44, %v9253_v43  ;;  %v8421_v60 = vld [vmem:[%s13683_s20 + $0xc8] sm:$0xf]  ;;  %v8775_v0 = vld [vmem:[%s13683_s20 + $0x3a8] sm:$0xf0] }
 0x105   : > { %v9189_v3 = vld [vmem:[%s13683_s20 + $0x6c8] sm:$0xf] }
 0x106   : > { %2616 = vmatpush.bf16.msrb.mxu2 %v8866_v61  ;;  %2591 = vmatpush.bf16.msrb.mxu0 %v8322_v8  ;;  %v11554_v61 = vld [vmem:[%s13683_s20 + $0xe4] sm:$0xf0] }
 0x107   : > { %v11746_v4 = vld [vmem:[%s13683_s20 + $0x6e4] sm:$0xf0]  ;;  %v8422_v5 = vor.u32 %v11554_v61, %v8421_v60  ;;  %v11574_v60 = vld [vmem:[%s13683_s20 + $0x18c] sm:$0xf] }
 0x108   : > { %2629 = vmatpush.bf16.msrb.mxu3 %v9122_v1  ;;  %2604 = vmatpush.bf16.msrb.mxu1 %v8578_v14  ;;  %v8933_v1 = vld [vmem:[%s13683_s20 + $0x4c8] sm:$0xf]  ;;  %v9190_v13 = vor.u32 %v11746_v4, %v9189_v3  ;;  %v8519_v61 = vld [vmem:[%s13683_s20 + $0x1a8] sm:$0xf0] }
 0x109   : > { %2592 = vmatmul.bf16.vlgmr.msrb.gmra.mxu0 %v13829_v19  ;;  %v8934_v7 = vor.u32 %v11682_v2, %v8933_v1  ;;  %v8389_v8 = vld [vmem:[%s13683_s20 + $0x88] sm:$0xf]  ;;  %v11702_v1 = vld [vmem:[%s13683_s20 + $0x58c] sm:$0xf] }
 0x10a   : > { %2617 = vmatpush.bf16.msrb.mxu2 %v8834_v15  ;;  %2636 = vmatpush.bf16.msra.mxu0 %v8550_v20  ;;  %v11546_v11 = vld [vmem:[%s13683_s20 + $0xa4] sm:$0xf0]  ;;  %v9031_v2 = vld [vmem:[%s13683_s20 + $0x5a8] sm:$0xf0] }
 0x10b   : > { %2605 = vmatmul.bf16.vlgmr.msrb.gmra.mxu1 %v13835_v26  ;;  %v8645_v12 = vld [vmem:[%s13683_s20 + $0x288] sm:$0xf]  ;;  %v8390_v20 = vor.u32 %v11546_v11, %v8389_v8  ;;  %v11766_v3 = vld [vmem:[%s13683_s20 + $0x78c] sm:$0xf] }
 0x10c   : > { %2630 = vmatpush.bf16.msrb.mxu3 %v9090_v18  ;;  %2649 = vmatpush.bf16.msra.mxu1 %v8806_v21  ;;  %v11610_v14 = vld [vmem:[%s13683_s20 + $0x2a4] sm:$0xf0]  ;;  %v9287_v4 = vld [vmem:[%s13683_s20 + $0x7a8] sm:$0xf0] }
 0x10d   : > { %2618 = vmatmul.bf16.vlgmr.msrb.gmra.mxu2 %v13817_v9  ;;  %v8901_v15 = vld [vmem:[%s13683_s20 + $0x488] sm:$0xf]  ;;  %v8646_v21 = vor.u32 %v11610_v14, %v8645_v12  ;;  %v11566_v8 = vld [vmem:[%s13683_s20 + $0x14c] sm:$0xf] }
 0x10e   : > { %2662 = vmatpush.bf16.msra.mxu2 %v9062_v22  ;;  %2637 = vmatpush.bf16.msra.mxu0 %v8518_v33  ;;  %v11674_v16 = vld [vmem:[%s13683_s20 + $0x4a4] sm:$0xf0]  ;;  %v8487_v11 = vld [vmem:[%s13683_s20 + $0x168] sm:$0xf0] }
 0x10f   : > { %2631 = vmatmul.bf16.vlgmr.msrb.gmra.mxu3 %v13819_v10  ;;  %v9157_v17 = vld [vmem:[%s13683_s20 + $0x688] sm:$0xf]  ;;  %v8902_v22 = vor.u32 %v11674_v16, %v8901_v15  ;;  %v11630_v12 = vld [vmem:[%s13683_s20 + $0x34c] sm:$0xf] }
 0x110   : > { %2675 = vmatpush.bf16.msra.mxu3 %v9318_v27  ;;  %2650 = vmatpush.bf16.msra.mxu1 %v8774_v34  ;;  %v11738_v18 = vld [vmem:[%s13683_s20 + $0x6a4] sm:$0xf0]  ;;  %v8743_v14 = vld [vmem:[%s13683_s20 + $0x368] sm:$0xf0] }
 0x111   : > { %v8357_v23 = vld [vmem:[%s13683_s20 + $0x48] sm:$0xf]  ;;  %v9158_v27 = vor.u32 %v11738_v18, %v9157_v17  ;;  %v11694_v15 = vld [vmem:[%s13683_s20 + $0x54c] sm:$0xf] }
 0x112   : > { %2663 = vmatpush.bf16.msra.mxu2 %v9030_v35  ;;  %2638 = vmatpush.bf16.msra.mxu0 %v8486_v45  ;;  %v11538_v24 = vld [vmem:[%s13683_s20 + $0x64] sm:$0xf0]  ;;  %v11582_v45 = vld [vmem:[%s13683_s20 + $0x1cc] sm:$0xf] }
 0x113   : > { %v8613_v25 = vld [vmem:[%s13683_s20 + $0x248] sm:$0xf]  ;;  %v8358_v33 = vor.u32 %v11538_v24, %v8357_v23  ;;  %v8999_v16 = vld [vmem:[%s13683_s20 + $0x568] sm:$0xf0] }
 0x114   : > { %2676 = vmatpush.bf16.msra.mxu3 %v9286_v39  ;;  %2651 = vmatpush.bf16.msra.mxu1 %v8742_v46  ;;  %v11602_v28 = vld [vmem:[%s13683_s20 + $0x264] sm:$0xf0]  ;;  %v8551_v46 = vld [vmem:[%s13683_s20 + $0x1e8] sm:$0xf0] }
 0x115   : > { %v8869_v29 = vld [vmem:[%s13683_s20 + $0x448] sm:$0xf]  ;;  %v8614_v36 = vor.u32 %v11602_v28, %v8613_v25  ;;  %v11758_v17 = vld [vmem:[%s13683_s20 + $0x74c] sm:$0xf] }
 0x116   : > { %2664 = vmatpush.bf16.msra.mxu2 %v8998_v47  ;;  %2639 = vmatpush.bf16.msra.mxu0 %v8454_v57  ;;  %v11666_v30 = vld [vmem:[%s13683_s20 + $0x464] sm:$0xf0]  ;;  %v11646_v47 = vld [vmem:[%s13683_s20 + $0x3cc] sm:$0xf]  ;;  %v8554_v57 = vor.u32 %v11582_v45, %v8551_v46 }
 0x117   : > { %v9125_v31 = vld [vmem:[%s13683_s20 + $0x648] sm:$0xf]  ;;  %v8870_v37 = vor.u32 %v11666_v30, %v8869_v29  ;;  %v9255_v18 = vld [vmem:[%s13683_s20 + $0x768] sm:$0xf0] }
 0x118   : > { %2677 = vmatpush.bf16.msra.mxu3 %v9254_v51  ;;  %2652 = vmatpush.bf16.msra.mxu1 %v8710_v58  ;;  %v11730_v32 = vld [vmem:[%s13683_s20 + $0x664] sm:$0xf0]  ;;  %v9063_v51 = vld [vmem:[%s13683_s20 + $0x5e8] sm:$0xf0]  ;;  %v8810_v58 = vor.u32 %v11646_v47, %v8807_v49 }
 0x119   : > { %v8325_v34 = vld [vmem:[%s13683_s20 + $0x8] sm:$0xf]  ;;  %v9126_v41 = vor.u32 %v11730_v32, %v9125_v31  ;;  %v11558_v23 = vld [vmem:[%s13683_s20 + $0x10c] sm:$0xf] }
 0x11a   : > { %2665 = vmatpush.bf16.msra.mxu2 %v8966_v59  ;;  %2640 = vmatpush.bf16.msra.mxu0 %v8422_v5  ;;  %v11530_v35 = vld [vmem:[%s13683_s20 + $0x24] sm:$0xf0]  ;;  %v9066_v59 = vor.u32 %v11710_v50, %v9063_v51  ;;  %v8522_v5 = vor.u32 %v11574_v60, %v8519_v61  ;;  %v8455_v24 = vld [vmem:[%s13683_s20 + $0x128] sm:$0xf0] }
 0x11b   : > { %v8581_v38 = vld [vmem:[%s13683_s20 + $0x208] sm:$0xf]  ;;  %v8326_v48 = vor.u32 %v11530_v35, %v8325_v34  ;;  %v11622_v25 = vld [vmem:[%s13683_s20 + $0x30c] sm:$0xf] }
 0x11c   : > { %2678 = vmatpush.bf16.msra.mxu3 %v9222_v63  ;;  %2653 = vmatpush.bf16.msra.mxu1 %v8678_v6  ;;  %v11594_v39 = vld [vmem:[%s13683_s20 + $0x224] sm:$0xf0]  ;;  %v9322_v63 = vor.u32 %v11774_v54, %v9319_v55  ;;  %v8778_v6 = vor.u32 %v11638_v62, %v8775_v0  ;;  %v8711_v28 = vld [vmem:[%s13683_s20 + $0x328] sm:$0xf0] }
 0x11d   : > { %v8837_v40 = vld [vmem:[%s13683_s20 + $0x408] sm:$0xf]  ;;  %v8582_v52 = vor.u32 %v11594_v39, %v8581_v38  ;;  %v11686_v29 = vld [vmem:[%s13683_s20 + $0x50c] sm:$0xf]  ;;  %v8714_v34 = vor.u32 %v11622_v25, %v8711_v28  ;;  %v9069_v25 = vld [vmem:[%s13683_s20 + $0x5d0] sm:$0xf] }
 0x11e   : > { %2666 = vmatpush.bf16.msra.mxu2 %v8934_v7  ;;  %2641 = vmatpush.bf16.msra.mxu0 %v8390_v20  ;;  %v11658_v42 = vld [vmem:[%s13683_s20 + $0x424] sm:$0xf0]  ;;  %v9034_v7 = vor.u32 %v11702_v1, %v9031_v2  ;;  %v8490_v20 = vor.u32 %v11566_v8, %v8487_v11  ;;  %v8967_v30 = vld [vmem:[%s13683_s20 + $0x528] sm:$0xf0] }
 0x11f   : > { %v9093_v43 = vld [vmem:[%s13683_s20 + $0x608] sm:$0xf]  ;;  %v8838_v53 = vor.u32 %v11658_v42, %v8837_v40  ;;  %v11750_v31 = vld [vmem:[%s13683_s20 + $0x70c] sm:$0xf]  ;;  %v8970_v35 = vor.u32 %v11686_v29, %v8967_v30  ;;  %v9325_v30 = vld [vmem:[%s13683_s20 + $0x7d0] sm:$0xf] }
 0x120   : > { %2679 = vmatpush.bf16.msra.mxu3 %v9190_v13  ;;  %2654 = vmatpush.bf16.msra.mxu1 %v8646_v21  ;;  %v11722_v44 = vld [vmem:[%s13683_s20 + $0x624] sm:$0xf0]  ;;  %v9290_v13 = vor.u32 %v11766_v3, %v9287_v4  ;;  %v8746_v21 = vor.u32 %v11630_v12, %v8743_v14  ;;  %v9223_v32 = vld [vmem:[%s13683_s20 + $0x728] sm:$0xf0] }
 0x121   : > { %v9094_v56 = vor.u32 %v11722_v44, %v9093_v43  ;;  %v11614_v38 = vld [vmem:[%s13683_s20 + $0x2cc] sm:$0xf]  ;;  %v9226_v39 = vor.u32 %v11750_v31, %v9223_v32  ;;  %v11779_v31 = vld [vmem:[%s13683_s20 + $0x7ec] sm:$0xf0] }
 0x122   : > { %2667 = vmatpush.bf16.msra.mxu2 %v8902_v22  ;;  %2642 = vmatpush.bf16.msra.mxu0 %v8358_v33  ;;  %v9002_v22 = vor.u32 %v11694_v15, %v8999_v16  ;;  %v8458_v33 = vor.u32 %v11558_v23, %v8455_v24  ;;  %v8679_v40 = vld [vmem:[%s13683_s20 + $0x2e8] sm:$0xf0]  ;;  %v11651_v24 = vld [vmem:[%s13683_s20 + $0x3ec] sm:$0xf0] }
 0x123   : > { %v8935_v42 = vld [vmem:[%s13683_s20 + $0x4e8] sm:$0xf0]  ;;  %v8682_v46 = vor.u32 %v11614_v38, %v8679_v40  ;;  %v8781_v38 = vld [vmem:[%s13683_s20 + $0x390] sm:$0xf] }
 0x124   : > { %2680 = vmatpush.bf16.msra.mxu3 %v9158_v27  ;;  %2655 = vmatpush.bf16.msra.mxu1 %v8614_v36  ;;  %v9258_v27 = vor.u32 %v11758_v17, %v9255_v18  ;;  %v11550_v36 = vld [vmem:[%s13683_s20 + $0xcc] sm:$0xf]  ;;  %v11643_v40 = vld [vmem:[%s13683_s20 + $0x3ac] sm:$0xf0] }
 0x125   : > { %v11742_v43 = vld [vmem:[%s13683_s20 + $0x6cc] sm:$0xf] }
 0x126   : > { %2668 = vmatpush.bf16.msra.mxu2 %v8870_v37  ;;  %2643 = vmatpush.bf16.msra.mxu0 %v8326_v48  ;;  %v8423_v37 = vld [vmem:[%s13683_s20 + $0xe8] sm:$0xf0] }
 0x127   : > { %v9191_v44 = vld [vmem:[%s13683_s20 + $0x6e8] sm:$0xf0]  ;;  %v8426_v45 = vor.u32 %v11550_v36, %v8423_v37  ;;  %v8525_v36 = vld [vmem:[%s13683_s20 + $0x190] sm:$0xf] }
 0x128   : > { %2681 = vmatpush.bf16.msra.mxu3 %v9126_v41  ;;  %2656 = vmatpush.bf16.msra.mxu1 %v8582_v52  ;;  %v11678_v41 = vld [vmem:[%s13683_s20 + $0x4cc] sm:$0xf]  ;;  %v9194_v51 = vor.u32 %v11742_v43, %v9191_v44  ;;  %v11579_v37 = vld [vmem:[%s13683_s20 + $0x1ac] sm:$0xf0] }
 0x129   : > { %2644 = vmatmul.bf16.vlgmr.msra.gmra.mxu0 %v13829_v19  ;;  %v8938_v47 = vor.u32 %v11678_v41, %v8935_v42  ;;  %v11542_v48 = vld [vmem:[%s13683_s20 + $0x8c] sm:$0xf]  ;;  %v9037_v41 = vld [vmem:[%s13683_s20 + $0x590] sm:$0xf] }
 0x12a   : > { %2669 = vmatpush.bf16.msra.mxu2 %v8838_v53  ;;  %2688 = vmatpush.bf16.msrb.mxu0 %v8554_v57  ;;  %v8391_v49 = vld [vmem:[%s13683_s20 + $0xa8] sm:$0xf0]  ;;  %v11707_v42 = vld [vmem:[%s13683_s20 + $0x5ac] sm:$0xf0] }
 0x12b   : > { %2657 = vmatmul.bf16.vlgmr.msra.gmra.mxu1 %v13835_v26  ;;  %v11606_v50 = vld [vmem:[%s13683_s20 + $0x28c] sm:$0xf]  ;;  %v8394_v57 = vor.u32 %v11542_v48, %v8391_v49  ;;  %v9293_v43 = vld [vmem:[%s13683_s20 + $0x790] sm:$0xf] }
 0x12c   : > { %2682 = vmatpush.bf16.msra.mxu3 %v9094_v56  ;;  %2701 = vmatpush.bf16.msrb.mxu1 %v8810_v58  ;;  %v8647_v52 = vld [vmem:[%s13683_s20 + $0x2a8] sm:$0xf0]  ;;  %v11771_v44 = vld [vmem:[%s13683_s20 + $0x7ac] sm:$0xf0] }
 0x12d   : > { %2670 = vmatmul.bf16.vlgmr.msra.gmra.mxu2 %v13817_v9  ;;  %v11670_v53 = vld [vmem:[%s13683_s20 + $0x48c] sm:$0xf]  ;;  %v8650_v58 = vor.u32 %v11606_v50, %v8647_v52  ;;  %v8493_v48 = vld [vmem:[%s13683_s20 + $0x150] sm:$0xf] }
 0x12e   : > { %2714 = vmatpush.bf16.msrb.mxu2 %v9066_v59  ;;  %2689 = vmatpush.bf16.msrb.mxu0 %v8522_v5  ;;  %v8903_v54 = vld [vmem:[%s13683_s20 + $0x4a8] sm:$0xf0]  ;;  %v11571_v49 = vld [vmem:[%s13683_s20 + $0x16c] sm:$0xf0] }
 0x12f   : > { %2683 = vmatmul.bf16.vlgmr.msra.gmra.mxu3 %v13819_v10  ;;  %v11734_v55 = vld [vmem:[%s13683_s20 + $0x68c] sm:$0xf]  ;;  %v8906_v59 = vor.u32 %v11670_v53, %v8903_v54  ;;  %v8749_v50 = vld [vmem:[%s13683_s20 + $0x350] sm:$0xf] }
 0x130   : > { %2727 = vmatpush.bf16.msrb.mxu3 %v9322_v63  ;;  %2702 = vmatpush.bf16.msrb.mxu1 %v8778_v6  ;;  %v9159_v56 = vld [vmem:[%s13683_s20 + $0x6a8] sm:$0xf0]  ;;  %v11635_v52 = vld [vmem:[%s13683_s20 + $0x36c] sm:$0xf0] }
 0x131   : > { %v11534_v60 = vld [vmem:[%s13683_s20 + $0x4c] sm:$0xf]  ;;  %v9162_v63 = vor.u32 %v11734_v55, %v9159_v56  ;;  %v9005_v53 = vld [vmem:[%s13683_s20 + $0x550] sm:$0xf] }
 0x132   : > { %2715 = vmatpush.bf16.msrb.mxu2 %v9034_v7  ;;  %2690 = vmatpush.bf16.msrb.mxu0 %v8490_v20  ;;  %v8359_v61 = vld [vmem:[%s13683_s20 + $0x68] sm:$0xf0]  ;;  %v8557_v20 = vld [vmem:[%s13683_s20 + $0x1d0] sm:$0xf] }
 0x133   : > { %v11598_v62 = vld [vmem:[%s13683_s20 + $0x24c] sm:$0xf]  ;;  %v8362_v5 = vor.u32 %v11534_v60, %v8359_v61  ;;  %v11699_v54 = vld [vmem:[%s13683_s20 + $0x56c] sm:$0xf0] }
 0x134   : > { %2728 = vmatpush.bf16.msrb.mxu3 %v9290_v13  ;;  %2703 = vmatpush.bf16.msrb.mxu1 %v8746_v21  ;;  %v8615_v0 = vld [vmem:[%s13683_s20 + $0x268] sm:$0xf0]  ;;  %v11587_v21 = vld [vmem:[%s13683_s20 + $0x1ec] sm:$0xf0] }
 0x135   : > { %v11662_v1 = vld [vmem:[%s13683_s20 + $0x44c] sm:$0xf]  ;;  %v8618_v8 = vor.u32 %v11598_v62, %v8615_v0  ;;  %v9261_v55 = vld [vmem:[%s13683_s20 + $0x750] sm:$0xf] }
 0x136   : > { %2716 = vmatpush.bf16.msrb.mxu2 %v9002_v22  ;;  %2691 = vmatpush.bf16.msrb.mxu0 %v8458_v33  ;;  %v8871_v2 = vld [vmem:[%s13683_s20 + $0x468] sm:$0xf0]  ;;  %v8813_v22 = vld [vmem:[%s13683_s20 + $0x3d0] sm:$0xf]  ;;  %v8558_v33 = vor.u32 %v11587_v21, %v8557_v20 }
 0x137   : > { %v11726_v3 = vld [vmem:[%s13683_s20 + $0x64c] sm:$0xf]  ;;  %v8874_v11 = vor.u32 %v11662_v1, %v8871_v2  ;;  %v11763_v56 = vld [vmem:[%s13683_s20 + $0x76c] sm:$0xf0] }
 0x138   : > { %2729 = vmatpush.bf16.msrb.mxu3 %v9258_v27  ;;  %2704 = vmatpush.bf16.msrb.mxu1 %v8714_v34  ;;  %v9127_v4 = vld [vmem:[%s13683_s20 + $0x668] sm:$0xf0]  ;;  %v11715_v27 = vld [vmem:[%s13683_s20 + $0x5ec] sm:$0xf0]  ;;  %v8814_v34 = vor.u32 %v11651_v24, %v8813_v22 }
 0x139   : > { %v11526_v6 = vld [vmem:[%s13683_s20 + $0xc] sm:$0xf]  ;;  %v9130_v15 = vor.u32 %v11726_v3, %v9127_v4  ;;  %v8461_v60 = vld [vmem:[%s13683_s20 + $0x110] sm:$0xf] }
 0x13a   : > { %2717 = vmatpush.bf16.msrb.mxu2 %v8970_v35  ;;  %2692 = vmatpush.bf16.msrb.mxu0 %v8426_v45  ;;  %v8327_v7 = vld [vmem:[%s13683_s20 + $0x28] sm:$0xf0]  ;;  %v9070_v35 = vor.u32 %v11715_v27, %v9069_v25  ;;  %v8526_v45 = vor.u32 %v11579_v37, %v8525_v36  ;;  %v11563_v61 = vld [vmem:[%s13683_s20 + $0x12c] sm:$0xf0] }
 0x13b   : > { %v11590_v12 = vld [vmem:[%s13683_s20 + $0x20c] sm:$0xf]  ;;  %v8330_v23 = vor.u32 %v11526_v6, %v8327_v7  ;;  %v8717_v62 = vld [vmem:[%s13683_s20 + $0x310] sm:$0xf] }
 0x13c   : > { %2730 = vmatpush.bf16.msrb.mxu3 %v9226_v39  ;;  %2705 = vmatpush.bf16.msrb.mxu1 %v8682_v46  ;;  %v8583_v13 = vld [vmem:[%s13683_s20 + $0x228] sm:$0xf0]  ;;  %v9326_v39 = vor.u32 %v11779_v31, %v9325_v30  ;;  %v8782_v46 = vor.u32 %v11643_v40, %v8781_v38  ;;  %v11627_v0 = vld [vmem:[%s13683_s20 + $0x32c] sm:$0xf0] }
 0x13d   : > { %v11654_v14 = vld [vmem:[%s13683_s20 + $0x40c] sm:$0xf]  ;;  %v8586_v28 = vor.u32 %v11590_v12, %v8583_v13  ;;  %v8973_v1 = vld [vmem:[%s13683_s20 + $0x510] sm:$0xf]  ;;  %v8718_v6 = vor.u32 %v11627_v0, %v8717_v62  ;;  %v11711_v62 = vld [vmem:[%s13683_s20 + $0x5d4] sm:$0xf] }
 0x13e   : > { %2718 = vmatpush.bf16.msrb.mxu2 %v8938_v47  ;;  %2693 = vmatpush.bf16.msrb.mxu0 %v8394_v57  ;;  %v8839_v16 = vld [vmem:[%s13683_s20 + $0x428] sm:$0xf0]  ;;  %v9038_v47 = vor.u32 %v11707_v42, %v9037_v41  ;;  %v8494_v57 = vor.u32 %v11571_v49, %v8493_v48  ;;  %v11691_v2 = vld [vmem:[%s13683_s20 + $0x52c] sm:$0xf0] }
 0x13f   : > { %v11718_v17 = vld [vmem:[%s13683_s20 + $0x60c] sm:$0xf]  ;;  %v8842_v29 = vor.u32 %v11654_v14, %v8839_v16  ;;  %v9229_v3 = vld [vmem:[%s13683_s20 + $0x710] sm:$0xf]  ;;  %v8974_v7 = vor.u32 %v11691_v2, %v8973_v1  ;;  %v11775_v2 = vld [vmem:[%s13683_s20 + $0x7d4] sm:$0xf] }
 0x140   : > { %2731 = vmatpush.bf16.msrb.mxu3 %v9194_v51  ;;  %2706 = vmatpush.bf16.msrb.mxu1 %v8650_v58  ;;  %v9095_v18 = vld [vmem:[%s13683_s20 + $0x628] sm:$0xf0]  ;;  %v9294_v51 = vor.u32 %v11771_v44, %v9293_v43  ;;  %v8750_v58 = vor.u32 %v11635_v52, %v8749_v50  ;;  %v11755_v4 = vld [vmem:[%s13683_s20 + $0x72c] sm:$0xf0] }
 0x141   : > { %v9098_v32 = vor.u32 %v11718_v17, %v9095_v18  ;;  %v8685_v12 = vld [vmem:[%s13683_s20 + $0x2d0] sm:$0xf]  ;;  %v9230_v13 = vor.u32 %v11755_v4, %v9229_v3  ;;  %v9327_v3 = vld [vmem:[%s13683_s20 + $0x7f0] sm:$0xf0] }
 0x142   : > { %2719 = vmatpush.bf16.msrb.mxu2 %v8906_v59  ;;  %2694 = vmatpush.bf16.msrb.mxu0 %v8362_v5  ;;  %v9006_v59 = vor.u32 %v11699_v54, %v9005_v53  ;;  %v8462_v5 = vor.u32 %v11563_v61, %v8461_v60  ;;  %v11619_v14 = vld [vmem:[%s13683_s20 + $0x2ec] sm:$0xf0]  ;;  %v8815_v61 = vld [vmem:[%s13683_s20 + $0x3f0] sm:$0xf0] }
 0x143   : > { %v11683_v16 = vld [vmem:[%s13683_s20 + $0x4ec] sm:$0xf0]  ;;  %v8686_v21 = vor.u32 %v11619_v14, %v8685_v12  ;;  %v11639_v12 = vld [vmem:[%s13683_s20 + $0x394] sm:$0xf] }
 0x144   : > { %2732 = vmatpush.bf16.msrb.mxu3 %v9162_v63  ;;  %2707 = vmatpush.bf16.msrb.mxu1 %v8618_v8  ;;  %v9262_v63 = vor.u32 %v11763_v56, %v9261_v55  ;;  %v8429_v8 = vld [vmem:[%s13683_s20 + $0xd0] sm:$0xf]  ;;  %v8783_v14 = vld [vmem:[%s13683_s20 + $0x3b0] sm:$0xf0] }
 0x145   : > { %v9197_v17 = vld [vmem:[%s13683_s20 + $0x6d0] sm:$0xf] }
 0x146   : > { %2720 = vmatpush.bf16.msrb.mxu2 %v8874_v11  ;;  %2695 = vmatpush.bf16.msrb.mxu0 %v8330_v23  ;;  %v11555_v11 = vld [vmem:[%s13683_s20 + $0xec] sm:$0xf0] }
 0x147   : > { %v11747_v18 = vld [vmem:[%s13683_s20 + $0x6ec] sm:$0xf0]  ;;  %v8430_v20 = vor.u32 %v11555_v11, %v8429_v8  ;;  %v11575_v8 = vld [vmem:[%s13683_s20 + $0x194] sm:$0xf] }
 0x148   : > { %2733 = vmatpush.bf16.msrb.mxu3 %v9130_v15  ;;  %2708 = vmatpush.bf16.msrb.mxu1 %v8586_v28  ;;  %v8941_v15 = vld [vmem:[%s13683_s20 + $0x4d0] sm:$0xf]  ;;  %v9198_v27 = vor.u32 %v11747_v18, %v9197_v17  ;;  %v8527_v11 = vld [vmem:[%s13683_s20 + $0x1b0] sm:$0xf0] }
 0x149   : > { %2696 = vmatmul.bf16.vlgmr.msrb.gmra.mxu0 %v13829_v19  ;;  %v8942_v22 = vor.u32 %v11683_v16, %v8941_v15  ;;  %v8397_v23 = vld [vmem:[%s13683_s20 + $0x90] sm:$0xf]  ;;  %v11703_v15 = vld [vmem:[%s13683_s20 + $0x594] sm:$0xf] }
 0x14a   : > { %2721 = vmatpush.bf16.msrb.mxu2 %v8842_v29  ;;  %2740 = vmatpush.bf16.msra.mxu0 %v8558_v33  ;;  %v11547_v24 = vld [vmem:[%s13683_s20 + $0xac] sm:$0xf0]  ;;  %v9039_v16 = vld [vmem:[%s13683_s20 + $0x5b0] sm:$0xf0] }
 0x14b   : > { %2709 = vmatmul.bf16.vlgmr.msrb.gmra.mxu1 %v13835_v26  ;;  %v8653_v25 = vld [vmem:[%s13683_s20 + $0x290] sm:$0xf]  ;;  %v8398_v33 = vor.u32 %v11547_v24, %v8397_v23  ;;  %v11767_v17 = vld [vmem:[%s13683_s20 + $0x794] sm:$0xf] }
 0x14c   : > { %2734 = vmatpush.bf16.msrb.mxu3 %v9098_v32  ;;  %2753 = vmatpush.bf16.msra.mxu1 %v8814_v34  ;;  %v11611_v28 = vld [vmem:[%s13683_s20 + $0x2ac] sm:$0xf0]  ;;  %v9295_v18 = vld [vmem:[%s13683_s20 + $0x7b0] sm:$0xf0] }
 0x14d   : > { %2722 = vmatmul.bf16.vlgmr.msrb.gmra.mxu2 %v13817_v9  ;;  %v8909_v29 = vld [vmem:[%s13683_s20 + $0x490] sm:$0xf]  ;;  %v8654_v34 = vor.u32 %v11611_v28, %v8653_v25  ;;  %v11567_v23 = vld [vmem:[%s13683_s20 + $0x154] sm:$0xf] }
 0x14e   : > { %2766 = vmatpush.bf16.msra.mxu2 %v9070_v35  ;;  %2741 = vmatpush.bf16.msra.mxu0 %v8526_v45  ;;  %v11675_v30 = vld [vmem:[%s13683_s20 + $0x4ac] sm:$0xf0]  ;;  %v8495_v24 = vld [vmem:[%s13683_s20 + $0x170] sm:$0xf0] }
 0x14f   : > { %2735 = vmatmul.bf16.vlgmr.msrb.gmra.mxu3 %v13819_v10  ;;  %v9165_v31 = vld [vmem:[%s13683_s20 + $0x690] sm:$0xf]  ;;  %v8910_v35 = vor.u32 %v11675_v30, %v8909_v29  ;;  %v11631_v25 = vld [vmem:[%s13683_s20 + $0x354] sm:$0xf] }
 0x150   : > { %2779 = vmatpush.bf16.msra.mxu3 %v9326_v39  ;;  %2754 = vmatpush.bf16.msra.mxu1 %v8782_v46  ;;  %v11739_v32 = vld [vmem:[%s13683_s20 + $0x6ac] sm:$0xf0]  ;;  %v8751_v28 = vld [vmem:[%s13683_s20 + $0x370] sm:$0xf0] }
 0x151   : > { %v8365_v36 = vld [vmem:[%s13683_s20 + $0x50] sm:$0xf]  ;;  %v9166_v39 = vor.u32 %v11739_v32, %v9165_v31  ;;  %v11695_v29 = vld [vmem:[%s13683_s20 + $0x554] sm:$0xf] }
 0x152   : > { %2767 = vmatpush.bf16.msra.mxu2 %v9038_v47  ;;  %2742 = vmatpush.bf16.msra.mxu0 %v8494_v57  ;;  %v11539_v37 = vld [vmem:[%s13683_s20 + $0x6c] sm:$0xf0]  ;;  %v11583_v57 = vld [vmem:[%s13683_s20 + $0x1d4] sm:$0xf] }
 0x153   : > { %v8621_v38 = vld [vmem:[%s13683_s20 + $0x250] sm:$0xf]  ;;  %v8366_v45 = vor.u32 %v11539_v37, %v8365_v36  ;;  %v9007_v30 = vld [vmem:[%s13683_s20 + $0x570] sm:$0xf0] }
 0x154   : > { %2780 = vmatpush.bf16.msra.mxu3 %v9294_v51  ;;  %2755 = vmatpush.bf16.msra.mxu1 %v8750_v58  ;;  %v11603_v40 = vld [vmem:[%s13683_s20 + $0x26c] sm:$0xf0]  ;;  %v8559_v58 = vld [vmem:[%s13683_s20 + $0x1f0] sm:$0xf0] }
 0x155   : > { %v8877_v41 = vld [vmem:[%s13683_s20 + $0x450] sm:$0xf]  ;;  %v8622_v48 = vor.u32 %v11603_v40, %v8621_v38  ;;  %v11759_v31 = vld [vmem:[%s13683_s20 + $0x754] sm:$0xf] }
 0x156   : > { %2768 = vmatpush.bf16.msra.mxu2 %v9006_v59  ;;  %2743 = vmatpush.bf16.msra.mxu0 %v8462_v5  ;;  %v11667_v42 = vld [vmem:[%s13683_s20 + $0x46c] sm:$0xf0]  ;;  %v11647_v59 = vld [vmem:[%s13683_s20 + $0x3d4] sm:$0xf]  ;;  %v8562_v5 = vor.u32 %v11583_v57, %v8559_v58 }
 0x157   : > { %v9133_v43 = vld [vmem:[%s13683_s20 + $0x650] sm:$0xf]  ;;  %v8878_v49 = vor.u32 %v11667_v42, %v8877_v41  ;;  %v9263_v32 = vld [vmem:[%s13683_s20 + $0x770] sm:$0xf0] }
 0x158   : > { %2781 = vmatpush.bf16.msra.mxu3 %v9262_v63  ;;  %2756 = vmatpush.bf16.msra.mxu1 %v8718_v6  ;;  %v11731_v44 = vld [vmem:[%s13683_s20 + $0x66c] sm:$0xf0]  ;;  %v9071_v63 = vld [vmem:[%s13683_s20 + $0x5f0] sm:$0xf0]  ;;  %v8818_v6 = vor.u32 %v11647_v59, %v8815_v61 }
 0x159   : > { %v8333_v46 = vld [vmem:[%s13683_s20 + $0x10] sm:$0xf]  ;;  %v9134_v53 = vor.u32 %v11731_v44, %v9133_v43  ;;  %v11559_v36 = vld [vmem:[%s13683_s20 + $0x114] sm:$0xf] }
 0x15a   : > { %2769 = vmatpush.bf16.msra.mxu2 %v8974_v7  ;;  %2744 = vmatpush.bf16.msra.mxu0 %v8430_v20  ;;  %v11531_v47 = vld [vmem:[%s13683_s20 + $0x2c] sm:$0xf0]  ;;  %v9074_v7 = vor.u32 %v11711_v62, %v9071_v63  ;;  %v8530_v20 = vor.u32 %v11575_v8, %v8527_v11  ;;  %v8463_v37 = vld [vmem:[%s13683_s20 + $0x130] sm:$0xf0] }
 0x15b   : > { %v8589_v50 = vld [vmem:[%s13683_s20 + $0x210] sm:$0xf]  ;;  %v8334_v60 = vor.u32 %v11531_v47, %v8333_v46  ;;  %v11623_v38 = vld [vmem:[%s13683_s20 + $0x314] sm:$0xf] }
 0x15c   : > { %2782 = vmatpush.bf16.msra.mxu3 %v9230_v13  ;;  %2757 = vmatpush.bf16.msra.mxu1 %v8686_v21  ;;  %v11595_v51 = vld [vmem:[%s13683_s20 + $0x22c] sm:$0xf0]  ;;  %v9330_v13 = vor.u32 %v11775_v2, %v9327_v3  ;;  %v8786_v21 = vor.u32 %v11639_v12, %v8783_v14  ;;  %v8719_v40 = vld [vmem:[%s13683_s20 + $0x330] sm:$0xf0] }
 0x15d   : > { %v8845_v52 = vld [vmem:[%s13683_s20 + $0x410] sm:$0xf]  ;;  %v8590_v0 = vor.u32 %v11595_v51, %v8589_v50  ;;  %v11687_v41 = vld [vmem:[%s13683_s20 + $0x514] sm:$0xf]  ;;  %v8722_v46 = vor.u32 %v11623_v38, %v8719_v40 }
 0x15e   : > { %2770 = vmatpush.bf16.msra.mxu2 %v8942_v22  ;;  %2745 = vmatpush.bf16.msra.mxu0 %v8398_v33  ;;  %v11659_v54 = vld [vmem:[%s13683_s20 + $0x42c] sm:$0xf0]  ;;  %v9042_v22 = vor.u32 %v11703_v15, %v9039_v16  ;;  %v8498_v33 = vor.u32 %v11567_v23, %v8495_v24  ;;  %v8975_v42 = vld [vmem:[%s13683_s20 + $0x530] sm:$0xf0] }
 0x15f   : > { %v9101_v55 = vld [vmem:[%s13683_s20 + $0x610] sm:$0xf]  ;;  %v8846_v1 = vor.u32 %v11659_v54, %v8845_v52  ;;  %v11751_v43 = vld [vmem:[%s13683_s20 + $0x714] sm:$0xf]  ;;  %v8978_v47 = vor.u32 %v11687_v41, %v8975_v42  ;;  %v8565_v41 = vld [vmem:[%s13683_s20 + $0x1d8] sm:$0xf] }
 0x160   : > { %2783 = vmatpush.bf16.msra.mxu3 %v9198_v27  ;;  %2758 = vmatpush.bf16.msra.mxu1 %v8654_v34  ;;  %v11723_v56 = vld [vmem:[%s13683_s20 + $0x62c] sm:$0xf0]  ;;  %v9298_v27 = vor.u32 %v11767_v17, %v9295_v18  ;;  %v8754_v34 = vor.u32 %v11631_v25, %v8751_v28  ;;  %v9231_v44 = vld [vmem:[%s13683_s20 + $0x730] sm:$0xf0]  ;;  %v11588_v42 = vld [vmem:[%s13683_s20 + $0x1f4] sm:$0xf0] }
 0x161   : > { %v9102_v4 = vor.u32 %v11723_v56, %v9101_v55  ;;  %v11615_v50 = vld [vmem:[%s13683_s20 + $0x2d4] sm:$0xf]  ;;  %v9234_v51 = vor.u32 %v11751_v43, %v9231_v44  ;;  %v8821_v43 = vld [vmem:[%s13683_s20 + $0x3d8] sm:$0xf] }
 0x162   : > { %2771 = vmatpush.bf16.msra.mxu2 %v8910_v35  ;;  %2746 = vmatpush.bf16.msra.mxu0 %v8366_v45  ;;  %v9010_v35 = vor.u32 %v11695_v29, %v9007_v30  ;;  %v8466_v45 = vor.u32 %v11559_v36, %v8463_v37  ;;  %v8687_v52 = vld [vmem:[%s13683_s20 + $0x2f0] sm:$0xf0]  ;;  %v988_v30 = vld [vmem:[#allocation2 + $0x30] sm:$0xff] }
 0x163   : > { %v8943_v54 = vld [vmem:[%s13683_s20 + $0x4f0] sm:$0xf0]  ;;  %v8690_v58 = vor.u32 %v11615_v50, %v8687_v52 }
 0x164   : > { %2784 = vmatpush.bf16.msra.mxu3 %v9166_v39  ;;  %2759 = vmatpush.bf16.msra.mxu1 %v8622_v48  ;;  %v9266_v39 = vor.u32 %v11759_v31, %v9263_v32  ;;  %v11551_v48 = vld [vmem:[%s13683_s20 + $0xd4] sm:$0xf] }
 0x165   : > { %v11743_v55 = vld [vmem:[%s13683_s20 + $0x6d4] sm:$0xf] }
 0x166   : > { %2772 = vmatpush.bf16.msra.mxu2 %v8878_v49  ;;  %2747 = vmatpush.bf16.msra.mxu0 %v8334_v60  ;;  %v8431_v49 = vld [vmem:[%s13683_s20 + $0xf0] sm:$0xf0] }
 0x167   : > { %v9199_v56 = vld [vmem:[%s13683_s20 + $0x6f0] sm:$0xf0]  ;;  %v8434_v57 = vor.u32 %v11551_v48, %v8431_v49  ;;  %v9077_v48 = vld [vmem:[%s13683_s20 + $0x5d8] sm:$0xf] }
 0x168   : > { %2785 = vmatpush.bf16.msra.mxu3 %v9134_v53  ;;  %2760 = vmatpush.bf16.msra.mxu1 %v8590_v0  ;;  %v11679_v53 = vld [vmem:[%s13683_s20 + $0x4d4] sm:$0xf]  ;;  %v9202_v63 = vor.u32 %v11743_v55, %v9199_v56  ;;  %v11716_v49 = vld [vmem:[%s13683_s20 + $0x5f4] sm:$0xf0]  ;;  %v8566_v56 = vor.u32 %v11588_v42, %v8565_v41 }
 0x169   : > { %2748 = vmatmul.bf16.vlgmr.msra.gmra.mxu0 %v13829_v19  ;;  %v8946_v59 = vor.u32 %v11679_v53, %v8943_v54  ;;  %v11543_v60 = vld [vmem:[%s13683_s20 + $0x94] sm:$0xf]  ;;  %v9333_v53 = vld [vmem:[%s13683_s20 + $0x7d8] sm:$0xf] }
 0x16a   : > { %2773 = vmatpush.bf16.msra.mxu2 %v8846_v1  ;;  %2792 = vmatpush.bf16.msrb.mxu0 %v8562_v5  ;;  %v8399_v61 = vld [vmem:[%s13683_s20 + $0xb0] sm:$0xf0]  ;;  %v2541_v5 = vpop.f32.mrf.mxu0  ;;  %v11780_v54 = vld [vmem:[%s13683_s20 + $0x7f4] sm:$0xf0] }
 0x16b   : > { %2761 = vmatmul.bf16.vlgmr.msra.gmra.mxu1 %v13835_v26  ;;  %v11607_v62 = vld [vmem:[%s13683_s20 + $0x294] sm:$0xf] }
 0x16c   : > { %2786 = vmatpush.bf16.msra.mxu3 %v9102_v4  ;;  %2805 = vmatpush.bf16.msrb.mxu1 %v8818_v6  ;;  %v8655_v0 = vld [vmem:[%s13683_s20 + $0x2b0] sm:$0xf0]  ;;  %v8402_v6 = vor.u32 %v11543_v60, %v8399_v61  ;;  %v9078_v60 = vor.u32 %v11716_v49, %v9077_v48  ;;  %v8533_v61 = vld [vmem:[%s13683_s20 + $0x198] sm:$0xf] }
 0x16d   : > { %2774 = vmatmul.bf16.vlgmr.msra.gmra.mxu2 %v13817_v9  ;;  %v11671_v1 = vld [vmem:[%s13683_s20 + $0x494] sm:$0xf]  ;;  %v8658_v8 = vor.u32 %v11607_v62, %v8655_v0  ;;  %v11580_v62 = vld [vmem:[%s13683_s20 + $0x1b4] sm:$0xf0]  ;;  %v9334_v0 = vor.u32 %v11780_v54, %v9333_v53 }
 0x16e   : > { %2818 = vmatpush.bf16.msrb.mxu2 %v9074_v7  ;;  %2793 = vmatpush.bf16.msrb.mxu0 %v8530_v20  ;;  %v8911_v2 = vld [vmem:[%s13683_s20 + $0x4b0] sm:$0xf0]  ;;  %v2554_v7 = vpop.f32.mrf.mxu1  ;;  %v11748_v48 = vld [vmem:[%s13683_s20 + $0x6f4] sm:$0xf0] }
 0x16f   : > { %2787 = vmatmul.bf16.vlgmr.msra.gmra.mxu3 %v13819_v10  ;;  %v11735_v3 = vld [vmem:[%s13683_s20 + $0x694] sm:$0xf]  ;;  %v8914_v11 = vor.u32 %v11671_v1, %v8911_v2  ;;  %v2555_v15 = vadd.f32 %v2554_v7, %v2541_v5  ;;  %v11644_v1 = vld [vmem:[%s13683_s20 + $0x3b4] sm:$0xf0] }
 0x170   : > { %2831 = vmatpush.bf16.msrb.mxu3 %v9330_v13  ;;  %2806 = vmatpush.bf16.msrb.mxu1 %v8786_v21  ;;  %v9167_v4 = vld [vmem:[%s13683_s20 + $0x6b0] sm:$0xf0]  ;;  %v2567_v21 = vpop.f32.mrf.mxu2  ;;  %v9045_v2 = vld [vmem:[%s13683_s20 + $0x598] sm:$0xf] }
 0x171   : > { %v11535_v12 = vld [vmem:[%s13683_s20 + $0x54] sm:$0xf]  ;;  %v9170_v16 = vor.u32 %v11735_v3, %v9167_v4  ;;  %v2568_v25 = vadd.f32 %v2567_v21, %v2555_v15  ;;  %v11708_v3 = vld [vmem:[%s13683_s20 + $0x5b4] sm:$0xf0] }
 0x172   : > { %2819 = vmatpush.bf16.msrb.mxu2 %v9042_v22  ;;  %2794 = vmatpush.bf16.msrb.mxu0 %v8498_v33  ;;  %v8367_v13 = vld [vmem:[%s13683_s20 + $0x70] sm:$0xf0]  ;;  %v2580_v22 = vpop.f32.mrf.mxu3  ;;  %v9301_v4 = vld [vmem:[%s13683_s20 + $0x798] sm:$0xf] }
 0x173   : > { %v11599_v14 = vld [vmem:[%s13683_s20 + $0x254] sm:$0xf]  ;;  %v2581_v36 = vadd.f32 %v2580_v22, %v2568_v25  ;;  %v11772_v5 = vld [vmem:[%s13683_s20 + $0x7b4] sm:$0xf0] }
 0x174   : > { %2832 = vmatpush.bf16.msrb.mxu3 %v9298_v27  ;;  %2807 = vmatpush.bf16.msrb.mxu1 %v8754_v34  ;;  %v8623_v17 = vld [vmem:[%s13683_s20 + $0x270] sm:$0xf0]  ;;  %v8370_v27 = vor.u32 %v11535_v12, %v8367_v13  ;;  %v11572_v12 = vld [vmem:[%s13683_s20 + $0x174] sm:$0xf0] }
 0x175   : > { %v11663_v18 = vld [vmem:[%s13683_s20 + $0x454] sm:$0xf]  ;;  %v8626_v31 = vor.u32 %v11599_v14, %v8623_v17  ;;  %v2948_v44 = vadd.f32 %v2581_v36, %v988_v30  ;;  %v8757_v13 = vld [vmem:[%s13683_s20 + $0x358] sm:$0xf]  ;;  %v9302_v14 = vor.u32 %v11772_v5, %v9301_v4 }
 0x176   : > { %2820 = vmatpush.bf16.msrb.mxu2 %v9010_v35  ;;  %2795 = vmatpush.bf16.msrb.mxu0 %v8466_v45  ;;  %v8879_v20 = vld [vmem:[%s13683_s20 + $0x470] sm:$0xf0]  ;;  %v2543_v45 = vpop.f32.mrf.mxu0  ;;  %v2556_v50 = vpop.f32.mrf.mxu1  ;;  %v11636_v15 = vld [vmem:[%s13683_s20 + $0x374] sm:$0xf0] }
 0x177   : > { %v11727_v23 = vld [vmem:[%s13683_s20 + $0x654] sm:$0xf]  ;;  %v8882_v32 = vor.u32 %v11663_v18, %v8879_v20  ;;  %2956 = vst [vmem:[#allocation2 + $0x30] sm:$0xff] %v2948_v44  ;;  %v11700_v17 = vld [vmem:[%s13683_s20 + $0x574] sm:$0xf0]  ;;  %v8758_v22 = vor.u32 %v11636_v15, %v8757_v13 }
 0x178   : > { %2833 = vmatpush.bf16.msrb.mxu3 %v9266_v39  ;;  %2808 = vmatpush.bf16.msrb.mxu1 %v8722_v46  ;;  %v9135_v24 = vld [vmem:[%s13683_s20 + $0x670] sm:$0xf0]  ;;  %v9269_v18 = vld [vmem:[%s13683_s20 + $0x758] sm:$0xf] }
 0x179   : > { %v11527_v28 = vld [vmem:[%s13683_s20 + $0x14] sm:$0xf]  ;;  %v9138_v37 = vor.u32 %v11727_v23, %v9135_v24  ;;  %v11764_v20 = vld [vmem:[%s13683_s20 + $0x774] sm:$0xf0] }
 0x17a   : > { %2821 = vmatpush.bf16.msrb.mxu2 %v8978_v47  ;;  %2796 = vmatpush.bf16.msrb.mxu0 %v8434_v57  ;;  %v8335_v29 = vld [vmem:[%s13683_s20 + $0x30] sm:$0xf0]  ;;  %v11652_v47 = vld [vmem:[%s13683_s20 + $0x3f4] sm:$0xf0]  ;;  %v2569_v57 = vpop.f32.mrf.mxu2 }
 0x17b   : > { %v11591_v33 = vld [vmem:[%s13683_s20 + $0x214] sm:$0xf]  ;;  %v8338_v46 = vor.u32 %v11527_v28, %v8335_v29  ;;  %v8469_v24 = vld [vmem:[%s13683_s20 + $0x118] sm:$0xf]  ;;  %v9270_v28 = vor.u32 %v11764_v20, %v9269_v18 }
 0x17c   : > { %2834 = vmatpush.bf16.msrb.mxu3 %v9234_v51  ;;  %2809 = vmatpush.bf16.msrb.mxu1 %v8690_v58  ;;  %v8591_v34 = vld [vmem:[%s13683_s20 + $0x230] sm:$0xf0]  ;;  %v2582_v58 = vpop.f32.mrf.mxu3  ;;  %v11564_v25 = vld [vmem:[%s13683_s20 + $0x134] sm:$0xf0] }
 0x17d   : > { %v11655_v35 = vld [vmem:[%s13683_s20 + $0x414] sm:$0xf]  ;;  %v8594_v51 = vor.u32 %v11591_v33, %v8591_v34  ;;  %v11628_v29 = vld [vmem:[%s13683_s20 + $0x334] sm:$0xf0]  ;;  %v8470_v34 = vor.u32 %v11564_v25, %v8469_v24 }
 0x17e   : > { %2822 = vmatpush.bf16.msrb.mxu2 %v8946_v59  ;;  %2797 = vmatpush.bf16.msrb.mxu0 %v8402_v6  ;;  %v8847_v38 = vld [vmem:[%s13683_s20 + $0x430] sm:$0xf0]  ;;  %v8822_v59 = vor.u32 %v11652_v47, %v8821_v43  ;;  %v8534_v6 = vor.u32 %v11580_v62, %v8533_v61  ;;  %v8981_v30 = vld [vmem:[%s13683_s20 + $0x518] sm:$0xf] }
 0x17f   : > { %v11719_v39 = vld [vmem:[%s13683_s20 + $0x614] sm:$0xf]  ;;  %v8850_v52 = vor.u32 %v11655_v35, %v8847_v38  ;;  %v11756_v33 = vld [vmem:[%s13683_s20 + $0x734] sm:$0xf0] }
 0x180   : > { %2835 = vmatpush.bf16.msrb.mxu3 %v9202_v63  ;;  %2810 = vmatpush.bf16.msrb.mxu1 %v8658_v8  ;;  %v9103_v40 = vld [vmem:[%s13683_s20 + $0x630] sm:$0xf0]  ;;  %v8789_v63 = vld [vmem:[%s13683_s20 + $0x398] sm:$0xf]  ;;  %v9046_v8 = vor.u32 %v11708_v3, %v9045_v2 }
 0x181   : > { %v9106_v55 = vor.u32 %v11719_v39, %v9103_v40  ;;  %v8790_v7 = vor.u32 %v11644_v1, %v8789_v63  ;;  %v8437_v38 = vld [vmem:[%s13683_s20 + $0xd8] sm:$0xf] }
 0x182   : > { %2823 = vmatpush.bf16.msrb.mxu2 %v8914_v11  ;;  %2798 = vmatpush.bf16.msrb.mxu0 %v8370_v27  ;;  %v8501_v11 = vld [vmem:[%s13683_s20 + $0x158] sm:$0xf] }
 0x183   : > { %v8502_v21 = vor.u32 %v11572_v12, %v8501_v11  ;;  %v8725_v27 = vld [vmem:[%s13683_s20 + $0x318] sm:$0xf] }
 0x184   : > { %2836 = vmatpush.bf16.msrb.mxu3 %v9170_v16  ;;  %2811 = vmatpush.bf16.msrb.mxu1 %v8626_v31  ;;  %v9013_v16 = vld [vmem:[%s13683_s20 + $0x558] sm:$0xf]  ;;  %v8726_v36 = vor.u32 %v11628_v29, %v8725_v27 }
 0x185   : > { %v9014_v23 = vor.u32 %v11700_v17, %v9013_v16  ;;  %v11692_v31 = vld [vmem:[%s13683_s20 + $0x534] sm:$0xf0] }
 0x186   : > { %2824 = vmatpush.bf16.msrb.mxu2 %v8882_v32  ;;  %2799 = vmatpush.bf16.msrb.mxu0 %v8338_v46  ;;  %v9237_v32 = vld [vmem:[%s13683_s20 + $0x718] sm:$0xf]  ;;  %v2593_v35 = vpop.f32.mrf.mxu0 }
 0x187   : > { %v11556_v39 = vld [vmem:[%s13683_s20 + $0xf4] sm:$0xf0]  ;;  %v9238_v42 = vor.u32 %v11756_v33, %v9237_v32 }
 0x188   : > { %2837 = vmatpush.bf16.msrb.mxu3 %v9138_v37  ;;  %2812 = vmatpush.bf16.msrb.mxu1 %v8594_v51  ;;  %v8982_v37 = vor.u32 %v11692_v31, %v8981_v30  ;;  %v8693_v40 = vld [vmem:[%s13683_s20 + $0x2d8] sm:$0xf]  ;;  %v2606_v41 = vpop.f32.mrf.mxu1  ;;  %v8438_v49 = vor.u32 %v11556_v39, %v8437_v38  ;;  %v8823_v39 = vld [vmem:[%s13683_s20 + $0x3f8] sm:$0xf0] }
 0x189   : > { %2800 = vmatmul.bf16.vlgmr.msrb.gmra.mxu0 %v13829_v19  ;;  %v11620_v43 = vld [vmem:[%s13683_s20 + $0x2f4] sm:$0xf0]  ;;  %v2607_v46 = vadd.f32 %v2606_v41, %v2593_v35  ;;  %v11584_v35 = vld [vmem:[%s13683_s20 + $0x1dc] sm:$0xf] }
 0x18a   : > { %2825 = vmatpush.bf16.msrb.mxu2 %v8850_v52  ;;  %2844 = vmatpush.bf16.msra.mxu0 %v8566_v56  ;;  %v8949_v44 = vld [vmem:[%s13683_s20 + $0x4d8] sm:$0xf]  ;;  %v8694_v50 = vor.u32 %v11620_v43, %v8693_v40  ;;  %v11712_v40 = vld [vmem:[%s13683_s20 + $0x5dc] sm:$0xf] }
 0x18b   : > { %2813 = vmatmul.bf16.vlgmr.msrb.gmra.mxu1 %v13835_v26  ;;  %v11684_v45 = vld [vmem:[%s13683_s20 + $0x4f4] sm:$0xf0]  ;;  %v9079_v41 = vld [vmem:[%s13683_s20 + $0x5f8] sm:$0xf0] }
 0x18c   : > { %2838 = vmatpush.bf16.msrb.mxu3 %v9106_v55  ;;  %2857 = vmatpush.bf16.msra.mxu1 %v8822_v59  ;;  %v9205_v47 = vld [vmem:[%s13683_s20 + $0x6d8] sm:$0xf]  ;;  %v8950_v51 = vor.u32 %v11684_v45, %v8949_v44  ;;  %v11776_v44 = vld [vmem:[%s13683_s20 + $0x7dc] sm:$0xf] }
 0x18d   : > { %2826 = vmatmul.bf16.vlgmr.msrb.gmra.mxu2 %v13817_v9  ;;  %v8405_v52 = vld [vmem:[%s13683_s20 + $0x98] sm:$0xf]  ;;  %v9206_v56 = vor.u32 %v11748_v48, %v9205_v47  ;;  %v9335_v45 = vld [vmem:[%s13683_s20 + $0x7f8] sm:$0xf0] }
 0x18e   : > { %2870 = vmatpush.bf16.msra.mxu2 %v9078_v60  ;;  %2845 = vmatpush.bf16.msra.mxu0 %v8534_v6  ;;  %v11548_v53 = vld [vmem:[%s13683_s20 + $0xb4] sm:$0xf0]  ;;  %v2595_v3 = vpop.f32.mrf.mxu0 }
 0x18f   : > { %2839 = vmatmul.bf16.vlgmr.msrb.gmra.mxu3 %v13819_v10  ;;  %v8661_v54 = vld [vmem:[%s13683_s20 + $0x298] sm:$0xf]  ;;  %v8406_v1 = vor.u32 %v11548_v53, %v8405_v52  ;;  %v11640_v52 = vld [vmem:[%s13683_s20 + $0x39c] sm:$0xf]  ;;  %v9338_v53 = vor.u32 %v11776_v44, %v9335_v45 }
 0x190   : > { %2883 = vmatpush.bf16.msra.mxu3 %v9334_v0  ;;  %2858 = vmatpush.bf16.msra.mxu1 %v8790_v7  ;;  %v2619_v55 = vpop.f32.mrf.mxu2  ;;  %v11612_v57 = vld [vmem:[%s13683_s20 + $0x2b4] sm:$0xf0]  ;;  %v2608_v11 = vpop.f32.mrf.mxu1  ;;  %v11696_v3 = vld [vmem:[%s13683_s20 + $0x55c] sm:$0xf] }
 0x191   : > { %v8917_v58 = vld [vmem:[%s13683_s20 + $0x498] sm:$0xf]  ;;  %v2620_v60 = vadd.f32 %v2619_v55, %v2607_v46  ;;  %v8662_v4 = vor.u32 %v11612_v57, %v8661_v54  ;;  %v8791_v54 = vld [vmem:[%s13683_s20 + $0x3b8] sm:$0xf0] }
 0x192   : > { %2871 = vmatpush.bf16.msra.mxu2 %v9046_v8  ;;  %2846 = vmatpush.bf16.msra.mxu0 %v8502_v21  ;;  %v11676_v59 = vld [vmem:[%s13683_s20 + $0x4b4] sm:$0xf0]  ;;  %v2632_v61 = vpop.f32.mrf.mxu3  ;;  %v11704_v55 = vld [vmem:[%s13683_s20 + $0x59c] sm:$0xf] }
 0x193   : > { %v9173_v62 = vld [vmem:[%s13683_s20 + $0x698] sm:$0xf]  ;;  %v2633_v2 = vadd.f32 %v2632_v61, %v2620_v60  ;;  %v8918_v5 = vor.u32 %v11676_v59, %v8917_v58  ;;  %v11768_v57 = vld [vmem:[%s13683_s20 + $0x79c] sm:$0xf]  ;;  %v8794_v60 = vor.u32 %v11640_v52, %v8791_v54 }
 0x194   : > { %2884 = vmatpush.bf16.msra.mxu3 %v9302_v14  ;;  %2859 = vmatpush.bf16.msra.mxu1 %v8758_v22  ;;  %v11740_v63 = vld [vmem:[%s13683_s20 + $0x6b4] sm:$0xf0]  ;;  %v9303_v58 = vld [vmem:[%s13683_s20 + $0x7b8] sm:$0xf0] }
 0x195   : > { %v989_v0 = vld [vmem:[#allocation2] sm:$0xff]  ;;  %v9174_v12 = vor.u32 %v11740_v63, %v9173_v62 }
 0x196   : > { %2872 = vmatpush.bf16.msra.mxu2 %v9014_v23  ;;  %2847 = vmatpush.bf16.msra.mxu0 %v8470_v34  ;;  %v8373_v6 = vld [vmem:[%s13683_s20 + $0x58] sm:$0xf]  ;;  %v2949_v16 = vadd.f32 %v2633_v2, %v989_v0  ;;  %v11568_v62 = vld [vmem:[%s13683_s20 + $0x15c] sm:$0xf] }
 0x197   : > { %v11540_v7 = vld [vmem:[%s13683_s20 + $0x74] sm:$0xf0]  ;;  %v8503_v63 = vld [vmem:[%s13683_s20 + $0x178] sm:$0xf0] }
 0x198   : > { %2885 = vmatpush.bf16.msra.mxu3 %v9270_v28  ;;  %2860 = vmatpush.bf16.msra.mxu1 %v8726_v36  ;;  %v8629_v8 = vld [vmem:[%s13683_s20 + $0x258] sm:$0xf]  ;;  %v8374_v20 = vor.u32 %v11540_v7, %v8373_v6  ;;  %2957 = vst [vmem:[#allocation2] sm:$0xff] %v2949_v16  ;;  %v2621_v29 = vpop.f32.mrf.mxu2  ;;  %v8567_v36 = vld [vmem:[%s13683_s20 + $0x1f8] sm:$0xf0]  ;;  %v8506_v7 = vor.u32 %v11568_v62, %v8503_v63 }
 0x199   : > { %v11604_v13 = vld [vmem:[%s13683_s20 + $0x274] sm:$0xf0]  ;;  %v8570_v47 = vor.u32 %v11584_v35, %v8567_v36  ;;  %v11632_v0 = vld [vmem:[%s13683_s20 + $0x35c] sm:$0xf] }
 0x19a   : > { %2873 = vmatpush.bf16.msra.mxu2 %v8982_v37  ;;  %2848 = vmatpush.bf16.msra.mxu0 %v8438_v49  ;;  %v8885_v14 = vld [vmem:[%s13683_s20 + $0x458] sm:$0xf]  ;;  %v8630_v23 = vor.u32 %v11604_v13, %v8629_v8  ;;  %v2634_v34 = vpop.f32.mrf.mxu3  ;;  %v11648_v37 = vld [vmem:[%s13683_s20 + $0x3dc] sm:$0xf]  ;;  %v9082_v49 = vor.u32 %v11712_v40, %v9079_v41 }
 0x19b   : > { %v11668_v15 = vld [vmem:[%s13683_s20 + $0x474] sm:$0xf0]  ;;  %v8826_v48 = vor.u32 %v11648_v37, %v8823_v39  ;;  %v8759_v2 = vld [vmem:[%s13683_s20 + $0x378] sm:$0xf0] }
 0x19c   : > { %2886 = vmatpush.bf16.msra.mxu3 %v9238_v42  ;;  %2861 = vmatpush.bf16.msra.mxu1 %v8694_v50  ;;  %v9141_v17 = vld [vmem:[%s13683_s20 + $0x658] sm:$0xf]  ;;  %v8886_v24 = vor.u32 %v11668_v15, %v8885_v14  ;;  %v11576_v50 = vld [vmem:[%s13683_s20 + $0x19c] sm:$0xf]  ;;  %v8762_v8 = vor.u32 %v11632_v0, %v8759_v2 }
 0x19d   : > { %v11732_v18 = vld [vmem:[%s13683_s20 + $0x674] sm:$0xf0]  ;;  %v9271_v6 = vld [vmem:[%s13683_s20 + $0x778] sm:$0xf0] }
 0x19e   : > { %2874 = vmatpush.bf16.msra.mxu2 %v8950_v51  ;;  %2849 = vmatpush.bf16.msra.mxu0 %v8406_v1  ;;  %v8341_v21 = vld [vmem:[%s13683_s20 + $0x18] sm:$0xf]  ;;  %v9142_v30 = vor.u32 %v11732_v18, %v9141_v17  ;;  %v8535_v51 = vld [vmem:[%s13683_s20 + $0x1b8] sm:$0xf0]  ;;  %v9306_v1 = vor.u32 %v11768_v57, %v9303_v58 }
 0x19f   : > { %v11532_v22 = vld [vmem:[%s13683_s20 + $0x34] sm:$0xf0]  ;;  %v8538_v59 = vor.u32 %v11576_v50, %v8535_v51  ;;  %v8471_v13 = vld [vmem:[%s13683_s20 + $0x138] sm:$0xf0] }
 0x1a0   : > { %2887 = vmatpush.bf16.msra.mxu3 %v9206_v56  ;;  %2862 = vmatpush.bf16.msra.mxu1 %v8662_v4  ;;  %v8597_v25 = vld [vmem:[%s13683_s20 + $0x218] sm:$0xf]  ;;  %v8342_v38 = vor.u32 %v11532_v22, %v8341_v21  ;;  %v9047_v56 = vld [vmem:[%s13683_s20 + $0x5b8] sm:$0xf0] }
 0x1a1   : > { %v11596_v27 = vld [vmem:[%s13683_s20 + $0x234] sm:$0xf0]  ;;  %v9050_v61 = vor.u32 %v11704_v55, %v9047_v56  ;;  %v9015_v4 = vld [vmem:[%s13683_s20 + $0x578] sm:$0xf0] }
 0x1a2   : > { %2875 = vmatpush.bf16.msra.mxu2 %v8918_v5  ;;  %v8853_v28 = vld [vmem:[%s13683_s20 + $0x418] sm:$0xf]  ;;  %2850 = vmatpush.bf16.msra.mxu0 %v8374_v20  ;;  %v8598_v42 = vor.u32 %v11596_v27, %v8597_v25  ;;  %v11760_v5 = vld [vmem:[%s13683_s20 + $0x75c] sm:$0xf]  ;;  %v9018_v11 = vor.u32 %v11696_v3, %v9015_v4 }
 0x1a3   : > { %v11660_v31 = vld [vmem:[%s13683_s20 + $0x434] sm:$0xf0]  ;;  %v11624_v14 = vld [vmem:[%s13683_s20 + $0x31c] sm:$0xf]  ;;  %v9274_v15 = vor.u32 %v11760_v5, %v9271_v6 }
 0x1a4   : > { %2888 = vmatpush.bf16.msra.mxu3 %v9174_v12  ;;  %v9109_v32 = vld [vmem:[%s13683_s20 + $0x618] sm:$0xf]  ;;  %2863 = vmatpush.bf16.msra.mxu1 %v8630_v23  ;;  %v8854_v43 = vor.u32 %v11660_v31, %v8853_v28  ;;  %v11560_v12 = vld [vmem:[%s13683_s20 + $0x11c] sm:$0xf] }
 0x1a5   : > { %v11724_v33 = vld [vmem:[%s13683_s20 + $0x634] sm:$0xf0]  ;;  %v8727_v16 = vld [vmem:[%s13683_s20 + $0x338] sm:$0xf0]  ;;  %v8474_v22 = vor.u32 %v11560_v12, %v8471_v13 }
 0x1a6   : > { %2876 = vmatpush.bf16.msra.mxu2 %v8886_v24  ;;  %v9110_v46 = vor.u32 %v11724_v33, %v9109_v32  ;;  %2851 = vmatpush.bf16.msra.mxu0 %v8342_v38  ;;  %v11688_v17 = vld [vmem:[%s13683_s20 + $0x51c] sm:$0xf]  ;;  %v2645_v23 = vpop.f32.mrf.mxu0  ;;  %v8730_v24 = vor.u32 %v11624_v14, %v8727_v16 }
 0x1a7   : > { %v8983_v18 = vld [vmem:[%s13683_s20 + $0x538] sm:$0xf0] }
 0x1a8   : > { %2889 = vmatpush.bf16.msra.mxu3 %v9142_v30  ;;  %2864 = vmatpush.bf16.msra.mxu1 %v8598_v42  ;;  %v11752_v20 = vld [vmem:[%s13683_s20 + $0x71c] sm:$0xf]  ;;  %v8986_v25 = vor.u32 %v11688_v17, %v8983_v18  ;;  %v2658_v30 = vpop.f32.mrf.mxu1 }
 0x1a9   : > { %2852 = vmatmul.bf16.vlgmr.msra.gmra.mxu0 %v13829_v19  ;;  %v9239_v21 = vld [vmem:[%s13683_s20 + $0x738] sm:$0xf0]  ;;  %v2659_v35 = vadd.f32 %v2658_v30, %v2645_v23  ;;  %v9453_v23 = vld [vmem:[%s13689_s19 + $0xe0] sm:$0xf]  ;;  %v11875_v30 = vld [vmem:[%s13689_s19 + $0x2ec] sm:$0xf0] }
 0x1aa   : > { %2877 = vmatpush.bf16.msra.mxu2 %v8854_v43  ;;  %2896 = vmatpush.bf16.msrb.mxu0 %v8570_v47  ;;  %v11552_v27 = vld [vmem:[%s13683_s20 + $0xdc] sm:$0xf]  ;;  %v9242_v31 = vor.u32 %v11752_v20, %v9239_v21 }
 0x1ab   : > { %2865 = vmatmul.bf16.vlgmr.msra.gmra.mxu1 %v13835_v26  ;;  %v8439_v28 = vld [vmem:[%s13683_s20 + $0xf8] sm:$0xf0] }
 0x1ac   : > { %2890 = vmatpush.bf16.msra.mxu3 %v9110_v46  ;;  %2909 = vmatpush.bf16.msrb.mxu1 %v8826_v48  ;;  %v11616_v29 = vld [vmem:[%s13683_s20 + $0x2dc] sm:$0xf]  ;;  %v8442_v38 = vor.u32 %v11552_v27, %v8439_v28  ;;  %v11843_v28 = vld [vmem:[%s13689_s19 + $0x1ec] sm:$0xf0] }
 0x1ad   : > { %2878 = vmatmul.bf16.vlgmr.msra.gmra.mxu2 %v13817_v9  ;;  %v8695_v32 = vld [vmem:[%s13683_s20 + $0x2f8] sm:$0xf0] }
 0x1ae   : > { %2922 = vmatpush.bf16.msrb.mxu2 %v9082_v49  ;;  %2897 = vmatpush.bf16.msrb.mxu0 %v8538_v59  ;;  %v11680_v33 = vld [vmem:[%s13683_s20 + $0x4dc] sm:$0xf]  ;;  %v8698_v39 = vor.u32 %v11616_v29, %v8695_v32  ;;  %v2647_v56 = vpop.f32.mrf.mxu0  ;;  %v9709_v29 = vld [vmem:[%s13689_s19 + $0x2e0] sm:$0xf] }
 0x1af   : > { %2891 = vmatmul.bf16.vlgmr.msra.gmra.mxu3 %v13819_v10  ;;  %v8951_v34 = vld [vmem:[%s13683_s20 + $0x4f8] sm:$0xf0]  ;;  %v9677_v56 = vld [vmem:[%s13689_s19 + $0x2a0] sm:$0xf] }
 0x1b0   : > { %2935 = vmatpush.bf16.msrb.mxu3 %v9338_v53  ;;  %2910 = vmatpush.bf16.msrb.mxu1 %v8794_v60  ;;  %v11744_v36 = vld [vmem:[%s13683_s20 + $0x6dc] sm:$0xf]  ;;  %v8954_v40 = vor.u32 %v11680_v33, %v8951_v34  ;;  %v2671_v44 = vpop.f32.mrf.mxu2  ;;  %v990_v53 = vld [vmem:[#allocation2 + $0x18] sm:$0xff]  ;;  %v2660_v62 = vpop.f32.mrf.mxu1  ;;  %v9837_v33 = vld [vmem:[%s13689_s19 + $0x3e0] sm:$0xf] }
 0x1b1   : > { %v9207_v37 = vld [vmem:[%s13683_s20 + $0x6f8] sm:$0xf0]  ;;  %v2672_v49 = vadd.f32 %v2671_v44, %v2659_v35  ;;  %v11907_v34 = vld [vmem:[%s13689_s19 + $0x3ec] sm:$0xf0]  ;;  %v9693_v44 = vld [vmem:[%s13689_s19 + $0x2c0] sm:$0xf] }
 0x1b2   : > { %2923 = vmatpush.bf16.msrb.mxu2 %v9050_v61  ;;  %2898 = vmatpush.bf16.msrb.mxu0 %v8506_v7  ;;  %v11544_v41 = vld [vmem:[%s13683_s20 + $0x9c] sm:$0xf]  ;;  %v9210_v45 = vor.u32 %v11744_v36, %v9207_v37  ;;  %v2684_v50 = vpop.f32.mrf.mxu3 }
 0x1b3   : > { %v8407_v42 = vld [vmem:[%s13683_s20 + $0xb8] sm:$0xf0]  ;;  %v2685_v55 = vadd.f32 %v2684_v50, %v2672_v49 }
 0x1b4   : > { %2936 = vmatpush.bf16.msrb.mxu3 %v9306_v1  ;;  %2911 = vmatpush.bf16.msrb.mxu1 %v8762_v8  ;;  %v11608_v43 = vld [vmem:[%s13683_s20 + $0x29c] sm:$0xf]  ;;  %v8410_v54 = vor.u32 %v11544_v41, %v8407_v42  ;;  %v9565_v41 = vld [vmem:[%s13689_s19 + $0x1c0] sm:$0xf]  ;;  %v9838_v42 = vor.u32 %v11907_v34, %v9837_v33 }
 0x1b5   : > { %v8663_v46 = vld [vmem:[%s13683_s20 + $0x2b8] sm:$0xf0]  ;;  %v2950_v3 = vadd.f32 %v2685_v55, %v990_v53  ;;  %v9549_v53 = vld [vmem:[%s13689_s19 + $0x1a0] sm:$0xf]  ;;  %v11835_v55 = vld [vmem:[%s13689_s19 + $0x1ac] sm:$0xf0] }
 0x1b6   : > { %2924 = vmatpush.bf16.msrb.mxu2 %v9018_v11  ;;  %2899 = vmatpush.bf16.msrb.mxu0 %v8474_v22  ;;  %v11672_v47 = vld [vmem:[%s13683_s20 + $0x49c] sm:$0xf]  ;;  %v8666_v57 = vor.u32 %v11608_v43, %v8663_v46  ;;  %v11839_v43 = vld [vmem:[%s13689_s19 + $0x1cc] sm:$0xf0]  ;;  %v9821_v46 = vld [vmem:[%s13689_s19 + $0x3c0] sm:$0xf] }
 0x1b7   : > { %v8919_v48 = vld [vmem:[%s13683_s20 + $0x4b8] sm:$0xf0]  ;;  %2958 = vst [vmem:[#allocation2 + $0x18] sm:$0xff] %v2950_v3  ;;  %v9566_v49 = vor.u32 %v11839_v43, %v9565_v41  ;;  %v11831_v3 = vld [vmem:[%s13689_s19 + $0x18c] sm:$0xf0] }
 0x1b8   : > { %2937 = vmatpush.bf16.msrb.mxu3 %v9274_v15  ;;  %2912 = vmatpush.bf16.msrb.mxu1 %v8730_v24  ;;  %v11736_v51 = vld [vmem:[%s13683_s20 + $0x69c] sm:$0xf]  ;;  %v8922_v58 = vor.u32 %v11672_v47, %v8919_v48  ;;  %v2673_v16 = vpop.f32.mrf.mxu2  ;;  %v11811_v24 = vld [vmem:[%s13689_s19 + $0xec] sm:$0xf0] }
 0x1b9   : > { %v9175_v52 = vld [vmem:[%s13683_s20 + $0x6b8] sm:$0xf0]  ;;  %v9454_v36 = vor.u32 %v11811_v24, %v9453_v23  ;;  %v11903_v47 = vld [vmem:[%s13689_s19 + $0x3cc] sm:$0xf0]  ;;  %v9517_v16 = vld [vmem:[%s13689_s19 + $0x160] sm:$0xf] }
 0x1ba   : > { %2925 = vmatpush.bf16.msrb.mxu2 %v8986_v25  ;;  %2900 = vmatpush.bf16.msrb.mxu0 %v8442_v38  ;;  %v11536_v59 = vld [vmem:[%s13683_s20 + $0x5c] sm:$0xf]  ;;  %v9178_v63 = vor.u32 %v11736_v51, %v9175_v52  ;;  %v2686_v22 = vpop.f32.mrf.mxu3  ;;  %v9581_v25 = vld [vmem:[%s13689_s19 + $0x1e0] sm:$0xf]  ;;  %v9710_v38 = vor.u32 %v11875_v30, %v9709_v29  ;;  %v11803_v52 = vld [vmem:[%s13689_s19 + $0xac] sm:$0xf0] }
 0x1bb   : > { %v8375_v60 = vld [vmem:[%s13683_s20 + $0x78] sm:$0xf0]  ;;  %v9582_v37 = vor.u32 %v11843_v28, %v9581_v25  ;;  %v9421_v51 = vld [vmem:[%s13689_s19 + $0xa0] sm:$0xf]  ;;  %v11859_v22 = vld [vmem:[%s13689_s19 + $0x26c] sm:$0xf0] }
 0x1bc   : > { %2938 = vmatpush.bf16.msrb.mxu3 %v9242_v31  ;;  %2913 = vmatpush.bf16.msrb.mxu1 %v8698_v39  ;;  %v11600_v61 = vld [vmem:[%s13683_s20 + $0x25c] sm:$0xf]  ;;  %v8378_v6 = vor.u32 %v11536_v59, %v8375_v60  ;;  %v9437_v39 = vld [vmem:[%s13689_s19 + $0xc0] sm:$0xf]  ;;  %v11899_v59 = vld [vmem:[%s13689_s19 + $0x3ac] sm:$0xf0]  ;;  %v9422_v60 = vor.u32 %v11803_v52, %v9421_v51 }
 0x1bd   : > { %v8631_v0 = vld [vmem:[%s13683_s20 + $0x278] sm:$0xf0]  ;;  %v9773_v24 = vld [vmem:[%s13689_s19 + $0x360] sm:$0xf]  ;;  %v11891_v25 = vld [vmem:[%s13689_s19 + $0x36c] sm:$0xf0] }
 0x1be   : > { %2926 = vmatpush.bf16.msrb.mxu2 %v8954_v40  ;;  %v11664_v1 = vld [vmem:[%s13683_s20 + $0x45c] sm:$0xf]  ;;  %2901 = vmatpush.bf16.msrb.mxu0 %v8410_v54  ;;  %v8634_v11 = vor.u32 %v11600_v61, %v8631_v0  ;;  %v11807_v40 = vld [vmem:[%s13689_s19 + $0xcc] sm:$0xf0]  ;;  %v9822_v54 = vor.u32 %v11903_v47, %v9821_v46  ;;  %v9550_v61 = vor.u32 %v11835_v55, %v9549_v53  ;;  %v9373_v30 = vld [vmem:[%s13689_s19 + $0x40] sm:$0xf] }
 0x1bf   : > { %v8887_v2 = vld [vmem:[%s13683_s20 + $0x478] sm:$0xf0]  ;;  %v9438_v48 = vor.u32 %v11807_v40, %v9437_v39  ;;  %v11799_v0 = vld [vmem:[%s13689_s19 + $0x8c] sm:$0xf0]  ;;  %v9774_v34 = vor.u32 %v11891_v25, %v9773_v24  ;;  %v9757_v40 = vld [vmem:[%s13689_s19 + $0x340] sm:$0xf] }
 0x1c0   : > { %2939 = vmatpush.bf16.msrb.mxu3 %v9210_v45  ;;  %v11728_v4 = vld [vmem:[%s13683_s20 + $0x65c] sm:$0xf]  ;;  %2914 = vmatpush.bf16.msrb.mxu1 %v8666_v57  ;;  %v8890_v12 = vor.u32 %v11664_v1, %v8887_v2  ;;  %v11871_v45 = vld [vmem:[%s13689_s19 + $0x2cc] sm:$0xf0]  ;;  %v9533_v1 = vld [vmem:[%s13689_s19 + $0x180] sm:$0xf] }
 0x1c1   : > { %v9143_v5 = vld [vmem:[%s13683_s20 + $0x678] sm:$0xf0]  ;;  %v9694_v50 = vor.u32 %v11871_v45, %v9693_v44  ;;  %v11867_v57 = vld [vmem:[%s13689_s19 + $0x2ac] sm:$0xf0] }
 0x1c2   : > { %v11528_v7 = vld [vmem:[%s13683_s20 + $0x1c] sm:$0xf]  ;;  %2927 = vmatpush.bf16.msrb.mxu2 %v8922_v58  ;;  %v9146_v17 = vor.u32 %v11728_v4, %v9143_v5  ;;  %2902 = vmatpush.bf16.msrb.mxu0 %v8378_v6  ;;  %v9805_v58 = vld [vmem:[%s13689_s19 + $0x3a0] sm:$0xf]  ;;  %v9678_v62 = vor.u32 %v11867_v57, %v9677_v56  ;;  %v11863_v5 = vld [vmem:[%s13689_s19 + $0x28c] sm:$0xf0] }
 0x1c3   : > { %v8343_v8 = vld [vmem:[%s13683_s20 + $0x38] sm:$0xf0]  ;;  %v9806_v2 = vor.u32 %v11899_v59, %v9805_v58  ;;  %v9661_v4 = vld [vmem:[%s13689_s19 + $0x280] sm:$0xf]  ;;  %v11887_v41 = vld [vmem:[%s13689_s19 + $0x34c] sm:$0xf0] }
 0x1c4   : > { %v11592_v13 = vld [vmem:[%s13683_s20 + $0x21c] sm:$0xf]  ;;  %2940 = vmatpush.bf16.msrb.mxu3 %v9178_v63  ;;  %v8346_v27 = vor.u32 %v11528_v7, %v8343_v8  ;;  %2915 = vmatpush.bf16.msrb.mxu1 %v8634_v11  ;;  %v9405_v63 = vld [vmem:[%s13689_s19 + $0x80] sm:$0xf]  ;;  %v11895_v7 = vld [vmem:[%s13689_s19 + $0x38c] sm:$0xf0]  ;;  %v9758_v52 = vor.u32 %v11887_v41, %v9757_v40 }
 0x1c5   : > { %v8599_v14 = vld [vmem:[%s13683_s20 + $0x238] sm:$0xf0]  ;;  %v9789_v6 = vld [vmem:[%s13689_s19 + $0x380] sm:$0xf]  ;;  %v9406_v8 = vor.u32 %v11799_v0, %v9405_v63  ;;  %v11819_v53 = vld [vmem:[%s13689_s19 + $0x12c] sm:$0xf0] }
 0x1c6   : > { %v11656_v15 = vld [vmem:[%s13683_s20 + $0x41c] sm:$0xf]  ;;  %2928 = vmatpush.bf16.msrb.mxu2 %v8890_v12  ;;  %v8602_v31 = vor.u32 %v11592_v13, %v8599_v14  ;;  %2903 = vmatpush.bf16.msrb.mxu0 %v8346_v27  ;;  %v2697_v11 = vpop.f32.mrf.mxu0  ;;  %v9534_v12 = vor.u32 %v11831_v3, %v9533_v1  ;;  %v9662_v13 = vor.u32 %v11863_v5, %v9661_v4  ;;  %v9389_v14 = vld [vmem:[%s13689_s19 + $0x60] sm:$0xf]  ;;  %v11851_v55 = vld [vmem:[%s13689_s19 + $0x22c] sm:$0xf0] }
 0x1c7   : > { %v8855_v18 = vld [vmem:[%s13683_s20 + $0x438] sm:$0xf0]  ;;  %v9741_v57 = vld [vmem:[%s13689_s19 + $0x320] sm:$0xf]  ;;  %v11883_v58 = vld [vmem:[%s13689_s19 + $0x32c] sm:$0xf0] }
 0x1c8   : > { %v11720_v20 = vld [vmem:[%s13683_s20 + $0x61c] sm:$0xf]  ;;  %v8858_v32 = vor.u32 %v11656_v15, %v8855_v18  ;;  %2941 = vmatpush.bf16.msrb.mxu3 %v9146_v17  ;;  %2916 = vmatpush.bf16.msrb.mxu1 %v8602_v31  ;;  %v11795_v15 = vld [vmem:[%s13689_s19 + $0x6c] sm:$0xf0]  ;;  %v2710_v17 = vpop.f32.mrf.mxu1  ;;  %v9790_v18 = vor.u32 %v11895_v7, %v9789_v6  ;;  %v9469_v0 = vld [vmem:[%s13689_s19 + $0x100] sm:$0xf]  ;;  %v9742_v4 = vor.u32 %v11883_v58, %v9741_v57 }
 0x1c9   : > { %v9111_v21 = vld [vmem:[%s13683_s20 + $0x638] sm:$0xf0]  ;;  %2904 = vmatmul.bf16.vlgmr.msrb.gmra.mxu0 %v13829_v19  ;;  %v2711_v23 = vadd.f32 %v2710_v17, %v2697_v11  ;;  %v9390_v27 = vor.u32 %v11795_v15, %v9389_v14  ;;  %v11791_v31 = vld [vmem:[%s13689_s19 + $0x4c] sm:$0xf0]  ;;  %v9725_v6 = vld [vmem:[%s13689_s19 + $0x300] sm:$0xf] }
 0x1ca   : > { %v9114_v35 = vor.u32 %v11720_v20, %v9111_v21  ;;  %2929 = vmatpush.bf16.msrb.mxu2 %v8858_v32  ;;  %3736 = vmatpush.bf16.msra.mxu0 %v9454_v36  ;;  %v11827_v20 = vld [vmem:[%s13689_s19 + $0x16c] sm:$0xf0]  ;;  %v9645_v21 = vld [vmem:[%s13689_s19 + $0x260] sm:$0xf]  ;;  %v9374_v43 = vor.u32 %v11791_v31, %v9373_v30  ;;  %v11809_v11 = vld [vmem:[%s13689_s19 + $0xe4] sm:$0xf] }
 0x1cb   : > { %2917 = vmatmul.bf16.vlgmr.msrb.gmra.mxu1 %v13835_v26  ;;  %v9518_v28 = vor.u32 %v11827_v20, %v9517_v16  ;;  %v9646_v29 = vor.u32 %v11859_v22, %v9645_v21  ;;  %v9501_v32 = vld [vmem:[%s13689_s19 + $0x140] sm:$0xf]  ;;  %v11815_v1 = vld [vmem:[%s13689_s19 + $0x10c] sm:$0xf0]  ;;  %v9583_v15 = vld [vmem:[%s13689_s19 + $0x1f0] sm:$0xf0] }
 0x1cc   : > { %2942 = vmatpush.bf16.msrb.mxu3 %v9114_v35  ;;  %3749 = vmatpush.bf16.msra.mxu1 %v9582_v37  ;;  %v11823_v35 = vld [vmem:[%s13689_s19 + $0x14c] sm:$0xf0]  ;;  %v9629_v36 = vld [vmem:[%s13689_s19 + $0x240] sm:$0xf]  ;;  %v11873_v16 = vld [vmem:[%s13689_s19 + $0x2e4] sm:$0xf] }
 0x1cd   : > { %2930 = vmatmul.bf16.vlgmr.msrb.gmra.mxu2 %v13817_v9  ;;  %v11855_v37 = vld [vmem:[%s13689_s19 + $0x24c] sm:$0xf0]  ;;  %v9502_v46 = vor.u32 %v11823_v35, %v9501_v32  ;;  %v9711_v17 = vld [vmem:[%s13689_s19 + $0x2f0] sm:$0xf0]  ;;  %v11905_v21 = vld [vmem:[%s13689_s19 + $0x3e4] sm:$0xf] }
 0x1ce   : > { %3762 = vmatpush.bf16.msra.mxu2 %v9710_v38  ;;  %3737 = vmatpush.bf16.msra.mxu0 %v9438_v48  ;;  %v2699_v45 = vpop.f32.mrf.mxu0  ;;  %v9630_v47 = vor.u32 %v11855_v37, %v9629_v36  ;;  %v9357_v48 = vld [vmem:[%s13689_s19 + $0x20] sm:$0xf]  ;;  %v11847_v5 = vld [vmem:[%s13689_s19 + $0x20c] sm:$0xf0]  ;;  %v9839_v22 = vld [vmem:[%s13689_s19 + $0x3f0] sm:$0xf0] }
 0x1cf   : > { %2943 = vmatmul.bf16.vlgmr.msrb.gmra.mxu3 %v13819_v10  ;;  %v11879_v7 = vld [vmem:[%s13689_s19 + $0x30c] sm:$0xf0]  ;;  %v11837_v30 = vld [vmem:[%s13689_s19 + $0x1c4] sm:$0xf]  ;;  %v9842_v31 = vor.u32 %v11905_v21, %v9839_v22  ;;  %v9567_v32 = vld [vmem:[%s13689_s19 + $0x1d0] sm:$0xf0] }
 0x1d0   : > { %3775 = vmatpush.bf16.msra.mxu3 %v9838_v42  ;;  %3750 = vmatpush.bf16.msra.mxu1 %v9566_v49  ;;  %v2723_v33 = vpop.f32.mrf.mxu2  ;;  %v991_v42 = vld [vmem:[#allocation2 + $0x10] sm:$0xff]  ;;  %v11787_v49 = vld [vmem:[%s13689_s19 + $0x2c] sm:$0xf0]  ;;  %v2712_v51 = vpop.f32.mrf.mxu1  ;;  %v11901_v35 = vld [vmem:[%s13689_s19 + $0x3c4] sm:$0xf] }
 0x1d1   : > { %v2724_v38 = vadd.f32 %v2723_v33, %v2711_v23  ;;  %v9358_v59 = vor.u32 %v11787_v49, %v9357_v48  ;;  %v9726_v23 = vor.u32 %v11879_v7, %v9725_v6  ;;  %v11869_v33 = vld [vmem:[%s13689_s19 + $0x2c4] sm:$0xf]  ;;  %v9823_v36 = vld [vmem:[%s13689_s19 + $0x3d0] sm:$0xf0] }
 0x1d2   : > { %3763 = vmatpush.bf16.msra.mxu2 %v9694_v50  ;;  %3738 = vmatpush.bf16.msra.mxu0 %v9422_v60  ;;  %v2736_v39 = vpop.f32.mrf.mxu3  ;;  %v9485_v50 = vld [vmem:[%s13689_s19 + $0x120] sm:$0xf]  ;;  %v11801_v40 = vld [vmem:[%s13689_s19 + $0xa4] sm:$0xf]  ;;  %v9423_v41 = vld [vmem:[%s13689_s19 + $0xb0] sm:$0xf0] }
 0x1d3   : > { %v2737_v44 = vadd.f32 %v2736_v39, %v2724_v38  ;;  %v9341_v60 = vld [vmem:[%s13689_s19] sm:$0xf]  ;;  %v9570_v38 = vor.u32 %v11837_v30, %v9567_v32  ;;  %v11865_v45 = vld [vmem:[%s13689_s19 + $0x2a4] sm:$0xf]  ;;  %v9807_v48 = vld [vmem:[%s13689_s19 + $0x3b0] sm:$0xf0]  ;;  %v9426_v49 = vor.u32 %v11801_v40, %v9423_v41 }
 0x1d4   : > { %3776 = vmatpush.bf16.msra.mxu3 %v9822_v54  ;;  %3751 = vmatpush.bf16.msra.mxu1 %v9550_v61  ;;  %v9613_v54 = vld [vmem:[%s13689_s19 + $0x220] sm:$0xf]  ;;  %v11783_v61 = vld [vmem:[%s13689_s19 + $0xc] sm:$0xf0]  ;;  %v11861_v57 = vld [vmem:[%s13689_s19 + $0x284] sm:$0xf] }
 0x1d5   : > { %v2951_v56 = vadd.f32 %v2737_v44, %v991_v42  ;;  %v9614_v63 = vor.u32 %v11851_v55, %v9613_v54  ;;  %v9342_v14 = vor.u32 %v11783_v61, %v9341_v60  ;;  %v11833_v42 = vld [vmem:[%s13689_s19 + $0x1a4] sm:$0xf]  ;;  %v9551_v44 = vld [vmem:[%s13689_s19 + $0x1b0] sm:$0xf0] }
 0x1d6   : > { %3764 = vmatpush.bf16.msra.mxu2 %v9678_v62  ;;  %3739 = vmatpush.bf16.msra.mxu0 %v9406_v8  ;;  %v9486_v62 = vor.u32 %v11819_v53, %v9485_v50  ;;  %v9554_v50 = vor.u32 %v11833_v42, %v9551_v44  ;;  %v9407_v53 = vld [vmem:[%s13689_s19 + $0x90] sm:$0xf0]  ;;  %v11829_v54 = vld [vmem:[%s13689_s19 + $0x184] sm:$0xf] }
 0x1d7   : > { %2959 = vst [vmem:[#allocation2 + $0x10] sm:$0xff] %v2951_v56  ;;  %v9535_v56 = vld [vmem:[%s13689_s19 + $0x190] sm:$0xf0]  ;;  %v11857_v7 = vld [vmem:[%s13689_s19 + $0x264] sm:$0xf] }
 0x1d8   : > { %3777 = vmatpush.bf16.msra.mxu3 %v9806_v2  ;;  %3752 = vmatpush.bf16.msra.mxu1 %v9534_v12  ;;  %v9597_v2 = vld [vmem:[%s13689_s19 + $0x200] sm:$0xf]  ;;  %v2725_v3 = vpop.f32.mrf.mxu2  ;;  %v9455_v12 = vld [vmem:[%s13689_s19 + $0xf0] sm:$0xf0] }
 0x1d9   : > { %v9598_v20 = vor.u32 %v11847_v5, %v9597_v2  ;;  %v9458_v24 = vor.u32 %v11809_v11, %v9455_v12  ;;  %v9663_v58 = vld [vmem:[%s13689_s19 + $0x290] sm:$0xf0]  ;;  %v11825_v3 = vld [vmem:[%s13689_s19 + $0x164] sm:$0xf] }
 0x1da   : > { %3765 = vmatpush.bf16.msra.mxu2 %v9662_v13  ;;  %3740 = vmatpush.bf16.msra.mxu0 %v9390_v27  ;;  %v2738_v8 = vpop.f32.mrf.mxu3  ;;  %v11841_v13 = vld [vmem:[%s13689_s19 + $0x1e4] sm:$0xf]  ;;  %v9714_v27 = vor.u32 %v11873_v16, %v9711_v17  ;;  %v9791_v60 = vld [vmem:[%s13689_s19 + $0x390] sm:$0xf0] }
 0x1db   : > { %v9586_v25 = vor.u32 %v11841_v13, %v9583_v15  ;;  %v9391_v2 = vld [vmem:[%s13689_s19 + $0x70] sm:$0xf0]  ;;  %v11889_v12 = vld [vmem:[%s13689_s19 + $0x364] sm:$0xf] }
 0x1dc   : > { %3778 = vmatpush.bf16.msra.mxu3 %v9790_v18  ;;  %3753 = vmatpush.bf16.msra.mxu1 %v9518_v28  ;;  %v9470_v18 = vor.u32 %v11815_v1, %v9469_v0  ;;  %v11805_v28 = vld [vmem:[%s13689_s19 + $0xc4] sm:$0xf]  ;;  %v9666_v0 = vor.u32 %v11861_v57, %v9663_v58  ;;  %v9519_v6 = vld [vmem:[%s13689_s19 + $0x170] sm:$0xf0] }
 0x1dd   : > { %v11793_v1 = vld [vmem:[%s13689_s19 + $0x64] sm:$0xf]  ;;  %v9647_v8 = vld [vmem:[%s13689_s19 + $0x270] sm:$0xf0]  ;;  %v9522_v15 = vor.u32 %v11825_v3, %v9519_v6  ;;  %v9717_v3 = vld [vmem:[%s13689_s19 + $0x2e8] sm:$0xf] }
 0x1de   : > { %3766 = vmatpush.bf16.msra.mxu2 %v9646_v29  ;;  %3741 = vmatpush.bf16.msra.mxu0 %v9374_v43  ;;  %v9439_v29 = vld [vmem:[%s13689_s19 + $0xd0] sm:$0xf0]  ;;  %v9826_v43 = vor.u32 %v11901_v35, %v9823_v36  ;;  %v9650_v16 = vor.u32 %v11857_v7, %v9647_v8  ;;  %v11789_v17 = vld [vmem:[%s13689_s19 + $0x44] sm:$0xf]  ;;  %v9845_v7 = vld [vmem:[%s13689_s19 + $0x3e8] sm:$0xf] }
 0x1df   : > { %v9442_v37 = vor.u32 %v11805_v28, %v9439_v29  ;;  %v9775_v13 = vld [vmem:[%s13689_s19 + $0x370] sm:$0xf0]  ;;  %v11885_v29 = vld [vmem:[%s13689_s19 + $0x344] sm:$0xf]  ;;  %v11908_v8 = vld [vmem:[%s13689_s19 + $0x3f4] sm:$0xf0] }
 0x1e0   : > { %3779 = vmatpush.bf16.msra.mxu3 %v9774_v34  ;;  %3754 = vmatpush.bf16.msra.mxu1 %v9502_v46  ;;  %v9695_v34 = vld [vmem:[%s13689_s19 + $0x2d0] sm:$0xf0]  ;;  %v9778_v22 = vor.u32 %v11889_v12, %v9775_v13 }
 0x1e1   : > { %v9698_v39 = vor.u32 %v11869_v33, %v9695_v34  ;;  %v9679_v46 = vld [vmem:[%s13689_s19 + $0x2b0] sm:$0xf0] }
 0x1e2   : > { %3767 = vmatpush.bf16.msra.mxu2 %v9630_v47  ;;  %3742 = vmatpush.bf16.msra.mxu0 %v9358_v59  ;;  %v11897_v47 = vld [vmem:[%s13689_s19 + $0x3a4] sm:$0xf]  ;;  %v9682_v51 = vor.u32 %v11865_v45, %v9679_v46  ;;  %v9759_v30 = vld [vmem:[%s13689_s19 + $0x350] sm:$0xf0] }
 0x1e3   : > { %v9810_v55 = vor.u32 %v11897_v47, %v9807_v48  ;;  %v11893_v59 = vld [vmem:[%s13689_s19 + $0x384] sm:$0xf]  ;;  %v9762_v41 = vor.u32 %v11885_v29, %v9759_v30  ;;  %v9487_v42 = vld [vmem:[%s13689_s19 + $0x130] sm:$0xf0]  ;;  %v9429_v29 = vld [vmem:[%s13689_s19 + $0xa8] sm:$0xf] }
 0x1e4   : > { %3780 = vmatpush.bf16.msra.mxu3 %v9758_v52  ;;  %3755 = vmatpush.bf16.msra.mxu1 %v9486_v62  ;;  %v11797_v52 = vld [vmem:[%s13689_s19 + $0x84] sm:$0xf]  ;;  %v9794_v5 = vor.u32 %v11893_v59, %v9791_v60  ;;  %v9615_v44 = vld [vmem:[%s13689_s19 + $0x230] sm:$0xf0]  ;;  %v11804_v30 = vld [vmem:[%s13689_s19 + $0xb4] sm:$0xf0] }
 0x1e5   : > { %v9410_v61 = vor.u32 %v11797_v52, %v9407_v53  ;;  %v11881_v46 = vld [vmem:[%s13689_s19 + $0x324] sm:$0xf]  ;;  %v9743_v47 = vld [vmem:[%s13689_s19 + $0x330] sm:$0xf0] }
 0x1e6   : > { %3768 = vmatpush.bf16.msra.mxu2 %v9614_v63  ;;  %3743 = vmatpush.bf16.msra.mxu0 %v9342_v14  ;;  %v2749_v62 = vpop.f32.mrf.mxu0  ;;  %v9538_v63 = vor.u32 %v11829_v54, %v9535_v56  ;;  %v9394_v14 = vor.u32 %v11793_v1, %v9391_v2  ;;  %v11813_v53 = vld [vmem:[%s13689_s19 + $0x104] sm:$0xf]  ;;  %v9471_v54 = vld [vmem:[%s13689_s19 + $0x110] sm:$0xf0]  ;;  %v9746_v57 = vor.u32 %v11881_v46, %v9743_v47  ;;  %v11844_v2 = vld [vmem:[%s13689_s19 + $0x1f4] sm:$0xf0] }
 0x1e7   : > { %v9599_v58 = vld [vmem:[%s13689_s19 + $0x210] sm:$0xf0]  ;;  %v11877_v59 = vld [vmem:[%s13689_s19 + $0x304] sm:$0xf]  ;;  %v9669_v46 = vld [vmem:[%s13689_s19 + $0x288] sm:$0xf] }
 0x1e8   : > { %3781 = vmatpush.bf16.msra.mxu3 %v9742_v4  ;;  %3756 = vmatpush.bf16.msra.mxu1 %v9470_v18  ;;  %v2762_v4 = vpop.f32.mrf.mxu1  ;;  %v9375_v18 = vld [vmem:[%s13689_s19 + $0x50] sm:$0xf0]  ;;  %v11864_v47 = vld [vmem:[%s13689_s19 + $0x294] sm:$0xf0] }
 0x1e9   : > { %3744 = vmatmul.bf16.vlgmr.msra.gmra.mxu0 %v13829_v19  ;;  %v2763_v11 = vadd.f32 %v2762_v4, %v2749_v62  ;;  %v9378_v32 = vor.u32 %v11789_v17, %v9375_v18  ;;  %v9727_v60 = vld [vmem:[%s13689_s19 + $0x310] sm:$0xf0]  ;;  %v9461_v62 = vld [vmem:[%s13689_s19 + $0xe8] sm:$0xf]  ;;  %v11876_v4 = vld [vmem:[%s13689_s19 + $0x2f4] sm:$0xf0]  ;;  %v9846_v18 = vor.u32 %v11908_v8, %v9845_v7 }
 0x1ea   : > { %3769 = vmatpush.bf16.msra.mxu2 %v9598_v20  ;;  %3788 = vmatpush.bf16.msrb.mxu0 %v9458_v24  ;;  %v11821_v20 = vld [vmem:[%s13689_s19 + $0x144] sm:$0xf]  ;;  %v9573_v17 = vld [vmem:[%s13689_s19 + $0x1c8] sm:$0xf] }
 0x1eb   : > { %3757 = vmatmul.bf16.vlgmr.msra.gmra.mxu1 %v13835_v26  ;;  %v11853_v24 = vld [vmem:[%s13689_s19 + $0x244] sm:$0xf] }
 0x1ec   : > { %3782 = vmatpush.bf16.msra.mxu3 %v9726_v23  ;;  %3801 = vmatpush.bf16.msrb.mxu1 %v9586_v25  ;;  %v9503_v23 = vld [vmem:[%s13689_s19 + $0x150] sm:$0xf0] }
 0x1ed   : > { %3770 = vmatmul.bf16.vlgmr.msra.gmra.mxu2 %v13817_v9  ;;  %v9631_v25 = vld [vmem:[%s13689_s19 + $0x250] sm:$0xf0]  ;;  %v9506_v35 = vor.u32 %v11821_v20, %v9503_v23  ;;  %v11840_v20 = vld [vmem:[%s13689_s19 + $0x1d4] sm:$0xf0]  ;;  %v9829_v23 = vld [vmem:[%s13689_s19 + $0x3c8] sm:$0xf] }
 0x1ee   : > { %3814 = vmatpush.bf16.msrb.mxu2 %v9714_v27  ;;  %3789 = vmatpush.bf16.msrb.mxu0 %v9442_v37  ;;  %v2751_v34 = vpop.f32.mrf.mxu0  ;;  %v9634_v36 = vor.u32 %v11853_v24, %v9631_v25  ;;  %v11785_v37 = vld [vmem:[%s13689_s19 + $0x24] sm:$0xf]  ;;  %v11904_v24 = vld [vmem:[%s13689_s19 + $0x3d4] sm:$0xf0] }
 0x1ef   : > { %3783 = vmatmul.bf16.vlgmr.msra.gmra.mxu3 %v13819_v10  ;;  %v9685_v34 = vld [vmem:[%s13689_s19 + $0x2a8] sm:$0xf] }
 0x1f0   : > { %3827 = vmatpush.bf16.msrb.mxu3 %v9842_v31  ;;  %3802 = vmatpush.bf16.msrb.mxu1 %v9570_v38  ;;  %v2775_v21 = vpop.f32.mrf.mxu2  ;;  %v992_v31 = vld [vmem:[#allocation2 + $0x8] sm:$0xff]  ;;  %v9359_v38 = vld [vmem:[%s13689_s19 + $0x30] sm:$0xf0]  ;;  %v2764_v40 = vpop.f32.mrf.mxu1 }
 0x1f1   : > { %v2776_v27 = vadd.f32 %v2775_v21, %v2763_v11  ;;  %v9362_v48 = vor.u32 %v11785_v37, %v9359_v38  ;;  %v9730_v11 = vor.u32 %v11877_v59, %v9727_v60  ;;  %v9701_v21 = vld [vmem:[%s13689_s19 + $0x2c8] sm:$0xf]  ;;  %v11900_v37 = vld [vmem:[%s13689_s19 + $0x3b4] sm:$0xf0]  ;;  %v9430_v38 = vor.u32 %v11804_v30, %v9429_v29 }
 0x1f2   : > { %3815 = vmatpush.bf16.msrb.mxu2 %v9698_v39  ;;  %3790 = vmatpush.bf16.msrb.mxu0 %v9426_v49  ;;  %v2788_v28 = vpop.f32.mrf.mxu3  ;;  %v11817_v39 = vld [vmem:[%s13689_s19 + $0x124] sm:$0xf]  ;;  %v11828_v59 = vld [vmem:[%s13689_s19 + $0x174] sm:$0xf0]  ;;  %v9653_v60 = vld [vmem:[%s13689_s19 + $0x268] sm:$0xf] }
 0x1f3   : > { %v2789_v33 = vadd.f32 %v2788_v28, %v2776_v27  ;;  %v11781_v49 = vld [vmem:[%s13689_s19 + $0x4] sm:$0xf]  ;;  %v9574_v27 = vor.u32 %v11840_v20, %v9573_v17  ;;  %v11888_v17 = vld [vmem:[%s13689_s19 + $0x354] sm:$0xf0] }
 0x1f4   : > { %3828 = vmatpush.bf16.msrb.mxu3 %v9826_v43  ;;  %3803 = vmatpush.bf16.msrb.mxu1 %v9554_v50  ;;  %v11849_v43 = vld [vmem:[%s13689_s19 + $0x224] sm:$0xf]  ;;  %v9343_v50 = vld [vmem:[%s13689_s19 + $0x10] sm:$0xf0] }
 0x1f5   : > { %v2952_v45 = vadd.f32 %v2789_v33, %v992_v31  ;;  %v9618_v52 = vor.u32 %v11849_v43, %v9615_v44  ;;  %v9346_v1 = vor.u32 %v11781_v49, %v9343_v50  ;;  %v9557_v31 = vld [vmem:[%s13689_s19 + $0x1a8] sm:$0xf]  ;;  %v11836_v33 = vld [vmem:[%s13689_s19 + $0x1b4] sm:$0xf0] }
 0x1f6   : > { %3816 = vmatpush.bf16.msrb.mxu2 %v9682_v51  ;;  %3791 = vmatpush.bf16.msrb.mxu0 %v9410_v61  ;;  %v9490_v51 = vor.u32 %v11817_v39, %v9487_v42  ;;  %v9558_v39 = vor.u32 %v11836_v33, %v9557_v31  ;;  %v11800_v42 = vld [vmem:[%s13689_s19 + $0x94] sm:$0xf0]  ;;  %v9541_v43 = vld [vmem:[%s13689_s19 + $0x188] sm:$0xf] }
 0x1f7   : > { %2960 = vst [vmem:[#allocation2 + $0x8] sm:$0xff] %v2952_v45  ;;  %v11832_v45 = vld [vmem:[%s13689_s19 + $0x194] sm:$0xf0] }
 0x1f8   : > { %3829 = vmatpush.bf16.msrb.mxu3 %v9810_v55  ;;  %3804 = vmatpush.bf16.msrb.mxu1 %v9538_v63  ;;  %v11845_v55 = vld [vmem:[%s13689_s19 + $0x204] sm:$0xf]  ;;  %v2777_v56 = vpop.f32.mrf.mxu2  ;;  %v11812_v63 = vld [vmem:[%s13689_s19 + $0xf4] sm:$0xf0] }
 0x1f9   : > { %v9602_v6 = vor.u32 %v11845_v55, %v9599_v58  ;;  %v9462_v12 = vor.u32 %v11812_v63, %v9461_v62  ;;  %v11896_v49 = vld [vmem:[%s13689_s19 + $0x394] sm:$0xf0]  ;;  %v9525_v56 = vld [vmem:[%s13689_s19 + $0x168] sm:$0xf] }
 0x1fa   : > { %3817 = vmatpush.bf16.msrb.mxu2 %v9666_v0  ;;  %3792 = vmatpush.bf16.msrb.mxu0 %v9394_v14  ;;  %v2790_v61 = vpop.f32.mrf.mxu3  ;;  %v9589_v0 = vld [vmem:[%s13689_s19 + $0x1e8] sm:$0xf]  ;;  %v9718_v14 = vor.u32 %v11876_v4, %v9717_v3  ;;  %v11796_v55 = vld [vmem:[%s13689_s19 + $0x74] sm:$0xf0] }
 0x1fb   : > { %v9590_v13 = vor.u32 %v11844_v2, %v9589_v0  ;;  %v11860_v61 = vld [vmem:[%s13689_s19 + $0x274] sm:$0xf0]  ;;  %v9781_v63 = vld [vmem:[%s13689_s19 + $0x368] sm:$0xf]  ;;  %v9526_v2 = vor.u32 %v11828_v59, %v9525_v56  ;;  %v11874_v56 = vld [vmem:[%s13689_s19 + $0x2ec] sm:$0xf] }
 0x1fc   : > { %3830 = vmatpush.bf16.msrb.mxu3 %v9794_v5  ;;  %3805 = vmatpush.bf16.msrb.mxu1 %v9522_v15  ;;  %v9474_v5 = vor.u32 %v11813_v53, %v9471_v54  ;;  %v9445_v15 = vld [vmem:[%s13689_s19 + $0xc8] sm:$0xf]  ;;  %v9670_v53 = vor.u32 %v11864_v47, %v9669_v46  ;;  %v11892_v0 = vld [vmem:[%s13689_s19 + $0x374] sm:$0xf0]  ;;  %v9654_v3 = vor.u32 %v11860_v61, %v9653_v60  ;;  %v11906_v60 = vld [vmem:[%s13689_s19 + $0x3ec] sm:$0xf] }
 0x1fd   : > { %v9397_v54 = vld [vmem:[%s13689_s19 + $0x68] sm:$0xf]  ;;  %v9782_v8 = vor.u32 %v11892_v0, %v9781_v63  ;;  %v11820_v31 = vld [vmem:[%s13689_s19 + $0x134] sm:$0xf0]  ;;  %v9847_v61 = vld [vmem:[%s13689_s19 + $0x3f8] sm:$0xf0] }
 0x1fe   : > { %3818 = vmatpush.bf16.msrb.mxu2 %v9650_v16  ;;  %3793 = vmatpush.bf16.msrb.mxu0 %v9378_v32  ;;  %v11808_v16 = vld [vmem:[%s13689_s19 + $0xd4] sm:$0xf0]  ;;  %v9830_v32 = vor.u32 %v11904_v24, %v9829_v23  ;;  %v9381_v4 = vld [vmem:[%s13689_s19 + $0x48] sm:$0xf] }
 0x1ff   : > { %v9446_v25 = vor.u32 %v11808_v16, %v9445_v15  ;;  %v9765_v16 = vld [vmem:[%s13689_s19 + $0x348] sm:$0xf]  ;;  %v11852_v33 = vld [vmem:[%s13689_s19 + $0x234] sm:$0xf0] }
 0x200   : > { %3831 = vmatpush.bf16.msrb.mxu3 %v9778_v22  ;;  %3806 = vmatpush.bf16.msrb.mxu1 %v9506_v35  ;;  %v11872_v22 = vld [vmem:[%s13689_s19 + $0x2d4] sm:$0xf0]  ;;  %v9766_v30 = vor.u32 %v11888_v17, %v9765_v16  ;;  %v11802_v16 = vld [vmem:[%s13689_s19 + $0xac] sm:$0xf]  ;;  %v9431_v17 = vld [vmem:[%s13689_s19 + $0xb8] sm:$0xf0] }
 0x201   : > { %v9702_v28 = vor.u32 %v11872_v22, %v9701_v21  ;;  %v11868_v35 = vld [vmem:[%s13689_s19 + $0x2b4] sm:$0xf0] }
 0x202   : > { %3819 = vmatpush.bf16.msrb.mxu2 %v9634_v36  ;;  %3794 = vmatpush.bf16.msrb.mxu0 %v9362_v48  ;;  %v9813_v36 = vld [vmem:[%s13689_s19 + $0x3a8] sm:$0xf]  ;;  %v9686_v40 = vor.u32 %v11868_v35, %v9685_v34  ;;  %v11848_v47 = vld [vmem:[%s13689_s19 + $0x214] sm:$0xf0] }
 0x203   : > { %v9814_v44 = vor.u32 %v11900_v37, %v9813_v36  ;;  %v9797_v48 = vld [vmem:[%s13689_s19 + $0x388] sm:$0xf]  ;;  %v11884_v36 = vld [vmem:[%s13689_s19 + $0x334] sm:$0xf0] }
 0x204   : > { %3832 = vmatpush.bf16.msrb.mxu3 %v9762_v41  ;;  %3807 = vmatpush.bf16.msrb.mxu1 %v9490_v51  ;;  %v9413_v41 = vld [vmem:[%s13689_s19 + $0x88] sm:$0xf]  ;;  %v9798_v58 = vor.u32 %v11896_v49, %v9797_v48  ;;  %v11880_v49 = vld [vmem:[%s13689_s19 + $0x314] sm:$0xf0] }
 0x205   : > { %v9414_v50 = vor.u32 %v11800_v42, %v9413_v41  ;;  %v9749_v35 = vld [vmem:[%s13689_s19 + $0x328] sm:$0xf] }
 0x206   : > { %3820 = vmatpush.bf16.msrb.mxu2 %v9618_v52  ;;  %3795 = vmatpush.bf16.msrb.mxu0 %v9346_v1  ;;  %v2801_v51 = vpop.f32.mrf.mxu0  ;;  %v9542_v52 = vor.u32 %v11832_v45, %v9541_v43  ;;  %v9398_v1 = vor.u32 %v11796_v55, %v9397_v54  ;;  %v9477_v42 = vld [vmem:[%s13689_s19 + $0x108] sm:$0xf]  ;;  %v11816_v43 = vld [vmem:[%s13689_s19 + $0x114] sm:$0xf0]  ;;  %v9750_v46 = vor.u32 %v11884_v36, %v9749_v35  ;;  %v9591_v55 = vld [vmem:[%s13689_s19 + $0x1f8] sm:$0xf0] }
 0x207   : > { %v9733_v48 = vld [vmem:[%s13689_s19 + $0x308] sm:$0xf]  ;;  %v11862_v35 = vld [vmem:[%s13689_s19 + $0x28c] sm:$0xf]  ;;  %v9671_v36 = vld [vmem:[%s13689_s19 + $0x298] sm:$0xf0] }
 0x208   : > { %3833 = vmatpush.bf16.msrb.mxu3 %v9746_v57  ;;  %3808 = vmatpush.bf16.msrb.mxu1 %v9474_v5  ;;  %v2814_v57 = vpop.f32.mrf.mxu1  ;;  %v11792_v5 = vld [vmem:[%s13689_s19 + $0x54] sm:$0xf0] }
 0x209   : > { %3796 = vmatmul.bf16.vlgmr.msrb.gmra.mxu0 %v13829_v19  ;;  %v2815_v62 = vadd.f32 %v2814_v57, %v2801_v51  ;;  %v9382_v20 = vor.u32 %v11792_v5, %v9381_v4  ;;  %v11810_v51 = vld [vmem:[%s13689_s19 + $0xec] sm:$0xf]  ;;  %v9719_v57 = vld [vmem:[%s13689_s19 + $0x2f8] sm:$0xf0]  ;;  %v9850_v5 = vor.u32 %v11906_v60, %v9847_v61 }
 0x20a   : > { %3821 = vmatpush.bf16.msrb.mxu2 %v9602_v6  ;;  %3840 = vmatpush.bf16.msra.mxu0 %v9462_v12  ;;  %v9509_v6 = vld [vmem:[%s13689_s19 + $0x148] sm:$0xf]  ;;  %v11838_v4 = vld [vmem:[%s13689_s19 + $0x1cc] sm:$0xf] }
 0x20b   : > { %3809 = vmatmul.bf16.vlgmr.msrb.gmra.mxu1 %v13835_v26  ;;  %v9637_v12 = vld [vmem:[%s13689_s19 + $0x248] sm:$0xf] }
 0x20c   : > { %3834 = vmatpush.bf16.msrb.mxu3 %v9730_v11  ;;  %3853 = vmatpush.bf16.msra.mxu1 %v9590_v13  ;;  %v11824_v11 = vld [vmem:[%s13689_s19 + $0x154] sm:$0xf0] }
 0x20d   : > { %3822 = vmatmul.bf16.vlgmr.msrb.gmra.mxu2 %v13817_v9  ;;  %v11856_v13 = vld [vmem:[%s13689_s19 + $0x254] sm:$0xf0]  ;;  %v9510_v23 = vor.u32 %v11824_v11, %v9509_v6  ;;  %v9575_v6 = vld [vmem:[%s13689_s19 + $0x1d8] sm:$0xf0]  ;;  %v11902_v11 = vld [vmem:[%s13689_s19 + $0x3cc] sm:$0xf] }
 0x20e   : > { %3866 = vmatpush.bf16.msra.mxu2 %v9718_v14  ;;  %3841 = vmatpush.bf16.msra.mxu0 %v9446_v25  ;;  %v2803_v22 = vpop.f32.mrf.mxu0  ;;  %v9638_v24 = vor.u32 %v11856_v13, %v9637_v12  ;;  %v9365_v25 = vld [vmem:[%s13689_s19 + $0x28] sm:$0xf]  ;;  %v9831_v12 = vld [vmem:[%s13689_s19 + $0x3d8] sm:$0xf0] }
 0x20f   : > { %3835 = vmatmul.bf16.vlgmr.msrb.gmra.mxu3 %v13819_v10  ;;  %v11866_v22 = vld [vmem:[%s13689_s19 + $0x2ac] sm:$0xf] }
 0x210   : > { %3879 = vmatpush.bf16.msra.mxu3 %v9846_v18  ;;  %3854 = vmatpush.bf16.msra.mxu1 %v9574_v27  ;;  %v2827_v7 = vpop.f32.mrf.mxu2  ;;  %v993_v18 = vld [vmem:[#allocation2 + $0x20] sm:$0xff]  ;;  %v2816_v29 = vpop.f32.mrf.mxu1 }
 0x211   : > { %v2828_v14 = vadd.f32 %v2827_v7, %v2815_v62  ;;  %v11788_v27 = vld [vmem:[%s13689_s19 + $0x34] sm:$0xf0]  ;;  %v9734_v62 = vor.u32 %v11880_v49, %v9733_v48  ;;  %v11870_v7 = vld [vmem:[%s13689_s19 + $0x2cc] sm:$0xf]  ;;  %v9527_v48 = vld [vmem:[%s13689_s19 + $0x178] sm:$0xf0] }
 0x212   : > { %3867 = vmatpush.bf16.msra.mxu2 %v9702_v28  ;;  %3842 = vmatpush.bf16.msra.mxu0 %v9430_v38  ;;  %v2840_v15 = vpop.f32.mrf.mxu3  ;;  %v9493_v28 = vld [vmem:[%s13689_s19 + $0x128] sm:$0xf]  ;;  %v9366_v37 = vor.u32 %v11788_v27, %v9365_v25  ;;  %v9815_v25 = vld [vmem:[%s13689_s19 + $0x3b8] sm:$0xf0]  ;;  %v9434_v27 = vor.u32 %v11802_v16, %v9431_v17  ;;  %v11858_v49 = vld [vmem:[%s13689_s19 + $0x26c] sm:$0xf] }
 0x213   : > { %v2841_v21 = vadd.f32 %v2840_v15, %v2828_v14  ;;  %v9349_v38 = vld [vmem:[%s13689_s19 + $0x8] sm:$0xf]  ;;  %v9578_v14 = vor.u32 %v11838_v4, %v9575_v6  ;;  %v9767_v4 = vld [vmem:[%s13689_s19 + $0x358] sm:$0xf0] }
 0x214   : > { %3880 = vmatpush.bf16.msra.mxu3 %v9830_v32  ;;  %3855 = vmatpush.bf16.msra.mxu1 %v9558_v39  ;;  %v9621_v32 = vld [vmem:[%s13689_s19 + $0x228] sm:$0xf]  ;;  %v11784_v39 = vld [vmem:[%s13689_s19 + $0x14] sm:$0xf0] }
 0x215   : > { %v2953_v34 = vadd.f32 %v2841_v21, %v993_v18  ;;  %v9622_v41 = vor.u32 %v11852_v33, %v9621_v32  ;;  %v9350_v54 = vor.u32 %v11784_v39, %v9349_v38  ;;  %v11834_v18 = vld [vmem:[%s13689_s19 + $0x1ac] sm:$0xf]  ;;  %v9559_v21 = vld [vmem:[%s13689_s19 + $0x1b8] sm:$0xf0] }
 0x216   : > { %3868 = vmatpush.bf16.msra.mxu2 %v9686_v40  ;;  %3843 = vmatpush.bf16.msra.mxu0 %v9414_v50  ;;  %v9494_v40 = vor.u32 %v11820_v31, %v9493_v28  ;;  %v9562_v28 = vor.u32 %v11834_v18, %v9559_v21  ;;  %v9415_v31 = vld [vmem:[%s13689_s19 + $0x98] sm:$0xf0]  ;;  %v11830_v32 = vld [vmem:[%s13689_s19 + $0x18c] sm:$0xf] }
 0x217   : > { %2961 = vst [vmem:[#allocation2 + $0x20] sm:$0xff] %v2953_v34  ;;  %v9543_v34 = vld [vmem:[%s13689_s19 + $0x198] sm:$0xf0] }
 0x218   : > { %3881 = vmatpush.bf16.msra.mxu3 %v9814_v44  ;;  %3856 = vmatpush.bf16.msra.mxu1 %v9542_v52  ;;  %v9605_v44 = vld [vmem:[%s13689_s19 + $0x208] sm:$0xf]  ;;  %v2829_v45 = vpop.f32.mrf.mxu2  ;;  %v9463_v52 = vld [vmem:[%s13689_s19 + $0xf8] sm:$0xf0] }
 0x219   : > { %v9606_v59 = vor.u32 %v11848_v47, %v9605_v44  ;;  %v9466_v63 = vor.u32 %v11810_v51, %v9463_v52  ;;  %v9799_v38 = vld [vmem:[%s13689_s19 + $0x398] sm:$0xf0]  ;;  %v11826_v45 = vld [vmem:[%s13689_s19 + $0x16c] sm:$0xf] }
 0x21a   : > { %3869 = vmatpush.bf16.msra.mxu2 %v9670_v53  ;;  %3844 = vmatpush.bf16.msra.mxu0 %v9398_v1  ;;  %v2842_v50 = vpop.f32.mrf.mxu3  ;;  %v11842_v53 = vld [vmem:[%s13689_s19 + $0x1ec] sm:$0xf]  ;;  %v9722_v1 = vor.u32 %v11874_v56, %v9719_v57  ;;  %v9399_v44 = vld [vmem:[%s13689_s19 + $0x78] sm:$0xf0] }
 0x21b   : > { %v9594_v0 = vor.u32 %v11842_v53, %v9591_v55  ;;  %v9655_v50 = vld [vmem:[%s13689_s19 + $0x278] sm:$0xf0]  ;;  %v11890_v52 = vld [vmem:[%s13689_s19 + $0x36c] sm:$0xf]  ;;  %v9530_v55 = vor.u32 %v11826_v45, %v9527_v48 }
 0x21c   : > { %3882 = vmatpush.bf16.msra.mxu3 %v9798_v58  ;;  %3857 = vmatpush.bf16.msra.mxu1 %v9526_v2  ;;  %v9478_v58 = vor.u32 %v11816_v43, %v9477_v42  ;;  %v11806_v2 = vld [vmem:[%s13689_s19 + $0xcc] sm:$0xf]  ;;  %v9674_v42 = vor.u32 %v11862_v35, %v9671_v36  ;;  %v9783_v53 = vld [vmem:[%s13689_s19 + $0x378] sm:$0xf0]  ;;  %v9658_v56 = vor.u32 %v11858_v49, %v9655_v50  ;;  %v995_v50 = vld [vmem:[#allocation2 + $0x38] sm:$0xff] }
 0x21d   : > { %v11794_v43 = vld [vmem:[%s13689_s19 + $0x6c] sm:$0xf]  ;;  %v9786_v61 = vor.u32 %v11890_v52, %v9783_v53  ;;  %v9495_v18 = vld [vmem:[%s13689_s19 + $0x138] sm:$0xf0] }
 0x21e   : > { %3870 = vmatpush.bf16.msra.mxu2 %v9654_v3  ;;  %3845 = vmatpush.bf16.msra.mxu0 %v9382_v20  ;;  %v9447_v3 = vld [vmem:[%s13689_s19 + $0xd8] sm:$0xf0]  ;;  %v9834_v20 = vor.u32 %v11902_v11, %v9831_v12  ;;  %v11790_v57 = vld [vmem:[%s13689_s19 + $0x4c] sm:$0xf] }
 0x21f   : > { %v9450_v13 = vor.u32 %v11806_v2, %v9447_v3  ;;  %v11886_v3 = vld [vmem:[%s13689_s19 + $0x34c] sm:$0xf]  ;;  %v9623_v21 = vld [vmem:[%s13689_s19 + $0x238] sm:$0xf0] }
 0x220   : > { %3883 = vmatpush.bf16.msra.mxu3 %v9782_v8  ;;  %3858 = vmatpush.bf16.msra.mxu1 %v9510_v23  ;;  %v9703_v8 = vld [vmem:[%s13689_s19 + $0x2d8] sm:$0xf0]  ;;  %v9770_v17 = vor.u32 %v11886_v3, %v9767_v4  ;;  %v11846_v35 = vld [vmem:[%s13689_s19 + $0x20c] sm:$0xf] }
 0x221   : > { %v9706_v15 = vor.u32 %v11870_v7, %v9703_v8  ;;  %v9687_v23 = vld [vmem:[%s13689_s19 + $0x2b8] sm:$0xf0] }
 0x222   : > { %3871 = vmatpush.bf16.msra.mxu2 %v9638_v24  ;;  %3846 = vmatpush.bf16.msra.mxu0 %v9366_v37  ;;  %v11898_v24 = vld [vmem:[%s13689_s19 + $0x3ac] sm:$0xf]  ;;  %v9690_v29 = vor.u32 %v11866_v22, %v9687_v23  ;;  %v9607_v36 = vld [vmem:[%s13689_s19 + $0x218] sm:$0xf0] }
 0x223   : > { %v9818_v33 = vor.u32 %v11898_v24, %v9815_v25  ;;  %v11894_v37 = vld [vmem:[%s13689_s19 + $0x38c] sm:$0xf]  ;;  %v9751_v24 = vld [vmem:[%s13689_s19 + $0x338] sm:$0xf0] }
 0x224   : > { %3884 = vmatpush.bf16.msra.mxu3 %v9766_v30  ;;  %3859 = vmatpush.bf16.msra.mxu1 %v9494_v40  ;;  %v11798_v30 = vld [vmem:[%s13689_s19 + $0x8c] sm:$0xf]  ;;  %v9802_v47 = vor.u32 %v11894_v37, %v9799_v38 }
 0x225   : > { %v9418_v39 = vor.u32 %v11798_v30, %v9415_v31  ;;  %v11882_v23 = vld [vmem:[%s13689_s19 + $0x32c] sm:$0xf]  ;;  %v9351_v30 = vld [vmem:[%s13689_s19 + $0x18] sm:$0xf0] }
 0x226   : > { %3872 = vmatpush.bf16.msra.mxu2 %v9622_v41  ;;  %3847 = vmatpush.bf16.msra.mxu0 %v9350_v54  ;;  %v2853_v40 = vpop.f32.mrf.mxu0  ;;  %v9546_v41 = vor.u32 %v11830_v32, %v9543_v34  ;;  %v9402_v54 = vor.u32 %v11794_v43, %v9399_v44  ;;  %v11814_v31 = vld [vmem:[%s13689_s19 + $0x10c] sm:$0xf]  ;;  %v9479_v34 = vld [vmem:[%s13689_s19 + $0x118] sm:$0xf0] }
 0x227   : > { %v11878_v38 = vld [vmem:[%s13689_s19 + $0x30c] sm:$0xf] }
 0x228   : > { %3885 = vmatpush.bf16.msra.mxu3 %v9750_v46  ;;  %3860 = vmatpush.bf16.msra.mxu1 %v9478_v58  ;;  %v2866_v46 = vpop.f32.mrf.mxu1  ;;  %v9383_v58 = vld [vmem:[%s13689_s19 + $0x58] sm:$0xf0] }
 0x229   : > { %3848 = vmatmul.bf16.vlgmr.msra.gmra.mxu0 %v13829_v19  ;;  %v2867_v51 = vadd.f32 %v2866_v46, %v2853_v40  ;;  %v9386_v6 = vor.u32 %v11790_v57, %v9383_v58 }
 0x22a   : > { %3873 = vmatpush.bf16.msra.mxu2 %v9606_v59  ;;  %3892 = vmatpush.bf16.msrb.mxu0 %v9466_v63  ;;  %v11822_v59 = vld [vmem:[%s13689_s19 + $0x14c] sm:$0xf] }
 0x22b   : > { %3861 = vmatmul.bf16.vlgmr.msra.gmra.mxu1 %v13835_v26  ;;  %v11854_v63 = vld [vmem:[%s13689_s19 + $0x24c] sm:$0xf] }
 0x22c   : > { %3886 = vmatpush.bf16.msra.mxu3 %v9734_v62  ;;  %3905 = vmatpush.bf16.msrb.mxu1 %v9594_v0  ;;  %v9511_v62 = vld [vmem:[%s13689_s19 + $0x158] sm:$0xf0] }
 0x22d   : > { %3874 = vmatmul.bf16.vlgmr.msra.gmra.mxu2 %v13817_v9  ;;  %v9639_v0 = vld [vmem:[%s13689_s19 + $0x258] sm:$0xf0]  ;;  %v9514_v11 = vor.u32 %v11822_v59, %v9511_v62 }
 0x22e   : > { %3918 = vmatpush.bf16.msrb.mxu2 %v9722_v1  ;;  %3893 = vmatpush.bf16.msrb.mxu0 %v9450_v13  ;;  %v2855_v8 = vpop.f32.mrf.mxu0  ;;  %v9642_v12 = vor.u32 %v11854_v63, %v9639_v0  ;;  %v11786_v13 = vld [vmem:[%s13689_s19 + $0x2c] sm:$0xf]  ;;  %v2964_v59 = vld [vmem:[#allocation3] sm:$0xff] }
 0x22f   : > { %3887 = vmatmul.bf16.vlgmr.msra.gmra.mxu3 %v13819_v10  ;;  %v2965_v8 = vld [vmem:[#allocation3 + $0x18] sm:$0xff] }
 0x230   : > { %3931 = vmatpush.bf16.msrb.mxu3 %v9850_v5  ;;  %3906 = vmatpush.bf16.msrb.mxu1 %v9578_v14  ;;  %v2879_v60 = vpop.f32.mrf.mxu2  ;;  %v994_v5 = vld [vmem:[#allocation2 + $0x28] sm:$0xff]  ;;  %v9367_v14 = vld [vmem:[%s13689_s19 + $0x38] sm:$0xf0]  ;;  %v2868_v16 = vpop.f32.mrf.mxu1 }
 0x231   : > { %v2880_v1 = vadd.f32 %v2879_v60, %v2867_v51  ;;  %v9370_v25 = vor.u32 %v11786_v13, %v9367_v14 }
 0x232   : > { %3919 = vmatpush.bf16.msrb.mxu2 %v9706_v15  ;;  %3894 = vmatpush.bf16.msrb.mxu0 %v9434_v27  ;;  %v2892_v2 = vpop.f32.mrf.mxu3  ;;  %v11818_v15 = vld [vmem:[%s13689_s19 + $0x12c] sm:$0xf] }
 0x233   : > { %v2893_v7 = vadd.f32 %v2892_v2, %v2880_v1  ;;  %v9498_v27 = vor.u32 %v11818_v15, %v9495_v18 }
 0x234   : > { %3932 = vmatpush.bf16.msrb.mxu3 %v9834_v20  ;;  %3907 = vmatpush.bf16.msrb.mxu1 %v9562_v28  ;;  %v11850_v20 = vld [vmem:[%s13689_s19 + $0x22c] sm:$0xf] }
 0x235   : > { %v2954_v22 = vadd.f32 %v2893_v7, %v994_v5  ;;  %v9626_v28 = vor.u32 %v11850_v20, %v9623_v21 }
 0x236   : > { %3920 = vmatpush.bf16.msrb.mxu2 %v9690_v29  ;;  %3895 = vmatpush.bf16.msrb.mxu0 %v9418_v39  ;;  %v11782_v29 = vld [vmem:[%s13689_s19 + $0xc] sm:$0xf]  ;;  %v9735_v39 = vld [vmem:[%s13689_s19 + $0x318] sm:$0xf0] }
 0x237   : > { %2962 = vst [vmem:[#allocation2 + $0x28] sm:$0xff] %v2954_v22  ;;  %v9354_v40 = vor.u32 %v11782_v29, %v9351_v30  ;;  %v9738_v43 = vor.u32 %v11878_v38, %v9735_v39  ;;  %v2967_v39 = vld [vmem:[#allocation3 + $0x8] sm:$0xff] }
 0x238   : > { %3933 = vmatpush.bf16.msrb.mxu3 %v9818_v33  ;;  %3908 = vmatpush.bf16.msrb.mxu1 %v9546_v41  ;;  %v2881_v32 = vpop.f32.mrf.mxu2  ;;  %v9754_v33 = vor.u32 %v11882_v23, %v9751_v24  ;;  %v9482_v41 = vor.u32 %v11814_v31, %v9479_v34  ;;  %v2966_v24 = vld [vmem:[#allocation3 + $0x10] sm:$0xff] }
 0x23a   : > { %3921 = vmatpush.bf16.msrb.mxu2 %v9674_v42  ;;  %3896 = vmatpush.bf16.msrb.mxu0 %v9402_v54  ;;  %v2894_v37 = vpop.f32.mrf.mxu3  ;;  %v9610_v42 = vor.u32 %v11846_v35, %v9607_v36 }
 0x23c   : > { %3934 = vmatpush.bf16.msrb.mxu3 %v9802_v47  ;;  %3909 = vmatpush.bf16.msrb.mxu1 %v9530_v55 }
 0x23e   : > { %3922 = vmatpush.bf16.msrb.mxu2 %v9658_v56  ;;  %3897 = vmatpush.bf16.msrb.mxu0 %v9386_v6 }
 0x240   : > { %3935 = vmatpush.bf16.msrb.mxu3 %v9786_v61  ;;  %3910 = vmatpush.bf16.msrb.mxu1 %v9514_v11 }
 0x242   : > { %3923 = vmatpush.bf16.msrb.mxu2 %v9642_v12  ;;  %3898 = vmatpush.bf16.msrb.mxu0 %v9370_v25 }
 0x244   : > { %3936 = vmatpush.bf16.msrb.mxu3 %v9770_v17  ;;  %3911 = vmatpush.bf16.msrb.mxu1 %v9498_v27 }
 0x246   : > { %3924 = vmatpush.bf16.msrb.mxu2 %v9626_v28  ;;  %3899 = vmatpush.bf16.msrb.mxu0 %v9354_v40  ;;  %v2905_v44 = vpop.f32.mrf.mxu0 }
 0x248   : > { %3937 = vmatpush.bf16.msrb.mxu3 %v9754_v33  ;;  %3912 = vmatpush.bf16.msrb.mxu1 %v9482_v41  ;;  %v2918_v45 = vpop.f32.mrf.mxu1 }
 0x249   : > { %3900 = vmatmul.bf16.vlgmr.msrb.gmra.mxu0 %v13829_v19  ;;  %v2919_v46 = vadd.f32 %v2918_v45, %v2905_v44 }
 0x24a   : > { %3925 = vmatpush.bf16.msrb.mxu2 %v9610_v42 }
 0x24b   : > { %3913 = vmatmul.bf16.vlgmr.msrb.gmra.mxu1 %v13835_v26 }
 0x24c   : > { %3938 = vmatpush.bf16.msrb.mxu3 %v9738_v43 }
 0x24d   : > { %3926 = vmatmul.bf16.vlgmr.msrb.gmra.mxu2 %v13817_v9 }
 0x24e   : > { %v2907_v52 = vpop.f32.mrf.mxu0 }
 0x24f   : > { %3939 = vmatmul.bf16.vlgmr.msrb.gmra.mxu3 %v13819_v10 }
 0x250   : > { %v2931_v47 = vpop.f32.mrf.mxu2  ;;  %v2920_v53 = vpop.f32.mrf.mxu1 }
 0x251   : > { %v2932_v48 = vadd.f32 %v2931_v47, %v2919_v46 }
 0x252   : > { %v2944_v49 = vpop.f32.mrf.mxu3 }
 0x253   : > { %v2945_v51 = vadd.f32 %v2944_v49, %v2932_v48 }
 0x255   : > { %v2955_v54 = vadd.f32 %v2945_v51, %v995_v50 }
 0x257   : > { %2963 = vst [vmem:[#allocation2 + $0x38] sm:$0xff] %v2955_v54 }
 0x258   : > { %v2933_v55 = vpop.f32.mrf.mxu2 }
 0x25a   : > { %v2946_v19 = vpop.f32.mrf.mxu3 }
 0x266   : > { %v3745_v56 = vpop.f32.mrf.mxu0 }
 0x268   : > { %v3758_v26 = vpop.f32.mrf.mxu1 }
 0x269   : > { %v3759_v57 = vadd.f32 %v3758_v26, %v3745_v56 }
 0x26e   : > { %v3747_v61 = vpop.f32.mrf.mxu0 }
 0x270   : > { %v3771_v9 = vpop.f32.mrf.mxu2  ;;  %v3760_v62 = vpop.f32.mrf.mxu1 }
 0x271   : > { %v3772_v58 = vadd.f32 %v3771_v9, %v3759_v57 }
 0x272   : > { %v3784_v10 = vpop.f32.mrf.mxu3 }
 0x273   : > { %v3785_v60 = vadd.f32 %v3784_v10, %v3772_v58 }
 0x275   : > { %v3944_v63 = vadd.f32 %v3785_v60, %v2964_v59 }
 0x277   : > { %3948 = vst [vmem:[#allocation3] sm:$0xff] %v3944_v63 }
 0x278   : > { %v3773_v0 = vpop.f32.mrf.mxu2 }
 0x27a   : > { %v3786_v1 = vpop.f32.mrf.mxu3 }
 0x286   : > { %v3797_v2 = vpop.f32.mrf.mxu0 }
 0x288   : > { %v3810_v3 = vpop.f32.mrf.mxu1 }
 0x289   : > { %v3811_v4 = vadd.f32 %v3810_v3, %v3797_v2 }
 0x28e   : > { %v3799_v12 = vpop.f32.mrf.mxu0 }
 0x290   : > { %v3823_v5 = vpop.f32.mrf.mxu2  ;;  %v3812_v13 = vpop.f32.mrf.mxu1 }
 0x291   : > { %v3824_v6 = vadd.f32 %v3823_v5, %v3811_v4 }
 0x292   : > { %v3836_v7 = vpop.f32.mrf.mxu3 }
 0x293   : > { %v3837_v11 = vadd.f32 %v3836_v7, %v3824_v6 }
 0x295   : > { %v3945_v14 = vadd.f32 %v3837_v11, %v2965_v8 }
 0x297   : > { %3949 = vst [vmem:[#allocation3 + $0x18] sm:$0xff] %v3945_v14 }
 0x298   : > { %v3825_v15 = vpop.f32.mrf.mxu2 }
 0x29a   : > { %v3838_v16 = vpop.f32.mrf.mxu3 }
 0x2a6   : > { %v3849_v17 = vpop.f32.mrf.mxu0 }
 0x2a8   : > { %v3862_v18 = vpop.f32.mrf.mxu1 }
 0x2a9   : > { %v3863_v20 = vadd.f32 %v3862_v18, %v3849_v17 }
 0x2ae   : > { %v3851_v27 = vpop.f32.mrf.mxu0 }
 0x2b0   : > { %v3875_v21 = vpop.f32.mrf.mxu2  ;;  %v3864_v28 = vpop.f32.mrf.mxu1 }
 0x2b1   : > { %v3876_v22 = vadd.f32 %v3875_v21, %v3863_v20 }
 0x2b2   : > { %v3888_v23 = vpop.f32.mrf.mxu3 }
 0x2b3   : > { %v3889_v25 = vadd.f32 %v3888_v23, %v3876_v22 }
 0x2b5   : > { %v3946_v29 = vadd.f32 %v3889_v25, %v2966_v24 }
 0x2b7   : > { %3950 = vst [vmem:[#allocation3 + $0x10] sm:$0xff] %v3946_v29 }
 0x2b8   : > { %v3877_v30 = vpop.f32.mrf.mxu2 }
 0x2ba   : > { %v3890_v31 = vpop.f32.mrf.mxu3 }
 0x2c6   : > { %v3901_v32 = vpop.f32.mrf.mxu0 }
 0x2c8   : > { %v3914_v33 = vpop.f32.mrf.mxu1 }
 0x2c9   : > { %v3915_v34 = vadd.f32 %v3914_v33, %v3901_v32 }
 0x2ce   : > { %v3903_v38 = vpop.f32.mrf.mxu0 }
 0x2d0   : > { %v3927_v35 = vpop.f32.mrf.mxu2  ;;  %v3916_v40 = vpop.f32.mrf.mxu1 }
 0x2d1   : > { %v3928_v36 = vadd.f32 %v3927_v35, %v3915_v34 }
 0x2d2   : > { %v3940_v37 = vpop.f32.mrf.mxu3 }
 0x2d3   : > { %v3941_v41 = vadd.f32 %v3940_v37, %v3928_v36 }
 0x2d5   : > { %v3947_v42 = vadd.f32 %v3941_v41, %v2967_v39 }
 0x2d6   : > { %3955 = sbr.rel (%p9851_p2) target bundleno = 1998 (0x7ce), region = 180 }
 0x2d7   : > { %3951 = vst [vmem:[#allocation3 + $0x8] sm:$0xff] %v3947_v42 }
 0x2d8   : > { %v3929_v43 = vpop.f32.mrf.mxu2 }
 0x2da   : > { %v3942_v44 = vpop.f32.mrf.mxu3 }
 0x2db   : > { %v14553_v45 = vld [vmem:[#allocation7] sm:$0xff]  ;;  %v13338_v46 = vmov 0   ;;  %v13339_v47 = vmov 2   ;;  %v9966_v48 = vld [vmem:[#allocation14 + $0xe0] sm:$0xf]  ;;  %v15548_v52 = vmov 4  }
 0x2dc   : > { %12587 = vset.pattern.permute.xlu0 %v13338_v46  ;;  %12589 = vset.pattern.permute.xlu1 %v13339_v47  ;;  %v11939_v49 = vld [vmem:[#allocation14 + $0xec] sm:$0xf0]  ;;  %v10094_v50 = vld [vmem:[#allocation14 + $0x1e0] sm:$0xf]  ;;  %v13341_v13 = vmov 1   ;;  %v15547_v14 = vmov 3  }
 0x2dd   : > { %3979 = vperm.xlu0 %12587, %v14553_v45   ;;  %4027 = vperm.xlu1 %12589, %v14553_v45   ;;  %v11971_v51 = vld [vmem:[#allocation14 + $0x1ec] sm:$0xf0]  ;;  %v9967_v53 = vor.u32 %v11939_v49, %v9966_v48  ;;  %v10222_v55 = vld [vmem:[#allocation14 + $0x2e0] sm:$0xf]  ;;  %v15546_v24 = vmov 5   ;;  %v15544_v48 = vmov 6  }
 0x2de   : > { %12591 = vset.pattern.permute.xlu2 %v15548_v52  ;;  %v10095_v54 = vor.u32 %v11971_v51, %v10094_v50  ;;  %v12003_v19 = vld [vmem:[#allocation14 + $0x2ec] sm:$0xf0]  ;;  %v10350_v56 = vld [vmem:[#allocation14 + $0x3e0] sm:$0xf]  ;;  %v14709_v52 = vld [vmem:[#allocation14 + $0x1c4] sm:$0xf] }
 0x2df   : > { %4083 = vperm.xlu2 %12591, %v14553_v45   ;;  %v10223_v26 = vor.u32 %v12003_v19, %v10222_v55  ;;  %v12035_v57 = vld [vmem:[#allocation14 + $0x3ec] sm:$0xf0]  ;;  %v9950_v9 = vld [vmem:[#allocation14 + $0xc0] sm:$0xf]  ;;  %5790 = vmatpush.bf16.msra.mxu0 %v9967_v53  ;;  %v15545_v19 = vmov 7   ;;  %15615 = vst [vmem:[#allocation57_spill] sm:$0xff] %v14709_v52 }
 0x2e0   : > { %v11935_v58 = vld [vmem:[#allocation14 + $0xcc] sm:$0xf0]  ;;  %5803 = vmatpush.bf16.msra.mxu1 %v10095_v54  ;;  %v10351_v10 = vor.u32 %v12035_v57, %v10350_v56  ;;  %v10078_v60 = vld [vmem:[#allocation14 + $0x1c0] sm:$0xf]  ;;  %v14775_v52 = vld [vmem:[#allocation14 + $0xa4] sm:$0xf] }
 0x2e1   : > { %v9951_v59 = vor.u32 %v11935_v58, %v9950_v9  ;;  %v11967_v61 = vld [vmem:[#allocation14 + $0x1cc] sm:$0xf0]  ;;  %v10206_v62 = vld [vmem:[#allocation14 + $0x2c0] sm:$0xf]  ;;  %5816 = vmatpush.bf16.msra.mxu2 %v10223_v26 }
 0x2e2   : > { %v10079_v63 = vor.u32 %v11967_v61, %v10078_v60  ;;  %v11999_v0 = vld [vmem:[#allocation14 + $0x2cc] sm:$0xf0]  ;;  %v10334_v1 = vld [vmem:[#allocation14 + $0x3c0] sm:$0xf]  ;;  %5829 = vmatpush.bf16.msra.mxu3 %v10351_v10 }
 0x2e3   : > { %v12031_v2 = vld [vmem:[#allocation14 + $0x3cc] sm:$0xf0]  ;;  %v9934_v3 = vld [vmem:[#allocation14 + $0xa0] sm:$0xf]  ;;  %v10207_v6 = vor.u32 %v11999_v0, %v10206_v62  ;;  %5791 = vmatpush.bf16.msra.mxu0 %v9951_v59 }
 0x2e4   : > { %v11931_v4 = vld [vmem:[#allocation14 + $0xac] sm:$0xf0]  ;;  %v10062_v5 = vld [vmem:[#allocation14 + $0x1a0] sm:$0xf]  ;;  %5804 = vmatpush.bf16.msra.mxu1 %v10079_v63  ;;  %v10335_v8 = vor.u32 %v12031_v2, %v10334_v1 }
 0x2e5   : > { %v11963_v7 = vld [vmem:[#allocation14 + $0x1ac] sm:$0xf0]  ;;  %v10190_v11 = vld [vmem:[#allocation14 + $0x2a0] sm:$0xf]  ;;  %12588 = vset.pattern.permute.xlu0 %v13341_v13  ;;  %12590 = vset.pattern.permute.xlu1 %v15547_v14  ;;  %v9935_v15 = vor.u32 %v11931_v4, %v9934_v3  ;;  %v14707_v14 = vld [vmem:[#allocation14 + $0xd0] sm:$0xf0] }
 0x2e6   : > { %v11995_v12 = vld [vmem:[#allocation14 + $0x2ac] sm:$0xf0]  ;;  %v10063_v16 = vor.u32 %v11963_v7, %v10062_v5  ;;  %v10318_v17 = vld [vmem:[#allocation14 + $0x3a0] sm:$0xf]  ;;  %3999 = vperm.xlu0 %12588, %v14553_v45   ;;  %4055 = vperm.xlu1 %12590, %v14553_v45   ;;  %15614 = vst [vmem:[#allocation56_spill] sm:$0xff] %v14707_v14 }
 0x2e7   : > { %v12027_v18 = vld [vmem:[#allocation14 + $0x3ac] sm:$0xf0]  ;;  %v9918_v20 = vld [vmem:[#allocation14 + $0x80] sm:$0xf]  ;;  %12592 = vset.pattern.permute.xlu2 %v15546_v24  ;;  %5817 = vmatpush.bf16.msra.mxu2 %v10207_v6  ;;  %v10191_v25 = vor.u32 %v11995_v12, %v10190_v11  ;;  %v14705_v24 = vld [vmem:[#allocation14 + $0xc4] sm:$0xf] }
 0x2e8   : > { %v11927_v21 = vld [vmem:[#allocation14 + $0x8c] sm:$0xf0]  ;;  %v10046_v22 = vld [vmem:[#allocation14 + $0x180] sm:$0xf]  ;;  %4111 = vperm.xlu2 %12592, %v14553_v45   ;;  %5830 = vmatpush.bf16.msra.mxu3 %v10335_v8  ;;  %v10319_v27 = vor.u32 %v12027_v18, %v10318_v17  ;;  %v3965_v8 = vld [vmem:[#allocation11] sm:$0xff]  ;;  %15613 = vst [vmem:[#allocation55_spill] sm:$0xff] %v14705_v24 }
 0x2e9   : > { %v11959_v23 = vld [vmem:[#allocation14 + $0x18c] sm:$0xf0]  ;;  %v10174_v28 = vld [vmem:[#allocation14 + $0x280] sm:$0xf]  ;;  %5792 = vmatpush.bf16.msra.mxu0 %v9935_v15  ;;  %5805 = vmatpush.bf16.msra.mxu1 %v10063_v16  ;;  %v9919_v30 = vor.u32 %v11927_v21, %v9918_v20  ;;  %v14777_v14 = vld [vmem:[#allocation14 + $0xb0] sm:$0xf0] }
 0x2ea   : > { %v11991_v29 = vld [vmem:[#allocation14 + $0x28c] sm:$0xf0]  ;;  %v10047_v31 = vor.u32 %v11959_v23, %v10046_v22  ;;  %v10302_v32 = vld [vmem:[#allocation14 + $0x380] sm:$0xf] }
 0x2eb   : > { %v12023_v33 = vld [vmem:[#allocation14 + $0x38c] sm:$0xf0]  ;;  %v9902_v34 = vld [vmem:[#allocation14 + $0x60] sm:$0xf]  ;;  %5818 = vmatpush.bf16.msra.mxu2 %v10191_v25  ;;  %v10175_v36 = vor.u32 %v11991_v29, %v10174_v28 }
 0x2ec   : > { %v11923_v35 = vld [vmem:[#allocation14 + $0x6c] sm:$0xf0]  ;;  %v10030_v37 = vld [vmem:[#allocation14 + $0x160] sm:$0xf]  ;;  %5831 = vmatpush.bf16.msra.mxu3 %v10319_v27  ;;  %v10303_v39 = vor.u32 %v12023_v33, %v10302_v32 }
 0x2ed   : > { %v11955_v38 = vld [vmem:[#allocation14 + $0x16c] sm:$0xf0]  ;;  %v10158_v40 = vld [vmem:[#allocation14 + $0x260] sm:$0xf]  ;;  %5793 = vmatpush.bf16.msra.mxu0 %v9919_v30  ;;  %5806 = vmatpush.bf16.msra.mxu1 %v10047_v31  ;;  %v9903_v42 = vor.u32 %v11923_v35, %v9902_v34  ;;  %v14574_v35 = vunpack.c.l.bf16 %v3965_v8 }
 0x2ee   : > { %v11987_v41 = vld [vmem:[#allocation14 + $0x26c] sm:$0xf0]  ;;  %v10286_v43 = vld [vmem:[#allocation14 + $0x360] sm:$0xf]  ;;  %12593 = vset.pattern.permute.xlu1 %v15544_v48  ;;  %v10031_v49 = vor.u32 %v11955_v38, %v10030_v37  ;;  %12595 = vset.pattern.permute.xlu0 %v13338_v46 }
 0x2ef   : > { %v12019_v44 = vld [vmem:[#allocation14 + $0x36c] sm:$0xf0]  ;;  %v9886_v50 = vld [vmem:[#allocation14 + $0x40] sm:$0xf]  ;;  %4139 = vperm.xlu1 %12593, %v14553_v45   ;;  %5819 = vmatpush.bf16.msra.mxu2 %v10175_v36  ;;  %v10159_v54 = vor.u32 %v11987_v41, %v10158_v40 }
 0x2f0   : > { %v11919_v51 = vld [vmem:[#allocation14 + $0x4c] sm:$0xf0]  ;;  %v10014_v53 = vld [vmem:[#allocation14 + $0x140] sm:$0xf]  ;;  %12594 = vset.pattern.permute.xlu2 %v15545_v19  ;;  %5832 = vmatpush.bf16.msra.mxu3 %v10303_v39  ;;  %v10287_v56 = vor.u32 %v12019_v44, %v10286_v43 }
 0x2f1   : > { %v11951_v55 = vld [vmem:[#allocation14 + $0x14c] sm:$0xf0]  ;;  %v10142_v26 = vld [vmem:[#allocation14 + $0x240] sm:$0xf]  ;;  %4167 = vperm.xlu2 %12594, %v14553_v45   ;;  %5794 = vmatpush.bf16.msra.mxu0 %v9903_v42  ;;  %v9887_v9 = vor.u32 %v11919_v51, %v9886_v50 }
 0x2f2   : > { %v11983_v57 = vld [vmem:[#allocation14 + $0x24c] sm:$0xf0]  ;;  %v10270_v58 = vld [vmem:[#allocation14 + $0x340] sm:$0xf]  ;;  %5807 = vmatpush.bf16.msra.mxu1 %v10031_v49  ;;  %v10015_v46 = vor.u32 %v11951_v55, %v10014_v53 }
 0x2f3   : > { %v12015_v10 = vld [vmem:[#allocation14 + $0x34c] sm:$0xf0]  ;;  %v9870_v59 = vld [vmem:[#allocation14 + $0x20] sm:$0xf]  ;;  %5820 = vmatpush.bf16.msra.mxu2 %v10159_v54  ;;  %v10143_v61 = vor.u32 %v11983_v57, %v10142_v26  ;;  %v3982_v26 = vperm.slane %v14574_v35, 0 }
 0x2f4   : > { %v11915_v60 = vld [vmem:[#allocation14 + $0x2c] sm:$0xf0]  ;;  %v9998_v62 = vld [vmem:[#allocation14 + $0x120] sm:$0xf]  ;;  %5833 = vmatpush.bf16.msra.mxu3 %v10287_v56  ;;  %v10271_v0 = vor.u32 %v12015_v10, %v10270_v58 }
 0x2f5   : > { %v11947_v63 = vld [vmem:[#allocation14 + $0x12c] sm:$0xf0]  ;;  %v10126_v1 = vld [vmem:[#allocation14 + $0x220] sm:$0xf]  ;;  %5795 = vmatpush.bf16.msra.mxu0 %v9887_v9  ;;  %v9871_v3 = vor.u32 %v11915_v60, %v9870_v59 }
 0x2f6   : > { %v11979_v2 = vld [vmem:[#allocation14 + $0x22c] sm:$0xf0]  ;;  %v10254_v4 = vld [vmem:[#allocation14 + $0x320] sm:$0xf]  ;;  %5808 = vmatpush.bf16.msra.mxu1 %v10015_v46  ;;  %v9999_v5 = vor.u32 %v11947_v63, %v9998_v62 }
 0x2f7   : > { %v12011_v45 = vld [vmem:[#allocation14 + $0x32c] sm:$0xf0]  ;;  %5821 = vmatpush.bf16.msra.mxu2 %v10143_v61  ;;  %v10127_v6 = vor.u32 %v11979_v2, %v10126_v1  ;;  %12596 = vset.pattern.permute.xlu1 %v13341_v13  ;;  %v9854_v11 = vld [vmem:[#allocation14] sm:$0xf]  ;;  %v14579_v61 = vunpack.c.h.bf16 %v3965_v8 }
 0x2f8   : > { %5834 = vmatpush.bf16.msra.mxu3 %v10271_v0  ;;  %v10255_v7 = vor.u32 %v12011_v45, %v10254_v4  ;;  %v11911_v12 = vld [vmem:[#allocation14 + $0xc] sm:$0xf0]  ;;  %v9982_v15 = vld [vmem:[#allocation14 + $0x100] sm:$0xf] }
 0x2f9   : > { %5796 = vmatpush.bf16.msra.mxu0 %v9871_v3  ;;  %12597 = vset.pattern.permute.xlu2 %v13339_v47  ;;  %v9855_v16 = vor.u32 %v11911_v12, %v9854_v11  ;;  %v11943_v17 = vld [vmem:[#allocation14 + $0x10c] sm:$0xf0]  ;;  %v10110_v18 = vld [vmem:[#allocation14 + $0x200] sm:$0xf] }
 0x2fa   : > { %5809 = vmatpush.bf16.msra.mxu1 %v9999_v5  ;;  %v11975_v20 = vld [vmem:[#allocation14 + $0x20c] sm:$0xf0]  ;;  %v9983_v21 = vor.u32 %v11943_v17, %v9982_v15  ;;  %v10238_v23 = vld [vmem:[#allocation14 + $0x300] sm:$0xf] }
 0x2fb   : > { %5822 = vmatpush.bf16.msra.mxu2 %v10127_v6  ;;  %v10111_v22 = vor.u32 %v11975_v20, %v10110_v18  ;;  %v12007_v13 = vld [vmem:[#allocation14 + $0x30c] sm:$0xf0]  ;;  %v10478_v25 = vld [vmem:[#allocation14 + $0x4e0] sm:$0xf]  ;;  %v3983_v18 = vperm.slane %v14579_v61, 0 }
 0x2fc   : > { %5835 = vmatpush.bf16.msra.mxu3 %v10255_v7  ;;  %v10239_v27 = vor.u32 %v12007_v13, %v10238_v23  ;;  %v12067_v28 = vld [vmem:[#allocation14 + $0x4ec] sm:$0xf0]  ;;  %v10606_v47 = vld [vmem:[#allocation14 + $0x5e0] sm:$0xf]  ;;  %v4030_v23 = vperm.slane %v14574_v35, 2 }
 0x2fd   : > { %5797 = vmatpush.bf16.msra.mxu0 %v9855_v16  ;;  %v12099_v29 = vld [vmem:[#allocation14 + $0x5ec] sm:$0xf0]  ;;  %v10479_v30 = vor.u32 %v12067_v28, %v10478_v25  ;;  %v10734_v32 = vld [vmem:[#allocation14 + $0x6e0] sm:$0xf]  ;;  %v4114_v28 = vperm.slane %v14574_v35, 5 }
 0x2fe   : > { %5810 = vmatpush.bf16.msra.mxu1 %v9983_v21  ;;  %v10607_v31 = vor.u32 %v12099_v29, %v10606_v47  ;;  %v12131_v33 = vld [vmem:[#allocation14 + $0x6ec] sm:$0xf0]  ;;  %v10862_v34 = vld [vmem:[#allocation14 + $0x7e0] sm:$0xf]  ;;  %v4003_v47 = vperm.slane %v14579_v61, 1  ;;  %v4031_v29 = vperm.slane %v14579_v61, 2 }
 0x2ff   : > { %5823 = vmatpush.bf16.msra.mxu2 %v10111_v22  ;;  %v10735_v36 = vor.u32 %v12131_v33, %v10734_v32  ;;  %v12163_v37 = vld [vmem:[#allocation14 + $0x7ec] sm:$0xf0]  ;;  %v10462_v38 = vld [vmem:[#allocation14 + $0x4c0] sm:$0xf]  ;;  %v4002_v22 = vperm.slane %v14574_v35, 1  ;;  %v4115_v32 = vperm.slane %v14579_v61, 5 }
 0x300   : > { %5836 = vmatpush.bf16.msra.mxu3 %v10239_v27  ;;  %v12063_v39 = vld [vmem:[#allocation14 + $0x4cc] sm:$0xf0]  ;;  %v14576_v40 = vld [vmem:[#allocation11 + $0x8] sm:$0xff]  ;;  %v10863_v41 = vor.u32 %v12163_v37, %v10862_v34  ;;  %v4086_v27 = vperm.slane %v14574_v35, 4 }
 0x301   : > { %5842 = vmatpush.bf16.msrb.mxu0 %v10479_v30  ;;  %v10463_v42 = vor.u32 %v12063_v39, %v10462_v38  ;;  %v10590_v43 = vld [vmem:[#allocation14 + $0x5c0] sm:$0xf]  ;;  %v12095_v44 = vld [vmem:[#allocation14 + $0x5cc] sm:$0xf0]  ;;  %v14582_v62 = vunpack.c.l.bf16 %v14576_v40 }
 0x302   : > { %5855 = vmatpush.bf16.msrb.mxu1 %v10607_v31  ;;  %v10718_v49 = vld [vmem:[#allocation14 + $0x6c0] sm:$0xf]  ;;  %v10591_v50 = vor.u32 %v12095_v44, %v10590_v43  ;;  %v12127_v51 = vld [vmem:[#allocation14 + $0x6cc] sm:$0xf0]  ;;  %v4087_v31 = vperm.slane %v14579_v61, 4 }
 0x303   : > { %5868 = vmatpush.bf16.msrb.mxu2 %v10735_v36  ;;  %v10846_v53 = vld [vmem:[#allocation14 + $0x7c0] sm:$0xf]  ;;  %v12159_v54 = vld [vmem:[#allocation14 + $0x7cc] sm:$0xf0]  ;;  %v10719_v55 = vor.u32 %v12127_v51, %v10718_v49  ;;  %v3984_v20 = vperm.slane %v14582_v62, 0 }
 0x304   : > { %5881 = vmatpush.bf16.msrb.mxu3 %v10863_v41  ;;  %v10847_v56 = vor.u32 %v12159_v54, %v10846_v53  ;;  %v10446_v57 = vld [vmem:[#allocation14 + $0x4a0] sm:$0xf]  ;;  %v12059_v9 = vld [vmem:[#allocation14 + $0x4ac] sm:$0xf0] }
 0x305   : > { %v10574_v58 = vld [vmem:[#allocation14 + $0x5a0] sm:$0xf]  ;;  %5843 = vmatpush.bf16.msrb.mxu0 %v10463_v42  ;;  %v10447_v10 = vor.u32 %v12059_v9, %v10446_v57  ;;  %v12091_v46 = vld [vmem:[#allocation14 + $0x5ac] sm:$0xf0] }
 0x306   : > { %5856 = vmatpush.bf16.msrb.mxu1 %v10591_v50  ;;  %v10702_v59 = vld [vmem:[#allocation14 + $0x6a0] sm:$0xf]  ;;  %v12123_v60 = vld [vmem:[#allocation14 + $0x6ac] sm:$0xf0]  ;;  %v10575_v0 = vor.u32 %v12091_v46, %v10574_v58 }
 0x307   : > { %5869 = vmatpush.bf16.msrb.mxu2 %v10719_v55  ;;  %v10703_v1 = vor.u32 %v12123_v60, %v10702_v59  ;;  %v10830_v2 = vld [vmem:[#allocation14 + $0x7a0] sm:$0xf]  ;;  %v12155_v3 = vld [vmem:[#allocation14 + $0x7ac] sm:$0xf0] }
 0x308   : > { %v10430_v4 = vld [vmem:[#allocation14 + $0x480] sm:$0xf]  ;;  %5882 = vmatpush.bf16.msrb.mxu3 %v10847_v56  ;;  %v10831_v45 = vor.u32 %v12155_v3, %v10830_v2  ;;  %v12055_v5 = vld [vmem:[#allocation14 + $0x48c] sm:$0xf0]  ;;  %v3967_v2 = vld [vmem:[#allocation11 + $0x10] sm:$0xff] }
 0x309   : > { %v10558_v6 = vld [vmem:[#allocation14 + $0x580] sm:$0xf]  ;;  %v12087_v7 = vld [vmem:[#allocation14 + $0x58c] sm:$0xf0]  ;;  %5844 = vmatpush.bf16.msrb.mxu0 %v10447_v10  ;;  %v10431_v15 = vor.u32 %v12055_v5, %v10430_v4 }
 0x30a   : > { %v10686_v11 = vld [vmem:[#allocation14 + $0x680] sm:$0xf]  ;;  %v12119_v12 = vld [vmem:[#allocation14 + $0x68c] sm:$0xf0]  ;;  %5857 = vmatpush.bf16.msrb.mxu1 %v10575_v0  ;;  %v10559_v16 = vor.u32 %v12087_v7, %v10558_v6 }
 0x30b   : > { %v10814_v8 = vld [vmem:[#allocation14 + $0x780] sm:$0xf]  ;;  %v12151_v17 = vld [vmem:[#allocation14 + $0x78c] sm:$0xf0]  ;;  %5870 = vmatpush.bf16.msrb.mxu2 %v10703_v1  ;;  %v10687_v21 = vor.u32 %v12119_v12, %v10686_v11 }
 0x30c   : > { %5883 = vmatpush.bf16.msrb.mxu3 %v10831_v45  ;;  %v10815_v25 = vor.u32 %v12151_v17, %v10814_v8  ;;  %v10414_v33 = vld [vmem:[#allocation14 + $0x460] sm:$0xf]  ;;  %v12051_v34 = vld [vmem:[#allocation14 + $0x46c] sm:$0xf0]  ;;  %v4004_v17 = vperm.slane %v14582_v62, 1 }
 0x30d   : > { %5845 = vmatpush.bf16.msrb.mxu0 %v10431_v15  ;;  %v10542_v36 = vld [vmem:[#allocation14 + $0x560] sm:$0xf]  ;;  %v10415_v37 = vor.u32 %v12051_v34, %v10414_v33  ;;  %v12083_v38 = vld [vmem:[#allocation14 + $0x56c] sm:$0xf0] }
 0x30e   : > { %5858 = vmatpush.bf16.msrb.mxu1 %v10559_v16  ;;  %v10670_v39 = vld [vmem:[#allocation14 + $0x660] sm:$0xf]  ;;  %v12115_v41 = vld [vmem:[#allocation14 + $0x66c] sm:$0xf0]  ;;  %v10543_v42 = vor.u32 %v12083_v38, %v10542_v36 }
 0x30f   : > { %5871 = vmatpush.bf16.msrb.mxu2 %v10687_v21  ;;  %v10671_v43 = vor.u32 %v12115_v41, %v10670_v39  ;;  %v10798_v44 = vld [vmem:[#allocation14 + $0x760] sm:$0xf]  ;;  %v12147_v49 = vld [vmem:[#allocation14 + $0x76c] sm:$0xf0]  ;;  %v4088_v21 = vperm.slane %v14582_v62, 4 }
 0x310   : > { %5884 = vmatpush.bf16.msrb.mxu3 %v10815_v25  ;;  %v10398_v50 = vld [vmem:[#allocation14 + $0x440] sm:$0xf]  ;;  %v10799_v53 = vor.u32 %v12147_v49, %v10798_v44  ;;  %v12047_v54 = vld [vmem:[#allocation14 + $0x44c] sm:$0xf0]  ;;  %v14610_v44 = vunpack.c.l.bf16 %v3967_v2  ;;  %v14612_v49 = vld [vmem:[#allocation12] sm:$0xff] }
 0x311   : > { %v10526_v55 = vld [vmem:[#allocation14 + $0x540] sm:$0xf]  ;;  %v12079_v56 = vld [vmem:[#allocation14 + $0x54c] sm:$0xf0]  ;;  %5846 = vmatpush.bf16.msrb.mxu0 %v10415_v37  ;;  %v10399_v57 = vor.u32 %v12047_v54, %v10398_v50 }
 0x312   : > { %5859 = vmatpush.bf16.msrb.mxu1 %v10543_v42  ;;  %v10527_v9 = vor.u32 %v12079_v56, %v10526_v55  ;;  %v10654_v58 = vld [vmem:[#allocation14 + $0x640] sm:$0xf]  ;;  %v12111_v10 = vld [vmem:[#allocation14 + $0x64c] sm:$0xf0]  ;;  %v4116_v55 = vperm.slane %v14582_v62, 5  ;;  %v3986_v30 = vperm.slane %v14610_v44, 0 }
 0x313   : > { %v10782_v46 = vld [vmem:[#allocation14 + $0x740] sm:$0xf]  ;;  %5872 = vmatpush.bf16.msrb.mxu2 %v10671_v43  ;;  %v10655_v59 = vor.u32 %v12111_v10, %v10654_v58  ;;  %v12143_v60 = vld [vmem:[#allocation14 + $0x74c] sm:$0xf0]  ;;  %v14608_v43 = vunpack.c.h.bf16 %v14576_v40 }
 0x314   : > { %v10382_v0 = vld [vmem:[#allocation14 + $0x420] sm:$0xf]  ;;  %v12043_v1 = vld [vmem:[#allocation14 + $0x42c] sm:$0xf0]  ;;  %5885 = vmatpush.bf16.msrb.mxu3 %v10799_v53  ;;  %v10783_v3 = vor.u32 %v12143_v60, %v10782_v46  ;;  %v4032_v53 = vperm.slane %v14582_v62, 2  ;;  %v4170_v46 = vperm.slane %v14574_v35, 7 }
 0x315   : > { %v10510_v4 = vld [vmem:[#allocation14 + $0x520] sm:$0xf]  ;;  %v12075_v45 = vld [vmem:[#allocation14 + $0x52c] sm:$0xf0]  ;;  %5847 = vmatpush.bf16.msrb.mxu0 %v10399_v57  ;;  %v10383_v12 = vor.u32 %v12043_v1, %v10382_v0  ;;  %v14625_v57 = vunpack.c.h.bf16 %v3967_v2  ;;  %v4171_v2 = vperm.slane %v14579_v61, 7 }
 0x316   : > { %v10638_v5 = vld [vmem:[#allocation14 + $0x620] sm:$0xf]  ;;  %v12107_v6 = vld [vmem:[#allocation14 + $0x62c] sm:$0xf0]  ;;  %5860 = vmatpush.bf16.msrb.mxu1 %v10527_v9  ;;  %v10511_v8 = vor.u32 %v12075_v45, %v10510_v4  ;;  %v14718_v4 = vld [vmem:[#allocation14 + $0x1d0] sm:$0xf0] }
 0x317   : > { %v10766_v7 = vld [vmem:[#allocation14 + $0x720] sm:$0xf]  ;;  %v12139_v11 = vld [vmem:[#allocation14 + $0x72c] sm:$0xf0]  ;;  %5873 = vmatpush.bf16.msrb.mxu2 %v10655_v59  ;;  %v10639_v25 = vor.u32 %v12107_v6, %v10638_v5  ;;  %v3985_v6 = vperm.slane %v14608_v43, 0  ;;  %15616 = vst [vmem:[#allocation58_spill] sm:$0xff] %v14718_v4 }
 0x318   : > { %v10366_v15 = vld [vmem:[#allocation14 + $0x400] sm:$0xf]  ;;  %v12039_v16 = vld [vmem:[#allocation14 + $0x40c] sm:$0xf0]  ;;  %5886 = vmatpush.bf16.msrb.mxu3 %v10783_v3  ;;  %v10767_v37 = vor.u32 %v12139_v11, %v10766_v7  ;;  %v4172_v3 = vperm.slane %v14582_v62, 7  ;;  %v4034_v45 = vperm.slane %v14610_v44, 2 }
 0x319   : > { %v10494_v33 = vld [vmem:[#allocation14 + $0x500] sm:$0xf]  ;;  %v12071_v34 = vld [vmem:[#allocation14 + $0x50c] sm:$0xf0]  ;;  %5848 = vmatpush.bf16.msrb.mxu0 %v10383_v12  ;;  %v4005_v12 = vperm.slane %v14608_v43, 1 }
 0x31a   : > { %v10622_v36 = vld [vmem:[#allocation14 + $0x600] sm:$0xf]  ;;  %v12103_v38 = vld [vmem:[#allocation14 + $0x60c] sm:$0xf0]  ;;  %5861 = vmatpush.bf16.msrb.mxu1 %v10511_v8  ;;  %v10495_v40 = vor.u32 %v12071_v34, %v10494_v33  ;;  %v4033_v8 = vperm.slane %v14608_v43, 2 }
 0x31b   : > { %v10750_v39 = vld [vmem:[#allocation14 + $0x700] sm:$0xf]  ;;  %v12135_v41 = vld [vmem:[#allocation14 + $0x70c] sm:$0xf0]  ;;  %5874 = vmatpush.bf16.msrb.mxu2 %v10639_v25  ;;  %v14667_v33 = vld [vmem:[#allocation14 + $0x1e4] sm:$0xf] }
 0x31c   : > { %v10751_v58 = vor.u32 %v12135_v41, %v10750_v39  ;;  %5887 = vmatpush.bf16.msrb.mxu3 %v10767_v37  ;;  %v14669_v34 = vld [vmem:[#allocation14 + $0x1f0] sm:$0xf0]  ;;  %v4173_v39 = vperm.slane %v14608_v43, 7  ;;  %v14679_v41 = vld [vmem:[#allocation14 + $0x2e4] sm:$0xf] }
 0x31d   : > { %v14742_v1 = vld [vmem:[#allocation14 + $0x3c4] sm:$0xf] }
 0x31e   : > { %5862 = vmatpush.bf16.msrb.mxu1 %v10495_v40  ;;  %15619 = vst [vmem:[#allocation61_spill] sm:$0xff] %v14742_v1  ;;  %v14787_v1 = vld [vmem:[#allocation14 + $0x1b0] sm:$0xf0] }
 0x320   : > { %5888 = vmatpush.bf16.msrb.mxu3 %v10751_v58 }
 0x339   : > { %v14584_v63 = vpop.permute.xlu2 %4083 }
 0x33a   : > { %v14605_v42 = vmul.f32 %v4086_v27, %v14584_v63  ;;  %v14617_v50 = vmul.f32 %v4087_v31, %v14584_v63  ;;  %v10367_v27 = vor.u32 %v12039_v16, %v10366_v15  ;;  %v14623_v56 = vmul.f32 %v4088_v21, %v14584_v63  ;;  %v14655_v15 = vld [vmem:[#allocation14 + $0xe4] sm:$0xf]  ;;  %v14657_v16 = vld [vmem:[#allocation14 + $0xf0] sm:$0xf0] }
 0x33b   : > { %v10623_v31 = vor.u32 %v12103_v38, %v10622_v36  ;;  %v4117_v38 = vperm.slane %v14608_v43, 5 }
 0x33c   : > { %5849 = vmatpush.bf16.msrb.mxu0 %v10367_v27  ;;  %v3968_v27 = vld [vmem:[#allocation11 + $0x18] sm:$0xff] }
 0x33d   : > { %5875 = vmatpush.bf16.msrb.mxu2 %v10623_v31  ;;  %v14746_v10 = vunpack.c.l.bf16 %v3968_v27 }
 0x342   : > { %v14598_v51 = vpop.permute.xlu2 %4111 }
 0x343   : > { %v14646_v7 = vmul.f32 %v4114_v28, %v14598_v51  ;;  %v14651_v11 = vmul.f32 %v4115_v32, %v14598_v51  ;;  %v14663_v28 = vmul.f32 %v4116_v55, %v14598_v51  ;;  %v4089_v32 = vperm.slane %v14608_v43, 4  ;;  %v14681_v55 = vld [vmem:[#allocation14 + $0x2f0] sm:$0xf0] }
 0x344   : > { %v14725_v0 = vmul.f32 %v4117_v38, %v14598_v51  ;;  %v15622_v38 = vperm.slane %v14574_v35, 3 }
 0x345   : > { %v14714_v5 = vmul.f32 %v4089_v32, %v14584_v63 }
 0x34b   : > { %v14627_v9 = vpop.permute.xlu2 %4167 }
 0x34c   : > { %v14660_v21 = vmul.f32 %v4170_v46, %v14627_v9  ;;  %v14672_v36 = vmul.f32 %v4171_v2, %v14627_v9  ;;  %v14675_v37 = vmul.f32 %v4172_v3, %v14627_v9  ;;  %v14691_v2 = vld [vmem:[#allocation14 + $0x3e4] sm:$0xf]  ;;  %v14693_v3 = vld [vmem:[#allocation14 + $0x3f0] sm:$0xf0]  ;;  %v14728_v58 = vmul.f32 %v4173_v39, %v14627_v9 }
 0x34d   : > { %15612 = vst [vmem:[#allocation54_spill] sm:$0xff] %v14693_v3  ;;  %v14744_v39 = vld [vmem:[#allocation14 + $0x3d0] sm:$0xf0] }
 0x34e   : > { %15620 = vst [vmem:[#allocation62_spill] sm:$0xff] %v14744_v39  ;;  %v14785_v39 = vld [vmem:[#allocation14 + $0x1a4] sm:$0xf] }
 0x34f   : > { %v14631_v59 = vpop.permute.xlu0 %3979  ;;  %v14633_v60 = vpop.permute.xlu1 %4027 }
 0x350   : > { %v3990_v40 = vmul.f32 %v3982_v26, %v14631_v59  ;;  %v4038_v31 = vmul.f32 %v4030_v23, %v14633_v60  ;;  %v3991_v48 = vmul.f32 %v3983_v18, %v14631_v59  ;;  %v4039_v26 = vmul.f32 %v4031_v29, %v14633_v60 }
 0x351   : > { %v3992_v23 = vmul.f32 %v3984_v20, %v14631_v59  ;;  %v4040_v19 = vmul.f32 %v4032_v53, %v14633_v60  ;;  %v3993_v46 = vmul.f32 %v3985_v6, %v14631_v59  ;;  %v4041_v18 = vmul.f32 %v4033_v8, %v14633_v60  ;;  %v14720_v20 = vld [vmem:[#allocation14 + $0x2c4] sm:$0xf]  ;;  %v14722_v53 = vld [vmem:[#allocation14 + $0x2d0] sm:$0xf0] }
 0x352   : > { %15617 = vst [vmem:[#allocation59_spill] sm:$0xff] %v14720_v20  ;;  %v14748_v6 = vunpack.c.h.bf16 %v3968_v27 }
 0x353   : > { %15618 = vst [vmem:[#allocation60_spill] sm:$0xff] %v14722_v53 }
 0x354   : > { %15621 = vst [vmem:[#allocation63_spill] sm:$0xff] %v14748_v6 }
 0x358   : > { %v14734_v32 = vpop.permute.xlu0 %3999  ;;  %v14736_v29 = vpop.permute.xlu1 %4055 }
 0x359   : > { %v4010_v8 = vmul.f32 %v4002_v22, %v14734_v32  ;;  %v4011_v25 = vmul.f32 %v4003_v47, %v14734_v32  ;;  %v4012_v54 = vmul.f32 %v4004_v17, %v14734_v32  ;;  %v4013_v27 = vmul.f32 %v4005_v12, %v14734_v32 }
 0x35a   : > { %v4006_v22 = vperm.slane %v14610_v44, 1  ;;  %v4066_v53 = vmul.f32 %v15622_v38, %v14736_v29  ;;  %v15623_v17 = vperm.slane %v14579_v61, 3  ;;  %v15625_v47 = vperm.slane %v14608_v43, 3 }
 0x35b   : > { %v4018_v13 = vadd.f32 %v4010_v8, %v3990_v40  ;;  %v4019_v6 = vadd.f32 %v4011_v25, %v3991_v48  ;;  %v4020_v12 = vadd.f32 %v4012_v54, %v3992_v23  ;;  %v4021_v4 = vadd.f32 %v4013_v27, %v3993_v46 }
 0x35c   : > { %v4067_v20 = vmul.f32 %v15623_v17, %v14736_v29  ;;  %v15624_v40 = vperm.slane %v14582_v62, 3  ;;  %v4069_v38 = vmul.f32 %v15625_v47, %v14736_v29  ;;  %v3994_v23 = vmul.f32 %v3986_v30, %v14631_v59 }
 0x35d   : > { %v4046_v48 = vadd.f32 %v4038_v31, %v4018_v13  ;;  %v4047_v25 = vadd.f32 %v4039_v26, %v4019_v6  ;;  %v4048_v54 = vadd.f32 %v4040_v19, %v4020_v12  ;;  %v4049_v46 = vadd.f32 %v4041_v18, %v4021_v4 }
 0x35e   : > { %v4068_v8 = vmul.f32 %v15624_v40, %v14736_v29  ;;  %v4014_v27 = vmul.f32 %v4006_v22, %v14734_v32  ;;  %v9939_v26 = vor.u32 %v14775_v52, %v14777_v14  ;;  %v4062_v6 = vperm.slane %v14610_v44, 3  ;;  %v11921_v52 = vld [vmem:[#allocation14 + $0x64] sm:$0xf]  ;;  %v9904_v14 = vld [vmem:[#allocation14 + $0x70] sm:$0xf0] }
 0x35f   : > { %v4074_v13 = vadd.f32 %v4066_v53, %v4046_v48  ;;  %v4075_v31 = vadd.f32 %v4067_v20, %v4047_v25  ;;  %v4077_v40 = vadd.f32 %v4069_v38, %v4049_v46  ;;  %v10067_v47 = vor.u32 %v14785_v39, %v14787_v1 }
 0x360   : > { %v4076_v17 = vadd.f32 %v4068_v8, %v4048_v54  ;;  %v4022_v24 = vadd.f32 %v4014_v27, %v3994_v23  ;;  %v4042_v4 = vmul.f32 %v4034_v45, %v14633_v60  ;;  %v4090_v18 = vperm.slane %v14610_v44, 4 }
 0x361   : > { %v14796_v3 = vpop.permute.xlu1 %4139  ;;  %v4102_v19 = vadd.f32 %v14605_v42, %v4074_v13  ;;  %v4103_v30 = vadd.f32 %v14617_v50, %v4075_v31  ;;  %v15626_v20 = vperm.slane %v14574_v35, 6  ;;  %v15627_v22 = vperm.slane %v14579_v61, 6  ;;  %v3958_v13 = vld [vmem:[#allocation2] sm:$0xff] }
 0x362   : > { %v4104_v48 = vadd.f32 %v14623_v56, %v4076_v17  ;;  %v15628_v25 = vperm.slane %v14582_v62, 6  ;;  %v4105_v8 = vadd.f32 %v14714_v5, %v4077_v40  ;;  %v15629_v35 = vperm.slane %v14608_v43, 6 }
 0x363   : > { %v4150_v53 = vmul.f32 %v15626_v20, %v14796_v3  ;;  %v4151_v12 = vmul.f32 %v15627_v22, %v14796_v3  ;;  %v4130_v50 = vadd.f32 %v14646_v7, %v4102_v19  ;;  %v4131_v45 = vadd.f32 %v14651_v11, %v4103_v30  ;;  %v3957_v11 = vld [vmem:[#allocation2 + $0x30] sm:$0xff] }
 0x364   : > { %v4152_v42 = vmul.f32 %v15628_v25, %v14796_v3  ;;  %v4153_v38 = vmul.f32 %v15629_v35, %v14796_v3  ;;  %v4132_v54 = vadd.f32 %v14663_v28, %v4104_v48  ;;  %v4050_v61 = vadd.f32 %v4042_v4, %v4022_v24  ;;  %v3960_v30 = vld [vmem:[#allocation2 + $0x10] sm:$0xff] }
 0x365   : > { %v4070_v46 = vmul.f32 %v4062_v6, %v14736_v29  ;;  %v4118_v56 = vperm.slane %v14610_v44, 5  ;;  %v4158_v23 = vadd.f32 %v4150_v53, %v4130_v50  ;;  %v4159_v62 = vadd.f32 %v4151_v12, %v4131_v45  ;;  %v3959_v6 = vld [vmem:[#allocation2 + $0x18] sm:$0xff] }
 0x366   : > { %v4133_v27 = vadd.f32 %v14725_v0, %v4105_v8  ;;  %v4146_v7 = vperm.slane %v14610_v44, 6  ;;  %v4160_v5 = vadd.f32 %v4152_v42, %v4132_v54  ;;  %v4098_v43 = vmul.f32 %v4090_v18, %v14584_v63 }
 0x367   : > { %v4078_v31 = vadd.f32 %v4070_v46, %v4050_v61  ;;  %v4174_v17 = vperm.slane %v14610_v44, 7  ;;  %v4186_v24 = vadd.f32 %v14660_v21, %v4158_v23  ;;  %v4187_v28 = vadd.f32 %v14672_v36, %v4159_v62 }
 0x368   : > { %v4161_v40 = vadd.f32 %v4153_v38, %v4133_v27  ;;  %v4126_v19 = vmul.f32 %v4118_v56, %v14598_v51  ;;  %v4188_v0 = vadd.f32 %v14675_v37, %v4160_v5  ;;  %v4154_v20 = vmul.f32 %v4146_v7, %v14796_v3  ;;  %v3961_v7 = vld [vmem:[#allocation2 + $0x8] sm:$0xff]  ;;  %v14847_v5 = vld [vmem:[#allocation14 + $0x2a4] sm:$0xf] }
 0x369   : > { %v4106_v4 = vadd.f32 %v4098_v43, %v4078_v31  ;;  %v4182_v53 = vmul.f32 %v4174_v17, %v14627_v9  ;;  %v4194_v22 = vadd.f32 %v4186_v24, %v3957_v11  ;;  %v4195_v18 = vadd.f32 %v4187_v28, %v3958_v13  ;;  %v14849_v31 = vld [vmem:[#allocation14 + $0x2b0] sm:$0xf0] }
 0x36a   : > { %v4189_v44 = vadd.f32 %v14728_v58, %v4161_v40  ;;  %v3987_v21 = vperm.slane %v14625_v57, 0  ;;  %v4196_v12 = vadd.f32 %v4188_v0, %v3959_v6  ;;  %v4007_v48 = vperm.slane %v14625_v57, 1 }
 0x36b   : > { %v4134_v36 = vadd.f32 %v4126_v19, %v4106_v4  ;;  %v4035_v25 = vperm.slane %v14625_v57, 2  ;;  %v15630_v37 = vperm.slane %v14612_v49, 0  ;;  %v15631_v50 = vperm.slane %v14612_v49, 1  ;;  %v14856_v19 = vld [vmem:[#allocation14 + $0x3a4] sm:$0xf] }
 0x36c   : > { %v4197_v8 = vadd.f32 %v4189_v44, %v3960_v30  ;;  %v3995_v35 = vmul.f32 %v3987_v21, %v14631_v59  ;;  %v15632_v38 = vperm.slane %v14612_v49, 2  ;;  %v4015_v61 = vmul.f32 %v4007_v48, %v14734_v32  ;;  %v14861_v4 = vld [vmem:[#allocation14 + $0x3b0] sm:$0xf0] }
 0x36d   : > { %v4220_v42 = vadd.f32 %v15630_v37, %v4194_v22  ;;  %v4221_v45 = vadd.f32 %v15631_v50, %v4195_v18  ;;  %v4162_v54 = vadd.f32 %v4154_v20, %v4134_v36  ;;  %v4043_v46 = vmul.f32 %v4035_v25, %v14633_v60  ;;  %v14863_v20 = vld [vmem:[#allocation14 + $0x84] sm:$0xf]  ;;  %v14865_v22 = vld [vmem:[#allocation14 + $0x90] sm:$0xf0] }
 0x36e   : > { %v4222_v58 = vadd.f32 %v15632_v38, %v4196_v12  ;;  %v15633_v62 = vperm.slane %v14612_v49, 3  ;;  %v4063_v11 = vperm.slane %v14625_v57, 3  ;;  %v4023_v17 = vadd.f32 %v4015_v61, %v3995_v35  ;;  %v14880_v37 = vld [vmem:[#allocation14 + $0x184] sm:$0xf] }
 0x36f   : > { %v4228_v56 = vmax.f32 %v4220_v42, 0.0  ;;  %v4229_v23 = vmax.f32 %v4221_v45, 0.0  ;;  %v4190_v43 = vadd.f32 %v4182_v53, %v4162_v54  ;;  %v4091_v24 = vperm.slane %v14625_v57, 4  ;;  %v14882_v42 = vld [vmem:[#allocation14 + $0x190] sm:$0xf0] }
 0x370   : > { %v4223_v27 = vadd.f32 %v15633_v62, %v4197_v8  ;;  %v4230_v13 = vmax.f32 %v4222_v58, 0.0  ;;  %v4208_v0 = vperm.slane %v14612_v49, 4  ;;  %v4051_v18 = vadd.f32 %v4043_v46, %v4023_v17  ;;  %v14895_v58 = vld [vmem:[#allocation14 + $0x284] sm:$0xf]  ;;  %v14897_v54 = vld [vmem:[#allocation14 + $0x290] sm:$0xf0] }
 0x371   : > { %v14852_v28 = vpack.c.bf16 %v4228_v56, %v4228_v56  ;;  %v14854_v6 = vpack.c.bf16 %v4229_v23, %v4229_v23  ;;  %v4198_v53 = vadd.f32 %v4190_v43, %v3961_v7  ;;  %v4071_v44 = vmul.f32 %v4063_v11, %v14736_v29  ;;  %v14906_v56 = vld [vmem:[#allocation14 + $0x384] sm:$0xf]  ;;  %v14908_v23 = vld [vmem:[#allocation14 + $0x390] sm:$0xf0]  ;;  %v15640_v17 = vld [vmem:[#allocation56_spill] sm:$0xff] }
 0x372   : > { %v4231_v40 = vmax.f32 %v4223_v27, 0.0  ;;  %v14859_v30 = vpack.c.bf16 %v4230_v13, %v4230_v13  ;;  %v10195_v12 = vor.u32 %v14847_v5, %v14849_v31  ;;  %v4119_v36 = vperm.slane %v14625_v57, 5  ;;  %v15639_v43 = vld [vmem:[#allocation55_spill] sm:$0xff] }
 0x373   : > { %5798 = vmatmul.bf16.vlgmr.msra.gmra.mxu0 %v14852_v28  ;;  %5811 = vmatmul.bf16.vlgmr.msra.gmra.mxu1 %v14854_v6  ;;  %v4147_v48 = vperm.slane %v14625_v57, 6  ;;  %v15634_v25 = vor.u32 %v14655_v15, %v14657_v16  ;;  %v4079_v50 = vadd.f32 %v4071_v44, %v4051_v18  ;;  %v4099_v45 = vmul.f32 %v4091_v24, %v14584_v63  ;;  %v15643_v18 = vld [vmem:[#allocation58_spill] sm:$0xff] }
 0x374   : > { %v14870_v21 = vpack.c.bf16 %v4231_v40, %v4231_v40  ;;  %5824 = vmatmul.bf16.vlgmr.msra.gmra.mxu2 %v14859_v30  ;;  %v4175_v8 = vperm.slane %v14625_v57, 7  ;;  %v3988_v35 = vperm.slane %v14746_v10, 0  ;;  %v15635_v38 = vor.u32 %v14667_v33, %v14669_v34  ;;  %v15637_v33 = vld [vmem:[#allocation54_spill] sm:$0xff] }
 0x375   : > { %5894 = vmatpush.bf16.msra.mxu0 %v15634_v25  ;;  %v10323_v15 = vor.u32 %v14856_v19, %v14861_v4  ;;  %v9923_v16 = vor.u32 %v14863_v20, %v14865_v22  ;;  %v4224_v61 = vadd.f32 %v4208_v0, %v4198_v53  ;;  %v4008_v57 = vperm.slane %v14746_v10, 1  ;;  %v15642_v53 = vld [vmem:[#allocation57_spill] sm:$0xff] }
 0x376   : > { %5837 = vmatmul.bf16.vlgmr.msra.gmra.mxu3 %v14870_v21  ;;  %5907 = vmatpush.bf16.msra.mxu1 %v15635_v38  ;;  %v15636_v46 = vor.u32 %v14679_v41, %v14681_v55  ;;  %v15638_v34 = vor.u32 %v14691_v2, %v15637_v33  ;;  %v4107_v62 = vadd.f32 %v4099_v45, %v4079_v50  ;;  %v4036_v11 = vperm.slane %v14746_v10, 2  ;;  %v15646_v50 = vld [vmem:[#allocation60_spill] sm:$0xff]  ;;  %v15649_v38 = vld [vmem:[#allocation62_spill] sm:$0xff]  ;;  %v3962_v33 = vld [vmem:[#allocation2 + $0x20] sm:$0xff] }
 0x377   : > { %v4127_v27 = vmul.f32 %v4119_v36, %v14598_v51  ;;  %v4155_v7 = vmul.f32 %v4147_v48, %v14796_v3  ;;  %v10051_v13 = vor.u32 %v14880_v37, %v14882_v42  ;;  %v3996_v41 = vmul.f32 %v3988_v35, %v14631_v59  ;;  %v15645_v42 = vld [vmem:[#allocation59_spill] sm:$0xff]  ;;  %v15648_v35 = vld [vmem:[#allocation61_spill] sm:$0xff] }
 0x378   : > { %5920 = vmatpush.bf16.msra.mxu2 %v15636_v46  ;;  %5933 = vmatpush.bf16.msra.mxu3 %v15638_v34  ;;  %v4016_v55 = vmul.f32 %v4008_v57, %v14734_v32  ;;  %v4064_v2 = vperm.slane %v14746_v10, 3  ;;  %v15641_v24 = vor.u32 %v15639_v43, %v15640_v17  ;;  %v10179_v40 = vor.u32 %v14895_v58, %v14897_v54  ;;  %v15651_v34 = vld [vmem:[#allocation63_spill] sm:$0xff] }
 0x379   : > { %v4135_v19 = vadd.f32 %v4127_v27, %v4107_v62  ;;  %v4183_v0 = vmul.f32 %v4175_v8, %v14627_v9  ;;  %v4092_v4 = vperm.slane %v14746_v10, 4  ;;  %v15644_v44 = vor.u32 %v15642_v53, %v15643_v18  ;;  %v10032_v53 = vld [vmem:[#allocation14 + $0x170] sm:$0xf0]  ;;  %v11985_v18 = vld [vmem:[#allocation14 + $0x264] sm:$0xf] }
 0x37a   : > { %5895 = vmatpush.bf16.msra.mxu0 %v15641_v24  ;;  %v10307_v36 = vor.u32 %v14906_v56, %v14908_v23  ;;  %v4232_v48 = vmax.f32 %v4224_v61, 0.0  ;;  %v4024_v25 = vadd.f32 %v4016_v55, %v3996_v41  ;;  %v4044_v37 = vmul.f32 %v4036_v11, %v14633_v60 }
 0x37b   : > { %5908 = vmatpush.bf16.msra.mxu1 %v15644_v44  ;;  %v15647_v45 = vor.u32 %v15645_v42, %v15646_v50  ;;  %v15650_v8 = vor.u32 %v15648_v35, %v15649_v38  ;;  %v4163_v58 = vadd.f32 %v4155_v7, %v4135_v19  ;;  %v4072_v54 = vmul.f32 %v4064_v2, %v14736_v29  ;;  %v10160_v44 = vld [vmem:[#allocation14 + $0x270] sm:$0xf0]  ;;  %v11917_v35 = vld [vmem:[#allocation14 + $0x44] sm:$0xf] }
 0x37c   : > { %v4120_v57 = vperm.slane %v14746_v10, 5  ;;  %v4148_v46 = vperm.slane %v14746_v10, 6  ;;  %v4052_v61 = vadd.f32 %v4044_v37, %v4024_v25  ;;  %v3989_v56 = vperm.slane %v15651_v34, 0  ;;  %v10288_v25 = vld [vmem:[#allocation14 + $0x370] sm:$0xf0] }
 0x37d   : > { %5921 = vmatpush.bf16.msra.mxu2 %v15647_v45  ;;  %5934 = vmatpush.bf16.msra.mxu3 %v15650_v8  ;;  %v4009_v23 = vperm.slane %v15651_v34, 1  ;;  %v4037_v62 = vperm.slane %v15651_v34, 2  ;;  %v4191_v27 = vadd.f32 %v4183_v0, %v4163_v58  ;;  %v4209_v7 = vperm.slane %v14612_v49, 5  ;;  %v9888_v38 = vld [vmem:[#allocation14 + $0x50] sm:$0xf0] }
 0x37e   : > { %5896 = vmatpush.bf16.msra.mxu0 %v9939_v26  ;;  %v4100_v11 = vmul.f32 %v4092_v4, %v14584_v63  ;;  %v4176_v41 = vperm.slane %v14746_v10, 7  ;;  %v4080_v55 = vadd.f32 %v4072_v54, %v4052_v61  ;;  %v3997_v2 = vmul.f32 %v3989_v56, %v14631_v59  ;;  %v11949_v58 = vld [vmem:[#allocation14 + $0x144] sm:$0xf]  ;;  %v10016_v54 = vld [vmem:[#allocation14 + $0x150] sm:$0xf0] }
 0x37f   : > { %5909 = vmatpush.bf16.msra.mxu1 %v10067_v47  ;;  %v4017_v43 = vmul.f32 %v4009_v23, %v14734_v32  ;;  %v4065_v17 = vperm.slane %v15651_v34, 3  ;;  %v14958_v26 = vpack.c.bf16 %v4232_v48, %v4232_v48  ;;  %v4199_v10 = vadd.f32 %v4191_v27, %v3962_v33  ;;  %v11953_v47 = vld [vmem:[#allocation14 + $0x164] sm:$0xf]  ;;  %v10144_v56 = vld [vmem:[#allocation14 + $0x250] sm:$0xf0] }
 0x380   : > { %v4128_v1 = vmul.f32 %v4120_v57, %v14598_v51  ;;  %v4093_v39 = vperm.slane %v15651_v34, 4  ;;  %v4108_v24 = vadd.f32 %v4100_v11, %v4080_v55  ;;  %v4156_v19 = vmul.f32 %v4148_v46, %v14796_v3  ;;  %v12017_v48 = vld [vmem:[#allocation14 + $0x364] sm:$0xf]  ;;  %v10272_v11 = vld [vmem:[#allocation14 + $0x350] sm:$0xf0] }
 0x381   : > { %5922 = vmatpush.bf16.msra.mxu2 %v10195_v12  ;;  %5935 = vmatpush.bf16.msra.mxu3 %v10323_v15  ;;  %v4025_v0 = vadd.f32 %v4017_v43, %v3997_v2  ;;  %v4045_v4 = vmul.f32 %v4037_v62, %v14633_v60  ;;  %v4225_v5 = vadd.f32 %v4209_v7, %v4199_v10  ;;  %v4121_v12 = vperm.slane %v15651_v34, 5  ;;  %v11981_v61 = vld [vmem:[#allocation14 + $0x244] sm:$0xf]  ;;  %v10000_v10 = vld [vmem:[#allocation14 + $0x130] sm:$0xf0] }
 0x382   : > { %5897 = vmatpush.bf16.msra.mxu0 %v9923_v16  ;;  %v4184_v31 = vmul.f32 %v4176_v41, %v14627_v9  ;;  %v9907_v15 = vor.u32 %v11921_v52, %v9904_v14  ;;  %v4136_v37 = vadd.f32 %v4128_v1, %v4108_v24  ;;  %v4073_v50 = vmul.f32 %v4065_v17, %v14736_v29  ;;  %v12013_v7 = vld [vmem:[#allocation14 + $0x344] sm:$0xf]  ;;  %v9872_v17 = vld [vmem:[#allocation14 + $0x30] sm:$0xf0] }
 0x383   : > { %5910 = vmatpush.bf16.msra.mxu1 %v10051_v13  ;;  %v4053_v42 = vadd.f32 %v4045_v4, %v4025_v0  ;;  %v4149_v45 = vperm.slane %v15651_v34, 6  ;;  %v4233_v20 = vmax.f32 %v4225_v5, 0.0  ;;  %v4101_v22 = vmul.f32 %v4093_v39, %v14584_v63  ;;  %5850 = vmatmul.bf16.vlgmr.msrb.gmra.mxu0 %v14958_v26  ;;  %v11913_v43 = vld [vmem:[#allocation14 + $0x24] sm:$0xf]  ;;  %v10128_v0 = vld [vmem:[#allocation14 + $0x230] sm:$0xf0] }
 0x384   : > { %v10035_v16 = vor.u32 %v11953_v47, %v10032_v53  ;;  %v10163_v8 = vor.u32 %v11985_v18, %v10160_v44  ;;  %v4164_v13 = vadd.f32 %v4156_v19, %v4136_v37  ;;  %v4177_v46 = vperm.slane %v15651_v34, 7  ;;  %v11945_v14 = vld [vmem:[#allocation14 + $0x124] sm:$0xf]  ;;  %v10256_v53 = vld [vmem:[#allocation14 + $0x330] sm:$0xf0]  ;;  %v3964_v18 = vld [vmem:[#allocation2 + $0x38] sm:$0xff] }
 0x385   : > { %5923 = vmatpush.bf16.msra.mxu2 %v10179_v40  ;;  %5936 = vmatpush.bf16.msra.mxu3 %v10307_v36  ;;  %v4081_v57 = vadd.f32 %v4073_v50, %v4053_v42  ;;  %v10291_v33 = vor.u32 %v12017_v48, %v10288_v25  ;;  %v14974_v23 = vpack.c.bf16 %v4233_v20, %v4233_v20  ;;  %v3963_v40 = vld [vmem:[#allocation2 + $0x28] sm:$0xff]  ;;  %v4210_v36 = vperm.slane %v14612_v49, 6  ;;  %v11977_v1 = vld [vmem:[#allocation14 + $0x224] sm:$0xf]  ;;  %v9984_v37 = vld [vmem:[#allocation14 + $0x110] sm:$0xf0] }
 0x386   : > { %v4129_v62 = vmul.f32 %v4121_v12, %v14598_v51  ;;  %5898 = vmatpush.bf16.msra.mxu0 %v9907_v15  ;;  %v9891_v27 = vor.u32 %v11917_v35, %v9888_v38  ;;  %v4192_v41 = vadd.f32 %v4184_v31, %v4164_v13  ;;  %v4157_v2 = vmul.f32 %v4149_v45, %v14796_v3  ;;  %v12009_v4 = vld [vmem:[#allocation14 + $0x324] sm:$0xf]  ;;  %v9856_v31 = vld [vmem:[#allocation14 + $0x10] sm:$0xf0] }
 0x387   : > { %v4109_v55 = vadd.f32 %v4101_v22, %v4081_v57  ;;  %5911 = vmatpush.bf16.msra.mxu1 %v10035_v16  ;;  %v10019_v34 = vor.u32 %v11949_v58, %v10016_v54  ;;  %v10147_v52 = vor.u32 %v11981_v61, %v10144_v56  ;;  %v4185_v24 = vmul.f32 %v4177_v46, %v14627_v9  ;;  %v11909_v5 = vld [vmem:[#allocation14 + $0x4] sm:$0xf]  ;;  %v10112_v50 = vld [vmem:[#allocation14 + $0x210] sm:$0xf0] }
 0x388   : > { %5863 = vmatmul.bf16.vlgmr.msrb.gmra.mxu1 %v14974_v23  ;;  %v4200_v39 = vadd.f32 %v4192_v41, %v3963_v40  ;;  %v10275_v19 = vor.u32 %v12013_v7, %v10272_v11  ;;  %v9875_v44 = vor.u32 %v11913_v43, %v9872_v17  ;;  %v11941_v12 = vld [vmem:[#allocation14 + $0x104] sm:$0xf]  ;;  %v10003_v25 = vor.u32 %v11945_v14, %v10000_v10  ;;  %v10480_v20 = vld [vmem:[#allocation14 + $0x4f0] sm:$0xf0] }
 0x389   : > { %5924 = vmatpush.bf16.msra.mxu2 %v10163_v8  ;;  %v4137_v47 = vadd.f32 %v4129_v62, %v4109_v55  ;;  %5937 = vmatpush.bf16.msra.mxu3 %v10291_v33  ;;  %v11973_v42 = vld [vmem:[#allocation14 + $0x204] sm:$0xf]  ;;  %v10131_v45 = vor.u32 %v11977_v1, %v10128_v0  ;;  %v4211_v8 = vperm.slane %v14612_v49, 7  ;;  %v10259_v58 = vor.u32 %v12009_v4, %v10256_v53  ;;  %v10608_v13 = vld [vmem:[#allocation14 + $0x5f0] sm:$0xf0] }
 0x38a   : > { %5899 = vmatpush.bf16.msra.mxu0 %v9891_v27  ;;  %v4226_v15 = vadd.f32 %v4210_v36, %v4200_v39  ;;  %v12005_v35 = vld [vmem:[#allocation14 + $0x304] sm:$0xf]  ;;  %v9859_v57 = vor.u32 %v11909_v5, %v9856_v31  ;;  %v10240_v46 = vld [vmem:[#allocation14 + $0x310] sm:$0xf0]  ;;  %v9987_v36 = vor.u32 %v11941_v12, %v9984_v37  ;;  %v10115_v27 = vor.u32 %v11973_v42, %v10112_v50 }
 0x38b   : > { %v4165_v48 = vadd.f32 %v4157_v2, %v4137_v47  ;;  %5912 = vmatpush.bf16.msra.mxu1 %v10019_v34  ;;  %v12065_v38 = vld [vmem:[#allocation14 + $0x4e4] sm:$0xf]  ;;  %v10736_v61 = vld [vmem:[#allocation14 + $0x6f0] sm:$0xf0]  ;;  %v10243_v55 = vor.u32 %v12005_v35, %v10240_v46 }
 0x38c   : > { %v4234_v22 = vmax.f32 %v4226_v15, 0.0  ;;  %v12097_v54 = vld [vmem:[#allocation14 + $0x5e4] sm:$0xf]  ;;  %v10483_v62 = vor.u32 %v12065_v38, %v10480_v20  ;;  %v10464_v49 = vld [vmem:[#allocation14 + $0x4d0] sm:$0xf0] }
 0x38d   : > { %5925 = vmatpush.bf16.msra.mxu2 %v10147_v52  ;;  %v4193_v16 = vadd.f32 %v4185_v24, %v4165_v48  ;;  %5938 = vmatpush.bf16.msra.mxu3 %v10275_v19  ;;  %v12129_v33 = vld [vmem:[#allocation14 + $0x6e4] sm:$0xf]  ;;  %v10611_v7 = vor.u32 %v12097_v54, %v10608_v13  ;;  %v10864_v43 = vld [vmem:[#allocation14 + $0x7f0] sm:$0xf0] }
 0x38e   : > { %5900 = vmatpush.bf16.msra.mxu0 %v9875_v44  ;;  %v14982_v56 = vpack.c.bf16 %v4234_v22, %v4234_v22  ;;  %v12061_v11 = vld [vmem:[#allocation14 + $0x4c4] sm:$0xf]  ;;  %v10739_v2 = vor.u32 %v12129_v33, %v10736_v61  ;;  %v10592_v52 = vld [vmem:[#allocation14 + $0x5d0] sm:$0xf0] }
 0x38f   : > { %v4201_v40 = vadd.f32 %v4193_v16, %v3964_v18  ;;  %5913 = vmatpush.bf16.msra.mxu1 %v10003_v25  ;;  %v12161_v34 = vld [vmem:[#allocation14 + $0x7e4] sm:$0xf]  ;;  %v10720_v10 = vld [vmem:[#allocation14 + $0x6d0] sm:$0xf0]  ;;  %v10467_v39 = vor.u32 %v12061_v11, %v10464_v49 }
 0x390   : > { %5876 = vmatmul.bf16.vlgmr.msrb.gmra.mxu2 %v14982_v56  ;;  %v12093_v17 = vld [vmem:[#allocation14 + $0x5c4] sm:$0xf]  ;;  %v10867_v47 = vor.u32 %v12161_v34, %v10864_v43  ;;  %v10448_v19 = vld [vmem:[#allocation14 + $0x4b0] sm:$0xf0] }
 0x391   : > { %5926 = vmatpush.bf16.msra.mxu2 %v10131_v45  ;;  %v4227_v41 = vadd.f32 %v4211_v8, %v4201_v40  ;;  %5939 = vmatpush.bf16.msra.mxu3 %v10259_v58  ;;  %v12125_v14 = vld [vmem:[#allocation14 + $0x6c4] sm:$0xf]  ;;  %v10595_v4 = vor.u32 %v12093_v17, %v10592_v52  ;;  %v10848_v44 = vld [vmem:[#allocation14 + $0x7d0] sm:$0xf0] }
 0x392   : > { %5901 = vmatpush.bf16.msra.mxu0 %v9859_v57  ;;  %v12057_v24 = vld [vmem:[#allocation14 + $0x4a4] sm:$0xf]  ;;  %v10723_v53 = vor.u32 %v12125_v14, %v10720_v10  ;;  %v10576_v31 = vld [vmem:[#allocation14 + $0x5b0] sm:$0xf0] }
 0x393   : > { %v4235_v1 = vmax.f32 %v4227_v41, 0.0  ;;  %5914 = vmatpush.bf16.msra.mxu1 %v9987_v36  ;;  %v12157_v18 = vld [vmem:[#allocation14 + $0x7c4] sm:$0xf]  ;;  %v10704_v15 = vld [vmem:[#allocation14 + $0x6b0] sm:$0xf0]  ;;  %v10451_v48 = vor.u32 %v12057_v24, %v10448_v19 }
 0x394   : > { %v12089_v5 = vld [vmem:[#allocation14 + $0x5a4] sm:$0xf]  ;;  %v10851_v25 = vor.u32 %v12157_v18, %v10848_v44  ;;  %v10432_v42 = vld [vmem:[#allocation14 + $0x490] sm:$0xf0] }
 0x395   : > { %5927 = vmatpush.bf16.msra.mxu2 %v10115_v27  ;;  %v14985_v0 = vpack.c.bf16 %v4235_v1, %v4235_v1  ;;  %5940 = vmatpush.bf16.msra.mxu3 %v10243_v55  ;;  %v12121_v12 = vld [vmem:[#allocation14 + $0x6a4] sm:$0xf]  ;;  %v10579_v50 = vor.u32 %v12089_v5, %v10576_v31  ;;  %v10832_v38 = vld [vmem:[#allocation14 + $0x7b0] sm:$0xf0] }
 0x396   : > { %5946 = vmatpush.bf16.msrb.mxu0 %v10483_v62  ;;  %v12053_v37 = vld [vmem:[#allocation14 + $0x484] sm:$0xf]  ;;  %v10707_v45 = vor.u32 %v12121_v12, %v10704_v15  ;;  %v10560_v22 = vld [vmem:[#allocation14 + $0x590] sm:$0xf0] }
 0x397   : > { %5959 = vmatpush.bf16.msrb.mxu1 %v10611_v7  ;;  %5902 = vmatmul.bf16.vlgmr.msra.gmra.mxu0 %v14852_v28  ;;  %v12153_v35 = vld [vmem:[#allocation14 + $0x7a4] sm:$0xf]  ;;  %v10435_v16 = vor.u32 %v12053_v37, %v10432_v42  ;;  %v10688_v58 = vld [vmem:[#allocation14 + $0x690] sm:$0xf0] }
 0x398   : > { %5889 = vmatmul.bf16.vlgmr.msrb.gmra.mxu3 %v14985_v0  ;;  %5915 = vmatmul.bf16.vlgmr.msra.gmra.mxu1 %v14854_v6  ;;  %v12085_v20 = vld [vmem:[#allocation14 + $0x584] sm:$0xf]  ;;  %v10835_v54 = vor.u32 %v12153_v35, %v10832_v38  ;;  %v10416_v57 = vld [vmem:[#allocation14 + $0x470] sm:$0xf0]  ;;  %v9974_v38 = vld [vmem:[#allocation14 + $0xe8] sm:$0xf] }
 0x399   : > { %5972 = vmatpush.bf16.msrb.mxu2 %v10739_v2  ;;  %5985 = vmatpush.bf16.msrb.mxu3 %v10867_v47  ;;  %v12117_v8 = vld [vmem:[#allocation14 + $0x684] sm:$0xf]  ;;  %v10563_v46 = vor.u32 %v12085_v20, %v10560_v22  ;;  %v10816_v61 = vld [vmem:[#allocation14 + $0x790] sm:$0xf0]  ;;  %v11940_v20 = vld [vmem:[#allocation14 + $0xf4] sm:$0xf0] }
 0x39a   : > { %5947 = vmatpush.bf16.msrb.mxu0 %v10467_v39  ;;  %v12049_v13 = vld [vmem:[#allocation14 + $0x464] sm:$0xf]  ;;  %v10691_v40 = vor.u32 %v12117_v8, %v10688_v58  ;;  %v10544_v62 = vld [vmem:[#allocation14 + $0x570] sm:$0xf0] }
 0x39b   : > { %5960 = vmatpush.bf16.msrb.mxu1 %v10595_v4  ;;  %v12149_v33 = vld [vmem:[#allocation14 + $0x784] sm:$0xf]  ;;  %v10419_v27 = vor.u32 %v12049_v13, %v10416_v57  ;;  %v10672_v11 = vld [vmem:[#allocation14 + $0x670] sm:$0xf0]  ;;  %v10102_v57 = vld [vmem:[#allocation14 + $0x1e8] sm:$0xf] }
 0x39c   : > { %v12081_v36 = vld [vmem:[#allocation14 + $0x564] sm:$0xf]  ;;  %v10819_v49 = vor.u32 %v12149_v33, %v10816_v61  ;;  %v10400_v55 = vld [vmem:[#allocation14 + $0x450] sm:$0xf0]  ;;  %v9975_v61 = vor.u32 %v11940_v20, %v9974_v38  ;;  %v11928_v38 = vld [vmem:[#allocation14 + $0x94] sm:$0xf0] }
 0x39d   : > { %5973 = vmatpush.bf16.msrb.mxu2 %v10723_v53  ;;  %5986 = vmatpush.bf16.msrb.mxu3 %v10851_v25  ;;  %v12113_v7 = vld [vmem:[#allocation14 + $0x664] sm:$0xf]  ;;  %v10547_v2 = vor.u32 %v12081_v36, %v10544_v62  ;;  %v10800_v43 = vld [vmem:[#allocation14 + $0x770] sm:$0xf0]  ;;  %v12004_v36 = vld [vmem:[#allocation14 + $0x2f4] sm:$0xf0] }
 0x39e   : > { %5948 = vmatpush.bf16.msrb.mxu0 %v10451_v48  ;;  %v12045_v41 = vld [vmem:[#allocation14 + $0x444] sm:$0xf]  ;;  %v10675_v17 = vor.u32 %v12113_v7, %v10672_v11  ;;  %v10528_v14 = vld [vmem:[#allocation14 + $0x550] sm:$0xf0]  ;;  %v10054_v20 = vld [vmem:[#allocation14 + $0x188] sm:$0xf] }
 0x39f   : > { %5961 = vmatpush.bf16.msrb.mxu1 %v10579_v50  ;;  %v12145_v34 = vld [vmem:[#allocation14 + $0x764] sm:$0xf]  ;;  %v10403_v10 = vor.u32 %v12045_v41, %v10400_v55  ;;  %v10656_v39 = vld [vmem:[#allocation14 + $0x650] sm:$0xf0]  ;;  %v10358_v41 = vld [vmem:[#allocation14 + $0x3e8] sm:$0xf] }
 0x3a0   : > { %5928 = vmatmul.bf16.vlgmr.msra.gmra.mxu2 %v14859_v30  ;;  %v12077_v52 = vld [vmem:[#allocation14 + $0x544] sm:$0xf]  ;;  %v10803_v47 = vor.u32 %v12145_v34, %v10800_v43  ;;  %v10384_v19 = vld [vmem:[#allocation14 + $0x430] sm:$0xf0]  ;;  %v12036_v55 = vld [vmem:[#allocation14 + $0x3f4] sm:$0xf0] }
 0x3a1   : > { %5974 = vmatpush.bf16.msrb.mxu2 %v10707_v45  ;;  %5987 = vmatpush.bf16.msrb.mxu3 %v10835_v54  ;;  %v12109_v1 = vld [vmem:[#allocation14 + $0x644] sm:$0xf]  ;;  %v10531_v4 = vor.u32 %v12077_v52, %v10528_v14  ;;  %v10784_v18 = vld [vmem:[#allocation14 + $0x750] sm:$0xf0]  ;;  %v11936_v43 = vld [vmem:[#allocation14 + $0xd4] sm:$0xf0] }
 0x3a2   : > { %5949 = vmatpush.bf16.msrb.mxu0 %v10435_v16  ;;  %v12041_v24 = vld [vmem:[#allocation14 + $0x424] sm:$0xf]  ;;  %v10659_v44 = vor.u32 %v12109_v1, %v10656_v39  ;;  %v10512_v31 = vld [vmem:[#allocation14 + $0x530] sm:$0xf0]  ;;  %v11968_v52 = vld [vmem:[#allocation14 + $0x1d4] sm:$0xf0]  ;;  %v10359_v39 = vor.u32 %v12036_v55, %v10358_v41 }
 0x3a3   : > { %5962 = vmatpush.bf16.msrb.mxu1 %v10563_v46  ;;  %v12141_v53 = vld [vmem:[#allocation14 + $0x744] sm:$0xf]  ;;  %v10387_v12 = vor.u32 %v12041_v24, %v10384_v19  ;;  %v10640_v48 = vld [vmem:[#allocation14 + $0x630] sm:$0xf0]  ;;  %v11972_v46 = vld [vmem:[#allocation14 + $0x1f4] sm:$0xf0] }
 0x3a4   : > { %v12073_v5 = vld [vmem:[#allocation14 + $0x524] sm:$0xf]  ;;  %v10787_v25 = vor.u32 %v12141_v53, %v10784_v18  ;;  %v10368_v50 = vld [vmem:[#allocation14 + $0x410] sm:$0xf0]  ;;  %v12000_v1 = vld [vmem:[#allocation14 + $0x2d4] sm:$0xf0] }
 0x3a5   : > { %5975 = vmatpush.bf16.msrb.mxu2 %v10691_v40  ;;  %5988 = vmatpush.bf16.msrb.mxu3 %v10819_v49  ;;  %v12105_v15 = vld [vmem:[#allocation14 + $0x624] sm:$0xf]  ;;  %v10515_v45 = vor.u32 %v12073_v5, %v10512_v31  ;;  %v10768_v35 = vld [vmem:[#allocation14 + $0x730] sm:$0xf0]  ;;  %v10230_v40 = vld [vmem:[#allocation14 + $0x2e8] sm:$0xf]  ;;  %v10103_v49 = vor.u32 %v11972_v46, %v10102_v57 }
 0x3a6   : > { %5950 = vmatpush.bf16.msrb.mxu0 %v10419_v27  ;;  %v12137_v37 = vld [vmem:[#allocation14 + $0x724] sm:$0xf]  ;;  %v10643_v22 = vor.u32 %v12105_v15, %v10640_v48  ;;  %v10496_v8 = vld [vmem:[#allocation14 + $0x510] sm:$0xf0]  ;;  %v10231_v34 = vor.u32 %v12004_v36, %v10230_v40  ;;  %v10342_v19 = vld [vmem:[#allocation14 + $0x3c8] sm:$0xf] }
 0x3a7   : > { %5963 = vmatpush.bf16.msrb.mxu1 %v10547_v2  ;;  %v12037_v42 = vld [vmem:[#allocation14 + $0x404] sm:$0xf]  ;;  %v10624_v13 = vld [vmem:[#allocation14 + $0x610] sm:$0xf0]  ;;  %v10771_v33 = vor.u32 %v12137_v37, %v10768_v35  ;;  %v9958_v2 = vld [vmem:[#allocation14 + $0xc8] sm:$0xf] }
 0x3a8   : > { %5941 = vmatmul.bf16.vlgmr.msra.gmra.mxu3 %v14870_v21  ;;  %v12069_v16 = vld [vmem:[#allocation14 + $0x504] sm:$0xf]  ;;  %v10371_v54 = vor.u32 %v12037_v42, %v10368_v50  ;;  %v10752_v7 = vld [vmem:[#allocation14 + $0x710] sm:$0xf0]  ;;  %v9942_v53 = vld [vmem:[#allocation14 + $0xa8] sm:$0xf] }
 0x3a9   : > { %5976 = vmatpush.bf16.msrb.mxu2 %v10675_v17  ;;  %5989 = vmatpush.bf16.msrb.mxu3 %v10803_v47  ;;  %v12101_v58 = vld [vmem:[#allocation14 + $0x604] sm:$0xf]  ;;  %v10499_v62 = vor.u32 %v12069_v16, %v10496_v8  ;;  %v10086_v17 = vld [vmem:[#allocation14 + $0x1c8] sm:$0xf]  ;;  %v9959_v47 = vor.u32 %v11936_v43, %v9958_v2  ;;  %v11964_v31 = vld [vmem:[#allocation14 + $0x1b4] sm:$0xf0] }
 0x3aa   : > { %5951 = vmatpush.bf16.msrb.mxu0 %v10403_v10  ;;  %v12133_v27 = vld [vmem:[#allocation14 + $0x704] sm:$0xf]  ;;  %v10627_v11 = vor.u32 %v12101_v58, %v10624_v13  ;;  %v10214_v10 = vld [vmem:[#allocation14 + $0x2c8] sm:$0xf]  ;;  %v10087_v24 = vor.u32 %v11968_v52, %v10086_v17  ;;  %v11996_v15 = vld [vmem:[#allocation14 + $0x2b4] sm:$0xf0] }
 0x3ab   : > { %5964 = vmatpush.bf16.msrb.mxu1 %v10531_v4  ;;  %v10755_v14 = vor.u32 %v12133_v27, %v10752_v7  ;;  %v12032_v4 = vld [vmem:[#allocation14 + $0x3d4] sm:$0xf0]  ;;  %v10215_v18 = vor.u32 %v12000_v1, %v10214_v10  ;;  %v10070_v5 = vld [vmem:[#allocation14 + $0x1a8] sm:$0xf] }
 0x3ac   : > { %v10343_v48 = vor.u32 %v12032_v4, %v10342_v19  ;;  %v10071_v37 = vor.u32 %v11964_v31, %v10070_v5  ;;  %v10326_v42 = vld [vmem:[#allocation14 + $0x3a8] sm:$0xf]  ;;  %v12028_v50 = vld [vmem:[#allocation14 + $0x3b4] sm:$0xf0] }
 0x3ad   : > { %5977 = vmatpush.bf16.msrb.mxu2 %v10659_v44  ;;  %5990 = vmatpush.bf16.msrb.mxu3 %v10787_v25  ;;  %v11932_v44 = vld [vmem:[#allocation14 + $0xb4] sm:$0xf0]  ;;  %v10182_v16 = vld [vmem:[#allocation14 + $0x288] sm:$0xf]  ;;  %v10327_v58 = vor.u32 %v12028_v50, %v10326_v42 }
 0x3ae   : > { %5952 = vmatpush.bf16.msrb.mxu0 %v10387_v12  ;;  %v10198_v12 = vld [vmem:[#allocation14 + $0x2a8] sm:$0xf]  ;;  %v9943_v25 = vor.u32 %v11932_v44, %v9942_v53  ;;  %v11992_v8 = vld [vmem:[#allocation14 + $0x294] sm:$0xf0] }
 0x3af   : > { %5965 = vmatpush.bf16.msrb.mxu1 %v10515_v45  ;;  %v9926_v45 = vld [vmem:[#allocation14 + $0x88] sm:$0xf]  ;;  %v10199_v35 = vor.u32 %v11996_v15, %v10198_v12  ;;  %v12024_v46 = vld [vmem:[#allocation14 + $0x394] sm:$0xf0] }
 0x3b0   : > { %v10310_v57 = vld [vmem:[#allocation14 + $0x388] sm:$0xf]  ;;  %v11924_v40 = vld [vmem:[#allocation14 + $0x74] sm:$0xf0] }
 0x3b1   : > { %5978 = vmatpush.bf16.msrb.mxu2 %v10643_v22  ;;  %5991 = vmatpush.bf16.msrb.mxu3 %v10771_v33  ;;  %v11960_v22 = vld [vmem:[#allocation14 + $0x194] sm:$0xf0]  ;;  %v9910_v33 = vld [vmem:[#allocation14 + $0x68] sm:$0xf] }
 0x3b2   : > { %5953 = vmatpush.bf16.msrb.mxu0 %v10371_v54  ;;  %v9927_v54 = vor.u32 %v11928_v38, %v9926_v45  ;;  %v10055_v13 = vor.u32 %v11960_v22, %v10054_v20  ;;  %v10038_v36 = vld [vmem:[#allocation14 + $0x168] sm:$0xf]  ;;  %v11988_v7 = vld [vmem:[#allocation14 + $0x274] sm:$0xf0] }
 0x3b3   : > { %5966 = vmatpush.bf16.msrb.mxu1 %v10499_v62  ;;  %v11956_v62 = vld [vmem:[#allocation14 + $0x174] sm:$0xf0]  ;;  %v10166_v27 = vld [vmem:[#allocation14 + $0x268] sm:$0xf] }
 0x3b4   : > { %v10039_v41 = vor.u32 %v11956_v62, %v10038_v36  ;;  %v10294_v55 = vld [vmem:[#allocation14 + $0x368] sm:$0xf]  ;;  %v12020_v2 = vld [vmem:[#allocation14 + $0x374] sm:$0xf0]  ;;  %v10167_v43 = vor.u32 %v11988_v7, %v10166_v27 }
 0x3b5   : > { %5979 = vmatpush.bf16.msrb.mxu2 %v10627_v11  ;;  %5954 = vmatmul.bf16.vlgmr.msrb.gmra.mxu0 %v14958_v26  ;;  %v10311_v11 = vor.u32 %v12024_v46, %v10310_v57  ;;  %v11920_v17 = vld [vmem:[#allocation14 + $0x54] sm:$0xf0]  ;;  %v10022_v52 = vld [vmem:[#allocation14 + $0x148] sm:$0xf] }
 0x3b6   : > { %5998 = vmatpush.bf16.msra.mxu0 %v9975_v61  ;;  %5992 = vmatpush.bf16.msrb.mxu3 %v10755_v14  ;;  %v10183_v61 = vor.u32 %v11992_v8, %v10182_v16  ;;  %v11952_v14 = vld [vmem:[#allocation14 + $0x154] sm:$0xf0]  ;;  %v10150_v10 = vld [vmem:[#allocation14 + $0x248] sm:$0xf] }
 0x3b7   : > { %6011 = vmatpush.bf16.msra.mxu1 %v10103_v49  ;;  %v9911_v49 = vor.u32 %v11924_v40, %v9910_v33  ;;  %v11984_v1 = vld [vmem:[#allocation14 + $0x254] sm:$0xf0]  ;;  %v10278_v19 = vld [vmem:[#allocation14 + $0x348] sm:$0xf] }
 0x3b8   : > { %5967 = vmatmul.bf16.vlgmr.msrb.gmra.mxu1 %v14974_v23  ;;  %5980 = vmatmul.bf16.vlgmr.msrb.gmra.mxu2 %v14982_v56  ;;  %v12016_v4 = vld [vmem:[#allocation14 + $0x354] sm:$0xf0]  ;;  %v9878_v53 = vld [vmem:[#allocation14 + $0x28] sm:$0xf] }
 0x3b9   : > { %6024 = vmatpush.bf16.msra.mxu2 %v10231_v34  ;;  %5993 = vmatmul.bf16.vlgmr.msrb.gmra.mxu3 %v14985_v0  ;;  %v9894_v34 = vld [vmem:[#allocation14 + $0x48] sm:$0xf]  ;;  %v11916_v44 = vld [vmem:[#allocation14 + $0x34] sm:$0xf0] }
 0x3ba   : > { %6037 = vmatpush.bf16.msra.mxu3 %v10359_v39  ;;  %5999 = vmatpush.bf16.msra.mxu0 %v9959_v47  ;;  %v10295_v39 = vor.u32 %v12020_v2, %v10294_v55  ;;  %v9895_v47 = vor.u32 %v11920_v17, %v9894_v34  ;;  %v10006_v5 = vld [vmem:[#allocation14 + $0x128] sm:$0xf]  ;;  %v11948_v31 = vld [vmem:[#allocation14 + $0x134] sm:$0xf0]  ;;  %v9879_v42 = vor.u32 %v11916_v44, %v9878_v53 }
 0x3bb   : > { %6012 = vmatpush.bf16.msra.mxu1 %v10087_v24  ;;  %v10023_v24 = vor.u32 %v11952_v14, %v10022_v52  ;;  %v10134_v12 = vld [vmem:[#allocation14 + $0x228] sm:$0xf]  ;;  %v11980_v15 = vld [vmem:[#allocation14 + $0x234] sm:$0xf0]  ;;  %v10007_v50 = vor.u32 %v11948_v31, %v10006_v5 }
 0x3bc   : > { %v9862_v45 = vld [vmem:[#allocation14 + $0x8] sm:$0xf]  ;;  %v10135_v20 = vor.u32 %v11980_v15, %v10134_v12  ;;  %v11944_v22 = vld [vmem:[#allocation14 + $0x114] sm:$0xf0] }
 0x3bd   : > { %6025 = vmatpush.bf16.msra.mxu2 %v10215_v18  ;;  %v10151_v18 = vor.u32 %v11984_v1, %v10150_v10  ;;  %v9990_v38 = vld [vmem:[#allocation14 + $0x108] sm:$0xf]  ;;  %v11976_v8 = vld [vmem:[#allocation14 + $0x214] sm:$0xf0] }
 0x3be   : > { %6038 = vmatpush.bf16.msra.mxu3 %v10343_v48  ;;  %6000 = vmatpush.bf16.msra.mxu0 %v9943_v25  ;;  %v10279_v48 = vor.u32 %v12016_v4, %v10278_v19  ;;  %v10262_v25 = vld [vmem:[#allocation14 + $0x328] sm:$0xf]  ;;  %v12100_v46 = vld [vmem:[#allocation14 + $0x5f4] sm:$0xf0]  ;;  %v9991_v36 = vor.u32 %v11944_v22, %v9990_v38 }
 0x3bf   : > { %6013 = vmatpush.bf16.msra.mxu1 %v10071_v37  ;;  %v12012_v37 = vld [vmem:[#allocation14 + $0x334] sm:$0xf0]  ;;  %v10118_v16 = vld [vmem:[#allocation14 + $0x208] sm:$0xf] }
 0x3c0   : > { %v10263_v57 = vor.u32 %v12012_v37, %v10262_v25  ;;  %v10742_v33 = vld [vmem:[#allocation14 + $0x6e8] sm:$0xf]  ;;  %v12008_v27 = vld [vmem:[#allocation14 + $0x314] sm:$0xf0]  ;;  %v10119_v7 = vor.u32 %v11976_v8, %v10118_v16 }
 0x3c1   : > { %6026 = vmatpush.bf16.msra.mxu2 %v10199_v35  ;;  %v11912_v35 = vld [vmem:[#allocation14 + $0x14] sm:$0xf0]  ;;  %v10246_v62 = vld [vmem:[#allocation14 + $0x308] sm:$0xf] }
 0x3c2   : > { %6039 = vmatpush.bf16.msra.mxu3 %v10327_v58  ;;  %6001 = vmatpush.bf16.msra.mxu0 %v9927_v54  ;;  %v10486_v58 = vld [vmem:[#allocation14 + $0x4e8] sm:$0xf]  ;;  %v12068_v54 = vld [vmem:[#allocation14 + $0x4f4] sm:$0xf0]  ;;  %v9863_v40 = vor.u32 %v11912_v35, %v9862_v45  ;;  %v10247_v17 = vor.u32 %v12008_v27, %v10246_v62 }
 0x3c3   : > { %6014 = vmatpush.bf16.msra.mxu1 %v10055_v13  ;;  %v10614_v13 = vld [vmem:[#allocation14 + $0x5e8] sm:$0xf]  ;;  %v12096_v14 = vld [vmem:[#allocation14 + $0x5d4] sm:$0xf0] }
 0x3c4   : > { %v10615_v55 = vor.u32 %v12100_v46, %v10614_v13  ;;  %v10470_v34 = vld [vmem:[#allocation14 + $0x4c8] sm:$0xf]  ;;  %v12160_v19 = vld [vmem:[#allocation14 + $0x7d4] sm:$0xf0] }
 0x3c5   : > { %6027 = vmatpush.bf16.msra.mxu2 %v10183_v61  ;;  %v12132_v61 = vld [vmem:[#allocation14 + $0x6f4] sm:$0xf0]  ;;  %v10598_v52 = vld [vmem:[#allocation14 + $0x5c8] sm:$0xf] }
 0x3c6   : > { %6040 = vmatpush.bf16.msra.mxu3 %v10311_v11  ;;  %6002 = vmatpush.bf16.msra.mxu0 %v9911_v49  ;;  %v10487_v11 = vor.u32 %v12068_v54, %v10486_v58  ;;  %v10870_v49 = vld [vmem:[#allocation14 + $0x7e8] sm:$0xf]  ;;  %v10743_v2 = vor.u32 %v12132_v61, %v10742_v33  ;;  %v10599_v4 = vor.u32 %v12096_v14, %v10598_v52  ;;  %v12092_v31 = vld [vmem:[#allocation14 + $0x5b4] sm:$0xf0] }
 0x3c7   : > { %6015 = vmatpush.bf16.msra.mxu1 %v10039_v41  ;;  %v12164_v41 = vld [vmem:[#allocation14 + $0x7f4] sm:$0xf0]  ;;  %v10726_v1 = vld [vmem:[#allocation14 + $0x6c8] sm:$0xf] }
 0x3c8   : > { %v10871_v10 = vor.u32 %v12164_v41, %v10870_v49  ;;  %v10454_v53 = vld [vmem:[#allocation14 + $0x4a8] sm:$0xf]  ;;  %v12056_v35 = vld [vmem:[#allocation14 + $0x494] sm:$0xf0] }
 0x3c9   : > { %6028 = vmatpush.bf16.msra.mxu2 %v10167_v43  ;;  %v12064_v43 = vld [vmem:[#allocation14 + $0x4d4] sm:$0xf0]  ;;  %v10582_v5 = vld [vmem:[#allocation14 + $0x5a8] sm:$0xf] }
 0x3ca   : > { %6041 = vmatpush.bf16.msra.mxu3 %v10295_v39  ;;  %6003 = vmatpush.bf16.msra.mxu0 %v9895_v47  ;;  %v12128_v39 = vld [vmem:[#allocation14 + $0x6d4] sm:$0xf0]  ;;  %v10471_v47 = vor.u32 %v12064_v43, %v10470_v34  ;;  %v10710_v15 = vld [vmem:[#allocation14 + $0x6a8] sm:$0xf] }
 0x3cb   : > { %6016 = vmatpush.bf16.msra.mxu1 %v10023_v24  ;;  %v10854_v24 = vld [vmem:[#allocation14 + $0x7c8] sm:$0xf]  ;;  %v10727_v44 = vor.u32 %v12128_v39, %v10726_v1  ;;  %v12088_v22 = vld [vmem:[#allocation14 + $0x594] sm:$0xf0] }
 0x3cc   : > { %v10855_v12 = vor.u32 %v12160_v19, %v10854_v24  ;;  %v10838_v37 = vld [vmem:[#allocation14 + $0x7a8] sm:$0xf]  ;;  %v12120_v58 = vld [vmem:[#allocation14 + $0x694] sm:$0xf0] }
 0x3cd   : > { %6029 = vmatpush.bf16.msra.mxu2 %v10151_v18  ;;  %v12060_v18 = vld [vmem:[#allocation14 + $0x4b4] sm:$0xf0]  ;;  %v10438_v45 = vld [vmem:[#allocation14 + $0x488] sm:$0xf] }
 0x3ce   : > { %6042 = vmatpush.bf16.msra.mxu3 %v10279_v48  ;;  %6004 = vmatpush.bf16.msra.mxu0 %v9879_v42  ;;  %v12124_v48 = vld [vmem:[#allocation14 + $0x6b4] sm:$0xf0]  ;;  %v10455_v25 = vor.u32 %v12060_v18, %v10454_v53  ;;  %v10694_v8 = vld [vmem:[#allocation14 + $0x688] sm:$0xf]  ;;  %v10439_v54 = vor.u32 %v12056_v35, %v10438_v45 }
 0x3cf   : > { %6017 = vmatpush.bf16.msra.mxu1 %v10007_v50  ;;  %v12156_v42 = vld [vmem:[#allocation14 + $0x7b4] sm:$0xf0]  ;;  %v10583_v50 = vor.u32 %v12092_v31, %v10582_v5  ;;  %v10711_v38 = vor.u32 %v12124_v48, %v10710_v15  ;;  %v10822_v13 = vld [vmem:[#allocation14 + $0x788] sm:$0xf] }
 0x3d0   : > { %v10839_v16 = vor.u32 %v12156_v42, %v10838_v37  ;;  %v10422_v33 = vld [vmem:[#allocation14 + $0x468] sm:$0xf]  ;;  %v12052_v61 = vld [vmem:[#allocation14 + $0x474] sm:$0xf0] }
 0x3d1   : > { %6030 = vmatpush.bf16.msra.mxu2 %v10135_v20  ;;  %v10566_v20 = vld [vmem:[#allocation14 + $0x588] sm:$0xf]  ;;  %v12084_v62 = vld [vmem:[#allocation14 + $0x574] sm:$0xf0]  ;;  %v10423_v49 = vor.u32 %v12052_v61, %v10422_v33  ;;  %v10104_v33 = vld [vmem:[#allocation14 + $0x1f8] sm:$0xf0] }
 0x3d2   : > { %6043 = vmatpush.bf16.msra.mxu3 %v10263_v57  ;;  %6005 = vmatpush.bf16.msra.mxu0 %v9863_v40  ;;  %v12152_v57 = vld [vmem:[#allocation14 + $0x794] sm:$0xf0]  ;;  %v10567_v46 = vor.u32 %v12088_v22, %v10566_v20  ;;  %v10695_v40 = vor.u32 %v12120_v58, %v10694_v8  ;;  %v10806_v41 = vld [vmem:[#allocation14 + $0x768] sm:$0xf]  ;;  %v11938_v58 = vld [vmem:[#allocation14 + $0xec] sm:$0xf] }
 0x3d3   : > { %6018 = vmatpush.bf16.msra.mxu1 %v9991_v36  ;;  %v10550_v36 = vld [vmem:[#allocation14 + $0x568] sm:$0xf]  ;;  %v10823_v27 = vor.u32 %v12152_v57, %v10822_v13  ;;  %v12048_v43 = vld [vmem:[#allocation14 + $0x454] sm:$0xf0] }
 0x3d4   : > { %v10406_v34 = vld [vmem:[#allocation14 + $0x448] sm:$0xf]  ;;  %v12080_v14 = vld [vmem:[#allocation14 + $0x554] sm:$0xf0] }
 0x3d5   : > { %6031 = vmatpush.bf16.msra.mxu2 %v10119_v7  ;;  %6006 = vmatmul.bf16.vlgmr.msra.gmra.mxu0 %v14852_v28  ;;  %v10678_v7 = vld [vmem:[#allocation14 + $0x668] sm:$0xf]  ;;  %v12112_v39 = vld [vmem:[#allocation14 + $0x654] sm:$0xf0] }
 0x3d6   : > { %6050 = vmatpush.bf16.msrb.mxu0 %v10487_v11  ;;  %6044 = vmatpush.bf16.msra.mxu3 %v10247_v17  ;;  %v12116_v11 = vld [vmem:[#allocation14 + $0x674] sm:$0xf0]  ;;  %v10534_v52 = vld [vmem:[#allocation14 + $0x548] sm:$0xf] }
 0x3d7   : > { %6063 = vmatpush.bf16.msrb.mxu1 %v10615_v55  ;;  %v12148_v55 = vld [vmem:[#allocation14 + $0x774] sm:$0xf0]  ;;  %v10679_v17 = vor.u32 %v12116_v11, %v10678_v7  ;;  %v10662_v1 = vld [vmem:[#allocation14 + $0x648] sm:$0xf]  ;;  %v12034_v11 = vld [vmem:[#allocation14 + $0x3ec] sm:$0xf] }
 0x3d8   : > { %6019 = vmatmul.bf16.vlgmr.msra.gmra.mxu1 %v14854_v6  ;;  %6032 = vmatmul.bf16.vlgmr.msra.gmra.mxu2 %v14859_v30  ;;  %v10790_v24 = vld [vmem:[#allocation14 + $0x748] sm:$0xf]  ;;  %v12144_v19 = vld [vmem:[#allocation14 + $0x754] sm:$0xf0] }
 0x3d9   : > { %6076 = vmatpush.bf16.msrb.mxu2 %v10743_v2  ;;  %6045 = vmatmul.bf16.vlgmr.msra.gmra.mxu3 %v14870_v21  ;;  %v10551_v2 = vor.u32 %v12084_v62, %v10550_v36  ;;  %v10390_v53 = vld [vmem:[#allocation14 + $0x428] sm:$0xf]  ;;  %v12044_v18 = vld [vmem:[#allocation14 + $0x434] sm:$0xf0]  ;;  %v12002_v36 = vld [vmem:[#allocation14 + $0x2ec] sm:$0xf] }
 0x3da   : > { %6089 = vmatpush.bf16.msrb.mxu3 %v10871_v10  ;;  %6051 = vmatpush.bf16.msrb.mxu0 %v10471_v47  ;;  %v10807_v10 = vor.u32 %v12148_v55, %v10806_v41  ;;  %v10407_v47 = vor.u32 %v12048_v43, %v10406_v34  ;;  %v10518_v5 = vld [vmem:[#allocation14 + $0x528] sm:$0xf]  ;;  %v12076_v31 = vld [vmem:[#allocation14 + $0x534] sm:$0xf0]  ;;  %v10391_v37 = vor.u32 %v12044_v18, %v10390_v53  ;;  %v10232_v62 = vld [vmem:[#allocation14 + $0x2f8] sm:$0xf0] }
 0x3db   : > { %6064 = vmatpush.bf16.msrb.mxu1 %v10599_v4  ;;  %v10535_v4 = vor.u32 %v12080_v14, %v10534_v52  ;;  %v10646_v15 = vld [vmem:[#allocation14 + $0x628] sm:$0xf]  ;;  %v12108_v48 = vld [vmem:[#allocation14 + $0x634] sm:$0xf0]  ;;  %v10519_v35 = vor.u32 %v12076_v31, %v10518_v5  ;;  %v10235_v34 = vor.u32 %v12002_v36, %v10232_v62  ;;  %v11934_v43 = vld [vmem:[#allocation14 + $0xcc] sm:$0xf] }
 0x3dc   : > { %v12140_v42 = vld [vmem:[#allocation14 + $0x734] sm:$0xf0]  ;;  %v10630_v22 = vld [vmem:[#allocation14 + $0x608] sm:$0xf]  ;;  %v11966_v52 = vld [vmem:[#allocation14 + $0x1cc] sm:$0xf] }
 0x3dd   : > { %6077 = vmatpush.bf16.msrb.mxu2 %v10727_v44  ;;  %v10663_v44 = vor.u32 %v12112_v39, %v10662_v1  ;;  %v12040_v45 = vld [vmem:[#allocation14 + $0x414] sm:$0xf0]  ;;  %v10758_v57 = vld [vmem:[#allocation14 + $0x708] sm:$0xf]  ;;  %v11998_v1 = vld [vmem:[#allocation14 + $0x2cc] sm:$0xf] }
 0x3de   : > { %6090 = vmatpush.bf16.msrb.mxu3 %v10855_v12  ;;  %6052 = vmatpush.bf16.msrb.mxu0 %v10455_v25  ;;  %v10791_v12 = vor.u32 %v12144_v19, %v10790_v24  ;;  %v10774_v25 = vld [vmem:[#allocation14 + $0x728] sm:$0xf]  ;;  %v12072_v20 = vld [vmem:[#allocation14 + $0x514] sm:$0xf0]  ;;  %v10216_v39 = vld [vmem:[#allocation14 + $0x2d8] sm:$0xf0] }
 0x3df   : > { %6065 = vmatpush.bf16.msrb.mxu1 %v10583_v50  ;;  %v10374_v50 = vld [vmem:[#allocation14 + $0x408] sm:$0xf]  ;;  %v12104_v8 = vld [vmem:[#allocation14 + $0x614] sm:$0xf0]  ;;  %v10775_v13 = vor.u32 %v12140_v42, %v10774_v25  ;;  %v10344_v24 = vld [vmem:[#allocation14 + $0x3d8] sm:$0xf0] }
 0x3e0   : > { %v10375_v61 = vor.u32 %v12040_v45, %v10374_v50  ;;  %v10631_v41 = vor.u32 %v12104_v8, %v10630_v22  ;;  %v15000_v19 = vld [vmem:[#allocation15] sm:$0xf]  ;;  %v11930_v53 = vld [vmem:[#allocation14 + $0xac] sm:$0xf]  ;;  %v9944_v5 = vld [vmem:[#allocation14 + $0xb8] sm:$0xf0] }
 0x3e1   : > { %6078 = vmatpush.bf16.msrb.mxu2 %v10711_v38  ;;  %v10502_v38 = vld [vmem:[#allocation14 + $0x508] sm:$0xf]  ;;  %v11962_v31 = vld [vmem:[#allocation14 + $0x1ac] sm:$0xf]  ;;  %v10200_v25 = vld [vmem:[#allocation14 + $0x2b8] sm:$0xf0]  ;;  %v9947_v45 = vor.u32 %v11930_v53, %v9944_v5 }
 0x3e2   : > { %6091 = vmatpush.bf16.msrb.mxu3 %v10839_v16  ;;  %6053 = vmatpush.bf16.msrb.mxu0 %v10439_v54  ;;  %v10647_v16 = vor.u32 %v12108_v48, %v10646_v15  ;;  %v9976_v54 = vld [vmem:[#allocation14 + $0xf8] sm:$0xf0]  ;;  %v11994_v48 = vld [vmem:[#allocation14 + $0x2ac] sm:$0xf] }
 0x3e3   : > { %6066 = vmatpush.bf16.msrb.mxu1 %v10567_v46  ;;  %v11970_v46 = vld [vmem:[#allocation14 + $0x1ec] sm:$0xf]  ;;  %v9979_v7 = vor.u32 %v11938_v58, %v9976_v54  ;;  %v10328_v50 = vld [vmem:[#allocation14 + $0x3b8] sm:$0xf0] }
 0x3e4   : > { %v10107_v55 = vor.u32 %v11970_v46, %v10104_v33  ;;  %v12026_v42 = vld [vmem:[#allocation14 + $0x3ac] sm:$0xf]  ;;  %v9928_v8 = vld [vmem:[#allocation14 + $0x98] sm:$0xf0] }
 0x3e5   : > { %6079 = vmatpush.bf16.msrb.mxu2 %v10695_v40  ;;  %v12136_v40 = vld [vmem:[#allocation14 + $0x714] sm:$0xf0]  ;;  %v11958_v58 = vld [vmem:[#allocation14 + $0x18c] sm:$0xf]  ;;  %v10331_v54 = vor.u32 %v12026_v42, %v10328_v50  ;;  %v10184_v33 = vld [vmem:[#allocation14 + $0x298] sm:$0xf0] }
 0x3e6   : > { %6092 = vmatpush.bf16.msrb.mxu3 %v10823_v27  ;;  %6054 = vmatpush.bf16.msrb.mxu0 %v10423_v49  ;;  %v10503_v27 = vor.u32 %v12072_v20, %v10502_v38  ;;  %v10360_v49 = vld [vmem:[#allocation14 + $0x3f8] sm:$0xf0]  ;;  %v10203_v38 = vor.u32 %v11994_v48, %v10200_v25  ;;  %v11990_v46 = vld [vmem:[#allocation14 + $0x28c] sm:$0xf] }
 0x3e7   : > { %6067 = vmatpush.bf16.msrb.mxu1 %v10551_v2  ;;  %v10759_v2 = vor.u32 %v12136_v40, %v10758_v57  ;;  %v10363_v14 = vor.u32 %v12034_v11, %v10360_v49  ;;  %v10056_v57 = vld [vmem:[#allocation14 + $0x198] sm:$0xf0]  ;;  %v11922_v11 = vld [vmem:[#allocation14 + $0x6c] sm:$0xf] }
 0x3e8   : > { %v10312_v40 = vld [vmem:[#allocation14 + $0x398] sm:$0xf0]  ;;  %v12014_v48 = vld [vmem:[#allocation14 + $0x34c] sm:$0xf] }
 0x3e9   : > { %6080 = vmatpush.bf16.msrb.mxu2 %v10679_v17  ;;  %v9960_v17 = vld [vmem:[#allocation14 + $0xd8] sm:$0xf0] }
 0x3ea   : > { %6093 = vmatpush.bf16.msrb.mxu3 %v10807_v10  ;;  %6055 = vmatpush.bf16.msrb.mxu0 %v10407_v47  ;;  %v10088_v10 = vld [vmem:[#allocation14 + $0x1d8] sm:$0xf0]  ;;  %v12030_v47 = vld [vmem:[#allocation14 + $0x3cc] sm:$0xf] }
 0x3eb   : > { %6068 = vmatpush.bf16.msrb.mxu1 %v10535_v4  ;;  %v9963_v4 = vor.u32 %v11934_v43, %v9960_v17  ;;  %v10091_v18 = vor.u32 %v11966_v52, %v10088_v10  ;;  %v10347_v15 = vor.u32 %v12030_v47, %v10344_v24  ;;  %v9912_v49 = vld [vmem:[#allocation14 + $0x78] sm:$0xf0]  ;;  %v12018_v17 = vld [vmem:[#allocation14 + $0x36c] sm:$0xf] }
 0x3ec   : > { %v10168_v43 = vld [vmem:[#allocation14 + $0x278] sm:$0xf0]  ;;  %v9915_v10 = vor.u32 %v11922_v11, %v9912_v49  ;;  %v11974_v49 = vld [vmem:[#allocation14 + $0x20c] sm:$0xf] }
 0x3ed   : > { %6081 = vmatpush.bf16.msrb.mxu2 %v10663_v44  ;;  %v10219_v44 = vor.u32 %v11998_v1, %v10216_v39  ;;  %v10296_v52 = vld [vmem:[#allocation14 + $0x378] sm:$0xf0] }
 0x3ee   : > { %6094 = vmatpush.bf16.msrb.mxu3 %v10791_v12  ;;  %6056 = vmatpush.bf16.msrb.mxu0 %v10391_v37  ;;  %v10072_v12 = vld [vmem:[#allocation14 + $0x1b8] sm:$0xf0]  ;;  %v4502_v37 = vperm.slane %v15000_v19, 0 }
 0x3ef   : > { %6069 = vmatpush.bf16.msrb.mxu1 %v10519_v35  ;;  %v10075_v35 = vor.u32 %v11962_v31, %v10072_v12  ;;  %v9896_v53 = vld [vmem:[#allocation14 + $0x58] sm:$0xf0]  ;;  %v11982_v12 = vld [vmem:[#allocation14 + $0x24c] sm:$0xf] }
 0x3f0   : > { %v5799_v20 = vpop.f32.mrf.mxu0  ;;  %v5812_v22 = vpop.f32.mrf.mxu1  ;;  %v10024_v31 = vld [vmem:[#allocation14 + $0x158] sm:$0xf0] }
 0x3f1   : > { %6082 = vmatpush.bf16.msrb.mxu2 %v10647_v16  ;;  %v11926_v16 = vld [vmem:[#allocation14 + $0x8c] sm:$0xf]  ;;  %v10280_v25 = vld [vmem:[#allocation14 + $0x358] sm:$0xf0] }
 0x3f2   : > { %6095 = vmatpush.bf16.msrb.mxu3 %v10775_v13  ;;  %6057 = vmatpush.bf16.msrb.mxu0 %v10375_v61  ;;  %v5800_v13 = vadd.f32 %v5799_v20, %v4502_v37  ;;  %v12022_v61 = vld [vmem:[#allocation14 + $0x38c] sm:$0xf]  ;;  %v9931_v62 = vor.u32 %v11926_v16, %v9928_v8  ;;  %v10283_v20 = vor.u32 %v12014_v48, %v10280_v25  ;;  %v10136_v8 = vld [vmem:[#allocation14 + $0x238] sm:$0xf0] }
 0x3f3   : > { %6070 = vmatpush.bf16.msrb.mxu1 %v10503_v27  ;;  %v10059_v27 = vor.u32 %v11958_v58, %v10056_v57  ;;  %v11978_v16 = vld [vmem:[#allocation14 + $0x22c] sm:$0xf]  ;;  %v9992_v11 = vld [vmem:[#allocation14 + $0x118] sm:$0xf0] }
 0x3f4   : > { %v15007_v36 = vadd.f32 %v5812_v22, %v5800_v13  ;;  %v10008_v22 = vld [vmem:[#allocation14 + $0x138] sm:$0xf0]  ;;  %v12010_v58 = vld [vmem:[#allocation14 + $0x32c] sm:$0xf] }
 0x3f5   : > { %6083 = vmatpush.bf16.msrb.mxu2 %v10631_v41  ;;  %6058 = vmatmul.bf16.vlgmr.msrb.gmra.mxu0 %v14958_v26  ;;  %v11954_v41 = vld [vmem:[#allocation14 + $0x16c] sm:$0xf] }
 0x3f6   : > { %6102 = vmatpush.bf16.msra.mxu0 %v9979_v7  ;;  %6096 = vmatpush.bf16.msrb.mxu3 %v10759_v2  ;;  %v10187_v7 = vor.u32 %v11990_v46, %v10184_v33  ;;  %v10040_v2 = vld [vmem:[#allocation14 + $0x178] sm:$0xf0]  ;;  %v11910_v46 = vld [vmem:[#allocation14 + $0xc] sm:$0xf] }
 0x3f7   : > { %6115 = vmatpush.bf16.msra.mxu1 %v10107_v55  ;;  %v10315_v55 = vor.u32 %v12022_v61, %v10312_v40  ;;  %v10043_v39 = vor.u32 %v11954_v41, %v10040_v2  ;;  %v9864_v33 = vld [vmem:[#allocation14 + $0x18] sm:$0xf0]  ;;  %v12006_v2 = vld [vmem:[#allocation14 + $0x30c] sm:$0xf] }
 0x3f8   : > { %6071 = vmatmul.bf16.vlgmr.msrb.gmra.mxu1 %v14974_v23  ;;  %6084 = vmatmul.bf16.vlgmr.msrb.gmra.mxu2 %v14982_v56  ;;  %v5801_v24 = vpop.f32.mrf.mxu0  ;;  %v5814_v5 = vpop.f32.mrf.mxu1  ;;  %v12062_v25 = vld [vmem:[#allocation14 + $0x4cc] sm:$0xf] }
 0x3f9   : > { %6128 = vmatpush.bf16.msra.mxu2 %v10235_v34  ;;  %6097 = vmatmul.bf16.vlgmr.msrb.gmra.mxu3 %v14985_v0  ;;  %v11986_v34 = vld [vmem:[#allocation14 + $0x26c] sm:$0xf]  ;;  %v15011_v1 = vpop.f32.mrf.mxu3  ;;  %v10872_v5 = vld [vmem:[#allocation14 + $0x7f8] sm:$0xf0] }
 0x3fa   : > { %6141 = vmatpush.bf16.msra.mxu3 %v10363_v14  ;;  %6103 = vmatpush.bf16.msra.mxu0 %v9963_v4  ;;  %v15009_v14 = vpop.f32.mrf.mxu2  ;;  %v10171_v47 = vor.u32 %v11986_v34, %v10168_v43  ;;  %v11918_v4 = vld [vmem:[#allocation14 + $0x4c] sm:$0xf]  ;;  %v10248_v34 = vld [vmem:[#allocation14 + $0x318] sm:$0xf0] }
 0x3fb   : > { %6116 = vmatpush.bf16.msra.mxu1 %v10091_v18  ;;  %v11950_v18 = vld [vmem:[#allocation14 + $0x14c] sm:$0xf]  ;;  %v9899_v37 = vor.u32 %v11918_v4, %v9896_v53  ;;  %v10744_v4 = vld [vmem:[#allocation14 + $0x6f8] sm:$0xf0] }
 0x3fc   : > { %v10027_v42 = vor.u32 %v11950_v18, %v10024_v31  ;;  %v12066_v43 = vld [vmem:[#allocation14 + $0x4ec] sm:$0xf]  ;;  %v10251_v31 = vor.u32 %v12006_v2, %v10248_v34  ;;  %v10440_v34 = vld [vmem:[#allocation14 + $0x498] sm:$0xf0] }
 0x3fd   : > { %6129 = vmatpush.bf16.msra.mxu2 %v10219_v44  ;;  %v10299_v44 = vor.u32 %v12018_v17, %v10296_v52  ;;  %v10488_v17 = vld [vmem:[#allocation14 + $0x4f8] sm:$0xf0]  ;;  %v12098_v52 = vld [vmem:[#allocation14 + $0x5ec] sm:$0xf] }
 0x3fe   : > { %6142 = vmatpush.bf16.msra.mxu3 %v10347_v15  ;;  %6104 = vmatpush.bf16.msra.mxu0 %v9947_v45  ;;  %v10152_v15 = vld [vmem:[#allocation14 + $0x258] sm:$0xf0]  ;;  %v11914_v45 = vld [vmem:[#allocation14 + $0x2c] sm:$0xf] }
 0x3ff   : > { %6117 = vmatpush.bf16.msra.mxu1 %v10075_v35  ;;  %v10155_v50 = vor.u32 %v11982_v12, %v10152_v15  ;;  %v9880_v35 = vld [vmem:[#allocation14 + $0x38] sm:$0xf0]  ;;  %v12130_v24 = vld [vmem:[#allocation14 + $0x6ec] sm:$0xf]  ;;  %v10491_v12 = vor.u32 %v12066_v43, %v10488_v17 }
 0x400   : > { %v9883_v57 = vor.u32 %v11914_v45, %v9880_v35  ;;  %v10747_v48 = vor.u32 %v12130_v24, %v10744_v4  ;;  %v10600_v45 = vld [vmem:[#allocation14 + $0x5d8] sm:$0xf0]  ;;  %v12126_v35 = vld [vmem:[#allocation14 + $0x6cc] sm:$0xf] }
 0x401   : > { %6130 = vmatpush.bf16.msra.mxu2 %v10203_v38  ;;  %v11946_v38 = vld [vmem:[#allocation14 + $0x12c] sm:$0xf]  ;;  %v5840_v61 = vpop.f32.mrf.mxu3 }
 0x402   : > { %6143 = vmatpush.bf16.msra.mxu3 %v10331_v54  ;;  %6105 = vmatpush.bf16.msra.mxu0 %v9931_v62  ;;  %v10264_v54 = vld [vmem:[#allocation14 + $0x338] sm:$0xf0]  ;;  %v5827_v13 = vpop.f32.mrf.mxu2  ;;  %v10011_v40 = vor.u32 %v11946_v38, %v10008_v22  ;;  %v10139_v62 = vor.u32 %v11978_v16, %v10136_v8  ;;  %v12158_v22 = vld [vmem:[#allocation14 + $0x7cc] sm:$0xf] }
 0x403   : > { %6118 = vmatpush.bf16.msra.mxu1 %v10059_v27  ;;  %v15013_v27 = vpop.f32.mrf.mxu0  ;;  %v10267_v41 = vor.u32 %v12010_v58, %v10264_v54  ;;  %v10728_v38 = vld [vmem:[#allocation14 + $0x6d8] sm:$0xf0]  ;;  %v12058_v13 = vld [vmem:[#allocation14 + $0x4ac] sm:$0xf] }
 0x404   : > { %v10856_v16 = vld [vmem:[#allocation14 + $0x7d8] sm:$0xf0]  ;;  %v10731_v54 = vor.u32 %v12126_v35, %v10728_v38  ;;  %v12086_v43 = vld [vmem:[#allocation14 + $0x58c] sm:$0xf] }
 0x405   : > { %6131 = vmatpush.bf16.msra.mxu2 %v10187_v7  ;;  %v11942_v7 = vld [vmem:[#allocation14 + $0x10c] sm:$0xf]  ;;  %v10859_v61 = vor.u32 %v12158_v22, %v10856_v16  ;;  %v10408_v22 = vld [vmem:[#allocation14 + $0x458] sm:$0xf0] }
 0x406   : > { %6144 = vmatpush.bf16.msra.mxu3 %v10315_v55  ;;  %6106 = vmatpush.bf16.msra.mxu0 %v9915_v10  ;;  %v10120_v55 = vld [vmem:[#allocation14 + $0x218] sm:$0xf0]  ;;  %v15015_v10 = vpop.f32.mrf.mxu1  ;;  %v9995_v53 = vor.u32 %v11942_v7, %v9992_v11  ;;  %v12154_v11 = vld [vmem:[#allocation14 + $0x7ac] sm:$0xf] }
 0x407   : > { %6119 = vmatpush.bf16.msra.mxu1 %v10043_v39  ;;  %v9867_v39 = vor.u32 %v11910_v46, %v9864_v33  ;;  %v10123_v18 = vor.u32 %v11974_v49, %v10120_v55  ;;  %v12090_v46 = vld [vmem:[#allocation14 + $0x5ac] sm:$0xf]  ;;  %v10712_v7 = vld [vmem:[#allocation14 + $0x6b8] sm:$0xf0] }
 0x408   : > { %v10840_v49 = vld [vmem:[#allocation14 + $0x7b8] sm:$0xf0]  ;;  %v12078_v16 = vld [vmem:[#allocation14 + $0x54c] sm:$0xf] }
 0x409   : > { %6132 = vmatpush.bf16.msra.mxu2 %v10171_v47  ;;  %v10616_v47 = vld [vmem:[#allocation14 + $0x5f8] sm:$0xf0]  ;;  %v10843_v17 = vor.u32 %v12154_v11, %v10840_v49  ;;  %v12042_v49 = vld [vmem:[#allocation14 + $0x42c] sm:$0xf] }
 0x40a   : > { %6145 = vmatpush.bf16.msra.mxu3 %v10299_v44  ;;  %6107 = vmatpush.bf16.msra.mxu0 %v9899_v37  ;;  %v12162_v44 = vld [vmem:[#allocation14 + $0x7ec] sm:$0xf]  ;;  %v10619_v15 = vor.u32 %v12098_v52, %v10616_v47  ;;  %v10472_v37 = vld [vmem:[#allocation14 + $0x4d8] sm:$0xf0] }
 0x40b   : > { %6120 = vmatpush.bf16.msra.mxu1 %v10027_v42  ;;  %v12094_v42 = vld [vmem:[#allocation14 + $0x5cc] sm:$0xf]  ;;  %v10475_v8 = vor.u32 %v12062_v25, %v10472_v37  ;;  %v10568_v52 = vld [vmem:[#allocation14 + $0x598] sm:$0xf0] }
 0x40c   : > { %v10603_v58 = vor.u32 %v12094_v42, %v10600_v45  ;;  %v12150_v47 = vld [vmem:[#allocation14 + $0x78c] sm:$0xf]  ;;  %v10680_v37 = vld [vmem:[#allocation14 + $0x678] sm:$0xf0] }
 0x40d   : > { %6133 = vmatpush.bf16.msra.mxu2 %v10155_v50  ;;  %v10875_v50 = vor.u32 %v12162_v44, %v10872_v5  ;;  %v12050_v44 = vld [vmem:[#allocation14 + $0x46c] sm:$0xf]  ;;  %v10424_v5 = vld [vmem:[#allocation14 + $0x478] sm:$0xf0] }
 0x40e   : > { %6146 = vmatpush.bf16.msra.mxu3 %v10283_v20  ;;  %6108 = vmatpush.bf16.msra.mxu0 %v9883_v57  ;;  %v5853_v20 = vpop.f32.mrf.mxu0  ;;  %v10456_v57 = vld [vmem:[#allocation14 + $0x4b8] sm:$0xf0]  ;;  %v5866_v33 = vpop.f32.mrf.mxu1  ;;  %v12114_v25 = vld [vmem:[#allocation14 + $0x66c] sm:$0xf]  ;;  %v10427_v45 = vor.u32 %v12050_v44, %v10424_v5 }
 0x40f   : > { %6121 = vmatpush.bf16.msra.mxu1 %v10011_v40  ;;  %v10584_v40 = vld [vmem:[#allocation14 + $0x5b8] sm:$0xf0]  ;;  %v12146_v42 = vld [vmem:[#allocation14 + $0x76c] sm:$0xf]  ;;  %v10683_v38 = vor.u32 %v12114_v25, %v10680_v37 }
 0x410   : > { %v10587_v55 = vor.u32 %v12090_v46, %v10584_v40  ;;  %v12046_v20 = vld [vmem:[#allocation14 + $0x44c] sm:$0xf]  ;;  %v10792_v33 = vld [vmem:[#allocation14 + $0x758] sm:$0xf0] }
 0x411   : > { %6134 = vmatpush.bf16.msra.mxu2 %v10139_v62  ;;  %v12122_v62 = vld [vmem:[#allocation14 + $0x6ac] sm:$0xf]  ;;  %v10411_v40 = vor.u32 %v12046_v20, %v10408_v22  ;;  %v10504_v44 = vld [vmem:[#allocation14 + $0x518] sm:$0xf0] }
 0x412   : > { %6147 = vmatpush.bf16.msra.mxu3 %v10267_v41  ;;  %6109 = vmatpush.bf16.msra.mxu0 %v9867_v39  ;;  %v10459_v41 = vor.u32 %v12058_v13, %v10456_v57  ;;  %v10715_v2 = vor.u32 %v12122_v62, %v10712_v7  ;;  %v12118_v39 = vld [vmem:[#allocation14 + $0x68c] sm:$0xf]  ;;  %v10664_v13 = vld [vmem:[#allocation14 + $0x658] sm:$0xf0] }
 0x413   : > { %6122 = vmatpush.bf16.msra.mxu1 %v9995_v53  ;;  %v15023_v4 = vpop.f32.mrf.mxu2  ;;  %v10571_v53 = vor.u32 %v12086_v43, %v10568_v52  ;;  %v12142_v46 = vld [vmem:[#allocation14 + $0x74c] sm:$0xf]  ;;  %v10760_v37 = vld [vmem:[#allocation14 + $0x718] sm:$0xf0] }
 0x414   : > { %v12106_v43 = vld [vmem:[#allocation14 + $0x62c] sm:$0xf] }
 0x415   : > { %6135 = vmatpush.bf16.msra.mxu2 %v10123_v18  ;;  %6110 = vmatmul.bf16.vlgmr.msra.gmra.mxu0 %v14852_v28  ;;  %v12054_v28 = vld [vmem:[#allocation14 + $0x48c] sm:$0xf] }
 0x416   : > { %6148 = vmatpush.bf16.msra.mxu3 %v10251_v31  ;;  %6154 = vmatpush.bf16.msrb.mxu0 %v10491_v12  ;;  %v15021_v24 = vpop.f32.mrf.mxu0  ;;  %v12082_v31 = vld [vmem:[#allocation14 + $0x56c] sm:$0xf]  ;;  %v15025_v12 = vpop.f32.mrf.mxu1 }
 0x417   : > { %6167 = vmatpush.bf16.msrb.mxu1 %v10619_v15  ;;  %v12138_v52 = vld [vmem:[#allocation14 + $0x72c] sm:$0xf] }
 0x418   : > { %6123 = vmatmul.bf16.vlgmr.msra.gmra.mxu1 %v14854_v6  ;;  %6136 = vmatmul.bf16.vlgmr.msra.gmra.mxu2 %v14859_v30  ;;  %v10696_v6 = vld [vmem:[#allocation14 + $0x698] sm:$0xf0] }
 0x419   : > { %6180 = vmatpush.bf16.msrb.mxu2 %v10747_v48  ;;  %6149 = vmatmul.bf16.vlgmr.msra.gmra.mxu3 %v14870_v21  ;;  %v10824_v30 = vld [vmem:[#allocation14 + $0x798] sm:$0xf0]  ;;  %v10443_v21 = vor.u32 %v12054_v28, %v10440_v34  ;;  %v10699_v18 = vor.u32 %v12118_v39, %v10696_v6  ;;  %v10795_v28 = vor.u32 %v12142_v46, %v10792_v33  ;;  %v10926_v46 = vld [vmem:[#allocation17 + $0x60] sm:$0xf]  ;;  %v12178_v33 = vld [vmem:[#allocation17 + $0x64] sm:$0xf0] }
 0x41a   : > { %6193 = vmatpush.bf16.msrb.mxu3 %v10875_v50  ;;  %6155 = vmatpush.bf16.msrb.mxu0 %v10475_v8  ;;  %v10827_v15 = vor.u32 %v12150_v47, %v10824_v30  ;;  %v10552_v48 = vld [vmem:[#allocation14 + $0x578] sm:$0xf0]  ;;  %v12038_v47 = vld [vmem:[#allocation14 + $0x40c] sm:$0xf] }
 0x41b   : > { %6168 = vmatpush.bf16.msrb.mxu1 %v10603_v58  ;;  %v10808_v50 = vld [vmem:[#allocation14 + $0x778] sm:$0xf0]  ;;  %v10555_v35 = vor.u32 %v12082_v31, %v10552_v48  ;;  %v15027_v57 = vpop.f32.mrf.mxu3  ;;  %v5879_v62 = vpop.f32.mrf.mxu2  ;;  %v12102_v31 = vld [vmem:[#allocation14 + $0x60c] sm:$0xf] }
 0x41c   : > { %v10811_v8 = vor.u32 %v12146_v42, %v10808_v50  ;;  %v10536_v58 = vld [vmem:[#allocation14 + $0x558] sm:$0xf0]  ;;  %v12134_v48 = vld [vmem:[#allocation14 + $0x70c] sm:$0xf]  ;;  %v10934_v42 = vld [vmem:[#allocation17 + $0x70] sm:$0xf] }
 0x41d   : > { %6181 = vmatpush.bf16.msrb.mxu2 %v10731_v54  ;;  %v12110_v54 = vld [vmem:[#allocation14 + $0x64c] sm:$0xf]  ;;  %v10539_v7 = vor.u32 %v12078_v16, %v10536_v58  ;;  %v10520_v34 = vld [vmem:[#allocation14 + $0x538] sm:$0xf0]  ;;  %v10763_v58 = vor.u32 %v12134_v48, %v10760_v37 }
 0x41e   : > { %6194 = vmatpush.bf16.msrb.mxu3 %v10859_v61  ;;  %6156 = vmatpush.bf16.msrb.mxu0 %v10459_v41  ;;  %v5905_v61 = vpop.f32.mrf.mxu0  ;;  %v10667_v11 = vor.u32 %v12110_v54, %v10664_v13  ;;  %v10392_v41 = vld [vmem:[#allocation14 + $0x438] sm:$0xf0]  ;;  %v12210_v37 = vld [vmem:[#allocation17 + $0x164] sm:$0xf0] }
 0x41f   : > { %6169 = vmatpush.bf16.msrb.mxu1 %v10587_v55  ;;  %v12074_v55 = vld [vmem:[#allocation14 + $0x52c] sm:$0xf]  ;;  %v10776_v39 = vld [vmem:[#allocation14 + $0x738] sm:$0xf0]  ;;  %v10395_v6 = vor.u32 %v12042_v49, %v10392_v41  ;;  %v10990_v61 = vld [vmem:[#allocation17 + $0xe0] sm:$0xf] }
 0x420   : > { %v10523_v30 = vor.u32 %v12074_v55, %v10520_v34  ;;  %v10779_v5 = vor.u32 %v12138_v52, %v10776_v39  ;;  %v12180_v50 = vld [vmem:[#allocation17 + $0x74] sm:$0xf0]  ;;  %v10918_v41 = vld [vmem:[#allocation17 + $0x50] sm:$0xf]  ;;  %v10910_v52 = vld [vmem:[#allocation17 + $0x40] sm:$0xf] }
 0x421   : > { %6182 = vmatpush.bf16.msrb.mxu2 %v10715_v2  ;;  %v5918_v2 = vpop.f32.mrf.mxu1  ;;  %v10935_v54 = vor.u32 %v12180_v50, %v10934_v42  ;;  %v12176_v55 = vld [vmem:[#allocation17 + $0x54] sm:$0xf0]  ;;  %v12174_v39 = vld [vmem:[#allocation17 + $0x44] sm:$0xf0] }
 0x422   : > { %6195 = vmatpush.bf16.msrb.mxu3 %v10843_v17  ;;  %6157 = vmatpush.bf16.msrb.mxu0 %v10443_v21  ;;  %v10648_v17 = vld [vmem:[#allocation14 + $0x638] sm:$0xf0]  ;;  %v10982_v2 = vld [vmem:[#allocation17 + $0xd0] sm:$0xf] }
 0x423   : > { %6170 = vmatpush.bf16.msrb.mxu1 %v10571_v53  ;;  %v10651_v21 = vor.u32 %v12106_v43, %v10648_v17  ;;  %v10376_v53 = vld [vmem:[#allocation14 + $0x418] sm:$0xf0]  ;;  %v5892_v25 = vpop.f32.mrf.mxu3  ;;  %v5929_v20 = vpop.f32.mrf.mxu2  ;;  %v10919_v43 = vor.u32 %v12176_v55, %v10918_v41  ;;  %v5826_v17 = vadd.f32 %v15009_v14, %v15007_v36  ;;  %v10966_v14 = vld [vmem:[#allocation17 + $0xb0] sm:$0xf] }
 0x424   : > { %v12172_v36 = vld [vmem:[#allocation17 + $0x34] sm:$0xf0]  ;;  %v11054_v25 = vld [vmem:[#allocation17 + $0x160] sm:$0xf]  ;;  %v10950_v41 = vld [vmem:[#allocation17 + $0x90] sm:$0xf] }
 0x425   : > { %6183 = vmatpush.bf16.msrb.mxu2 %v10699_v18  ;;  %v12070_v18 = vld [vmem:[#allocation14 + $0x50c] sm:$0xf]  ;;  %v12188_v48 = vld [vmem:[#allocation17 + $0xb4] sm:$0xf0]  ;;  %v11055_v50 = vor.u32 %v12210_v37, %v11054_v25  ;;  %v11022_v37 = vld [vmem:[#allocation17 + $0x120] sm:$0xf] }
 0x426   : > { %6196 = vmatpush.bf16.msrb.mxu3 %v10827_v15  ;;  %6158 = vmatpush.bf16.msrb.mxu0 %v10427_v45  ;;  %v10632_v15 = vld [vmem:[#allocation14 + $0x618] sm:$0xf0]  ;;  %v10379_v45 = vor.u32 %v12038_v47, %v10376_v53  ;;  %v10507_v22 = vor.u32 %v12070_v18, %v10504_v44  ;;  %v12190_v47 = vld [vmem:[#allocation17 + $0xc4] sm:$0xf0]  ;;  %v11062_v53 = vld [vmem:[#allocation17 + $0x170] sm:$0xf] }
 0x427   : > { %6171 = vmatpush.bf16.msrb.mxu1 %v10555_v35  ;;  %v10998_v35 = vld [vmem:[#allocation17 + $0xf0] sm:$0xf]  ;;  %v10635_v16 = vor.u32 %v12102_v31, %v10632_v15 }
 0x429   : > { %6184 = vmatpush.bf16.msrb.mxu2 %v10683_v38  ;;  %v12196_v38 = vld [vmem:[#allocation17 + $0xf4] sm:$0xf0] }
 0x42a   : > { %6197 = vmatpush.bf16.msrb.mxu3 %v10811_v8  ;;  %6159 = vmatpush.bf16.msrb.mxu0 %v10411_v40  ;;  %v4503_v8 = vperm.slane %v15000_v19, 1  ;;  %v10999_v13 = vor.u32 %v12196_v38, %v10998_v35  ;;  %v12194_v40 = vld [vmem:[#allocation17 + $0xe4] sm:$0xf0]  ;;  %v10894_v38 = vld [vmem:[#allocation17 + $0x20] sm:$0xf] }
 0x42b   : > { %6172 = vmatpush.bf16.msrb.mxu1 %v10539_v7  ;;  %v10927_v7 = vor.u32 %v12178_v33, %v10926_v46  ;;  %v10991_v49 = vor.u32 %v12194_v40, %v10990_v61  ;;  %v5931_v34 = vpop.f32.mrf.mxu2  ;;  %v11046_v33 = vld [vmem:[#allocation17 + $0x150] sm:$0xf]  ;;  %v12208_v61 = vld [vmem:[#allocation17 + $0x154] sm:$0xf0] }
 0x42c   : > { %v5904_v62 = vadd.f32 %v15021_v24, %v4503_v8  ;;  %v11047_v55 = vor.u32 %v12208_v61, %v11046_v33  ;;  %v12206_v34 = vld [vmem:[#allocation17 + $0x144] sm:$0xf0]  ;;  %v11006_v33 = vld [vmem:[#allocation17 + $0x100] sm:$0xf] }
 0x42d   : > { %6185 = vmatpush.bf16.msrb.mxu2 %v10667_v11  ;;  %v5942_v11 = vpop.f32.mrf.mxu3  ;;  %v12198_v61 = vld [vmem:[#allocation17 + $0x104] sm:$0xf0] }
 0x42e   : > { %6198 = vmatpush.bf16.msrb.mxu3 %v10795_v28  ;;  %6160 = vmatpush.bf16.msrb.mxu0 %v10395_v6  ;;  %v12192_v28 = vld [vmem:[#allocation17 + $0xd4] sm:$0xf0]  ;;  %v5917_v24 = vadd.f32 %v15025_v12, %v5904_v62  ;;  %v5839_v12 = vadd.f32 %v15011_v1, %v5826_v17  ;;  %v10967_v1 = vor.u32 %v12188_v48, %v10966_v14  ;;  %v10878_v17 = vld [vmem:[#allocation17] sm:$0xf] }
 0x42f   : > { %6173 = vmatpush.bf16.msrb.mxu1 %v10523_v30 }
 0x430   : > { %v5930_v6 = vadd.f32 %v5929_v20, %v5917_v24  ;;  %v5852_v42 = vadd.f32 %v15013_v27, %v5839_v12  ;;  %v12170_v20 = vld [vmem:[#allocation17 + $0x24] sm:$0xf0]  ;;  %v11000_v12 = vld [vmem:[#allocation17 + $0xf8] sm:$0xf0] }
 0x431   : > { %6186 = vmatpush.bf16.msrb.mxu2 %v10651_v21  ;;  %v10911_v21 = vor.u32 %v12174_v39, %v10910_v52  ;;  %v10895_v27 = vor.u32 %v12170_v20, %v10894_v38  ;;  %v10942_v39 = vld [vmem:[#allocation17 + $0x80] sm:$0xf]  ;;  %v11014_v20 = vld [vmem:[#allocation17 + $0x110] sm:$0xf] }
 0x432   : > { %6199 = vmatpush.bf16.msrb.mxu3 %v10779_v5  ;;  %6161 = vmatpush.bf16.msrb.mxu0 %v10379_v45  ;;  %v10902_v5 = vld [vmem:[#allocation17 + $0x30] sm:$0xf]  ;;  %v5943_v15 = vadd.f32 %v5942_v11, %v5930_v6  ;;  %v5865_v8 = vadd.f32 %v15015_v10, %v5852_v42  ;;  %v12184_v10 = vld [vmem:[#allocation17 + $0x94] sm:$0xf0]  ;;  %v12182_v6 = vld [vmem:[#allocation17 + $0x84] sm:$0xf0] }
 0x433   : > { %6174 = vmatpush.bf16.msrb.mxu1 %v10507_v22  ;;  %v10903_v35 = vor.u32 %v12172_v36, %v10902_v5  ;;  %v10958_v22 = vld [vmem:[#allocation17 + $0xa0] sm:$0xf]  ;;  %v10886_v11 = vld [vmem:[#allocation17 + $0x10] sm:$0xf]  ;;  %v12202_v42 = vld [vmem:[#allocation17 + $0x124] sm:$0xf0] }
 0x434   : > { %v5878_v40 = vadd.f32 %v15023_v4, %v5865_v8  ;;  %v10951_v4 = vor.u32 %v12184_v10, %v10950_v41  ;;  %v10976_v41 = vld [vmem:[#allocation17 + $0xc8] sm:$0xf0] }
 0x435   : > { %6187 = vmatpush.bf16.msrb.mxu2 %v10635_v16  ;;  %6162 = vmatmul.bf16.vlgmr.msrb.gmra.mxu0 %v14958_v26  ;;  %v10983_v26 = vor.u32 %v12192_v28, %v10982_v2  ;;  %v5968_v30 = vpop.f32.mrf.mxu1  ;;  %v5944_v18 = vpop.f32.mrf.mxu3  ;;  %v12186_v16 = vld [vmem:[#allocation17 + $0xa4] sm:$0xf0]  ;;  %v11038_v28 = vld [vmem:[#allocation17 + $0x140] sm:$0xf] }
 0x436   : > { %6200 = vmatpush.bf16.msrb.mxu3 %v10763_v58  ;;  %6604 = vmatpush.bf16.msra.mxu0 %v10935_v54  ;;  %v11039_v24 = vor.u32 %v12206_v34, %v11038_v28  ;;  %v5891_v52 = vadd.f32 %v15027_v57, %v5878_v40  ;;  %v10943_v57 = vor.u32 %v12182_v6, %v10942_v39  ;;  %v12171_v28 = vld [vmem:[#allocation17 + $0x34] sm:$0xf]  ;;  %v10904_v34 = vld [vmem:[#allocation17 + $0x38] sm:$0xf0] }
 0x437   : > { %6617 = vmatpush.bf16.msra.mxu1 %v10999_v13  ;;  %v10968_v39 = vld [vmem:[#allocation17 + $0xb8] sm:$0xf0] }
 0x438   : > { %6175 = vmatmul.bf16.vlgmr.msrb.gmra.mxu1 %v14974_v23  ;;  %6188 = vmatmul.bf16.vlgmr.msrb.gmra.mxu2 %v14982_v56  ;;  %v10974_v23 = vld [vmem:[#allocation17 + $0xc0] sm:$0xf]  ;;  %v5955_v56 = vpop.f32.mrf.mxu0  ;;  %v6206_v5 = vmax.f32 %v5891_v52, 0.0  ;;  %v12209_v52 = vld [vmem:[#allocation17 + $0x164] sm:$0xf] }
 0x439   : > { %6201 = vmatmul.bf16.vlgmr.msrb.gmra.mxu3 %v14985_v0  ;;  %v12212_v0 = vld [vmem:[#allocation17 + $0x174] sm:$0xf0]  ;;  %v10975_v44 = vor.u32 %v12190_v47, %v10974_v23  ;;  %v5956_v45 = vadd.f32 %v5955_v56, %v5943_v15  ;;  %v12179_v23 = vld [vmem:[#allocation17 + $0x74] sm:$0xf]  ;;  %v10936_v56 = vld [vmem:[#allocation17 + $0x78] sm:$0xf0] }
 0x43a   : > { %6605 = vmatpush.bf16.msra.mxu0 %v10927_v7  ;;  %v11063_v31 = vor.u32 %v12212_v0, %v11062_v53  ;;  %v10959_v7 = vor.u32 %v12186_v16, %v10958_v22  ;;  %v12195_v0 = vld [vmem:[#allocation17 + $0xf4] sm:$0xf]  ;;  %v10939_v14 = vor.u32 %v12179_v23, %v10936_v56  ;;  %v10928_v15 = vld [vmem:[#allocation17 + $0x68] sm:$0xf0]  ;;  %v12200_v22 = vld [vmem:[#allocation17 + $0x114] sm:$0xf0] }
 0x43b   : > { %6618 = vmatpush.bf16.msra.mxu1 %v10991_v49  ;;  %v5981_v58 = vpop.f32.mrf.mxu2  ;;  %v5969_v13 = vadd.f32 %v5968_v30, %v5956_v45  ;;  %v12168_v49 = vld [vmem:[#allocation17 + $0x14] sm:$0xf0]  ;;  %v11030_v30 = vld [vmem:[#allocation17 + $0x130] sm:$0xf]  ;;  %v11003_v25 = vor.u32 %v12195_v0, %v11000_v12  ;;  %v10992_v45 = vld [vmem:[#allocation17 + $0xe8] sm:$0xf0] }
 0x43c   : > { %6630 = vmatpush.bf16.msra.mxu2 %v11063_v31  ;;  %v12177_v31 = vld [vmem:[#allocation17 + $0x64] sm:$0xf]  ;;  %v11056_v23 = vld [vmem:[#allocation17 + $0x168] sm:$0xf0] }
 0x43d   : > { %v5970_v46 = vpop.f32.mrf.mxu1  ;;  %v5994_v62 = vpop.f32.mrf.mxu3  ;;  %v5982_v2 = vadd.f32 %v5981_v58, %v5969_v13  ;;  %v10931_v38 = vor.u32 %v12177_v31, %v10928_v15  ;;  %v12175_v58 = vld [vmem:[#allocation17 + $0x54] sm:$0xf]  ;;  %v11059_v56 = vor.u32 %v12209_v52, %v11056_v23  ;;  %v12185_v0 = vld [vmem:[#allocation17 + $0xa4] sm:$0xf]  ;;  %v10960_v12 = vld [vmem:[#allocation17 + $0xa8] sm:$0xf0] }
 0x43e   : > { %6606 = vmatpush.bf16.msra.mxu0 %v10919_v43  ;;  %v10887_v43 = vor.u32 %v12168_v49, %v10886_v11  ;;  %v12191_v13 = vld [vmem:[#allocation17 + $0xd4] sm:$0xf]  ;;  %v10984_v46 = vld [vmem:[#allocation17 + $0xd8] sm:$0xf0]  ;;  %v10912_v11 = vld [vmem:[#allocation17 + $0x48] sm:$0xf0] }
 0x43f   : > { %6619 = vmatpush.bf16.msra.mxu1 %v10983_v26  ;;  %v12166_v26 = vld [vmem:[#allocation17 + $0x4] sm:$0xf0]  ;;  %v5995_v47 = vadd.f32 %v5994_v62, %v5982_v2  ;;  %v10987_v62 = vor.u32 %v12191_v13, %v10984_v46  ;;  %v12189_v49 = vld [vmem:[#allocation17 + $0xc4] sm:$0xf]  ;;  %v12167_v31 = vld [vmem:[#allocation17 + $0x14] sm:$0xf] }
 0x440   : > { %v5957_v54 = vpop.f32.mrf.mxu0  ;;  %6631 = vmatpush.bf16.msra.mxu2 %v11055_v50  ;;  %v12193_v50 = vld [vmem:[#allocation17 + $0xe4] sm:$0xf]  ;;  %v10888_v15 = vld [vmem:[#allocation17 + $0x18] sm:$0xf0]  ;;  %v4504_v46 = vperm.slane %v15000_v19, 2 }
 0x441   : > { %v6207_v48 = vmax.f32 %v5995_v47, 0.0  ;;  %v10995_v8 = vor.u32 %v12193_v50, %v10992_v45  ;;  %v10920_v54 = vld [vmem:[#allocation17 + $0x58] sm:$0xf0]  ;;  %v10907_v47 = vor.u32 %v12171_v28, %v10904_v34  ;;  %v12205_v45 = vld [vmem:[#allocation17 + $0x144] sm:$0xf] }
 0x442   : > { %6607 = vmatpush.bf16.msra.mxu0 %v10911_v21  ;;  %v12204_v21 = vld [vmem:[#allocation17 + $0x134] sm:$0xf0]  ;;  %v10923_v40 = vor.u32 %v12175_v58, %v10920_v54  ;;  %v11048_v50 = vld [vmem:[#allocation17 + $0x158] sm:$0xf0]  ;;  %v12181_v58 = vld [vmem:[#allocation17 + $0x84] sm:$0xf] }
 0x443   : > { %6620 = vmatpush.bf16.msra.mxu1 %v10975_v44  ;;  %v5983_v53 = vpop.f32.mrf.mxu2  ;;  %v11031_v18 = vor.u32 %v12204_v21, %v11030_v30  ;;  %v10879_v44 = vor.u32 %v12166_v26, %v10878_v17  ;;  %v15045_v16 = vpack.c.bf16 %v6207_v48, %v6207_v48  ;;  %v12211_v17 = vld [vmem:[#allocation17 + $0x174] sm:$0xf]  ;;  %v11064_v26 = vld [vmem:[#allocation17 + $0x178] sm:$0xf0]  ;;  %v12169_v21 = vld [vmem:[#allocation17 + $0x24] sm:$0xf] }
 0x444   : > { %6632 = vmatpush.bf16.msra.mxu2 %v11047_v55  ;;  %v11007_v55 = vor.u32 %v12198_v61, %v11006_v33  ;;  %v11067_v6 = vor.u32 %v12211_v17, %v11064_v26  ;;  %v10896_v53 = vld [vmem:[#allocation17 + $0x28] sm:$0xf0]  ;;  %v12183_v48 = vld [vmem:[#allocation17 + $0x94] sm:$0xf]  ;;  %v11016_v34 = vld [vmem:[#allocation17 + $0x118] sm:$0xf0] }
 0x445   : > { %v5996_v36 = vpop.f32.mrf.mxu3  ;;  %v10944_v54 = vld [vmem:[#allocation17 + $0x88] sm:$0xf0]  ;;  %v12203_v61 = vld [vmem:[#allocation17 + $0x134] sm:$0xf]  ;;  %v12197_v26 = vld [vmem:[#allocation17 + $0x104] sm:$0xf] }
 0x446   : > { %6608 = vmatpush.bf16.msra.mxu0 %v10903_v35  ;;  %v11023_v35 = vor.u32 %v12202_v42, %v11022_v37  ;;  %v10891_v37 = vor.u32 %v12167_v31, %v10888_v15  ;;  %v12207_v42 = vld [vmem:[#allocation17 + $0x154] sm:$0xf]  ;;  %v11008_v52 = vld [vmem:[#allocation17 + $0x108] sm:$0xf0]  ;;  %v11126_v23 = vld [vmem:[#allocation17 + $0x1f0] sm:$0xf] }
 0x447   : > { %6621 = vmatpush.bf16.msra.mxu1 %v10967_v1  ;;  %v15043_v1 = vpack.c.bf16 %v6206_v5, %v6206_v5  ;;  %v10899_v5 = vor.u32 %v12169_v21, %v10896_v53  ;;  %v12199_v28 = vld [vmem:[#allocation17 + $0x114] sm:$0xf]  ;;  %v12222_v31 = vld [vmem:[#allocation17 + $0x1c4] sm:$0xf0] }
 0x448   : > { %6633 = vmatpush.bf16.msra.mxu2 %v11039_v24  ;;  %v11019_v17 = vor.u32 %v12199_v28, %v11016_v34 }
 0x44a   : > { %6609 = vmatpush.bf16.msra.mxu0 %v10895_v27  ;;  %v11015_v27 = vor.u32 %v12200_v22, %v11014_v20  ;;  %v10880_v20 = vld [vmem:[#allocation17 + $0x8] sm:$0xf0]  ;;  %v11051_v22 = vor.u32 %v12207_v42, %v11048_v50  ;;  %v11094_v42 = vld [vmem:[#allocation17 + $0x1b0] sm:$0xf]  ;;  %v12220_v50 = vld [vmem:[#allocation17 + $0x1b4] sm:$0xf0] }
 0x44b   : > { %6622 = vmatpush.bf16.msra.mxu1 %v10959_v7  ;;  %v12173_v7 = vld [vmem:[#allocation17 + $0x44] sm:$0xf] }
 0x44c   : > { %6634 = vmatpush.bf16.msra.mxu2 %v11031_v18  ;;  %v10915_v10 = vor.u32 %v12173_v7, %v10912_v11  ;;  %v10947_v7 = vor.u32 %v12181_v58, %v10944_v54  ;;  %v11078_v58 = vld [vmem:[#allocation17 + $0x190] sm:$0xf]  ;;  %v12216_v54 = vld [vmem:[#allocation17 + $0x194] sm:$0xf0] }
 0x44e   : > { %6610 = vmatpush.bf16.msra.mxu0 %v10887_v43  ;;  %v10979_v43 = vor.u32 %v12189_v49, %v10976_v41  ;;  %v12201_v41 = vld [vmem:[#allocation17 + $0x124] sm:$0xf] }
 0x44f   : > { %6623 = vmatpush.bf16.msra.mxu1 %v10951_v4  ;;  %v12187_v4 = vld [vmem:[#allocation17 + $0xb4] sm:$0xf] }
 0x450   : > { %6635 = vmatpush.bf16.msra.mxu2 %v11023_v35  ;;  %v10971_v30 = vor.u32 %v12187_v4, %v10968_v39 }
 0x452   : > { %6611 = vmatpush.bf16.msra.mxu0 %v10879_v44  ;;  %v15049_v2 = vpop.f32.mrf.mxu0 }
 0x453   : > { %6624 = vmatpush.bf16.msra.mxu1 %v10943_v57  ;;  %v6008_v49 = vadd.f32 %v15049_v2, %v4504_v46  ;;  %v11070_v46 = vld [vmem:[#allocation17 + $0x180] sm:$0xf] }
 0x454   : > { %6636 = vmatpush.bf16.msra.mxu2 %v11015_v27 }
 0x455   : > { %6612 = vmatmul.bf16.vlgmr.msra.gmra.mxu0 %v15043_v1  ;;  %v15051_v24 = vpop.f32.mrf.mxu1 }
 0x456   : > { %6656 = vmatpush.bf16.msrb.mxu0 %v10939_v14  ;;  %6625 = vmatmul.bf16.vlgmr.msra.gmra.mxu1 %v15045_v16  ;;  %v10963_v14 = vor.u32 %v12185_v0, %v10960_v12 }
 0x457   : > { %6669 = vmatpush.bf16.msrb.mxu1 %v11003_v25  ;;  %v10952_v25 = vld [vmem:[#allocation17 + $0x98] sm:$0xf0] }
 0x458   : > { %6637 = vmatpush.bf16.msra.mxu2 %v11007_v55  ;;  %v10955_v35 = vor.u32 %v12183_v48, %v10952_v25  ;;  %v11024_v55 = vld [vmem:[#allocation17 + $0x128] sm:$0xf0] }
 0x459   : > { %v11027_v19 = vor.u32 %v12201_v41, %v11024_v55  ;;  %v11120_v41 = vld [vmem:[#allocation17 + $0x1e8] sm:$0xf0] }
 0x45a   : > { %6657 = vmatpush.bf16.msrb.mxu0 %v10931_v38  ;;  %v6009_v44 = vpop.f32.mrf.mxu0  ;;  %v12165_v38 = vld [vmem:[#allocation17 + $0x4] sm:$0xf] }
 0x45b   : > { %6670 = vmatpush.bf16.msrb.mxu1 %v10995_v8  ;;  %v6033_v18 = vpop.f32.mrf.mxu2  ;;  %v11040_v8 = vld [vmem:[#allocation17 + $0x148] sm:$0xf0]  ;;  %v10883_v33 = vor.u32 %v12165_v38, %v10880_v20  ;;  %v11110_v44 = vld [vmem:[#allocation17 + $0x1d0] sm:$0xf]  ;;  %v11095_v38 = vor.u32 %v12220_v50, %v11094_v42  ;;  %v11086_v20 = vld [vmem:[#allocation17 + $0x1a0] sm:$0xf] }
 0x45c   : > { %6682 = vmatpush.bf16.msrb.mxu2 %v11067_v6  ;;  %v6046_v36 = vpop.f32.mrf.mxu3  ;;  %v11043_v13 = vor.u32 %v12205_v45, %v11040_v8  ;;  %v11011_v6 = vor.u32 %v12197_v26, %v11008_v52  ;;  %v12221_v26 = vld [vmem:[#allocation17 + $0x1c4] sm:$0xf] }
 0x45d   : > { %v6022_v57 = vpop.f32.mrf.mxu1 }
 0x45e   : > { %6658 = vmatpush.bf16.msrb.mxu0 %v10923_v40  ;;  %v11032_v40 = vld [vmem:[#allocation17 + $0x138] sm:$0xf0] }
 0x45f   : > { %6671 = vmatpush.bf16.msrb.mxu1 %v10987_v62  ;;  %v11035_v11 = vor.u32 %v12203_v61, %v11032_v40  ;;  %v12227_v40 = vld [vmem:[#allocation17 + $0x1f4] sm:$0xf] }
 0x460   : > { %6683 = vmatpush.bf16.msrb.mxu2 %v11059_v56 }
 0x462   : > { %6659 = vmatpush.bf16.msrb.mxu0 %v10915_v10  ;;  %v6021_v10 = vadd.f32 %v15051_v24, %v6008_v49  ;;  %v12226_v24 = vld [vmem:[#allocation17 + $0x1e4] sm:$0xf0] }
 0x463   : > { %6672 = vmatpush.bf16.msrb.mxu1 %v10979_v43  ;;  %v6035_v27 = vpop.f32.mrf.mxu2 }
 0x464   : > { %6684 = vmatpush.bf16.msrb.mxu2 %v11051_v22  ;;  %v6048_v62 = vpop.f32.mrf.mxu3  ;;  %v6034_v43 = vadd.f32 %v6033_v18, %v6021_v10  ;;  %v12218_v22 = vld [vmem:[#allocation17 + $0x1a4] sm:$0xf0] }
 0x465   : > { %v11087_v8 = vor.u32 %v12218_v22, %v11086_v20  ;;  %v12214_v27 = vld [vmem:[#allocation17 + $0x184] sm:$0xf0]  ;;  %v11128_v62 = vld [vmem:[#allocation17 + $0x1f8] sm:$0xf0] }
 0x466   : > { %6660 = vmatpush.bf16.msrb.mxu0 %v10907_v47  ;;  %v6047_v2 = vadd.f32 %v6046_v36, %v6034_v43  ;;  %v11118_v47 = vld [vmem:[#allocation17 + $0x1e0] sm:$0xf]  ;;  %v11131_v49 = vor.u32 %v12227_v40, %v11128_v62  ;;  %v12223_v43 = vld [vmem:[#allocation17 + $0x1d4] sm:$0xf] }
 0x467   : > { %6673 = vmatpush.bf16.msrb.mxu1 %v10971_v30 }
 0x468   : > { %6685 = vmatpush.bf16.msrb.mxu2 %v11043_v13  ;;  %v11079_v13 = vor.u32 %v12216_v54, %v11078_v58 }
 0x46a   : > { %6661 = vmatpush.bf16.msrb.mxu0 %v10899_v5  ;;  %v12224_v5 = vld [vmem:[#allocation17 + $0x1d4] sm:$0xf0] }
 0x46b   : > { %6674 = vmatpush.bf16.msrb.mxu1 %v10963_v14  ;;  %v11111_v57 = vor.u32 %v12224_v5, %v11110_v44  ;;  %v11102_v14 = vld [vmem:[#allocation17 + $0x1c0] sm:$0xf] }
 0x46c   : > { %6686 = vmatpush.bf16.msrb.mxu2 %v11035_v11  ;;  %v11103_v25 = vor.u32 %v12222_v31, %v11102_v14 }
 0x46e   : > { %6662 = vmatpush.bf16.msrb.mxu0 %v10891_v37 }
 0x46f   : > { %6675 = vmatpush.bf16.msrb.mxu1 %v10955_v35 }
 0x470   : > { %6687 = vmatpush.bf16.msrb.mxu2 %v11027_v19 }
 0x472   : > { %6663 = vmatpush.bf16.msrb.mxu0 %v10883_v33  ;;  %v6059_v4 = vpop.f32.mrf.mxu0  ;;  %v11071_v33 = vor.u32 %v12214_v27, %v11070_v46 }
 0x473   : > { %6676 = vmatpush.bf16.msrb.mxu1 %v10947_v7  ;;  %v6060_v56 = vadd.f32 %v6059_v4, %v6047_v2  ;;  %v12225_v7 = vld [vmem:[#allocation17 + $0x1e4] sm:$0xf]  ;;  %v11104_v2 = vld [vmem:[#allocation17 + $0x1c8] sm:$0xf0] }
 0x474   : > { %6688 = vmatpush.bf16.msrb.mxu2 %v11019_v17  ;;  %v11123_v55 = vor.u32 %v12225_v7, %v11120_v41  ;;  %v11112_v17 = vld [vmem:[#allocation17 + $0x1d8] sm:$0xf0]  ;;  %v11107_v4 = vor.u32 %v12221_v26, %v11104_v2  ;;  %v12243_v26 = vld [vmem:[#allocation20 + $0x70] sm:$0xff] }
 0x475   : > { %6664 = vmatmul.bf16.vlgmr.msrb.gmra.mxu0 %v15043_v1  ;;  %v6072_v39 = vpop.f32.mrf.mxu1  ;;  %v12228_v1 = vld [vmem:[#allocation17 + $0x1f4] sm:$0xf0]  ;;  %v11115_v52 = vor.u32 %v12223_v43, %v11112_v17 }
 0x476   : > { %6677 = vmatmul.bf16.vlgmr.msrb.gmra.mxu1 %v15045_v16  ;;  %v11127_v30 = vor.u32 %v12228_v1, %v11126_v23  ;;  %v11119_v16 = vor.u32 %v12226_v24, %v11118_v47  ;;  %v6073_v21 = vadd.f32 %v6072_v39, %v6060_v56  ;;  %v12618_v39 = vld [vmem:[#allocation15] sm:$0xf]  ;;  %v12219_v1 = vld [vmem:[#allocation17 + $0x1b4] sm:$0xf] }
 0x477   : > { %v11096_v47 = vld [vmem:[#allocation17 + $0x1b8] sm:$0xf0]  ;;  %v12235_v17 = vld [vmem:[#allocation20 + $0x30] sm:$0xff] }
 0x478   : > { %6643 = vmatpush.bf16.msra.mxu3 %v11127_v30  ;;  %6689 = vmatpush.bf16.msrb.mxu2 %v11011_v6  ;;  %v4505_v6 = vperm.slane %v12618_v39, 3  ;;  %v11099_v30 = vor.u32 %v12219_v1, %v11096_v47  ;;  %v12244_v43 = vld [vmem:[#allocation20 + $0x78] sm:$0xff] }
 0x479   : > { %6857 = vmatpush.bf16.msra.mxu1 %v12244_v43  ;;  %v12232_v39 = vld [vmem:[#allocation20 + $0x18] sm:$0xff]  ;;  %v6875_v43 = vld [vmem:[#allocation23 + $0x8] sm:$0xff] }
 0x47a   : > { %v6061_v18 = vpop.f32.mrf.mxu0 }
 0x47b   : > { %v6085_v53 = vpop.f32.mrf.mxu2  ;;  %v11080_v18 = vld [vmem:[#allocation17 + $0x198] sm:$0xf0] }
 0x47c   : > { %v6086_v0 = vadd.f32 %v6085_v53, %v6073_v21  ;;  %v6098_v12 = vpop.f32.mrf.mxu3  ;;  %6644 = vmatpush.bf16.msra.mxu3 %v11119_v16  ;;  %v12217_v16 = vld [vmem:[#allocation17 + $0x1a4] sm:$0xf]  ;;  %v11088_v21 = vld [vmem:[#allocation17 + $0x1a8] sm:$0xf0] }
 0x47d   : > { %v6074_v36 = vpop.f32.mrf.mxu1  ;;  %v11091_v53 = vor.u32 %v12217_v16, %v11088_v21  ;;  %6858 = vmatpush.bf16.msra.mxu1 %v12243_v26  ;;  %v12241_v16 = vld [vmem:[#allocation20 + $0x60] sm:$0xff]  ;;  %v12240_v21 = vld [vmem:[#allocation20 + $0x58] sm:$0xff] }
 0x47e   : > { %v6099_v15 = vadd.f32 %v6098_v12, %v6086_v0  ;;  %v12215_v12 = vld [vmem:[#allocation17 + $0x194] sm:$0xf]  ;;  %v12213_v36 = vld [vmem:[#allocation17 + $0x184] sm:$0xf] }
 0x47f   : > { %v11083_v5 = vor.u32 %v12215_v12, %v11080_v18  ;;  %v12237_v12 = vld [vmem:[#allocation20 + $0x40] sm:$0xff] }
 0x480   : > { %v6208_v48 = vmax.f32 %v6099_v15, 0.0  ;;  %6645 = vmatpush.bf16.msra.mxu3 %v11111_v57  ;;  %v11072_v57 = vld [vmem:[#allocation17 + $0x188] sm:$0xf0] }
 0x482   : > { %v6212_v37 = vpack.c.bf16 %v6208_v48, %v6208_v48  ;;  %v11075_v48 = vor.u32 %v12213_v36, %v11072_v57 }
 0x483   : > { %v6087_v45 = vpop.f32.mrf.mxu2 }
 0x484   : > { %v6100_v35 = vpop.f32.mrf.mxu3  ;;  %6638 = vmatmul.bf16.vlgmr.msra.gmra.mxu2 %v6212_v37  ;;  %6646 = vmatpush.bf16.msra.mxu3 %v11103_v25 }
 0x488   : > { %6647 = vmatpush.bf16.msra.mxu3 %v11095_v38 }
 0x48c   : > { %6648 = vmatpush.bf16.msra.mxu3 %v11087_v8 }
 0x490   : > { %6649 = vmatpush.bf16.msra.mxu3 %v11079_v13  ;;  %v6278_v13 = vld [vmem:[#allocation18] sm:$0x3] }
 0x491   : > { %v6280_v46 = vperm.slane %v6278_v13, 0 }
 0x492   : > { %v6111_v61 = vpop.f32.mrf.mxu0 }
 0x493   : > { %v6112_v24 = vadd.f32 %v6111_v61, %v4505_v6 }
 0x494   : > { %6690 = vmatmul.bf16.vlgmr.msrb.gmra.mxu2 %v6212_v37  ;;  %6650 = vmatpush.bf16.msra.mxu3 %v11071_v33 }
 0x495   : > { %v6124_v11 = vpop.f32.mrf.mxu1 }
 0x496   : > { %v6125_v0 = vadd.f32 %v6124_v11, %v6112_v24  ;;  %v6281_v11 = vperm.slane %v6278_v13, 1  ;;  %v12229_v24 = vld [vmem:[#allocation20] sm:$0xff]  ;;  %v15654_v13 = vmov 5  }
 0x498   : > { %6695 = vmatpush.bf16.msrb.mxu3 %v11131_v49 }
 0x49a   : > { %v6113_v28 = vpop.f32.mrf.mxu0 }
 0x49b   : > { %v6137_v19 = vpop.f32.mrf.mxu2 }
 0x49c   : > { %6696 = vmatpush.bf16.msrb.mxu3 %v11123_v55  ;;  %v6150_v10 = vpop.f32.mrf.mxu3  ;;  %v6138_v44 = vadd.f32 %v6137_v19, %v6125_v0  ;;  %v12238_v0 = vld [vmem:[#allocation20 + $0x48] sm:$0xff] }
 0x49d   : > { %v6126_v34 = vpop.f32.mrf.mxu1 }
 0x49e   : > { %v6151_v14 = vadd.f32 %v6150_v10, %v6138_v44  ;;  %v12236_v34 = vld [vmem:[#allocation20 + $0x38] sm:$0xff] }
 0x49f   : > { %6844 = vmatpush.bf16.msra.mxu0 %v12236_v34  ;;  %v6874_v34 = vld [vmem:[#allocation23] sm:$0xff] }
 0x4a0   : > { %6697 = vmatpush.bf16.msrb.mxu3 %v11115_v52  ;;  %v12234_v52 = vld [vmem:[#allocation20 + $0x28] sm:$0xff]  ;;  %v15087_v26 = vunpack.c.h.bf16 %v6874_v34 }
 0x4a3   : > { %v6139_v23 = vpop.f32.mrf.mxu2  ;;  %6845 = vmatpush.bf16.msra.mxu0 %v12235_v17  ;;  %v15085_v17 = vunpack.c.l.bf16 %v6874_v34 }
 0x4a4   : > { %v6152_v56 = vpop.f32.mrf.mxu3  ;;  %6698 = vmatpush.bf16.msrb.mxu3 %v11107_v4  ;;  %v12233_v4 = vld [vmem:[#allocation20 + $0x20] sm:$0xff]  ;;  %v12231_v23 = vld [vmem:[#allocation20 + $0x10] sm:$0xff] }
 0x4a5   : > { %v12230_v56 = vld [vmem:[#allocation20 + $0x8] sm:$0xff] }
 0x4a7   : > { %6846 = vmatpush.bf16.msra.mxu0 %v12234_v52  ;;  %v15089_v52 = vunpack.c.l.bf16 %v6875_v43 }
 0x4a8   : > { %6699 = vmatpush.bf16.msrb.mxu3 %v11099_v30  ;;  %v12242_v30 = vld [vmem:[#allocation20 + $0x68] sm:$0xff] }
 0x4a9   : > { %6859 = vmatpush.bf16.msra.mxu1 %v12242_v30  ;;  %v6938_v34 = vperm.slane %v15089_v52, 5 }
 0x4ab   : > { %6847 = vmatpush.bf16.msra.mxu0 %v12233_v4  ;;  %v6889_v4 = vperm.slane %v15087_v26, 1 }
 0x4ac   : > { %6700 = vmatpush.bf16.msrb.mxu3 %v11091_v53  ;;  %v12239_v53 = vld [vmem:[#allocation20 + $0x50] sm:$0xff] }
 0x4ad   : > { %6860 = vmatpush.bf16.msra.mxu1 %v12241_v16 }
 0x4af   : > { %6848 = vmatpush.bf16.msra.mxu0 %v12232_v39  ;;  %v6890_v39 = vperm.slane %v15089_v52, 1 }
 0x4b0   : > { %6701 = vmatpush.bf16.msrb.mxu3 %v11083_v5 }
 0x4b1   : > { %6861 = vmatpush.bf16.msra.mxu1 %v12240_v21  ;;  %v6894_v16 = vmul.f32 %v6890_v39, %v14734_v32 }
 0x4b2   : > { %v6163_v31 = vpop.f32.mrf.mxu0 }
 0x4b3   : > { %v6164_v25 = vadd.f32 %v6163_v31, %v6151_v14  ;;  %6849 = vmatpush.bf16.msra.mxu0 %v12231_v23  ;;  %v6880_v23 = vperm.slane %v15085_v17, 0 }
 0x4b4   : > { %6702 = vmatpush.bf16.msrb.mxu3 %v11075_v48 }
 0x4b5   : > { %v6176_v15 = vpop.f32.mrf.mxu1  ;;  %6862 = vmatpush.bf16.msra.mxu1 %v12239_v53  ;;  %v6900_v53 = vperm.slane %v15085_v17, 2 }
 0x4b6   : > { %v6177_v37 = vadd.f32 %v6176_v15, %v6164_v25 }
 0x4b7   : > { %6850 = vmatpush.bf16.msra.mxu0 %v12230_v56 }
 0x4b9   : > { %6863 = vmatpush.bf16.msra.mxu1 %v12238_v0  ;;  %v6901_v0 = vperm.slane %v15087_v26, 2 }
 0x4ba   : > { %v6165_v35 = vpop.f32.mrf.mxu0 }
 0x4bb   : > { %v6189_v42 = vpop.f32.mrf.mxu2  ;;  %6851 = vmatpush.bf16.msra.mxu0 %v12229_v24  ;;  %v12616_v35 = vld [vmem:[#allocation21] ss:$0 sm:$0xff]  ;;  %v6893_v24 = vmul.f32 %v6889_v4, %v14734_v32 }
 0x4bc   : > { %v6190_v50 = vadd.f32 %v6189_v42, %v6177_v37  ;;  %v6202_v45 = vpop.f32.mrf.mxu3 }
 0x4bd   : > { %v6178_v38 = vpop.f32.mrf.mxu1  ;;  %6864 = vmatpush.bf16.msra.mxu1 %v12237_v12  ;;  %v6884_v12 = vmul.f32 %v6880_v23, %v14631_v59 }
 0x4be   : > { %v6203_v20 = vadd.f32 %v6202_v45, %v6190_v50 }
 0x4c0   : > { %v6209_v22 = vmax.f32 %v6203_v20, 0.0 }
 0x4c2   : > { %v6213_v8 = vpack.c.bf16 %v6209_v22, %v6209_v22 }
 0x4c3   : > { %v6191_v58 = vpop.f32.mrf.mxu2 }
 0x4c4   : > { %v6204_v54 = vpop.f32.mrf.mxu3  ;;  %6651 = vmatmul.bf16.vlgmr.msra.gmra.mxu3 %v6213_v8  ;;  %v15652_v58 = vmov 4  }
 0x4c5   : > { %v15653_v54 = vmov 3  }
 0x4d2   : > { %v6613_v27 = vpop.f32.mrf.mxu0 }
 0x4d3   : > { %v6614_v33 = vadd.f32 %v6613_v27, %v6280_v46  ;;  %v6626_v61 = vpop.f32.mrf.mxu1  ;;  %v15655_v46 = vmov 7   ;;  %v15656_v27 = vmov 6  }
 0x4d4   : > { %6703 = vmatmul.bf16.vlgmr.msrb.gmra.mxu3 %v6213_v8 }
 0x4d5   : > { %v6627_v40 = vadd.f32 %v6626_v61, %v6614_v33  ;;  %v13346_v33 = vmov 10   ;;  %v13347_v61 = vmov 9  }
 0x4da   : > { %v6615_v62 = vpop.f32.mrf.mxu0 }
 0x4db   : > { %v6628_v7 = vpop.f32.mrf.mxu1  ;;  %v13349_v62 = vmov 15  }
 0x4dc   : > { %v13350_v7 = vmov 12  }
 0x4f2   : > { %v6665_v49 = vpop.f32.mrf.mxu0 }
 0x4f3   : > { %v6666_v41 = vadd.f32 %v6665_v49, %v6281_v11  ;;  %v6678_v55 = vpop.f32.mrf.mxu1  ;;  %v13351_v11 = vmov 11   ;;  %v13352_v49 = vmov 19  }
 0x4f5   : > { %v6679_v19 = vadd.f32 %v6678_v55, %v6666_v41  ;;  %v13353_v41 = vmov 14   ;;  %v13354_v55 = vmov 13  }
 0x4fa   : > { %v6667_v10 = vpop.f32.mrf.mxu0 }
 0x4fb   : > { %v6680_v28 = vpop.f32.mrf.mxu1  ;;  %v13356_v10 = vmov 16  }
 0x4fc   : > { %v13357_v28 = vmov 18  }
 0x507   : > { %v6639_v2 = vpop.f32.mrf.mxu2 }
 0x508   : > { %v6640_v18 = vadd.f32 %v6639_v2, %v6627_v40  ;;  %v13348_v40 = vmov 8   ;;  %v6888_v2 = vperm.slane %v15085_v17, 1 }
 0x50a   : > { %v6892_v30 = vmul.f32 %v6888_v2, %v14734_v32 }
 0x50f   : > { %v6641_v6 = vpop.f32.mrf.mxu2 }
 0x510   : > { %v15094_v6 = vunpack.c.h.bf16 %v6875_v43 }
 0x512   : > { %v6891_v56 = vperm.slane %v15094_v6, 1  ;;  %v6883_v21 = vperm.slane %v15094_v6, 0 }
 0x517   : > { %v6691_v1 = vpop.f32.mrf.mxu2 }
 0x518   : > { %v6692_v31 = vadd.f32 %v6691_v1, %v6679_v19  ;;  %v13355_v19 = vmov 17   ;;  %v6881_v1 = vperm.slane %v15087_v26, 0 }
 0x51f   : > { %v6693_v47 = vpop.f32.mrf.mxu2 }
 0x520   : > { %v6882_v47 = vperm.slane %v15089_v52, 0 }
 0x547   : > { %v6652_v44 = vpop.f32.mrf.mxu3 }
 0x548   : > { %v6653_v5 = vadd.f32 %v6652_v44, %v6640_v18  ;;  %v6885_v18 = vmul.f32 %v6881_v1, %v14631_v59  ;;  %v6886_v44 = vmul.f32 %v6882_v47, %v14631_v59  ;;  %v6949_v1 = vperm.slane %v15087_v26, 6 }
 0x549   : > { %v6950_v47 = vperm.slane %v15089_v52, 6 }
 0x54a   : > { %v6708_v36 = vmax.f32 %v6653_v5, 0.0  ;;  %v6902_v5 = vperm.slane %v15089_v52, 2 }
 0x54c   : > { %v6710_v57 = vpack.c.bf16 %v6708_v36, %v6708_v36  ;;  %v6895_v36 = vmul.f32 %v6891_v56, %v14734_v32  ;;  %v6939_v56 = vperm.slane %v15094_v6, 5 }
 0x54e   : > { %6852 = vmatmul.bf16.vlgmr.msra.gmra.mxu0 %v6710_v57  ;;  %v6896_v57 = vadd.f32 %v6892_v30, %v6884_v12 }
 0x54f   : > { %v6654_v14 = vpop.f32.mrf.mxu3 }
 0x550   : > { %v6897_v14 = vadd.f32 %v6893_v24, %v6885_v18 }
 0x557   : > { %v6704_v15 = vpop.f32.mrf.mxu3 }
 0x558   : > { %v6705_v48 = vadd.f32 %v6704_v15, %v6692_v31  ;;  %v6898_v31 = vadd.f32 %v6894_v16, %v6886_v44  ;;  %v6887_v15 = vmul.f32 %v6883_v21, %v14631_v59  ;;  %v6942_v16 = vmul.f32 %v6938_v34, %v14598_v51 }
 0x559   : > { %v6953_v44 = vmul.f32 %v6949_v1, %v14796_v3 }
 0x55a   : > { %v6709_v25 = vmax.f32 %v6705_v48, 0.0  ;;  %v6903_v48 = vperm.slane %v15094_v6, 2  ;;  %v6899_v32 = vadd.f32 %v6895_v36, %v6887_v15  ;;  %v6960_v36 = vperm.slane %v15085_v17, 7  ;;  %v6976_v15 = vld [vmem:[#allocation24] sm:$0xff] }
 0x55c   : > { %v6711_v37 = vpack.c.bf16 %v6709_v25, %v6709_v25  ;;  %v6904_v25 = vmul.f32 %v6900_v53, %v14633_v60  ;;  %v6907_v59 = vmul.f32 %v6903_v48, %v14633_v60  ;;  %v6977_v48 = vld [vmem:[#allocation24 + $0x8] sm:$0xff] }
 0x55e   : > { %6865 = vmatmul.bf16.vlgmr.msra.gmra.mxu1 %v6711_v37  ;;  %v6905_v37 = vmul.f32 %v6901_v0, %v14633_v60 }
 0x55f   : > { %v6706_v42 = vpop.f32.mrf.mxu3 }
 0x560   : > { %v6906_v42 = vmul.f32 %v6902_v5, %v14633_v60  ;;  %v6954_v5 = vmul.f32 %v6950_v47, %v14796_v3 }
 0x5cb   : > { %v6853_v50 = vpop.f32.mrf.mxu0 }
 0x5cc   : > { %v6854_v38 = vadd.f32 %v12616_v35, %v6853_v50  ;;  %v6912_v50 = vperm.slane %v15085_v17, 3  ;;  %v6914_v35 = vperm.slane %v15089_v52, 3 }
 0x5d3   : > { %v6855_v45 = vpop.f32.mrf.mxu0 }
 0x5d4   : > { %v6913_v45 = vperm.slane %v15087_v26, 3 }
 0x5db   : > { %v6866_v20 = vpop.f32.mrf.mxu1 }
 0x5dc   : > { %v15058_v22 = vadd.f32 %v6866_v20, %v6854_v38  ;;  %v6908_v38 = vadd.f32 %v6904_v25, %v6896_v57  ;;  %v6909_v20 = vadd.f32 %v6905_v37, %v6897_v14  ;;  %v6943_v57 = vmul.f32 %v6939_v56, %v14598_v51 }
 0x5dd   : > { %v6961_v14 = vperm.slane %v15087_v26, 7 }
 0x5de   : > { %7024 = vperm.xlu2 %12597, %v15058_v22   ;;  %7008 = vperm.xlu1 %12596, %v15058_v22  }
 0x5df   : > { %6996 = vperm.xlu0 %12595, %v15058_v22  }
 0x5e3   : > { %v6868_v8 = vpop.f32.mrf.mxu1 }
 0x5e4   : > { %v6910_v8 = vadd.f32 %v6906_v42, %v6898_v31  ;;  %v6962_v31 = vperm.slane %v15089_v52, 7 }
 0x5e6   : > { %12599 = vset.pattern.permute.xlu2 %v15652_v58  ;;  %12598 = vset.pattern.permute.xlu1 %v15653_v54  ;;  %v6915_v58 = vperm.slane %v15094_v6, 3  ;;  %v6924_v54 = vperm.slane %v15085_v17, 4 }
 0x5e7   : > { %12600 = vset.pattern.permute.xlu0 %v15654_v13  ;;  %7056 = vperm.xlu2 %12599, %v15058_v22   ;;  %v6925_v13 = vperm.slane %v15087_v26, 4 }
 0x5e8   : > { %7040 = vperm.xlu1 %12598, %v15058_v22   ;;  %7072 = vperm.xlu0 %12600, %v15058_v22   ;;  %v6919_v60 = vmul.f32 %v6915_v58, %v14736_v29 }
 0x5ef   : > { %12602 = vset.pattern.permute.xlu2 %v15655_v46  ;;  %v6916_v46 = vmul.f32 %v6912_v50, %v14736_v29 }
 0x5f0   : > { %12601 = vset.pattern.permute.xlu1 %v15656_v27  ;;  %12605 = vset.pattern.permute.xlu0 %v13346_v33  ;;  %v6917_v27 = vmul.f32 %v6913_v45, %v14736_v29  ;;  %v6918_v33 = vmul.f32 %v6914_v35, %v14736_v29  ;;  %v6948_v29 = vperm.slane %v15085_v17, 6  ;;  %v6964_v35 = vmul.f32 %v6960_v36, %v14627_v9  ;;  %v11446_v36 = vld [vmem:[#allocation27 + $0x1f0] sm:$0xf] }
 0x5f1   : > { %7104 = vperm.xlu2 %12602, %v15058_v22   ;;  %7088 = vperm.xlu1 %12601, %v15058_v22  }
 0x5f2   : > { %7152 = vperm.xlu0 %12605, %v15058_v22   ;;  %v6952_v18 = vmul.f32 %v6948_v29, %v14796_v3 }
 0x5f9   : > { %12604 = vset.pattern.permute.xlu2 %v13347_v61  ;;  %12603 = vset.pattern.permute.xlu1 %v13348_v40  ;;  %v6926_v61 = vperm.slane %v15089_v52, 4  ;;  %v6911_v40 = vadd.f32 %v6907_v59, %v6899_v32  ;;  %v15153_v32 = vunpack.c.l.bf16 %v6976_v15  ;;  %v15160_v52 = vunpack.c.l.bf16 %v6977_v48 }
 0x5fa   : > { %12610 = vset.pattern.permute.xlu0 %v13349_v62  ;;  %7136 = vperm.xlu2 %12604, %v15058_v22   ;;  %v6920_v62 = vadd.f32 %v6916_v46, %v6908_v38  ;;  %v15158_v38 = vunpack.c.h.bf16 %v6976_v15 }
 0x5fb   : > { %7120 = vperm.xlu1 %12603, %v15058_v22   ;;  %7232 = vperm.xlu0 %12610, %v15058_v22   ;;  %v6923_v43 = vadd.f32 %v6919_v60, %v6911_v40  ;;  %v7027_v58 = vperm.slane %v15153_v32, 2  ;;  %v7059_v40 = vperm.slane %v15153_v32, 4  ;;  %v6999_v29 = vperm.slane %v15153_v32, 0 }
 0x5fc   : > { %v7001_v1 = vperm.slane %v15160_v52, 0  ;;  %v7043_v56 = vperm.slane %v15153_v32, 3 }
 0x602   : > { %12607 = vset.pattern.permute.xlu2 %v13350_v7  ;;  %v6921_v7 = vadd.f32 %v6917_v27, %v6909_v20  ;;  %v15162_v20 = vunpack.c.h.bf16 %v6977_v48  ;;  %v7028_v27 = vperm.slane %v15158_v38, 2 }
 0x603   : > { %12606 = vset.pattern.permute.xlu1 %v13351_v11  ;;  %7184 = vperm.xlu2 %12607, %v15058_v22   ;;  %v6922_v11 = vadd.f32 %v6918_v33, %v6910_v8  ;;  %v7029_v33 = vperm.slane %v15160_v52, 2 }
 0x604   : > { %7168 = vperm.xlu1 %12606, %v15058_v22   ;;  %12615 = vset.pattern.permute.xlu0 %v13352_v49  ;;  %v7062_v60 = vperm.slane %v15162_v20, 4  ;;  %v7002_v47 = vperm.slane %v15162_v20, 0 }
 0x60b   : > { %12609 = vset.pattern.permute.xlu2 %v13353_v41  ;;  %v6928_v41 = vmul.f32 %v6924_v54, %v14584_v63  ;;  %v6978_v54 = vld [vmem:[#allocation24 + $0x10] sm:$0xff] }
 0x60c   : > { %12608 = vset.pattern.permute.xlu1 %v13354_v55  ;;  %7216 = vperm.xlu2 %12609, %v15058_v22   ;;  %v6929_v55 = vmul.f32 %v6925_v13, %v14584_v63 }
 0x60d   : > { %7200 = vperm.xlu1 %12608, %v15058_v22   ;;  %v6932_v2 = vadd.f32 %v6928_v41, %v6920_v62  ;;  %v6979_v62 = vld [vmem:[#allocation24 + $0x18] sm:$0xff] }
 0x60e   : > { %v6933_v4 = vadd.f32 %v6929_v55, %v6921_v7  ;;  %v7060_v7 = vperm.slane %v15158_v38, 4  ;;  %v15188_v34 = vunpack.c.l.bf16 %v6979_v62 }
 0x614   : > { %12612 = vset.pattern.permute.xlu2 %v13355_v19  ;;  %v6930_v19 = vmul.f32 %v6926_v61, %v14584_v63  ;;  %v7030_v61 = vperm.slane %v15162_v20, 2 }
 0x615   : > { %12611 = vset.pattern.permute.xlu1 %v13356_v10  ;;  %7264 = vperm.xlu2 %12612, %v15058_v22   ;;  %v6936_v10 = vperm.slane %v15085_v17, 5  ;;  %v6963_v17 = vperm.slane %v15094_v6, 7 }
 0x616   : > { %7248 = vperm.xlu1 %12611, %v15058_v22   ;;  %v6934_v39 = vadd.f32 %v6930_v19, %v6922_v11  ;;  %v7061_v11 = vperm.slane %v15160_v52, 4  ;;  %v15183_v19 = vunpack.c.l.bf16 %v6978_v54 }
 0x617   : > { %v6940_v30 = vmul.f32 %v6936_v10, %v14598_v51  ;;  %v6967_v13 = vmul.f32 %v6963_v17, %v14627_v9  ;;  %v7011_v10 = vperm.slane %v15153_v32, 1 }
 0x618   : > { %v6946_v12 = vadd.f32 %v6942_v16, %v6934_v39  ;;  %v7014_v39 = vperm.slane %v15162_v20, 1  ;;  %v7045_v16 = vperm.slane %v15160_v52, 3 }
 0x619   : > { %v6944_v53 = vadd.f32 %v6940_v30, %v6932_v2  ;;  %v7012_v2 = vperm.slane %v15158_v38, 1 }
 0x61a   : > { %v6958_v45 = vadd.f32 %v6954_v5, %v6946_v12  ;;  %v12308_v5 = vld [vmem:[#allocation27 + $0x1f4] sm:$0xf0] }
 0x61b   : > { %v6956_v37 = vadd.f32 %v6952_v18, %v6944_v53  ;;  %v7075_v18 = vperm.slane %v15153_v32, 5  ;;  %v11318_v53 = vld [vmem:[#allocation27 + $0xf0] sm:$0xf] }
 0x61d   : > { %12614 = vset.pattern.permute.xlu2 %v13352_v49  ;;  %v6927_v49 = vperm.slane %v15094_v6, 4  ;;  %v6968_v59 = vadd.f32 %v6964_v35, %v6956_v37  ;;  %v7091_v37 = vperm.slane %v15153_v32, 6  ;;  %v12276_v35 = vld [vmem:[#allocation27 + $0xf4] sm:$0xf0] }
 0x61e   : > { %12613 = vset.pattern.permute.xlu1 %v13357_v28  ;;  %7296 = vperm.xlu2 %12614, %v15058_v22   ;;  %v6937_v28 = vperm.slane %v15087_v26, 5  ;;  %v6966_v26 = vmul.f32 %v6962_v31, %v14627_v9  ;;  %v6870_v31 = vld [vmem:[#allocation3] sm:$0xff] }
 0x61f   : > { %7280 = vperm.xlu1 %12613, %v15058_v22   ;;  %v6931_v23 = vmul.f32 %v6927_v49, %v14584_v63  ;;  %v6951_v63 = vperm.slane %v15094_v6, 6  ;;  %v7108_v49 = vperm.slane %v15158_v38, 7 }
 0x620   : > { %v6941_v24 = vmul.f32 %v6937_v28, %v14598_v51  ;;  %v6965_v51 = vmul.f32 %v6961_v14, %v14627_v9  ;;  %v15170_v46 = vadd.f32 %v6966_v26, %v6958_v45  ;;  %v7107_v9 = vperm.slane %v15153_v32, 7  ;;  %v11382_v45 = vld [vmem:[#allocation27 + $0x170] sm:$0xf]  ;;  %v12292_v26 = vld [vmem:[#allocation27 + $0x174] sm:$0xf0] }
 0x621   : > { %v6935_v21 = vadd.f32 %v6931_v23, %v6923_v43  ;;  %v6955_v42 = vmul.f32 %v6951_v63, %v14796_v3  ;;  %v15186_v28 = vunpack.c.h.bf16 %v6978_v54  ;;  %v15190_v43 = vunpack.c.h.bf16 %v6979_v62  ;;  %v11254_v54 = vld [vmem:[#allocation27 + $0x70] sm:$0xf]  ;;  %v12260_v62 = vld [vmem:[#allocation27 + $0x74] sm:$0xf0] }
 0x622   : > { %v6945_v0 = vadd.f32 %v6941_v24, %v6933_v4  ;;  %v7013_v4 = vperm.slane %v15160_v52, 1  ;;  %v7000_v23 = vperm.slane %v15158_v38, 0  ;;  %v7044_v24 = vperm.slane %v15158_v38, 3 }
 0x623   : > { %v6947_v25 = vadd.f32 %v6943_v57, %v6935_v21  ;;  %v7046_v21 = vperm.slane %v15162_v20, 3 }
 0x624   : > { %v6957_v50 = vadd.f32 %v6953_v44, %v6945_v0 }
 0x625   : > { %v6959_v3 = vadd.f32 %v6955_v42, %v6947_v25  ;;  %v15226_v25 = vadd.f32 %v6968_v59, %v6870_v31  ;;  %v11447_v31 = vor.u32 %v12308_v5, %v11446_v36  ;;  %v7126_v5 = vperm.slane %v15190_v43, 0 }
 0x626   : > { %v15168_v6 = vadd.f32 %v6965_v51, %v6957_v50 }
 0x627   : > { %v15224_v48 = vadd.f32 %v6967_v13, %v6959_v3  ;;  %v7124_v3 = vperm.slane %v15186_v28, 0  ;;  %7766 = vmatpush.bf16.msrb.mxu1 %v11447_v31 }
 0x638   : > { %v15164_v8 = vpop.permute.xlu2 %7024 }
 0x639   : > { %v7031_v15 = vmul.f32 %v7027_v58, %v15164_v8  ;;  %v7032_v14 = vmul.f32 %v7028_v27, %v15164_v8  ;;  %v7033_v58 = vmul.f32 %v7029_v33, %v15164_v8  ;;  %v12272_v33 = vld [vmem:[#allocation27 + $0xd4] sm:$0xf0] }
 0x641   : > { %v15208_v63 = vpop.permute.xlu2 %7056 }
 0x650   : > { %v7009_v44 = vpop.permute.xlu1 %7008 }
 0x651   : > { %v6997_v42 = vpop.permute.xlu0 %6996  ;;  %v7015_v12 = vmul.f32 %v7011_v10, %v7009_v44  ;;  %v7016_v0 = vmul.f32 %v7012_v2, %v7009_v44  ;;  %v7017_v17 = vmul.f32 %v7013_v4, %v7009_v44  ;;  %v7018_v27 = vmul.f32 %v7014_v39, %v7009_v44  ;;  %v11222_v2 = vld [vmem:[#allocation27 + $0x30] sm:$0xf] }
 0x652   : > { %v7003_v50 = vmul.f32 %v6999_v29, %v6997_v42  ;;  %v7004_v51 = vmul.f32 %v7000_v23, %v6997_v42  ;;  %v7005_v57 = vmul.f32 %v7001_v1, %v6997_v42  ;;  %v7006_v10 = vmul.f32 %v7002_v47, %v6997_v42  ;;  %v15243_v47 = vpop.permute.xlu2 %7104  ;;  %v12256_v42 = vld [vmem:[#allocation27 + $0x54] sm:$0xf0] }
 0x653   : > { %v7123_v4 = vperm.slane %v15183_v19, 0  ;;  %v11255_v29 = vor.u32 %v12260_v62, %v11254_v54  ;;  %v11319_v23 = vor.u32 %v12276_v35, %v11318_v53  ;;  %v11383_v1 = vor.u32 %v12292_v26, %v11382_v45  ;;  %v11374_v26 = vld [vmem:[#allocation27 + $0x160] sm:$0xf] }
 0x654   : > { %v7019_v30 = vadd.f32 %v7015_v12, %v7003_v50  ;;  %v7020_v55 = vadd.f32 %v7016_v0, %v7004_v51  ;;  %v7021_v41 = vadd.f32 %v7017_v17, %v7005_v57  ;;  %v7034_v39 = vmul.f32 %v7030_v61, %v15164_v8  ;;  %v6980_v12 = vld [vmem:[#allocation24 + $0x20] sm:$0x33]  ;;  %v6981_v0 = vld [vmem:[#allocation24 + $0x28] sm:$0x33]  ;;  %v11246_v8 = vld [vmem:[#allocation27 + $0x60] sm:$0xf] }
 0x655   : > { %v7125_v53 = vperm.slane %v15188_v34, 0  ;;  %7727 = vmatpush.bf16.msra.mxu2 %v11255_v29  ;;  %7740 = vmatpush.bf16.msra.mxu3 %v11319_v23  ;;  %v7022_v36 = vadd.f32 %v7018_v27, %v7006_v10  ;;  %v12258_v61 = vld [vmem:[#allocation27 + $0x64] sm:$0xf0]  ;;  %v7063_v50 = vmul.f32 %v7059_v40, %v15208_v63  ;;  %v7064_v45 = vmul.f32 %v7060_v7, %v15208_v63  ;;  %v11310_v17 = vld [vmem:[#allocation27 + $0xe0] sm:$0xf] }
 0x656   : > { %7753 = vmatpush.bf16.msrb.mxu0 %v11383_v1  ;;  %v15260_v35 = vmul.f32 %v7061_v11, %v15208_v63  ;;  %v12274_v51 = vld [vmem:[#allocation27 + $0xe4] sm:$0xf0]  ;;  %v7035_v54 = vadd.f32 %v7031_v15, %v7019_v30  ;;  %v7036_v40 = vadd.f32 %v7032_v14, %v7020_v55  ;;  %v7037_v62 = vadd.f32 %v7033_v58, %v7021_v41  ;;  %v11438_v10 = vld [vmem:[#allocation27 + $0x1e0] sm:$0xf] }
 0x657   : > { %v12290_v27 = vld [vmem:[#allocation27 + $0x164] sm:$0xf0]  ;;  %v15275_v23 = vunpack.c.h.bf16 %v6980_v12  ;;  %v7038_v1 = vadd.f32 %v7034_v39, %v7022_v36  ;;  %v15277_v55 = vunpack.c.l.bf16 %v6981_v0  ;;  %v15279_v41 = vunpack.c.h.bf16 %v6981_v0  ;;  %v11366_v0 = vld [vmem:[#allocation27 + $0x150] sm:$0xf]  ;;  %v12288_v36 = vld [vmem:[#allocation27 + $0x154] sm:$0xf0] }
 0x658   : > { %v12306_v29 = vld [vmem:[#allocation27 + $0x1e4] sm:$0xf0]  ;;  %v11247_v14 = vor.u32 %v12258_v61, %v11246_v8  ;;  %v11311_v15 = vor.u32 %v12274_v51, %v11310_v17  ;;  %v11375_v58 = vor.u32 %v12290_v27, %v11374_v26  ;;  %v15663_v51 = vperm.slane %v15158_v38, 6 }
 0x659   : > { %v11439_v31 = vor.u32 %v12306_v29, %v11438_v10  ;;  %v7171_v10 = vperm.slane %v15183_v19, 3  ;;  %v7172_v29 = vperm.slane %v15186_v28, 3  ;;  %v15664_v17 = vperm.slane %v15160_v52, 6 }
 0x65a   : > { %v7041_v44 = vpop.permute.xlu1 %7040  ;;  %v7073_v61 = vpop.permute.xlu0 %7072  ;;  %7728 = vmatpush.bf16.msra.mxu2 %v11247_v14  ;;  %7741 = vmatpush.bf16.msra.mxu3 %v11311_v15  ;;  %v15657_v14 = vperm.slane %v15160_v52, 7 }
 0x65b   : > { %v7047_v57 = vmul.f32 %v7043_v56, %v7041_v44  ;;  %v15265_v56 = vmul.f32 %v7062_v60, %v15208_v63  ;;  %v7048_v7 = vmul.f32 %v7044_v24, %v7041_v44  ;;  %v7049_v11 = vmul.f32 %v7045_v16, %v7041_v44  ;;  %v11238_v24 = vld [vmem:[#allocation27 + $0x50] sm:$0xf]  ;;  %7754 = vmatpush.bf16.msrb.mxu0 %v11375_v58  ;;  %v15291_v27 = vpop.permute.xlu2 %7136  ;;  %v12254_v58 = vld [vmem:[#allocation27 + $0x44] sm:$0xf0] }
 0x65c   : > { %v7050_v60 = vmul.f32 %v7046_v21, %v7041_v44  ;;  %v15273_v63 = vunpack.c.l.bf16 %v6980_v12  ;;  %v11302_v16 = vld [vmem:[#allocation27 + $0xd0] sm:$0xf]  ;;  %v15284_v21 = vmul.f32 %v7107_v9, %v15243_v47  ;;  %7767 = vmatpush.bf16.msrb.mxu1 %v11439_v31  ;;  %v15309_v15 = vmul.f32 %v15657_v14, %v15243_v47  ;;  %v11294_v31 = vld [vmem:[#allocation27 + $0xc0] sm:$0xf] }
 0x65d   : > { %v7051_v30 = vadd.f32 %v7047_v57, %v7035_v54  ;;  %v7052_v44 = vadd.f32 %v7048_v7, %v7036_v40  ;;  %v7053_v57 = vadd.f32 %v7049_v11, %v7037_v62  ;;  %v11239_v40 = vor.u32 %v12256_v42, %v11238_v24  ;;  %v11430_v42 = vld [vmem:[#allocation27 + $0x1d0] sm:$0xf]  ;;  %v12286_v62 = vld [vmem:[#allocation27 + $0x144] sm:$0xf0] }
 0x65e   : > { %v7054_v8 = vadd.f32 %v7050_v60, %v7038_v1  ;;  %v11303_v7 = vor.u32 %v12272_v33, %v11302_v16  ;;  %v11367_v11 = vor.u32 %v12288_v36, %v11366_v0  ;;  %v12304_v33 = vld [vmem:[#allocation27 + $0x1d4] sm:$0xf0]  ;;  %v15304_v24 = vmul.f32 %v7108_v49, %v15243_v47 }
 0x65f   : > { %v7067_v26 = vadd.f32 %v7063_v50, %v7051_v30  ;;  %v7068_v60 = vadd.f32 %v7064_v45, %v7052_v44  ;;  %v7079_v50 = vmul.f32 %v7075_v18, %v7073_v61  ;;  %v15658_v18 = vperm.slane %v15162_v20, 7  ;;  %7729 = vmatpush.bf16.msra.mxu2 %v11239_v40 }
 0x660   : > { %v7069_v32 = vadd.f32 %v15260_v35, %v7053_v57  ;;  %v15659_v49 = vperm.slane %v15183_v19, 1  ;;  %v7070_v44 = vadd.f32 %v15265_v56, %v7054_v8  ;;  %v15660_v0 = vperm.slane %v15158_v38, 5  ;;  %7742 = vmatpush.bf16.msra.mxu3 %v11303_v7  ;;  %7755 = vmatpush.bf16.msrb.mxu0 %v11367_v11  ;;  %v11422_v8 = vld [vmem:[#allocation27 + $0x1c0] sm:$0xf]  ;;  %v11286_v38 = vld [vmem:[#allocation27 + $0xb0] sm:$0xf] }
 0x661   : > { %v15314_v45 = vmul.f32 %v15658_v18, %v15243_v47  ;;  %v7083_v14 = vadd.f32 %v7079_v50, %v7067_v26  ;;  %v12270_v47 = vld [vmem:[#allocation27 + $0xc4] sm:$0xf0]  ;;  %v11358_v18 = vld [vmem:[#allocation27 + $0x140] sm:$0xf]  ;;  %v15661_v35 = vperm.slane %v15160_v52, 5  ;;  %v15662_v40 = vperm.slane %v15162_v20, 5 }
 0x662   : > { %v15320_v16 = vmul.f32 %v15659_v49, %v15291_v27  ;;  %v7080_v36 = vmul.f32 %v15660_v0, %v7073_v61  ;;  %v12302_v0 = vld [vmem:[#allocation27 + $0x1c4] sm:$0xf0]  ;;  %v15665_v7 = vperm.slane %v15162_v20, 6  ;;  %v11431_v39 = vor.u32 %v12304_v33, %v11430_v42  ;;  %v12284_v20 = vld [vmem:[#allocation27 + $0x134] sm:$0xf0] }
 0x663   : > { %v7089_v54 = vpop.permute.xlu1 %7088  ;;  %v7081_v57 = vmul.f32 %v15661_v35, %v7073_v61  ;;  %v7082_v9 = vmul.f32 %v15662_v40, %v7073_v61  ;;  %v12252_v35 = vld [vmem:[#allocation27 + $0x34] sm:$0xf0]  ;;  %v11295_v61 = vor.u32 %v12270_v47, %v11294_v31  ;;  %v11359_v40 = vor.u32 %v12286_v62, %v11358_v18  ;;  %v11278_v47 = vld [vmem:[#allocation27 + $0xa0] sm:$0xf] }
 0x664   : > { %v7095_v1 = vmul.f32 %v7091_v37, %v7089_v54  ;;  %v11230_v37 = vld [vmem:[#allocation27 + $0x40] sm:$0xf]  ;;  %v7096_v49 = vmul.f32 %v15663_v51, %v7089_v54  ;;  %v7097_v56 = vmul.f32 %v15664_v17, %v7089_v54  ;;  %v7084_v26 = vadd.f32 %v7080_v36, %v7068_v60  ;;  %v12268_v51 = vld [vmem:[#allocation27 + $0xb4] sm:$0xf0]  ;;  %7768 = vmatpush.bf16.msrb.mxu1 %v11431_v39  ;;  %v11350_v60 = vld [vmem:[#allocation27 + $0x130] sm:$0xf] }
 0x665   : > { %v7098_v50 = vmul.f32 %v15665_v7, %v7089_v54  ;;  %v7085_v13 = vadd.f32 %v7081_v57, %v7069_v32  ;;  %v11231_v59 = vor.u32 %v12254_v58, %v11230_v37  ;;  %v7086_v30 = vadd.f32 %v7082_v9, %v7070_v44  ;;  %7743 = vmatpush.bf16.msra.mxu3 %v11295_v61  ;;  %v11414_v32 = vld [vmem:[#allocation27 + $0x1b0] sm:$0xf]  ;;  %v12300_v62 = vld [vmem:[#allocation27 + $0x1b4] sm:$0xf0]  ;;  %v11214_v44 = vld [vmem:[#allocation27 + $0x20] sm:$0xf] }
 0x666   : > { %v7099_v12 = vadd.f32 %v7095_v1, %v7083_v14  ;;  %v7174_v52 = vperm.slane %v15190_v43, 3  ;;  %v7299_v17 = vperm.slane %v15273_v63, 3  ;;  %v11423_v11 = vor.u32 %v12302_v0, %v11422_v8  ;;  %7756 = vmatpush.bf16.msrb.mxu0 %v11359_v40  ;;  %v12250_v36 = vld [vmem:[#allocation27 + $0x24] sm:$0xf0]  ;;  %v15340_v14 = vpop.permute.xlu2 %7184  ;;  %v11406_v7 = vld [vmem:[#allocation27 + $0x1a0] sm:$0xf] }
 0x667   : > { %v7100_v54 = vadd.f32 %v7096_v49, %v7084_v26  ;;  %v7101_v1 = vadd.f32 %v7097_v56, %v7085_v13  ;;  %v7300_v42 = vperm.slane %v15275_v23, 3  ;;  %7730 = vmatpush.bf16.msra.mxu2 %v11231_v59  ;;  %v11223_v33 = vor.u32 %v12252_v35, %v11222_v2  ;;  %v12282_v8 = vld [vmem:[#allocation27 + $0x124] sm:$0xf0]  ;;  %v6872_v35 = vld [vmem:[#allocation3 + $0x10] sm:$0xff] }
 0x668   : > { %v7102_v37 = vadd.f32 %v7098_v50, %v7086_v30  ;;  %v7115_v9 = vadd.f32 %v15284_v21, %v7099_v12  ;;  %v11287_v39 = vor.u32 %v12268_v51, %v11286_v38  ;;  %v11351_v30 = vor.u32 %v12284_v20, %v11350_v60  ;;  %v12266_v21 = vld [vmem:[#allocation27 + $0xa4] sm:$0xf0]  ;;  %v6871_v12 = vld [vmem:[#allocation3 + $0x18] sm:$0xff]  ;;  %7769 = vmatpush.bf16.msrb.mxu1 %v11423_v11  ;;  %v11206_v51 = vld [vmem:[#allocation27 + $0x10] sm:$0xf]  ;;  %v7153_v60 = vpop.permute.xlu0 %7152 }
 0x669   : > { %v7203_v49 = vperm.slane %v15183_v19, 5  ;;  %v11415_v56 = vor.u32 %v12300_v62, %v11414_v32  ;;  %v7117_v0 = vadd.f32 %v15309_v15, %v7101_v1  ;;  %v11215_v26 = vor.u32 %v12250_v36, %v11214_v44  ;;  %v12298_v50 = vld [vmem:[#allocation27 + $0x1a4] sm:$0xf0]  ;;  %v12248_v11 = vld [vmem:[#allocation27 + $0x14] sm:$0xf0]  ;;  %v6873_v32 = vld [vmem:[#allocation3 + $0x8] sm:$0xff] }
 0x66a   : > { %v7204_v61 = vperm.slane %v15186_v28, 5  ;;  %v7205_v40 = vperm.slane %v15188_v34, 5  ;;  %7744 = vmatpush.bf16.msra.mxu3 %v11287_v39  ;;  %v11279_v38 = vor.u32 %v12266_v21, %v11278_v47  ;;  %v7206_v15 = vperm.slane %v15190_v43, 5  ;;  %7757 = vmatpush.bf16.msrb.mxu0 %v11351_v30  ;;  %v11270_v1 = vld [vmem:[#allocation27 + $0x90] sm:$0xf] }
 0x66b   : > { %7731 = vmatpush.bf16.msra.mxu2 %v11223_v33  ;;  %v12264_v33 = vld [vmem:[#allocation27 + $0x94] sm:$0xf0]  ;;  %v15359_v39 = vadd.f32 %v15168_v6, %v6871_v12  ;;  %v15362_v44 = vadd.f32 %v15170_v46, %v6872_v35  ;;  %v15666_v36 = vperm.slane %v15186_v28, 1  ;;  %v11207_v47 = vor.u32 %v12248_v11, %v11206_v51  ;;  %v12278_v51 = vld [vmem:[#allocation27 + $0x104] sm:$0xf0] }
 0x66c   : > { %7770 = vmatpush.bf16.msrb.mxu1 %v11415_v56  ;;  %v12296_v21 = vld [vmem:[#allocation27 + $0x194] sm:$0xf0]  ;;  %v12246_v56 = vld [vmem:[#allocation27 + $0x4] sm:$0xf0]  ;;  %v15668_v6 = vperm.slane %v15190_v43, 1  ;;  %v15669_v12 = vperm.slane %v15183_v19, 2 }
 0x66d   : > { %v7121_v58 = vpop.permute.xlu1 %7120  ;;  %v12259_v11 = vld [vmem:[#allocation27 + $0x74] sm:$0xf] }
 0x66e   : > { %v7127_v13 = vmul.f32 %v7123_v4, %v7121_v58  ;;  %v7128_v59 = vmul.f32 %v7124_v3, %v7121_v58  ;;  %v7129_v2 = vmul.f32 %v7125_v53, %v7121_v58  ;;  %v7130_v18 = vmul.f32 %v7126_v5, %v7121_v58  ;;  %v11342_v4 = vld [vmem:[#allocation27 + $0x120] sm:$0xf]  ;;  %v12280_v58 = vld [vmem:[#allocation27 + $0x114] sm:$0xf0]  ;;  %7745 = vmatpush.bf16.msra.mxu3 %v11279_v38  ;;  %v11256_v38 = vld [vmem:[#allocation27 + $0x78] sm:$0xf0] }
 0x66f   : > { %v7116_v3 = vadd.f32 %v15304_v24, %v7100_v54  ;;  %v7118_v5 = vadd.f32 %v15314_v45, %v7102_v37  ;;  %v11343_v54 = vor.u32 %v12282_v8, %v11342_v4  ;;  %v11407_v45 = vor.u32 %v12298_v50, %v11406_v7  ;;  %v11334_v37 = vld [vmem:[#allocation27 + $0x110] sm:$0xf]  ;;  %7732 = vmatpush.bf16.msra.mxu2 %v11215_v26  ;;  %v15378_v7 = vld [vmem:[#allocation27 + $0x100] sm:$0xf] }
 0x670   : > { %v7131_v53 = vadd.f32 %v7127_v13, %v7115_v9  ;;  %v7133_v20 = vadd.f32 %v7129_v2, %v7117_v0  ;;  %v11398_v9 = vld [vmem:[#allocation27 + $0x190] sm:$0xf]  ;;  %v7144_v13 = vmul.f32 %v15666_v36, %v15291_v27  ;;  %v7146_v46 = vmul.f32 %v15668_v6, %v15291_v27  ;;  %v12262_v0 = vld [vmem:[#allocation27 + $0x84] sm:$0xf0]  ;;  %v12275_v6 = vld [vmem:[#allocation27 + $0xf4] sm:$0xf] }
 0x671   : > { %v7132_v24 = vadd.f32 %v7128_v59, %v7116_v3  ;;  %v7134_v62 = vadd.f32 %v7130_v18, %v7118_v5  ;;  %v15667_v59 = vperm.slane %v15188_v34, 1  ;;  %v11198_v18 = vld [vmem:[#allocation27] sm:$0xf]  ;;  %v7159_v4 = vmul.f32 %v15669_v12, %v7153_v60  ;;  %7758 = vmatpush.bf16.msrb.mxu0 %v11343_v54  ;;  %7771 = vmatpush.bf16.msrb.mxu1 %v11407_v45  ;;  %v11320_v12 = vld [vmem:[#allocation27 + $0xf8] sm:$0xf0]  ;;  %v15391_v54 = vpop.permute.xlu2 %7216 }
 0x672   : > { %v7147_v30 = vadd.f32 %v15320_v16, %v7131_v53  ;;  %v11271_v8 = vor.u32 %v12264_v33, %v11270_v1  ;;  %v15376_v3 = vld [vmem:[#allocation27 + $0x80] sm:$0xf]  ;;  %v15381_v16 = vadd.f32 %v15224_v48, %v6873_v32  ;;  %v15670_v53 = vperm.slane %v15186_v28, 2 }
 0x673   : > { %v7145_v2 = vmul.f32 %v15667_v59, %v15291_v27  ;;  %v7148_v50 = vadd.f32 %v7144_v13, %v7132_v24  ;;  %v11335_v27 = vor.u32 %v12280_v58, %v11334_v37  ;;  %v15671_v1 = vperm.slane %v15188_v34, 2  ;;  %v11390_v32 = vld [vmem:[#allocation27 + $0x180] sm:$0xf]  ;;  %7733 = vmatpush.bf16.msra.mxu2 %v11207_v47 }
 0x674   : > { %v7160_v26 = vmul.f32 %v15670_v53, %v7153_v60  ;;  %v7150_v36 = vadd.f32 %v7146_v46, %v7134_v62  ;;  %v11399_v48 = vor.u32 %v12296_v21, %v11398_v9  ;;  %v15672_v24 = vperm.slane %v15190_v43, 2  ;;  %v12294_v62 = vld [vmem:[#allocation27 + $0x184] sm:$0xf0]  ;;  %v11384_v46 = vld [vmem:[#allocation27 + $0x178] sm:$0xf0]  ;;  %7746 = vmatpush.bf16.msra.mxu3 %v11271_v8 }
 0x675   : > { %v7149_v35 = vadd.f32 %v7145_v2, %v7133_v20  ;;  %v7161_v33 = vmul.f32 %v15671_v1, %v7153_v60  ;;  %v7163_v37 = vadd.f32 %v7159_v4, %v7147_v30  ;;  %v11199_v13 = vor.u32 %v12246_v56, %v11198_v18  ;;  %v12291_v2 = vld [vmem:[#allocation27 + $0x174] sm:$0xf]  ;;  %v11448_v30 = vld [vmem:[#allocation27 + $0x1f8] sm:$0xf0]  ;;  %7759 = vmatpush.bf16.msrb.mxu0 %v11335_v27  ;;  %v12257_v18 = vld [vmem:[#allocation27 + $0x64] sm:$0xf] }
 0x676   : > { %v7169_v5 = vpop.permute.xlu1 %7168  ;;  %v7162_v20 = vmul.f32 %v15672_v24, %v7153_v60  ;;  %v11263_v60 = vor.u32 %v12262_v0, %v15376_v3  ;;  %v11259_v21 = vor.u32 %v12259_v11, %v11256_v38  ;;  %v12307_v53 = vld [vmem:[#allocation27 + $0x1f4] sm:$0xf]  ;;  %v7164_v4 = vadd.f32 %v7160_v26, %v7148_v50  ;;  %v11248_v56 = vld [vmem:[#allocation27 + $0x68] sm:$0xf0]  ;;  %7772 = vmatpush.bf16.msrb.mxu1 %v11399_v48 }
 0x677   : > { %v7175_v59 = vmul.f32 %v7171_v10, %v7169_v5  ;;  %v7176_v58 = vmul.f32 %v7172_v29, %v7169_v5  ;;  %v15673_v10 = vperm.slane %v15188_v34, 3  ;;  %v7178_v9 = vmul.f32 %v7174_v52, %v7169_v5  ;;  %v12273_v52 = vld [vmem:[#allocation27 + $0xe4] sm:$0xf]  ;;  %v11312_v8 = vld [vmem:[#allocation27 + $0xe8] sm:$0xf0]  ;;  %7734 = vmatpush.bf16.msra.mxu2 %v11199_v13 }
 0x678   : > { %v7165_v1 = vadd.f32 %v7161_v33, %v7149_v35  ;;  %v11327_v29 = vor.u32 %v12278_v51, %v15378_v7  ;;  %v11323_v47 = vor.u32 %v12275_v6, %v11320_v12  ;;  %v7166_v24 = vadd.f32 %v7162_v20, %v7150_v36  ;;  %v11376_v27 = vld [vmem:[#allocation27 + $0x168] sm:$0xf0]  ;;  %v12305_v51 = vld [vmem:[#allocation27 + $0x1e4] sm:$0xf]  ;;  %7747 = vmatpush.bf16.msra.mxu3 %v11263_v60  ;;  %v12271_v13 = vld [vmem:[#allocation27 + $0xd4] sm:$0xf] }
 0x679   : > { %v7177_v45 = vmul.f32 %v15673_v10, %v7169_v5  ;;  %v7179_v57 = vadd.f32 %v7175_v59, %v7163_v37  ;;  %v11391_v10 = vor.u32 %v12294_v62, %v11390_v32  ;;  %v11387_v31 = vor.u32 %v12291_v2, %v11384_v46  ;;  %v12289_v5 = vld [vmem:[#allocation27 + $0x164] sm:$0xf]  ;;  %v11440_v11 = vld [vmem:[#allocation27 + $0x1e8] sm:$0xf0]  ;;  %v12255_v37 = vld [vmem:[#allocation27 + $0x54] sm:$0xf] }
 0x67a   : > { %v15674_v3 = vperm.slane %v15183_v19, 4  ;;  %v15675_v26 = vperm.slane %v15186_v28, 4  ;;  %v7180_v7 = vadd.f32 %v7176_v58, %v7164_v4  ;;  %v11451_v35 = vor.u32 %v12307_v53, %v11448_v30  ;;  %7760 = vmatpush.bf16.msrb.mxu0 %v11327_v29  ;;  %v11240_v58 = vld [vmem:[#allocation27 + $0x58] sm:$0xf0]  ;;  %v12287_v60 = vld [vmem:[#allocation27 + $0x154] sm:$0xf] }
 0x67b   : > { %v7181_v38 = vadd.f32 %v7177_v45, %v7165_v1  ;;  %v7182_v33 = vadd.f32 %v7178_v9, %v7166_v24  ;;  %v7251_v36 = vperm.slane %v15273_v63, 0  ;;  %7779 = vmatpush.bf16.msrb.mxu2 %v11259_v21  ;;  %v11251_v59 = vor.u32 %v12257_v18, %v11248_v56  ;;  %7773 = vmatpush.bf16.msrb.mxu1 %v11391_v10  ;;  %v11304_v9 = vld [vmem:[#allocation27 + $0xd8] sm:$0xf0]  ;;  %v15428_v10 = vpop.permute.xlu2 %7264 }
 0x67c   : > { %v7191_v0 = vmul.f32 %v15674_v3, %v15340_v14  ;;  %v7192_v50 = vmul.f32 %v15675_v26, %v15340_v14  ;;  %v15676_v48 = vperm.slane %v15188_v34, 4  ;;  %v15677_v6 = vperm.slane %v15190_v43, 4  ;;  %7792 = vmatpush.bf16.msrb.mxu3 %v11323_v47  ;;  %v11368_v21 = vld [vmem:[#allocation27 + $0x158] sm:$0xf0]  ;;  %v12303_v47 = vld [vmem:[#allocation27 + $0x1d4] sm:$0xf] }
 0x67d   : > { %v11315_v20 = vor.u32 %v12273_v52, %v11312_v8  ;;  %v11379_v46 = vor.u32 %v12289_v5, %v11376_v27  ;;  %v11443_v45 = vor.u32 %v12305_v51, %v11440_v11  ;;  %v11243_v29 = vor.u32 %v12255_v37, %v11240_v58  ;;  %v11432_v18 = vld [vmem:[#allocation27 + $0x1d8] sm:$0xf0]  ;;  %v12253_v8 = vld [vmem:[#allocation27 + $0x44] sm:$0xf]  ;;  %v11232_v5 = vld [vmem:[#allocation27 + $0x48] sm:$0xf0] }
 0x67e   : > { %v7193_v32 = vmul.f32 %v15676_v48, %v15340_v14  ;;  %v7194_v12 = vmul.f32 %v15677_v6, %v15340_v14  ;;  %v7195_v2 = vadd.f32 %v7191_v0, %v7179_v57  ;;  %7805 = vmatpush.bf16.msra.mxu0 %v11387_v31  ;;  %v7196_v57 = vadd.f32 %v7192_v50, %v7180_v7  ;;  %v12269_v3 = vld [vmem:[#allocation27 + $0xc4] sm:$0xf]  ;;  %v11360_v51 = vld [vmem:[#allocation27 + $0x148] sm:$0xf0] }
 0x67f   : > { %v7201_v62 = vpop.permute.xlu1 %7200  ;;  %7818 = vmatpush.bf16.msra.mxu1 %v11451_v35  ;;  %7780 = vmatpush.bf16.msrb.mxu2 %v11251_v59  ;;  %v11371_v52 = vor.u32 %v12287_v60, %v11368_v21  ;;  %v11296_v35 = vld [vmem:[#allocation27 + $0xc8] sm:$0xf0]  ;;  %v12285_v27 = vld [vmem:[#allocation27 + $0x144] sm:$0xf]  ;;  %v7252_v11 = vperm.slane %v15275_v23, 0  ;;  %v11435_v59 = vor.u32 %v12303_v47, %v11432_v18  ;;  %v15682_v37 = vperm.slane %v15183_v19, 7 }
 0x680   : > { %v7207_v53 = vmul.f32 %v7203_v49, %v7201_v62  ;;  %v7208_v14 = vmul.f32 %v7204_v61, %v7201_v62  ;;  %v7209_v30 = vmul.f32 %v7205_v40, %v7201_v62  ;;  %v7210_v4 = vmul.f32 %v7206_v15, %v7201_v62  ;;  %v7233_v40 = vpop.permute.xlu0 %7232  ;;  %7793 = vmatpush.bf16.msrb.mxu3 %v11315_v20  ;;  %v12301_v48 = vld [vmem:[#allocation27 + $0x1c4] sm:$0xf]  ;;  %v11424_v62 = vld [vmem:[#allocation27 + $0x1c8] sm:$0xf0] }
 0x681   : > { %v7197_v31 = vadd.f32 %v7193_v32, %v7181_v38  ;;  %v7198_v1 = vadd.f32 %v7194_v12, %v7182_v33  ;;  %v15678_v49 = vperm.slane %v15183_v19, 6  ;;  %v15679_v61 = vperm.slane %v15186_v28, 6 }
 0x682   : > { %v11307_v15 = vor.u32 %v12271_v13, %v11304_v9  ;;  %v7211_v0 = vadd.f32 %v7207_v53, %v7195_v2  ;;  %v7212_v26 = vadd.f32 %v7208_v14, %v7196_v57  ;;  %7806 = vmatpush.bf16.msra.mxu0 %v11379_v46  ;;  %v7253_v38 = vperm.slane %v15277_v55, 0  ;;  %v12251_v2 = vld [vmem:[#allocation27 + $0x34] sm:$0xf]  ;;  %v11224_v46 = vld [vmem:[#allocation27 + $0x38] sm:$0xf0] }
 0x683   : > { %v7223_v56 = vmul.f32 %v15678_v49, %v15391_v54  ;;  %v7224_v24 = vmul.f32 %v15679_v61, %v15391_v54  ;;  %v7213_v50 = vadd.f32 %v7209_v30, %v7197_v31  ;;  %v7214_v7 = vadd.f32 %v7210_v4, %v7198_v1  ;;  %7819 = vmatpush.bf16.msra.mxu1 %v11443_v45  ;;  %v12267_v30 = vld [vmem:[#allocation27 + $0xb4] sm:$0xf]  ;;  %v11288_v31 = vld [vmem:[#allocation27 + $0xb8] sm:$0xf0] }
 0x684   : > { %v7254_v33 = vperm.slane %v15279_v41, 0  ;;  %v15680_v32 = vperm.slane %v15188_v34, 6  ;;  %v15681_v12 = vperm.slane %v15190_v43, 6  ;;  %v7239_v58 = vmul.f32 %v15682_v37, %v7233_v40  ;;  %7781 = vmatpush.bf16.msrb.mxu2 %v11243_v29  ;;  %7794 = vmatpush.bf16.msrb.mxu3 %v11307_v15  ;;  %v12283_v1 = vld [vmem:[#allocation27 + $0x134] sm:$0xf]  ;;  %v7297_v37 = vpop.permute.xlu2 %7296 }
 0x685   : > { %v11235_v13 = vor.u32 %v12253_v8, %v11232_v5  ;;  %v15683_v45 = vperm.slane %v15186_v28, 7  ;;  %v15684_v60 = vperm.slane %v15188_v34, 7  ;;  %v11299_v53 = vor.u32 %v12269_v3, %v11296_v35  ;;  %v11352_v29 = vld [vmem:[#allocation27 + $0x138] sm:$0xf0] }
 0x686   : > { %v7225_v6 = vmul.f32 %v15680_v32, %v15391_v54  ;;  %v7226_v20 = vmul.f32 %v15681_v12, %v15391_v54  ;;  %v11363_v14 = vor.u32 %v12285_v27, %v11360_v51  ;;  %v7227_v4 = vadd.f32 %v7223_v56, %v7211_v0  ;;  %7807 = vmatpush.bf16.msra.mxu0 %v11371_v52  ;;  %v12299_v56 = vld [vmem:[#allocation27 + $0x1b4] sm:$0xf]  ;;  %v11416_v3 = vld [vmem:[#allocation27 + $0x1b8] sm:$0xf0]  ;;  %v12265_v27 = vld [vmem:[#allocation27 + $0xa4] sm:$0xf] }
 0x687   : > { %v7240_v9 = vmul.f32 %v15683_v45, %v7233_v40  ;;  %v7241_v21 = vmul.f32 %v15684_v60, %v7233_v40  ;;  %v7228_v54 = vadd.f32 %v7224_v24, %v7212_v26  ;;  %v15685_v47 = vperm.slane %v15190_v43, 7  ;;  %7820 = vmatpush.bf16.msra.mxu1 %v11435_v59  ;;  %v12249_v43 = vld [vmem:[#allocation27 + $0x24] sm:$0xf] }
 0x688   : > { %v7229_v57 = vadd.f32 %v7225_v6, %v7213_v50  ;;  %v7230_v19 = vadd.f32 %v7226_v20, %v7214_v7  ;;  %v15686_v28 = vperm.slane %v15273_v63, 1  ;;  %v7249_v49 = vpop.permute.xlu1 %7248  ;;  %v11427_v61 = vor.u32 %v12301_v48, %v11424_v62  ;;  %7782 = vmatpush.bf16.msrb.mxu2 %v11235_v13  ;;  %7795 = vmatpush.bf16.msrb.mxu3 %v11299_v53  ;;  %v11344_v48 = vld [vmem:[#allocation27 + $0x128] sm:$0xf0]  ;;  %v11208_v53 = vld [vmem:[#allocation27 + $0x18] sm:$0xf0] }
 0x689   : > { %v7242_v18 = vmul.f32 %v15685_v47, %v7233_v40  ;;  %v11227_v15 = vor.u32 %v12251_v2, %v11224_v46  ;;  %v7255_v24 = vmul.f32 %v7251_v36, %v7249_v49  ;;  %v7256_v52 = vmul.f32 %v7252_v11, %v7249_v49  ;;  %v11216_v40 = vld [vmem:[#allocation27 + $0x28] sm:$0xf0]  ;;  %v12247_v46 = vld [vmem:[#allocation27 + $0x14] sm:$0xf]  ;;  %v15473_v47 = vld [vmem:[#allocation26] sm:$0xf] }
 0x68a   : > { %v15450_v34 = vmul.f32 %v15686_v28, %v15428_v10  ;;  %v7257_v8 = vmul.f32 %v7253_v38, %v7249_v49  ;;  %v7258_v5 = vmul.f32 %v7254_v33, %v7249_v49  ;;  %v15687_v0 = vperm.slane %v15275_v23, 1  ;;  %7808 = vmatpush.bf16.msra.mxu0 %v11363_v14  ;;  %v11280_v38 = vld [vmem:[#allocation27 + $0xa8] sm:$0xf0]  ;;  %v12281_v33 = vld [vmem:[#allocation27 + $0x124] sm:$0xf] }
 0x68b   : > { %v7283_v50 = vperm.slane %v15273_v63, 2  ;;  %v11291_v7 = vor.u32 %v12267_v30, %v11288_v31  ;;  %v11355_v35 = vor.u32 %v12283_v1, %v11352_v29  ;;  %v7243_v51 = vadd.f32 %v7239_v58, %v7227_v4  ;;  %7821 = vmatpush.bf16.msra.mxu1 %v11427_v61  ;;  %v12297_v58 = vld [vmem:[#allocation27 + $0x1a4] sm:$0xf]  ;;  %v11408_v2 = vld [vmem:[#allocation27 + $0x1a8] sm:$0xf0] }
 0x68c   : > { %v7272_v26 = vmul.f32 %v15687_v0, %v15428_v10  ;;  %v7244_v59 = vadd.f32 %v7240_v9, %v7228_v54  ;;  %v7245_v36 = vadd.f32 %v7241_v21, %v7229_v57  ;;  %v7246_v11 = vadd.f32 %v7242_v18, %v7230_v19  ;;  %7783 = vmatpush.bf16.msrb.mxu2 %v11227_v15  ;;  %v12263_v14 = vld [vmem:[#allocation27 + $0x94] sm:$0xf]  ;;  %v11272_v30 = vld [vmem:[#allocation27 + $0x98] sm:$0xf0] }
 0x68d   : > { %v15688_v32 = vperm.slane %v15277_v55, 1  ;;  %v15689_v12 = vperm.slane %v15279_v41, 1  ;;  %v11419_v13 = vor.u32 %v12299_v56, %v11416_v3  ;;  %v11219_v62 = vor.u32 %v12249_v43, %v11216_v40  ;;  %7796 = vmatpush.bf16.msrb.mxu3 %v11291_v7  ;;  %v12279_v28 = vld [vmem:[#allocation27 + $0x114] sm:$0xf]  ;;  %v11336_v63 = vld [vmem:[#allocation27 + $0x118] sm:$0xf0] }
 0x68e   : > { %v7259_v45 = vadd.f32 %v7255_v24, %v7243_v51  ;;  %v7260_v9 = vadd.f32 %v7256_v52, %v7244_v59  ;;  %v7261_v60 = vadd.f32 %v7257_v8, %v7245_v36  ;;  %v7262_v21 = vadd.f32 %v7258_v5, %v7246_v11  ;;  %7809 = vmatpush.bf16.msra.mxu0 %v11355_v35  ;;  %v11400_v52 = vld [vmem:[#allocation27 + $0x198] sm:$0xf0]  ;;  %v12245_v3 = vld [vmem:[#allocation27 + $0x4] sm:$0xf]  ;;  %v11200_v7 = vld [vmem:[#allocation27 + $0x8] sm:$0xf0] }
 0x68f   : > { %v7273_v6 = vmul.f32 %v15688_v32, %v15428_v10  ;;  %v7274_v20 = vmul.f32 %v15689_v12, %v15428_v10  ;;  %v7284_v4 = vperm.slane %v15275_v23, 2  ;;  %v7285_v54 = vperm.slane %v15277_v55, 2  ;;  %7822 = vmatpush.bf16.msra.mxu1 %v11419_v13  ;;  %v12261_v35 = vld [vmem:[#allocation27 + $0x84] sm:$0xf] }
 0x690   : > { %v7286_v10 = vperm.slane %v15279_v41, 2  ;;  %v11283_v57 = vor.u32 %v12265_v27, %v11280_v38  ;;  %v7303_v19 = vmul.f32 %v7299_v17, %v7297_v37  ;;  %v7304_v31 = vmul.f32 %v7300_v42, %v7297_v37  ;;  %v12295_v17 = vld [vmem:[#allocation27 + $0x194] sm:$0xf]  ;;  %7784 = vmatpush.bf16.msrb.mxu2 %v11219_v62  ;;  %v11264_v27 = vld [vmem:[#allocation27 + $0x88] sm:$0xf0] }
 0x691   : > { %v15690_v1 = vperm.slane %v15277_v55, 3  ;;  %v11347_v18 = vor.u32 %v12281_v33, %v11344_v48  ;;  %v15691_v49 = vperm.slane %v15279_v41, 3  ;;  %v11411_v15 = vor.u32 %v12297_v58, %v11408_v2  ;;  %v7281_v23 = vpop.permute.xlu1 %7280  ;;  %v12293_v32 = vld [vmem:[#allocation27 + $0x184] sm:$0xf] }
 0x692   : > { %v11211_v56 = vor.u32 %v12247_v46, %v11208_v53  ;;  %v11275_v24 = vor.u32 %v12263_v14, %v11272_v30  ;;  %v7275_v42 = vadd.f32 %v15450_v34, %v7259_v45  ;;  %v7276_v55 = vadd.f32 %v7272_v26, %v7260_v9  ;;  %7797 = vmatpush.bf16.msrb.mxu3 %v11283_v57  ;;  %v12277_v26 = vld [vmem:[#allocation27 + $0x104] sm:$0xf] }
 0x693   : > { %v7305_v29 = vmul.f32 %v15690_v1, %v7297_v37  ;;  %v7306_v61 = vmul.f32 %v15691_v49, %v7297_v37  ;;  %v7277_v8 = vadd.f32 %v7273_v6, %v7261_v60  ;;  %v7278_v5 = vadd.f32 %v7274_v20, %v7262_v21  ;;  %7810 = vmatpush.bf16.msra.mxu0 %v11347_v18  ;;  %v11392_v6 = vld [vmem:[#allocation27 + $0x188] sm:$0xf0]  ;;  %v12324_v49 = vld [vmem:[#allocation30 + $0x78] sm:$0xff] }
 0x694   : > { %v7287_v43 = vmul.f32 %v7283_v50, %v7281_v23  ;;  %v7288_v40 = vmul.f32 %v7284_v4, %v7281_v23  ;;  %v7289_v0 = vmul.f32 %v7285_v54, %v7281_v23  ;;  %v7290_v41 = vmul.f32 %v7286_v10, %v7281_v23  ;;  %7823 = vmatpush.bf16.msra.mxu1 %v11411_v15  ;;  %v11328_v50 = vld [vmem:[#allocation27 + $0x108] sm:$0xf0]  ;;  %v12311_v15 = vld [vmem:[#allocation30 + $0x10] sm:$0xff]  ;;  %v12320_v23 = vld [vmem:[#allocation30 + $0x58] sm:$0xff] }
 0x695   : > { %v7317_v51 = vperm.slane %v15473_v47, 0  ;;  %v7318_v59 = vperm.slane %v15473_v47, 1  ;;  %v11339_v36 = vor.u32 %v12279_v28, %v11336_v63  ;;  %v11403_v34 = vor.u32 %v12295_v17, %v11400_v52  ;;  %7785 = vmatpush.bf16.msrb.mxu2 %v11211_v56  ;;  %v12314_v18 = vld [vmem:[#allocation30 + $0x28] sm:$0xff]  ;;  %v12313_v28 = vld [vmem:[#allocation30 + $0x20] sm:$0xff]  ;;  %v12323_v56 = vld [vmem:[#allocation30 + $0x70] sm:$0xff] }
 0x696   : > { %v7291_v11 = vadd.f32 %v7287_v43, %v7275_v42  ;;  %v7292_v38 = vadd.f32 %v7288_v40, %v7276_v55  ;;  %v7293_v33 = vadd.f32 %v7289_v0, %v7277_v8  ;;  %v7294_v48 = vadd.f32 %v7290_v41, %v7278_v5  ;;  %7798 = vmatpush.bf16.msrb.mxu3 %v11275_v24  ;;  %v12310_v24 = vld [vmem:[#allocation30 + $0x8] sm:$0xff]  ;;  %v12309_v17 = vld [vmem:[#allocation30] sm:$0xff]  ;;  %v7401_v42 = vld [vmem:[#allocation29] sm:$0x3] }
 0x697   : > { %v7319_v12 = vperm.slane %v15473_v47, 2  ;;  %v7320_v20 = vperm.slane %v15473_v47, 3  ;;  %v11203_v37 = vor.u32 %v12245_v3, %v11200_v7  ;;  %v11267_v13 = vor.u32 %v12261_v35, %v11264_v27  ;;  %7811 = vmatpush.bf16.msra.mxu0 %v11339_v36  ;;  %v12322_v63 = vld [vmem:[#allocation30 + $0x68] sm:$0xff]  ;;  %v12321_v52 = vld [vmem:[#allocation30 + $0x60] sm:$0xff]  ;;  %v12319_v5 = vld [vmem:[#allocation30 + $0x50] sm:$0xff] }
 0x698   : > { %v7307_v62 = vadd.f32 %v7303_v19, %v7291_v11  ;;  %v7308_v58 = vadd.f32 %v7304_v31, %v7292_v38  ;;  %v7309_v2 = vadd.f32 %v7305_v29, %v7293_v33  ;;  %v7310_v46 = vadd.f32 %v7306_v61, %v7294_v48  ;;  %7824 = vmatpush.bf16.msra.mxu1 %v11403_v34  ;;  %v12312_v61 = vld [vmem:[#allocation30 + $0x18] sm:$0xff]  ;;  %v12318_v43 = vld [vmem:[#allocation30 + $0x48] sm:$0xff]  ;;  %v12317_v7 = vld [vmem:[#allocation30 + $0x40] sm:$0xff] }
 0x699   : > { %v11331_v45 = vor.u32 %v12277_v26, %v11328_v50  ;;  %v11395_v9 = vor.u32 %v12293_v32, %v11392_v6  ;;  %7786 = vmatpush.bf16.msrb.mxu2 %v11203_v37  ;;  %v7403_v3 = vperm.slane %v7401_v42, 0  ;;  %v7404_v50 = vperm.slane %v7401_v42, 1 }
 0x69a   : > { %v7311_v60 = vadd.f32 %v7307_v62, %v15226_v25  ;;  %v7312_v21 = vadd.f32 %v7308_v58, %v15359_v39  ;;  %v7313_v53 = vadd.f32 %v7309_v2, %v15362_v44  ;;  %v7314_v14 = vadd.f32 %v7310_v46, %v15381_v16  ;;  %7799 = vmatpush.bf16.msrb.mxu3 %v11267_v13  ;;  %v12316_v44 = vld [vmem:[#allocation30 + $0x38] sm:$0xff]  ;;  %v12315_v16 = vld [vmem:[#allocation30 + $0x30] sm:$0xff] }
 0x69b   : > { %7812 = vmatpush.bf16.msra.mxu0 %v11331_v45 }
 0x69c   : > { %v7325_v30 = vadd.f32 %v7317_v51, %v7311_v60  ;;  %v7326_v4 = vadd.f32 %v7318_v59, %v7312_v21  ;;  %v7327_v54 = vadd.f32 %v7319_v12, %v7313_v53  ;;  %v7328_v10 = vadd.f32 %v7320_v20, %v7314_v14  ;;  %7825 = vmatpush.bf16.msra.mxu1 %v11395_v9  ;;  %v12617_v53 = vld [vmem:[#allocation32] ss:$0 sm:$0xff] }
 0x69e   : > { %v7329_v57 = vmax.f32 %v7325_v30, 0.0  ;;  %v7330_v19 = vmax.f32 %v7326_v4, 0.0  ;;  %v7331_v31 = vmax.f32 %v7327_v54, 0.0  ;;  %v7332_v1 = vmax.f32 %v7328_v10, 0.0 }
 0x6a0   : > { %v7333_v25 = vpack.c.bf16 %v7329_v57, %v7329_v57  ;;  %v7334_v29 = vpack.c.bf16 %v7330_v19, %v7330_v19  ;;  %v7335_v39 = vpack.c.bf16 %v7331_v31, %v7331_v31  ;;  %v7336_v47 = vpack.c.bf16 %v7332_v1, %v7332_v1 }
 0x6a2   : > { %7735 = vmatmul.bf16.vlgmr.msra.gmra.mxu2 %v7333_v25  ;;  %7748 = vmatmul.bf16.vlgmr.msra.gmra.mxu3 %v7334_v29 }
 0x6a3   : > { %7761 = vmatmul.bf16.vlgmr.msrb.gmra.mxu0 %v7335_v39  ;;  %7774 = vmatmul.bf16.vlgmr.msrb.gmra.mxu1 %v7336_v47 }
 0x6a4   : > { %7967 = vmatpush.bf16.msra.mxu2 %v12316_v44  ;;  %7980 = vmatpush.bf16.msra.mxu3 %v12324_v49 }
 0x6a8   : > { %7968 = vmatpush.bf16.msra.mxu2 %v12315_v16  ;;  %7981 = vmatpush.bf16.msra.mxu3 %v12323_v56 }
 0x6ac   : > { %7969 = vmatpush.bf16.msra.mxu2 %v12314_v18  ;;  %7982 = vmatpush.bf16.msra.mxu3 %v12322_v63 }
 0x6b0   : > { %7970 = vmatpush.bf16.msra.mxu2 %v12313_v28  ;;  %7983 = vmatpush.bf16.msra.mxu3 %v12321_v52 }
 0x6b2   : > { %7787 = vmatmul.bf16.vlgmr.msrb.gmra.mxu2 %v7333_v25  ;;  %7800 = vmatmul.bf16.vlgmr.msrb.gmra.mxu3 %v7334_v29 }
 0x6b3   : > { %7813 = vmatmul.bf16.vlgmr.msra.gmra.mxu0 %v7335_v39  ;;  %7826 = vmatmul.bf16.vlgmr.msra.gmra.mxu1 %v7336_v47 }
 0x6b4   : > { %7971 = vmatpush.bf16.msra.mxu2 %v12312_v61  ;;  %7984 = vmatpush.bf16.msra.mxu3 %v12320_v23 }
 0x6b8   : > { %7972 = vmatpush.bf16.msra.mxu2 %v12311_v15  ;;  %7985 = vmatpush.bf16.msra.mxu3 %v12319_v5 }
 0x6bc   : > { %7973 = vmatpush.bf16.msra.mxu2 %v12310_v24  ;;  %7986 = vmatpush.bf16.msra.mxu3 %v12318_v43 }
 0x6c0   : > { %7974 = vmatpush.bf16.msra.mxu2 %v12309_v17  ;;  %7987 = vmatpush.bf16.msra.mxu3 %v12317_v7 }
 0x720   : > { %v7762_v55 = vpop.f32.mrf.mxu0  ;;  %v7775_v8 = vpop.f32.mrf.mxu1 }
 0x725   : > { %v7736_v40 = vpop.f32.mrf.mxu2  ;;  %v7749_v0 = vpop.f32.mrf.mxu3 }
 0x726   : > { %v7737_v41 = vadd.f32 %v7736_v40, %v7403_v3 }
 0x728   : > { %v7750_v35 = vadd.f32 %v7749_v0, %v7737_v41  ;;  %v7764_v27 = vpop.f32.mrf.mxu0  ;;  %v7777_v51 = vpop.f32.mrf.mxu1 }
 0x72a   : > { %v7763_v59 = vadd.f32 %v7762_v55, %v7750_v35 }
 0x72c   : > { %v7776_v36 = vadd.f32 %v7775_v8, %v7763_v59 }
 0x72d   : > { %v7738_v34 = vpop.f32.mrf.mxu2  ;;  %v7751_v26 = vpop.f32.mrf.mxu3 }
 0x72e   : > { %v7831_v11 = vmax.f32 %v7776_v36, 0.0 }
 0x730   : > { %v7833_v38 = vpack.c.bf16 %v7831_v11, %v7831_v11  ;;  %v7814_v33 = vpop.f32.mrf.mxu0  ;;  %v7827_v48 = vpop.f32.mrf.mxu1 }
 0x732   : > { %7975 = vmatmul.bf16.vlgmr.msra.gmra.mxu2 %v7833_v38 }
 0x735   : > { %v7788_v32 = vpop.f32.mrf.mxu2  ;;  %v7801_v6 = vpop.f32.mrf.mxu3 }
 0x736   : > { %v7789_v12 = vadd.f32 %v7788_v32, %v7404_v50 }
 0x738   : > { %v7802_v20 = vadd.f32 %v7801_v6, %v7789_v12  ;;  %v7816_v37 = vpop.f32.mrf.mxu0  ;;  %v7829_v13 = vpop.f32.mrf.mxu1 }
 0x73a   : > { %v7815_v62 = vadd.f32 %v7814_v33, %v7802_v20 }
 0x73c   : > { %v7828_v58 = vadd.f32 %v7827_v48, %v7815_v62 }
 0x73d   : > { %v7790_v2 = vpop.f32.mrf.mxu2  ;;  %v7803_v46 = vpop.f32.mrf.mxu3 }
 0x73e   : > { %v7832_v45 = vmax.f32 %v7828_v58, 0.0 }
 0x740   : > { %v7834_v9 = vpack.c.bf16 %v7832_v45, %v7832_v45 }
 0x742   : > { %7988 = vmatmul.bf16.vlgmr.msra.gmra.mxu3 %v7834_v9 }
 0x7b5   : > { %v7976_v60 = vpop.f32.mrf.mxu2 }
 0x7b6   : > { %v7977_v14 = vadd.f32 %v12617_v53, %v7976_v60 }
 0x7bd   : > { %v7978_v21 = vpop.f32.mrf.mxu2 }
 0x7c5   : > { %v7989_v30 = vpop.f32.mrf.mxu3 }
 0x7c6   : > { %v7990_v4 = vadd.f32 %v7989_v30, %v7977_v14 }
 0x7c8   : > { %v7993_v54 = vadd.f32 %v7990_v4, %v15058_v22 }
 0x7ca   : > { %7994 = vst [vmem:[#allocation33] sm:$0xff] %v7993_v54 }
 0x7cd   : > { %v7991_v10 = vpop.f32.mrf.mxu3 }
 0x7ce PF: > { %s15692_s12 = sld [smem:[#allocation49_spill]]  ;;  %s13358_s28 = smov [#allocation33]  }
 0x7cf   : > { %s15693_s18 = sld [smem:[#allocation78_spill]]  ;;  %s8003_s4 = sshll.u32 %s13358_s28, 4  ;;  %s8004_s4 = int_to_ptr.vmem [resolvable:$true] %s8003_s4 }
 0x7d4   : > { %p12491_p3 = scmp.eq.s32.totalorder %s15692_s12, 3 }
 0x7d5   : > { %s8005_s2 = sshll.u32 %s15693_s18, 4  ;;  %s8006_s2 = int_to_ptr.hbm [resolvable:$true] %s8005_s2 }
 0x7d6   : > { %12396 = dma.vmem_to_hbm [thread:$0]  (%p12491_p3), %s8004_s4, 128, %s8006_s2, [#allocation6]  }
 0x7d7   : > { %13286 = dma.done.wait (%p12491_p3), [#allocation6], 128  }
 0x7d8   : > { %13288 = vsyncadd (%p12491_p3), [#allocation6], 4294967168 }
 0x7d9 PF: > { %s41_s22 = sadd.s32 1, %s13311_s22   ;;  %s15694_s0 = sld [smem:[#allocation46_spill]] }
 0x7da   : > { %p38_p4 = scmp.ge.s32.totalorder %s41_s22, 6   ;;  %s15695_s30 = sld [smem:[#allocation47_spill]] }
 0x7db   : > { %s15696_s20 = sld [smem:[#allocation52_spill]]  ;;  %s15698_s21 = smov %s13307_s1 }
 0x7dc   : > { %s15697_s29 = sld [smem:[#allocation50_spill]] }
 0x7de   :  { %40 = sbr.rel (!%p38_p4) target bundleno = 29 (0x1d), region = 229 }
 0x7e2   : > { %s15699_s1 = smov %s15697_s29 }
 0x7e3   :  { %8019 = vsyncpa [#allocation5], 1 }
 0x7e4   :  { %8021 = vsyncpa [#allocation5 + $0x1], 1 }
 0x7e5   :  { %8022 = vsyncpa [#allocation8], 1 }
 0x7e6   :  { %8023 = vsyncpa [#allocation13], 1 }
 0x7e7   :  { %8024 = vsyncpa [#allocation16], 1 }
 0x7e8   :  { %8025 = vsyncpa [#allocation19], 1 }
 0x7e9   :  { %8026 = vsyncpa [#allocation22], 1 }
 0x7ea   :  { %8027 = vsyncpa [#allocation25], 1 }
 0x7eb   :  { %8028 = vsyncpa [#allocation28], 1 }
 0x7ec   :  { %8029 = vsyncpa [#allocation31], 1 }
 0x7ed   :  { %8030 = vsyncpa [#allocation6], 1 }
 0x7ee   :  { %8032 = vsyncpa [#allocation6 + $0x1], 1 }

</bundles_post_ra>
